<compile_context>
chip_gen: v6e
topology: v6e:2x2x1
jax: 0.10.0
libtpu: 0.0.40
codegen_flags: <defaults>
</compile_context>

<pallas_src>
import functools

import jax
import jax.numpy as jnp
import numpy as np
from jax.experimental import pallas as pl
from jax.experimental.pallas import tpu as pltpu


def _round_up(x, m):
    return ((x + m - 1) // m) * m


# ----------------------------- Pallas kernel -------------------------------


def _fused_matmul_bias_kernel(x_ref, w_ref, b_ref, o_ref):
    """Single fused head matmul + bias.

    x_ref: (Mtot, Kmax)  bf16  row-stacked, K-padded im2col slabs (all sources)
    w_ref: (Kmax, Ntot)  bf16  BN-folded [loc||conf] weights, per-source N
                               blocks zero-padded to multiples of 128
    b_ref: (1, Ntot)     f32   folded BN bias (zero in padded lanes)
    o_ref: (Mtot, Ntot)  f32
    """
    acc = jnp.dot(x_ref[...], w_ref[...], preferred_element_type=jnp.float32)
    o_ref[...] = acc + b_ref[...]


def fused_matmul_bias_pallas(x2col, w, b):
    """One launch: (Mtot, Kmax) x (Kmax, Ntot) + bias, everything in VMEM."""
    M = x2col.shape[0]
    N = w.shape[1]
    # No grid: whole operands are copied into VMEM once (single block, no
    # pipeline machinery / per-step overhead).  Footprint is ~5 MB at these
    # shapes, well under every generation's VMEM budget (incl. v7x 64 MiB).
    # TODO(synk): at real SSD feature-map sizes this must be M-tiled with a
    # grid and the 9-tap expansion moved in-kernel (im2col slab is 9x bytes).
    return pl.pallas_call(
        _fused_matmul_bias_kernel,
        out_shape=jax.ShapeDtypeStruct((M, N), jnp.float32),
        compiler_params=pltpu.CompilerParams(
            vmem_limit_bytes=32 * 1024 * 1024),
    )(x2col, w, b)


# --------------------------- JAX-side plumbing ------------------------------


def _im2col_3x3(x_nhwc):
    """SAME-padded 3x3 im2col. Returns (B*H*W, 9*Cin), tap order kh*3+kw with
    channel minor — matches w_hwio.reshape(9*Cin, Cout) flattening."""
    B, H, W, Cin = x_nhwc.shape
    xp = jnp.pad(x_nhwc, ((0, 0), (1, 1), (1, 1), (0, 0)))
    cols = [xp[:, kh:kh + H, kw:kw + W, :] for kh in range(3) for kw in range(3)]
    x2 = jnp.concatenate(cols, axis=-1)          # (B, H, W, 9*Cin)
    return x2.reshape(B * H * W, 9 * Cin)


def _head_forward(w, b, sources_nchw, priors, *, meta, kmax, num_classes):
    """meta: tuple of (Cloc, Cconf, H, W, n_off) per source (static)."""
    # Build the row-stacked, K-padded bf16 im2col slab for ALL sources.
    rows = []
    for x_nchw, (_, _, H, W, _) in zip(sources_nchw, meta):
        x_nhwc = jnp.transpose(x_nchw, (0, 2, 3, 1)).astype(jnp.bfloat16)
        x2 = _im2col_3x3(x_nhwc)                             # (B*H*W, 9*Cin)
        x2 = jnp.pad(x2, ((0, 0), (0, kmax - x2.shape[1])))  # -> (B*H*W, Kmax)
        rows.append(x2)
    x_all = jnp.concatenate(rows, axis=0)                    # (Mtot, Kmax)

    # Single fused Pallas launch for every loc/conf head of every source.
    y = fused_matmul_bias_pallas(x_all, w, b)                # (Mtot, Ntot) f32

    # Slice valid per-source blocks; matches torch
    # permute(0,2,3,1).contiguous().view(B, -1) then cat over sources.
    loc_flat, conf_flat = [], []
    r_off = 0
    for x_nchw, (Cloc, Cconf, H, W, n_off) in zip(sources_nchw, meta):
        B = x_nchw.shape[0]
        Mi = B * H * W
        yi = y[r_off:r_off + Mi].reshape(B, H * W, -1)
        loc_flat.append(yi[..., n_off:n_off + Cloc].reshape(B, -1))
        conf_flat.append(
            yi[..., n_off + Cloc:n_off + Cloc + Cconf].reshape(B, -1))
        r_off += Mi
    loc = jnp.concatenate(loc_flat, axis=1)
    conf = jnp.concatenate(conf_flat, axis=1)
    B = loc.shape[0]
    return (loc.reshape(B, -1, 4),
            conf.reshape(B, -1, num_classes),
            priors)


# ------------------------- Parameter construction --------------------------


def make_convbn_params(key, cin, cout):
    """Deterministic Conv (no bias) + BatchNorm params, BN folded to scale/bias.

    Note: BN is folded with running statistics (inference semantics)."""
    kw_, kg, kb, km, kv = jax.random.split(key, 5)
    w_hwio = 0.05 * jax.random.normal(kw_, (3, 3, cin, cout), jnp.float32)
    gamma = 1.0 + 0.1 * jax.random.normal(kg, (cout,), jnp.float32)
    beta = 0.1 * jax.random.normal(kb, (cout,), jnp.float32)
    run_mean = 0.1 * jax.random.normal(km, (cout,), jnp.float32)
    run_var = 1.0 + jnp.abs(jax.random.normal(kv, (cout,), jnp.float32))
    eps = 1e-5
    scale = gamma / jnp.sqrt(run_var + eps)
    bias = beta - run_mean * scale
    return {"w": w_hwio, "scale": scale, "bias": bias}


class SSDMobileNetV2HeadPallas:
    """Pallas re-implementation of SSD_MobileNetV2_HEAD.forward (phase='train')."""

    def __init__(self, source_channels, source_spatial, cfg, num_classes, key):
        assert len(source_channels) == len(cfg) == len(source_spatial)
        self.num_classes = num_classes
        self.cfg = cfg
        keys = jax.random.split(key, 2 * len(source_channels) + 1)

        self.loc_params = []    # raw (unfolded) params, kept for reference check
        self.conf_params = []

        # Common padded contraction dim across sources (multiple of 128).
        kmax = _round_up(max(9 * c for c in source_channels), 128)
        self.kmax = kmax

        w_blocks, b_blocks, meta = [], [], []
        n_off = 0
        for i, (cin, (H, W)) in enumerate(zip(source_channels, source_spatial)):
            lp = make_convbn_params(keys[2 * i], cin, cfg[i] * 4)
            cp = make_convbn_params(keys[2 * i + 1], cin, cfg[i] * num_classes)
            self.loc_params.append(lp)
            self.conf_params.append(cp)

            Cloc = cfg[i] * 4
            Cconf = cfg[i] * num_classes
            Ntot = Cloc + Cconf
            Npad = _round_up(Ntot, 128)              # lane-dense output block

            # Fold BN scale into weights (one-time, host side), loc||conf.
            wl = lp["w"] * lp["scale"]                      # (3,3,Cin,Cloc)
            wc = cp["w"] * cp["scale"]                      # (3,3,Cin,Cconf)
            w_cat = jnp.concatenate([wl, wc], axis=-1).reshape(9 * cin, Ntot)
            b_cat = jnp.concatenate([lp["bias"], cp["bias"]])

            w_blk = jnp.zeros((kmax, Npad), jnp.float32)
            w_blk = w_blk.at[:9 * cin, :Ntot].set(w_cat)
            b_blk = jnp.zeros((Npad,), jnp.float32).at[:Ntot].set(b_cat)

            w_blocks.append(w_blk)
            b_blocks.append(b_blk)
            meta.append((Cloc, Cconf, H, W, n_off))
            n_off += Npad

        # Fused weights for the single Pallas launch: bf16 operands, f32 bias.
        self.w_fused = jnp.concatenate(w_blocks, axis=1).astype(jnp.bfloat16)
        self.b_fused = jnp.concatenate(b_blocks)[None, :]   # (1, Ntot) f32
        self.layer_meta = tuple(meta)

        # Synthetic deterministic priors (PriorBox stand-in): (total_anchors, 4).
        # TODO(synk): PriorBox / test-phase Detect+softmax path not implemented
        # (phase='train' branch only).
        total = sum(h * w * c for (h, w), c in zip(source_spatial, cfg))
        self.priors = jax.random.uniform(keys[-1], (total, 4), jnp.float32)

        self._forward = jax.jit(functools.partial(
            _head_forward, meta=self.layer_meta, kmax=kmax,
            num_classes=num_classes))

    def __call__(self, sources_nchw):
        return self._forward(self.w_fused, self.b_fused,
                             list(sources_nchw), self.priors)


# ------------------------------ Reference -----------------------------------


def convbn_ref(x_nhwc, w_hwio, scale, bias):
    y = jax.lax.conv_general_dilated(
        x_nhwc, w_hwio, window_strides=(1, 1), padding="SAME",
        dimension_numbers=("NHWC", "HWIO", "NHWC"))
    return y * scale + bias


# -------------------------------- Main ---------------------------------------


if __name__ == "__main__":
    key = jax.random.PRNGKey(0)
    num_classes = 21          # VOC
    cfg = [4, 6, 6]           # anchors per location for each source
    # SSD head sources (NCHW): decreasing spatial resolution
    source_shapes_nchw = [(2, 32, 16, 16), (2, 48, 8, 8), (2, 32, 8, 8)]
    source_channels = [s[1] for s in source_shapes_nchw]
    source_spatial = [(s[2], s[3]) for s in source_shapes_nchw]

    k_head, *k_srcs = jax.random.split(key, 1 + len(source_shapes_nchw))
    sources = [jax.random.normal(k, s, jnp.float32)
               for k, s in zip(k_srcs, source_shapes_nchw)]

    head = SSDMobileNetV2HeadPallas(
        source_channels, source_spatial, cfg, num_classes, k_head)

    loc, conf, priors = head(sources)
    jax.block_until_ready((loc, conf, priors))

    # Shape checks (match the PyTorch module's train-phase output contract).
    total_anchors = sum(h * w * c for (h, w), c in zip(source_spatial, cfg))
    assert loc.shape == (2, total_anchors, 4), loc.shape
    assert conf.shape == (2, total_anchors, num_classes), conf.shape
    assert priors.shape == (total_anchors, 4), priors.shape

    # Numerical check of the fused bf16-operand Pallas path against a pure-JAX
    # f32 conv reference following the exact torch flattening/concat order.
    loc_ref_flat, conf_ref_flat = [], []
    for x_nchw, lp, cp in zip(sources, head.loc_params, head.conf_params):
        B = x_nchw.shape[0]
        x_nhwc = jnp.transpose(x_nchw, (0, 2, 3, 1))
        l = convbn_ref(x_nhwc, lp["w"], lp["scale"], lp["bias"])  # (B,H,W,Cloc)
        c = convbn_ref(x_nhwc, cp["w"], cp["scale"], cp["bias"])  # (B,H,W,Cconf)
        loc_ref_flat.append(l.reshape(B, -1))
        conf_ref_flat.append(c.reshape(B, -1))
    B = sources[0].shape[0]
    loc_ref = jnp.concatenate(loc_ref_flat, axis=1).reshape(B, -1, 4)
    conf_ref = jnp.concatenate(conf_ref_flat, axis=1).reshape(B, -1, num_classes)
    # bf16 operands (f32 accumulation) -> relax tolerance vs. the f32 reference.
    np.testing.assert_allclose(np.asarray(loc), np.asarray(loc_ref),
                               rtol=2e-2, atol=2e-2)
    np.testing.assert_allclose(np.asarray(conf), np.asarray(conf_ref),
                               rtol=2e-2, atol=2e-2)

    print("KERNEL_OK")
</pallas_src>

<mosaic_0001>
module attributes {stable_mosaic.version = 11 : i64} {
  func.func @_fused_matmul_bias_kernel(%arg0: memref<768x512xbf16, #tpu.memory_space<vmem>>, %arg1: memref<512x640xbf16, #tpu.memory_space<vmem>>, %arg2: memref<1x640xf32, #tpu.memory_space<vmem>>, %arg3: memref<768x640xf32, #tpu.memory_space<vmem>>) attributes {dimension_semantics = [], scalar_prefetch = 0 : i64, scratch_operands = 0 : i64, tpu.core_type = #tpu.core_type<tc>} {
    %c0 = arith.constant 0 : index
    %c0_0 = arith.constant 0 : index
    %0 = vector.load %arg0[%c0, %c0_0] : memref<768x512xbf16, #tpu.memory_space<vmem>>, vector<768x512xbf16>
    %c0_1 = arith.constant 0 : index
    %c0_2 = arith.constant 0 : index
    %1 = vector.load %arg1[%c0_1, %c0_2] : memref<512x640xbf16, #tpu.memory_space<vmem>>, vector<512x640xbf16>
    %cst = arith.constant dense<0.000000e+00> : vector<768x640xf32>
    %2 = tpu.matmul %0, %1, %cst {dimension_numbers = #tpu.dot_dimension_numbers<[1], [0], [0], [1], [0, 0, 1, 1], [], []>} : vector<768x512xbf16>, vector<512x640xbf16>, vector<768x640xf32> -> vector<768x640xf32>
    %c0_3 = arith.constant 0 : index
    %c0_4 = arith.constant 0 : index
    %3 = vector.load %arg2[%c0_3, %c0_4] : memref<1x640xf32, #tpu.memory_space<vmem>>, vector<1x640xf32>
    %4 = vector.broadcast %3 : vector<1x640xf32> to vector<768x640xf32>
    %5 = arith.addf %2, %4 : vector<768x640xf32>
    %c0_5 = arith.constant 0 : index
    %c0_6 = arith.constant 0 : index
    %6 = vector.load %arg3[%c0_5, %c0_6] : memref<768x640xf32, #tpu.memory_space<vmem>>, vector<768x640xf32>
    tpu.vector_store %arg3[%c0_5, %c0_6], %5 {strides = array<i32>} : memref<768x640xf32, #tpu.memory_space<vmem>>, vector<768x640xf32>,
    return
  }
}

</mosaic_0001>

<bundles_post_ra>
// kernel: _head_forward.1
= control target key start
LH: loop header
LB: loop body
LE: loop exit
PB: predicated region body
PF: predicated region fallthrough
CT: control target
= control target key end

     0   :  { %s11046_s1 = inlined_call_operand.vmem [shape: bf16[512,640], index: 1, kind: input, shape index: {}]   ;;  %s11047_s0 = inlined_call_operand.vmem [shape: bf16[768,512], index: 0, kind: input, shape index: {}]   ;;  %s11048_s2 = inlined_call_operand.vmem [shape: f32[1,640], index: 2, kind: input, shape index: {}]   ;;  %s11049_s3 = inlined_call_operand.vmem [shape: f32[768,640], index: 3, kind: output, shape index: {}]  }
   0x1   :  { %v5941_v0 = vld [vmem:[%s11046_s1 + $0x11c] ss:$20 sps:$4 sm:$0xff]   ;;  %v5945_v2 = vld [vmem:[%s11046_s1 + $0x118] ss:$20 sps:$4 sm:$0xff]   ;;  %v5947_v4 = vld [vmem:[%s11046_s1 + $0xf4] ss:$20 sps:$4 sm:$0xff]  }
   0x2   :  { %v5943_v1 = vld [vmem:[%s11046_s1 + $0x39c] ss:$20 sps:$4 sm:$0xff]   ;;  %2218 = vmatprep.subr.bf16.mxu0 %v5941_v0  ;;  %v5946_v3 = vld [vmem:[%s11046_s1 + $0x398] ss:$20 sps:$4 sm:$0xff]   ;;  %v5949_v5 = vld [vmem:[%s11046_s1 + $0x374] ss:$20 sps:$4 sm:$0xff]  }
   0x3   :  { %2731 = vmatprep.subr.bf16.mxu1 %v5943_v1  ;;  %2219 = vmatpush1.bf16.msra.mxu0 %v5945_v2  ;;  %v5951_v6 = vld [vmem:[%s11046_s1 + $0xf0] ss:$20 sps:$4 sm:$0xff]   ;;  %v5953_v8 = vld [vmem:[%s11046_s1 + $0xcc] ss:$20 sps:$4 sm:$0xff]   ;;  %v5957_v10 = vld [vmem:[%s11046_s1 + $0xc8] ss:$20 sps:$4 sm:$0xff]  }
   0x4   :  { %2732 = vmatpush1.bf16.msra.mxu1 %v5946_v3  ;;  %2220 = vmatprep.subr.bf16.mxu0 %v5947_v4  ;;  %v5952_v7 = vld [vmem:[%s11046_s1 + $0x370] ss:$20 sps:$4 sm:$0xff]   ;;  %v5955_v9 = vld [vmem:[%s11046_s1 + $0x34c] ss:$20 sps:$4 sm:$0xff]   ;;  %v5958_v11 = vld [vmem:[%s11046_s1 + $0x348] ss:$20 sps:$4 sm:$0xff]  }
   0x5   :  { %2733 = vmatprep.subr.bf16.mxu1 %v5949_v5  ;;  %v5959_v12 = vld [vmem:[%s11046_s1 + $0xa4] ss:$20 sps:$4 sm:$0xff]   ;;  %v5963_v14 = vld [vmem:[%s11046_s1 + $0xa0] ss:$20 sps:$4 sm:$0xff]   ;;  %v5965_v16 = vld [vmem:[%s11046_s1 + $0x7c] ss:$20 sps:$4 sm:$0xff]  }
   0x6   :  { %v5961_v13 = vld [vmem:[%s11046_s1 + $0x324] ss:$20 sps:$4 sm:$0xff]   ;;  %v5964_v15 = vld [vmem:[%s11046_s1 + $0x320] ss:$20 sps:$4 sm:$0xff]   ;;  %v5967_v17 = vld [vmem:[%s11046_s1 + $0x2fc] ss:$20 sps:$4 sm:$0xff]  }
   0x7   :  { %2221 = vmatpush1.bf16.msra.mxu0 %v5951_v6  ;;  %v5969_v18 = vld [vmem:[%s11046_s1 + $0x78] ss:$20 sps:$4 sm:$0xff]   ;;  %v5971_v20 = vld [vmem:[%s11046_s1 + $0x54] ss:$20 sps:$4 sm:$0xff]   ;;  %v5975_v22 = vld [vmem:[%s11046_s1 + $0x50] ss:$20 sps:$4 sm:$0xff]  }
   0x8   :  { %2734 = vmatpush1.bf16.msra.mxu1 %v5952_v7  ;;  %2222 = vmatprep.subr.bf16.mxu0 %v5953_v8  ;;  %v5970_v19 = vld [vmem:[%s11046_s1 + $0x2f8] ss:$20 sps:$4 sm:$0xff]   ;;  %v5973_v21 = vld [vmem:[%s11046_s1 + $0x2d4] ss:$20 sps:$4 sm:$0xff]   ;;  %v5976_v23 = vld [vmem:[%s11046_s1 + $0x2d0] ss:$20 sps:$4 sm:$0xff]  }
   0x9   :  { %2735 = vmatprep.subr.bf16.mxu1 %v5955_v9  ;;  %v5977_v24 = vld [vmem:[%s11046_s1 + $0x2c] ss:$20 sps:$4 sm:$0xff]   ;;  %v5981_v26 = vld [vmem:[%s11046_s1 + $0x28] ss:$20 sps:$4 sm:$0xff]   ;;  %v5983_v28 = vld [vmem:[%s11046_s1 + $0x4] ss:$20 sps:$4 sm:$0xff]  }
   0xa   :  { %v5979_v25 = vld [vmem:[%s11046_s1 + $0x2ac] ss:$20 sps:$4 sm:$0xff]   ;;  %v5982_v27 = vld [vmem:[%s11046_s1 + $0x2a8] ss:$20 sps:$4 sm:$0xff]   ;;  %v5985_v29 = vld [vmem:[%s11046_s1 + $0x284] ss:$20 sps:$4 sm:$0xff]  }
   0xb   :  { %2223 = vmatpush1.bf16.msra.mxu0 %v5957_v10  ;;  %v5987_v30 = vld [vmem:[%s11046_s1] ss:$20 sps:$4 sm:$0xff]   ;;  %v5989_v32 = vld [vmem:[%s11046_s1 + $0x25c] ss:$20 sps:$4 sm:$0xff]   ;;  %v5993_v34 = vld [vmem:[%s11046_s1 + $0x258] ss:$20 sps:$4 sm:$0xff]  }
   0xc   :  { %2736 = vmatpush1.bf16.msra.mxu1 %v5958_v11  ;;  %2224 = vmatprep.subr.bf16.mxu0 %v5959_v12  ;;  %v5988_v31 = vld [vmem:[%s11046_s1 + $0x280] ss:$20 sps:$4 sm:$0xff]   ;;  %v5991_v33 = vld [vmem:[%s11046_s1 + $0x4dc] ss:$20 sps:$4 sm:$0xff]   ;;  %v5994_v35 = vld [vmem:[%s11046_s1 + $0x4d8] ss:$20 sps:$4 sm:$0xff]  }
   0xd   :  { %2737 = vmatprep.subr.bf16.mxu1 %v5961_v13  ;;  %v5995_v36 = vld [vmem:[%s11046_s1 + $0x234] ss:$20 sps:$4 sm:$0xff]   ;;  %v5999_v38 = vld [vmem:[%s11046_s1 + $0x230] ss:$20 sps:$4 sm:$0xff]   ;;  %v6001_v40 = vld [vmem:[%s11046_s1 + $0x20c] ss:$20 sps:$4 sm:$0xff]  }
   0xe   :  { %v5997_v37 = vld [vmem:[%s11046_s1 + $0x4b4] ss:$20 sps:$4 sm:$0xff]   ;;  %v6000_v39 = vld [vmem:[%s11046_s1 + $0x4b0] ss:$20 sps:$4 sm:$0xff]   ;;  %v6003_v41 = vld [vmem:[%s11046_s1 + $0x48c] ss:$20 sps:$4 sm:$0xff]  }
   0xf   :  { %2225 = vmatpush1.bf16.msra.mxu0 %v5963_v14  ;;  %v6005_v42 = vld [vmem:[%s11046_s1 + $0x208] ss:$20 sps:$4 sm:$0xff]   ;;  %v6007_v44 = vld [vmem:[%s11046_s1 + $0x1e4] ss:$20 sps:$4 sm:$0xff]   ;;  %v6011_v46 = vld [vmem:[%s11046_s1 + $0x1e0] ss:$20 sps:$4 sm:$0xff]  }
  0x10   :  { %2738 = vmatpush1.bf16.msra.mxu1 %v5964_v15  ;;  %2226 = vmatprep.subr.bf16.mxu0 %v5965_v16  ;;  %v6006_v43 = vld [vmem:[%s11046_s1 + $0x488] ss:$20 sps:$4 sm:$0xff]   ;;  %v6009_v45 = vld [vmem:[%s11046_s1 + $0x464] ss:$20 sps:$4 sm:$0xff]   ;;  %v6012_v47 = vld [vmem:[%s11046_s1 + $0x460] ss:$20 sps:$4 sm:$0xff]  }
  0x11   :  { %2739 = vmatprep.subr.bf16.mxu1 %v5967_v17  ;;  %v6037_v48 = vld [vmem:[%s11047_s0 + $0x4] ss:$16 sps:$4 sm:$0xff]   ;;  %v6013_v49 = vld [vmem:[%s11046_s1 + $0x1bc] ss:$20 sps:$4 sm:$0xff]   ;;  %v6017_v52 = vld [vmem:[%s11046_s1 + $0x1b8] ss:$20 sps:$4 sm:$0xff]  }
  0x12   :  { %v6039_v50 = vld [vmem:[%s11047_s0 + $0xc] ss:$16 sps:$4 sm:$0xff]   ;;  %2250 = vmatprep.mubr.bf16.mxu0 %v6037_v48  ;;  %v6019_v54 = vld [vmem:[%s11046_s1 + $0x194] ss:$20 sps:$4 sm:$0xff]   ;;  %v6023_v56 = vld [vmem:[%s11046_s1 + $0x190] ss:$20 sps:$4 sm:$0xff]  }
  0x13   :  { %2227 = vmatpush1.bf16.msra.mxu0 %v5969_v18  ;;  %v6015_v51 = vld [vmem:[%s11046_s1 + $0x43c] ss:$20 sps:$4 sm:$0xff]   ;;  %2763 = vmatprep.mubr.bf16.mxu1 %v6039_v50  ;;  %v6018_v53 = vld [vmem:[%s11046_s1 + $0x438] ss:$20 sps:$4 sm:$0xff]   ;;  %v6021_v55 = vld [vmem:[%s11046_s1 + $0x414] ss:$20 sps:$4 sm:$0xff]  }
  0x14   :  { %2740 = vmatpush1.bf16.msra.mxu1 %v5970_v19  ;;  %2228 = vmatprep.subr.bf16.mxu0 %v5971_v20  ;;  %v6024_v57 = vld [vmem:[%s11046_s1 + $0x410] ss:$20 sps:$4 sm:$0xff]   ;;  %v6025_v58 = vld [vmem:[%s11046_s1 + $0x16c] ss:$20 sps:$4 sm:$0xff]   ;;  %v6029_v60 = vld [vmem:[%s11046_s1 + $0x168] ss:$20 sps:$4 sm:$0xff]  }
  0x15   :  { %2741 = vmatprep.subr.bf16.mxu1 %v5973_v21  ;;  %v6027_v59 = vld [vmem:[%s11046_s1 + $0x3ec] ss:$20 sps:$4 sm:$0xff]   ;;  %v6030_v61 = vld [vmem:[%s11046_s1 + $0x3e8] ss:$20 sps:$4 sm:$0xff]   ;;  %v6031_v62 = vld [vmem:[%s11046_s1 + $0x144] ss:$20 sps:$4 sm:$0xff]  }
  0x16   :  { %v6033_v63 = vld [vmem:[%s11046_s1 + $0x3c4] ss:$20 sps:$4 sm:$0xff]   ;;  %v6035_v0 = vld [vmem:[%s11046_s1 + $0x140] ss:$20 sps:$4 sm:$0xff]   ;;  %v6051_v9 = vld [vmem:[%s11047_s0 + $0x2c] ss:$16 sps:$4 sm:$0xff]  }
  0x17   :  { %2229 = vmatpush1.bf16.msra.mxu0 %v5975_v22  ;;  %v6036_v1 = vld [vmem:[%s11046_s1 + $0x3c0] ss:$20 sps:$4 sm:$0xff]   ;;  %v6045_v2 = vld [vmem:[%s11046_s1 + $0x124] ss:$20 sps:$4 sm:$0xff]   ;;  %v6069_v10 = vld [vmem:[%s11046_s1 + $0xfc] ss:$20 sps:$4 sm:$0xff]  }
  0x18   :  { %2742 = vmatpush1.bf16.msra.mxu1 %v5976_v23  ;;  %2230 = vmatprep.subr.bf16.mxu0 %v5977_v24  ;;  %v6048_v3 = vld [vmem:[%s11046_s1 + $0x3a4] ss:$20 sps:$4 sm:$0xff]   ;;  %v6041_v4 = vld [vmem:[%s11047_s0] ss:$16 sps:$4 sm:$0xff]   ;;  %v6093_v14 = vld [vmem:[%s11046_s1 + $0xd4] ss:$20 sps:$4 sm:$0xff]  }
  0x19   :  { %2743 = vmatprep.subr.bf16.mxu1 %v5979_v25  ;;  %v6042_v5 = vld [vmem:[%s11047_s0 + $0x8] ss:$16 sps:$4 sm:$0xff]   ;;  %v6043_v6 = vld [vmem:[%s11046_s1 + $0x120] ss:$20 sps:$4 sm:$0xff]   ;;  %v6072_v11 = vld [vmem:[%s11046_s1 + $0x37c] ss:$20 sps:$4 sm:$0xff]  }
  0x1a   :  { %v6046_v7 = vld [vmem:[%s11046_s1 + $0x3a0] ss:$20 sps:$4 sm:$0xff]   ;;  %v6067_v12 = vld [vmem:[%s11046_s1 + $0xf8] ss:$20 sps:$4 sm:$0xff]   ;;  %v6091_v20 = vld [vmem:[%s11046_s1 + $0xd0] ss:$20 sps:$4 sm:$0xff]  }
  0x1b   :  { %2231 = vmatpush1.bf16.msra.mxu0 %v5981_v26  ;;  %v6049_v8 = vld [vmem:[%s11047_s0 + $0x24] ss:$16 sps:$4 sm:$0xff]   ;;  %v6070_v13 = vld [vmem:[%s11046_s1 + $0x378] ss:$20 sps:$4 sm:$0xff]   ;;  %v6053_v16 = vld [vmem:[%s11047_s0 + $0x20] ss:$16 sps:$4 sm:$0xff]  }
  0x1c   :  { %2744 = vmatpush1.bf16.msra.mxu1 %v5982_v27  ;;  %2232 = vmatprep.subr.bf16.mxu0 %v5983_v28  ;;  %v6096_v15 = vld [vmem:[%s11046_s1 + $0x354] ss:$20 sps:$4 sm:$0xff]   ;;  %v6057_v19 = vld [vmem:[%s11047_s0 + $0x4c] ss:$16 sps:$4 sm:$0xff]   ;;  %v6094_v21 = vld [vmem:[%s11046_s1 + $0x350] ss:$20 sps:$4 sm:$0xff]  }
  0x1d   :  { %2745 = vmatprep.subr.bf16.mxu1 %v5985_v29  ;;  %v6054_v17 = vld [vmem:[%s11047_s0 + $0x28] ss:$16 sps:$4 sm:$0xff]   ;;  %v6055_v18 = vld [vmem:[%s11047_s0 + $0x44] ss:$16 sps:$4 sm:$0xff]   ;;  %v6059_v22 = vld [vmem:[%s11047_s0 + $0x40] ss:$16 sps:$4 sm:$0xff]  }
  0x1e   :  { %v6060_v23 = vld [vmem:[%s11047_s0 + $0x48] ss:$16 sps:$4 sm:$0xff]   ;;  %v6061_v24 = vld [vmem:[%s11047_s0 + $0x64] ss:$16 sps:$4 sm:$0xff]   ;;  %v6117_v26 = vld [vmem:[%s11046_s1 + $0xac] ss:$20 sps:$4 sm:$0xff]  }
  0x1f   :  { %2233 = vmatpush1.bf16.msra.mxu0 %v5987_v30  ;;  %v6115_v25 = vld [vmem:[%s11046_s1 + $0xa8] ss:$20 sps:$4 sm:$0xff]   ;;  %v6120_v28 = vld [vmem:[%s11046_s1 + $0x32c] ss:$20 sps:$4 sm:$0xff]   ;;  %v6085_v48 = vld [vmem:[%s11047_s0 + $0xc4] ss:$16 sps:$4 sm:$0xff]  }
  0x20   :  { %2746 = vmatpush1.bf16.msra.mxu1 %v5988_v31  ;;  %2234 = vmatprep.subr.bf16.mxu0 %v5989_v32  ;;  %v6118_v27 = vld [vmem:[%s11046_s1 + $0x328] ss:$20 sps:$4 sm:$0xff]   ;;  %v6065_v30 = vld [vmem:[%s11047_s0 + $0x60] ss:$16 sps:$4 sm:$0xff]   ;;  %v6073_v32 = vld [vmem:[%s11047_s0 + $0x84] ss:$16 sps:$4 sm:$0xff]  }
  0x21   :  { %2747 = vmatprep.subr.bf16.mxu1 %v5991_v33  ;;  %v6063_v29 = vld [vmem:[%s11047_s0 + $0x6c] ss:$16 sps:$4 sm:$0xff]   ;;  %v6066_v31 = vld [vmem:[%s11047_s0 + $0x68] ss:$16 sps:$4 sm:$0xff]   ;;  %v6089_v50 = vld [vmem:[%s11047_s0 + $0xc0] ss:$16 sps:$4 sm:$0xff]  }
  0x22   :  { %v6075_v33 = vld [vmem:[%s11047_s0 + $0x8c] ss:$16 sps:$4 sm:$0xff]  }
  0x23   :  { %2235 = vmatpush2.bf16.msra.mxu0 %v5993_v34  ;;  %v6139_v34 = vld [vmem:[%s11046_s1 + $0x80] ss:$20 sps:$4 sm:$0xff]  }
  0x24   :  { %2748 = vmatpush2.bf16.msra.mxu1 %v5994_v35  ;;  %2236 = vmatprep.subr.bf16.mxu0 %v5995_v36  ;;  %v6141_v35 = vld [vmem:[%s11046_s1 + $0x84] ss:$20 sps:$4 sm:$0xff]   ;;  %v6142_v36 = vld [vmem:[%s11046_s1 + $0x300] ss:$20 sps:$4 sm:$0xff]  }
  0x25   :  { %2749 = vmatprep.subr.bf16.mxu1 %v5997_v37  ;;  %v6144_v37 = vld [vmem:[%s11046_s1 + $0x304] ss:$20 sps:$4 sm:$0xff]  }
  0x27   :  { %2237 = vmatpush2.bf16.msra.mxu0 %v5999_v38  ;;  %v6077_v38 = vld [vmem:[%s11047_s0 + $0x80] ss:$16 sps:$4 sm:$0xff]  }
  0x28   :  { %2750 = vmatpush2.bf16.msra.mxu1 %v6000_v39  ;;  %2238 = vmatprep.subr.bf16.mxu0 %v6001_v40  ;;  %v6078_v39 = vld [vmem:[%s11047_s0 + $0x88] ss:$16 sps:$4 sm:$0xff]   ;;  %v6079_v40 = vld [vmem:[%s11047_s0 + $0xa4] ss:$16 sps:$4 sm:$0xff]  }
  0x29   :  { %2751 = vmatprep.subr.bf16.mxu1 %v6003_v41  ;;  %v6081_v41 = vld [vmem:[%s11047_s0 + $0xac] ss:$16 sps:$4 sm:$0xff]  }
  0x2b   :  { %2239 = vmatpush2.bf16.msra.mxu0 %v6005_v42  ;;  %v6163_v42 = vld [vmem:[%s11046_s1 + $0x58] ss:$20 sps:$4 sm:$0xff]  }
  0x2c   :  { %2752 = vmatpush2.bf16.msra.mxu1 %v6006_v43  ;;  %2240 = vmatprep.subr.bf16.mxu0 %v6007_v44  ;;  %v6165_v43 = vld [vmem:[%s11046_s1 + $0x5c] ss:$20 sps:$4 sm:$0xff]   ;;  %v6166_v44 = vld [vmem:[%s11046_s1 + $0x2d8] ss:$20 sps:$4 sm:$0xff]  }
  0x2d   :  { %2753 = vmatprep.subr.bf16.mxu1 %v6009_v45  ;;  %v6168_v45 = vld [vmem:[%s11046_s1 + $0x2dc] ss:$20 sps:$4 sm:$0xff]  }
  0x2f   :  { %2241 = vmatpush2.bf16.msra.mxu0 %v6011_v46  ;;  %v6083_v46 = vld [vmem:[%s11047_s0 + $0xa0] ss:$16 sps:$4 sm:$0xff]  }
  0x30   :  { %2754 = vmatpush2.bf16.msra.mxu1 %v6012_v47  ;;  %2242 = vmatprep.subr.bf16.mxu0 %v6013_v49  ;;  %v6084_v47 = vld [vmem:[%s11047_s0 + $0xa8] ss:$16 sps:$4 sm:$0xff]   ;;  %v6087_v49 = vld [vmem:[%s11047_s0 + $0xcc] ss:$16 sps:$4 sm:$0xff]  }
  0x31   :  { %2755 = vmatprep.subr.bf16.mxu1 %v6015_v51  ;;  %v6090_v51 = vld [vmem:[%s11047_s0 + $0xc8] ss:$16 sps:$4 sm:$0xff]  }
  0x33   :  { %2243 = vmatpush2.bf16.msra.mxu0 %v6017_v52  ;;  %v6097_v52 = vld [vmem:[%s11047_s0 + $0xe4] ss:$16 sps:$4 sm:$0xff]  }
  0x34   :  { %2756 = vmatpush2.bf16.msra.mxu1 %v6018_v53  ;;  %2244 = vmatprep.subr.bf16.mxu0 %v6019_v54  ;;  %v6187_v53 = vld [vmem:[%s11046_s1 + $0x30] ss:$20 sps:$4 sm:$0xff]   ;;  %v6189_v54 = vld [vmem:[%s11046_s1 + $0x34] ss:$20 sps:$4 sm:$0xff]  }
  0x35   :  { %2757 = vmatprep.subr.bf16.mxu1 %v6021_v55  ;;  %v6190_v55 = vld [vmem:[%s11046_s1 + $0x2b0] ss:$20 sps:$4 sm:$0xff]  }
  0x37   :  { %2245 = vmatpush2.bf16.msra.mxu0 %v6023_v56  ;;  %v6192_v56 = vld [vmem:[%s11046_s1 + $0x2b4] ss:$20 sps:$4 sm:$0xff]  }
  0x38   :  { %2758 = vmatpush2.bf16.msra.mxu1 %v6024_v57  ;;  %2246 = vmatprep.subr.bf16.mxu0 %v6025_v58  ;;  %v6099_v57 = vld [vmem:[%s11047_s0 + $0xec] ss:$16 sps:$4 sm:$0xff]   ;;  %v6101_v58 = vld [vmem:[%s11047_s0 + $0xe0] ss:$16 sps:$4 sm:$0xff]  }
  0x39   :  { %2759 = vmatprep.subr.bf16.mxu1 %v6027_v59  ;;  %v6102_v59 = vld [vmem:[%s11047_s0 + $0xe8] ss:$16 sps:$4 sm:$0xff]  }
  0x3b   :  { %2247 = vmatpush2.bf16.msra.mxu0 %v6029_v60  ;;  %v6103_v60 = vld [vmem:[%s11047_s0 + $0x104] ss:$16 sps:$4 sm:$0xff]  }
  0x3c   :  { %2760 = vmatpush2.bf16.msra.mxu1 %v6030_v61  ;;  %2248 = vmatprep.subr.bf16.mxu0 %v6031_v62  ;;  %v6105_v61 = vld [vmem:[%s11047_s0 + $0x10c] ss:$16 sps:$4 sm:$0xff]  }
  0x3d   :  { %2761 = vmatprep.subr.bf16.mxu1 %v6033_v63  ;;  %v6211_v62 = vld [vmem:[%s11046_s1 + $0x8] ss:$20 sps:$4 sm:$0xff]   ;;  %v6213_v63 = vld [vmem:[%s11046_s1 + $0xc] ss:$20 sps:$4 sm:$0xff]  }
  0x3f   :  { %2249 = vmatpush2.bf16.msra.mxu0 %v6035_v0  ;;  %v6214_v0 = vld [vmem:[%s11046_s1 + $0x288] ss:$20 sps:$4 sm:$0xff]  }
  0x40   :  { %2762 = vmatpush2.bf16.msra.mxu1 %v6036_v1  ;;  %3244 = vmatprep.subr.bf16.mxu0 %v6045_v2  ;;  %v6216_v1 = vld [vmem:[%s11046_s1 + $0x28c] ss:$20 sps:$4 sm:$0xff]  }
  0x41   :  { %3757 = vmatprep.subr.bf16.mxu1 %v6048_v3  ;;  %v6107_v2 = vld [vmem:[%s11047_s0 + $0x100] ss:$16 sps:$4 sm:$0xff]   ;;  %v6108_v3 = vld [vmem:[%s11047_s0 + $0x108] ss:$16 sps:$4 sm:$0xff]  }
  0x42   :  { %2251 = vmatmul.mubr.bf16.vlgmr.msra.gmra.mxu0 %v6041_v4  ;;  %v6109_v4 = vld [vmem:[%s11047_s0 + $0x124] ss:$16 sps:$4 sm:$0xff]  }
  0x43   :  { %2764 = vmatmul.mubr.bf16.vlgmr.msra.gmra.mxu1 %v6042_v5  ;;  %3245 = vmatpush1.bf16.msra.mxu0 %v6043_v6  ;;  %v6111_v5 = vld [vmem:[%s11047_s0 + $0x12c] ss:$16 sps:$4 sm:$0xff]   ;;  %v6113_v6 = vld [vmem:[%s11047_s0 + $0x120] ss:$16 sps:$4 sm:$0xff]  }
  0x44   :  { %3758 = vmatpush1.bf16.msra.mxu1 %v6046_v7  ;;  %2260 = vmatprep.mubr.bf16.mxu0 %v6049_v8  ;;  %v6114_v7 = vld [vmem:[%s11047_s0 + $0x128] ss:$16 sps:$4 sm:$0xff]   ;;  %v6121_v8 = vld [vmem:[%s11047_s0 + $0x144] ss:$16 sps:$4 sm:$0xff]  }
  0x45   :  { %2773 = vmatprep.mubr.bf16.mxu1 %v6051_v9  ;;  %3246 = vmatprep.subr.bf16.mxu0 %v6069_v10  ;;  %v6123_v9 = vld [vmem:[%s11047_s0 + $0x14c] ss:$16 sps:$4 sm:$0xff]   ;;  %v6237_v10 = vld [vmem:[%s11046_s1 + $0x264] ss:$20 sps:$4 sm:$0xff]  }
  0x46   :  { %3759 = vmatprep.subr.bf16.mxu1 %v6072_v11  ;;  %v6235_v11 = vld [vmem:[%s11046_s1 + $0x260] ss:$20 sps:$4 sm:$0xff]  }
  0x47   :  { %3247 = vmatpush1.bf16.msra.mxu0 %v6067_v12  ;;  %v6238_v12 = vld [vmem:[%s11046_s1 + $0x4e0] ss:$20 sps:$4 sm:$0xff]  }
  0x48   :  { %3760 = vmatpush1.bf16.msra.mxu1 %v6070_v13  ;;  %3248 = vmatprep.subr.bf16.mxu0 %v6093_v14  ;;  %v6240_v13 = vld [vmem:[%s11046_s1 + $0x4e4] ss:$20 sps:$4 sm:$0xff]   ;;  %v6125_v14 = vld [vmem:[%s11047_s0 + $0x140] ss:$16 sps:$4 sm:$0xff]  }
  0x49   :  { %3761 = vmatprep.subr.bf16.mxu1 %v6096_v15  ;;  %v6126_v15 = vld [vmem:[%s11047_s0 + $0x148] ss:$16 sps:$4 sm:$0xff]  }
  0x4a   :  { %2261 = vmatmul.mubr.bf16.gmra.mxu0 %v6053_v16  ;;  %v6127_v16 = vld [vmem:[%s11047_s0 + $0x164] ss:$16 sps:$4 sm:$0xff]  }
  0x4b   :  { %2774 = vmatmul.mubr.bf16.gmra.mxu1 %v6054_v17  ;;  %2270 = vmatprep.mubr.bf16.mxu0 %v6055_v18  ;;  %v6129_v17 = vld [vmem:[%s11047_s0 + $0x16c] ss:$16 sps:$4 sm:$0xff]   ;;  %v6131_v18 = vld [vmem:[%s11047_s0 + $0x160] ss:$16 sps:$4 sm:$0xff]  }
  0x4c   :  { %2783 = vmatprep.mubr.bf16.mxu1 %v6057_v19  ;;  %3249 = vmatpush1.bf16.msra.mxu0 %v6091_v20  ;;  %v6132_v19 = vld [vmem:[%s11047_s0 + $0x168] ss:$16 sps:$4 sm:$0xff]   ;;  %v6133_v20 = vld [vmem:[%s11047_s0 + $0x184] ss:$16 sps:$4 sm:$0xff]  }
  0x4d   :  { %3762 = vmatpush1.bf16.msra.mxu1 %v6094_v21  ;;  %3250 = vmatprep.subr.bf16.mxu0 %v6117_v26  ;;  %v6135_v21 = vld [vmem:[%s11047_s0 + $0x18c] ss:$16 sps:$4 sm:$0xff]  }
  0x4e   :  { %3763 = vmatprep.subr.bf16.mxu1 %v6120_v28  ;;  %v6261_v26 = vld [vmem:[%s11046_s1 + $0x23c] ss:$20 sps:$4 sm:$0xff]   ;;  %v6262_v28 = vld [vmem:[%s11046_s1 + $0x4b8] ss:$20 sps:$4 sm:$0xff]  }
  0x50   :  { %3251 = vmatpush1.bf16.msra.mxu0 %v6115_v25  ;;  %v6147_v25 = vld [vmem:[%s11047_s0 + $0x1ac] ss:$16 sps:$4 sm:$0xff]  }
  0x51   :  { %3764 = vmatpush1.bf16.msra.mxu1 %v6118_v27  ;;  %3252 = vmatprep.subr.bf16.mxu0 %v6141_v35  ;;  %v6259_v27 = vld [vmem:[%s11046_s1 + $0x238] ss:$20 sps:$4 sm:$0xff]  }
  0x52   :  { %2271 = vmatmul.mubr.bf16.gmra.mxu0 %v6059_v22  ;;  %3765 = vmatprep.subr.bf16.mxu1 %v6144_v37  ;;  %v6137_v22 = vld [vmem:[%s11047_s0 + $0x180] ss:$16 sps:$4 sm:$0xff]   ;;  %v6156_v35 = vld [vmem:[%s11047_s0 + $0x1c8] ss:$16 sps:$4 sm:$0xff]   ;;  %v6159_v37 = vld [vmem:[%s11047_s0 + $0x1ec] ss:$16 sps:$4 sm:$0xff]  }
  0x53   :  { %2784 = vmatmul.mubr.bf16.gmra.mxu1 %v6060_v23  ;;  %2280 = vmatprep.mubr.bf16.mxu0 %v6061_v24  ;;  %v6138_v23 = vld [vmem:[%s11047_s0 + $0x188] ss:$16 sps:$4 sm:$0xff]   ;;  %v6145_v24 = vld [vmem:[%s11047_s0 + $0x1a4] ss:$16 sps:$4 sm:$0xff]  }
  0x54   :  { %2793 = vmatprep.mubr.bf16.mxu1 %v6063_v29  ;;  %3253 = vmatpush1.bf16.msra.mxu0 %v6139_v34  ;;  %v6264_v29 = vld [vmem:[%s11046_s1 + $0x4bc] ss:$20 sps:$4 sm:$0xff]  }
  0x55   :  { %3766 = vmatpush1.bf16.msra.mxu1 %v6142_v36  ;;  %3254 = vmatprep.subr.bf16.mxu0 %v6165_v43  ;;  %v6155_v34 = vld [vmem:[%s11047_s0 + $0x1c0] ss:$16 sps:$4 sm:$0xff]   ;;  %v6157_v36 = vld [vmem:[%s11047_s0 + $0x1e4] ss:$16 sps:$4 sm:$0xff]  }
  0x56   :  { %3767 = vmatprep.subr.bf16.mxu1 %v6168_v45  ;;  %v6283_v43 = vld [vmem:[%s11046_s1 + $0x210] ss:$20 sps:$4 sm:$0xff]   ;;  %v6288_v45 = vld [vmem:[%s11046_s1 + $0x494] ss:$20 sps:$4 sm:$0xff]  }
  0x58   :  { %3255 = vmatpush1.bf16.msra.mxu0 %v6163_v42  ;;  %v6285_v42 = vld [vmem:[%s11046_s1 + $0x214] ss:$20 sps:$4 sm:$0xff]  }
  0x59   :  { %3768 = vmatpush1.bf16.msra.mxu1 %v6166_v44  ;;  %3256 = vmatprep.subr.bf16.mxu0 %v6189_v54  ;;  %v6286_v44 = vld [vmem:[%s11046_s1 + $0x490] ss:$20 sps:$4 sm:$0xff]  }
  0x5a   :  { %2281 = vmatmul.mubr.bf16.gmra.mxu0 %v6065_v30  ;;  %3769 = vmatprep.subr.bf16.mxu1 %v6192_v56  ;;  %v6149_v30 = vld [vmem:[%s11047_s0 + $0x1a0] ss:$16 sps:$4 sm:$0xff]   ;;  %v6193_v56 = vld [vmem:[%s11047_s0 + $0x264] ss:$16 sps:$4 sm:$0xff]  }
  0x5b   :  { %2794 = vmatmul.mubr.bf16.gmra.mxu1 %v6066_v31  ;;  %2290 = vmatprep.mubr.bf16.mxu0 %v6073_v32  ;;  %v6150_v31 = vld [vmem:[%s11047_s0 + $0x1a8] ss:$16 sps:$4 sm:$0xff]   ;;  %v6151_v32 = vld [vmem:[%s11047_s0 + $0x1c4] ss:$16 sps:$4 sm:$0xff]   ;;  %v6185_v54 = vld [vmem:[%s11047_s0 + $0x240] ss:$16 sps:$4 sm:$0xff]  }
  0x5c   :  { %2803 = vmatprep.mubr.bf16.mxu1 %v6075_v33  ;;  %3257 = vmatpush1.bf16.msra.mxu0 %v6187_v53  ;;  %v6153_v33 = vld [vmem:[%s11047_s0 + $0x1cc] ss:$16 sps:$4 sm:$0xff]  }
  0x5d   :  { %3770 = vmatpush1.bf16.msra.mxu1 %v6190_v55  ;;  %3258 = vmatprep.subr.bf16.mxu0 %v6213_v63  ;;  %v6183_v53 = vld [vmem:[%s11047_s0 + $0x24c] ss:$16 sps:$4 sm:$0xff]   ;;  %v6186_v55 = vld [vmem:[%s11047_s0 + $0x248] ss:$16 sps:$4 sm:$0xff]  }
  0x5e   :  { %3771 = vmatprep.subr.bf16.mxu1 %v6216_v1  ;;  %v6198_v63 = vld [vmem:[%s11047_s0 + $0x268] ss:$16 sps:$4 sm:$0xff]   ;;  %v6201_v1 = vld [vmem:[%s11047_s0 + $0x28c] ss:$16 sps:$4 sm:$0xff]  }
  0x60   :  { %3259 = vmatpush1.bf16.msra.mxu0 %v6211_v62  ;;  %v6197_v62 = vld [vmem:[%s11047_s0 + $0x260] ss:$16 sps:$4 sm:$0xff]  }
  0x61   :  { %3772 = vmatpush1.bf16.msra.mxu1 %v6214_v0  ;;  %3260 = vmatprep.subr.bf16.mxu0 %v6237_v10  ;;  %v6199_v0 = vld [vmem:[%s11047_s0 + $0x284] ss:$16 sps:$4 sm:$0xff]  }
  0x62   :  { %2291 = vmatmul.mubr.bf16.gmra.mxu0 %v6077_v38  ;;  %3773 = vmatprep.subr.bf16.mxu1 %v6240_v13  ;;  %v6161_v38 = vld [vmem:[%s11047_s0 + $0x1e0] ss:$16 sps:$4 sm:$0xff]   ;;  %v6333_v10 = vld [vmem:[%s11046_s1 + $0x1c4] ss:$20 sps:$4 sm:$0xff]  }
  0x63   :  { %2804 = vmatmul.mubr.bf16.gmra.mxu1 %v6078_v39  ;;  %2300 = vmatprep.mubr.bf16.mxu0 %v6079_v40  ;;  %v6162_v39 = vld [vmem:[%s11047_s0 + $0x1e8] ss:$16 sps:$4 sm:$0xff]   ;;  %v6169_v40 = vld [vmem:[%s11047_s0 + $0x204] ss:$16 sps:$4 sm:$0xff]  }
  0x64   :  { %2813 = vmatprep.mubr.bf16.mxu1 %v6081_v41  ;;  %3261 = vmatpush2.bf16.msra.mxu0 %v6235_v11  ;;  %v6171_v41 = vld [vmem:[%s11047_s0 + $0x20c] ss:$16 sps:$4 sm:$0xff]   ;;  %v6331_v11 = vld [vmem:[%s11046_s1 + $0x1c0] ss:$20 sps:$4 sm:$0xff]   ;;  %v6336_v13 = vld [vmem:[%s11046_s1 + $0x444] ss:$20 sps:$4 sm:$0xff]  }
  0x65   :  { %3774 = vmatpush2.bf16.msra.mxu1 %v6238_v12  ;;  %3262 = vmatprep.subr.bf16.mxu0 %v6261_v26  ;;  %v6334_v12 = vld [vmem:[%s11046_s1 + $0x440] ss:$20 sps:$4 sm:$0xff]  }
  0x66   :  { %3775 = vmatprep.subr.bf16.mxu1 %v6264_v29 }
  0x68   :  { %3263 = vmatpush2.bf16.msra.mxu0 %v6259_v27  ;;  %v6233_v27 = vld [vmem:[%s11047_s0 + $0x300] ss:$16 sps:$4 sm:$0xff]  }
  0x69   :  { %3776 = vmatpush2.bf16.msra.mxu1 %v6262_v28  ;;  %3264 = vmatprep.subr.bf16.mxu0 %v6285_v42  ;;  %v6234_v28 = vld [vmem:[%s11047_s0 + $0x308] ss:$16 sps:$4 sm:$0xff]  }
  0x6a   :  { %2301 = vmatmul.mubr.bf16.gmra.mxu0 %v6083_v46  ;;  %v6173_v46 = vld [vmem:[%s11047_s0 + $0x200] ss:$16 sps:$4 sm:$0xff]   ;;  %3777 = vmatprep.subr.bf16.mxu1 %v6288_v45 }
  0x6b   :  { %2814 = vmatmul.mubr.bf16.gmra.mxu1 %v6084_v47  ;;  %2310 = vmatprep.mubr.bf16.mxu0 %v6085_v48  ;;  %v6174_v47 = vld [vmem:[%s11047_s0 + $0x208] ss:$16 sps:$4 sm:$0xff]   ;;  %v6175_v48 = vld [vmem:[%s11047_s0 + $0x224] ss:$16 sps:$4 sm:$0xff]  }
  0x6c   :  { %2823 = vmatprep.mubr.bf16.mxu1 %v6087_v49  ;;  %3265 = vmatpush2.bf16.msra.mxu0 %v6283_v43  ;;  %v6177_v49 = vld [vmem:[%s11047_s0 + $0x22c] ss:$16 sps:$4 sm:$0xff]  }
  0x6d   :  { %3778 = vmatpush2.bf16.msra.mxu1 %v6286_v44 }
  0x72   :  { %2311 = vmatmul.mubr.bf16.gmra.mxu0 %v6089_v50  ;;  %v6179_v50 = vld [vmem:[%s11047_s0 + $0x220] ss:$16 sps:$4 sm:$0xff]  }
  0x73   :  { %2824 = vmatmul.mubr.bf16.gmra.mxu1 %v6090_v51  ;;  %2320 = vmatprep.mubr.bf16.mxu0 %v6097_v52  ;;  %v6180_v51 = vld [vmem:[%s11047_s0 + $0x228] ss:$16 sps:$4 sm:$0xff]   ;;  %v6181_v52 = vld [vmem:[%s11047_s0 + $0x244] ss:$16 sps:$4 sm:$0xff]  }
  0x74   :  { %2833 = vmatprep.mubr.bf16.mxu1 %v6099_v57  ;;  %v6195_v57 = vld [vmem:[%s11047_s0 + $0x26c] ss:$16 sps:$4 sm:$0xff]  }
  0x7a   :  { %2321 = vmatmul.mubr.bf16.gmra.mxu0 %v6101_v58  ;;  %v6309_v58 = vld [vmem:[%s11046_s1 + $0x1ec] ss:$20 sps:$4 sm:$0xff]  }
  0x7b   :  { %2834 = vmatmul.mubr.bf16.gmra.mxu1 %v6102_v59  ;;  %2330 = vmatprep.mubr.bf16.mxu0 %v6103_v60  ;;  %v6307_v59 = vld [vmem:[%s11046_s1 + $0x1e8] ss:$20 sps:$4 sm:$0xff]  }
  0x7c   :  { %2843 = vmatprep.mubr.bf16.mxu1 %v6105_v61  ;;  %3266 = vmatprep.subr.bf16.mxu0 %v6309_v58  ;;  %v6310_v60 = vld [vmem:[%s11046_s1 + $0x468] ss:$20 sps:$4 sm:$0xff]   ;;  %v6312_v61 = vld [vmem:[%s11046_s1 + $0x46c] ss:$20 sps:$4 sm:$0xff]  }
  0x7d   :  { %3267 = vmatpush2.bf16.msra.mxu0 %v6307_v59  ;;  %3779 = vmatprep.subr.bf16.mxu1 %v6312_v61 }
  0x7e   :  { %3780 = vmatpush2.bf16.msra.mxu1 %v6310_v60  ;;  %3268 = vmatprep.subr.bf16.mxu0 %v6333_v10 }
  0x7f   :  { %3781 = vmatprep.subr.bf16.mxu1 %v6336_v13 }
  0x81   :  { %3269 = vmatpush2.bf16.msra.mxu0 %v6331_v11 }
  0x82   :  { %2331 = vmatmul.mubr.bf16.gmra.mxu0 %v6107_v2  ;;  %v6203_v2 = vld [vmem:[%s11047_s0 + $0x280] ss:$16 sps:$4 sm:$0xff]   ;;  %3782 = vmatpush2.bf16.msra.mxu1 %v6334_v12 }
  0x83   :  { %2844 = vmatmul.mubr.bf16.gmra.mxu1 %v6108_v3  ;;  %2340 = vmatprep.mubr.bf16.mxu0 %v6109_v4  ;;  %v6204_v3 = vld [vmem:[%s11047_s0 + $0x288] ss:$16 sps:$4 sm:$0xff]   ;;  %v6205_v4 = vld [vmem:[%s11047_s0 + $0x2a4] ss:$16 sps:$4 sm:$0xff]  }
  0x84   :  { %2853 = vmatprep.mubr.bf16.mxu1 %v6111_v5  ;;  %v6207_v5 = vld [vmem:[%s11047_s0 + $0x2ac] ss:$16 sps:$4 sm:$0xff]  }
  0x8a   :  { %2341 = vmatmul.mubr.bf16.gmra.mxu0 %v6113_v6  ;;  %v6209_v6 = vld [vmem:[%s11047_s0 + $0x2a0] ss:$16 sps:$4 sm:$0xff]  }
  0x8b   :  { %2854 = vmatmul.mubr.bf16.gmra.mxu1 %v6114_v7  ;;  %2350 = vmatprep.mubr.bf16.mxu0 %v6121_v8  ;;  %v6210_v7 = vld [vmem:[%s11047_s0 + $0x2a8] ss:$16 sps:$4 sm:$0xff]   ;;  %v6217_v8 = vld [vmem:[%s11047_s0 + $0x2c4] ss:$16 sps:$4 sm:$0xff]  }
  0x8c   :  { %2863 = vmatprep.mubr.bf16.mxu1 %v6123_v9  ;;  %v6219_v9 = vld [vmem:[%s11047_s0 + $0x2cc] ss:$16 sps:$4 sm:$0xff]  }
  0x92   :  { %2351 = vmatmul.mubr.bf16.gmra.mxu0 %v6125_v14  ;;  %v6221_v14 = vld [vmem:[%s11047_s0 + $0x2c0] ss:$16 sps:$4 sm:$0xff]  }
  0x93   :  { %2864 = vmatmul.mubr.bf16.gmra.mxu1 %v6126_v15  ;;  %2360 = vmatprep.mubr.bf16.mxu0 %v6127_v16  ;;  %v6222_v15 = vld [vmem:[%s11047_s0 + $0x2c8] ss:$16 sps:$4 sm:$0xff]   ;;  %v6223_v16 = vld [vmem:[%s11047_s0 + $0x2e4] ss:$16 sps:$4 sm:$0xff]  }
  0x94   :  { %2873 = vmatprep.mubr.bf16.mxu1 %v6129_v17  ;;  %v6225_v17 = vld [vmem:[%s11047_s0 + $0x2ec] ss:$16 sps:$4 sm:$0xff]  }
  0x9a   :  { %2361 = vmatmul.mubr.bf16.gmra.mxu0 %v6131_v18  ;;  %v401_v18 = vlaneseq }
  0x9b   :  { %2874 = vmatmul.mubr.bf16.gmra.mxu1 %v6132_v19  ;;  %2370 = vmatprep.mubr.bf16.mxu0 %v6133_v20  ;;  %v6227_v19 = vld [vmem:[%s11047_s0 + $0x2e0] ss:$16 sps:$4 sm:$0xff]   ;;  %v6228_v20 = vld [vmem:[%s11047_s0 + $0x2e8] ss:$16 sps:$4 sm:$0xff]  }
  0x9c   :  { %2883 = vmatprep.mubr.bf16.mxu1 %v6135_v21  ;;  %v6229_v21 = vld [vmem:[%s11047_s0 + $0x304] ss:$16 sps:$4 sm:$0xff]  }
  0xa2   :  { %2371 = vmatmul.mubr.bf16.gmra.mxu0 %v6137_v22  ;;  %v6231_v22 = vld [vmem:[%s11047_s0 + $0x30c] ss:$16 sps:$4 sm:$0xff]  }
  0xa3   :  { %2884 = vmatmul.mubr.bf16.gmra.mxu1 %v6138_v23  ;;  %2380 = vmatprep.mubr.bf16.mxu0 %v6145_v24  ;;  %v7502_v23 = vshrl.u32 %v401_v18, 7 }
  0xa4   :  { %2893 = vmatprep.mubr.bf16.mxu1 %v6147_v25  ;;  %v399_v25 = vld [vmem:[%s11048_s2] sm:$0x1f] }
  0xa5   :  { %v403_v24 = vsub.s32 0, %v7502_v23  ;;  %v407_v26 = vsub.s32 1, %v7502_v23 }
  0xa7   :  { %v7515_v29 = vrot.slane %v399_v25, %v403_v24  ;;  %v6258_v24 = vld [vmem:[%s11047_s0 + $0x368] ss:$16 sps:$4 sm:$0xff]  }
  0xaa   :  { %2381 = vmatmul.mubr.bf16.gmra.mxu0 %v6149_v30  ;;  %v6241_v30 = vld [vmem:[%s11047_s0 + $0x324] ss:$16 sps:$4 sm:$0xff]  }
  0xab   :  { %2894 = vmatmul.mubr.bf16.gmra.mxu1 %v6150_v31  ;;  %2390 = vmatprep.mubr.bf16.mxu0 %v6151_v32  ;;  %v6243_v31 = vld [vmem:[%s11047_s0 + $0x32c] ss:$16 sps:$4 sm:$0xff]  }
  0xac   :  { %2903 = vmatprep.mubr.bf16.mxu1 %v6153_v33  ;;  %v6357_v32 = vld [vmem:[%s11046_s1 + $0x19c] ss:$20 sps:$4 sm:$0xff]   ;;  %v6355_v33 = vld [vmem:[%s11046_s1 + $0x198] ss:$20 sps:$4 sm:$0xff]  }
  0xad   :  { %3270 = vmatprep.subr.bf16.mxu0 %v6357_v32 }
  0xae   :  { %3271 = vmatpush2.bf16.msra.mxu0 %v6355_v33  ;;  %v6379_v33 = vld [vmem:[%s11046_s1 + $0x170] ss:$20 sps:$4 sm:$0xff]  }
  0xb2   :  { %2391 = vmatmul.mubr.bf16.gmra.mxu0 %v6155_v34  ;;  %v7529_v34 = vrot.slane %v399_v25, %v407_v26 }
  0xb3   :  { %2904 = vmatmul.mubr.bf16.gmra.mxu1 %v6156_v35  ;;  %2400 = vmatprep.mubr.bf16.mxu0 %v6157_v36  ;;  %v6358_v35 = vld [vmem:[%s11046_s1 + $0x418] ss:$20 sps:$4 sm:$0xff]   ;;  %v6360_v36 = vld [vmem:[%s11046_s1 + $0x41c] ss:$20 sps:$4 sm:$0xff]  }
  0xb4   :  { %2913 = vmatprep.mubr.bf16.mxu1 %v6159_v37  ;;  %3783 = vmatprep.subr.bf16.mxu1 %v6360_v36 }
  0xb5   :  { %3784 = vmatpush2.bf16.msra.mxu1 %v6358_v35 }
  0xba   :  { %2401 = vmatmul.mubr.bf16.gmra.mxu0 %v6161_v38 }
  0xbb   :  { %2914 = vmatmul.mubr.bf16.gmra.mxu1 %v6162_v39  ;;  %2410 = vmatprep.mubr.bf16.mxu0 %v6169_v40 }
  0xbc   :  { %2923 = vmatprep.mubr.bf16.mxu1 %v6171_v41 }
  0xc2   :  { %2411 = vmatmul.mubr.bf16.gmra.mxu0 %v6173_v46  ;;  %v6245_v46 = vld [vmem:[%s11047_s0 + $0x320] ss:$16 sps:$4 sm:$0xff]  }
  0xc3   :  { %2924 = vmatmul.mubr.bf16.gmra.mxu1 %v6174_v47  ;;  %2420 = vmatprep.mubr.bf16.mxu0 %v6175_v48  ;;  %v6246_v47 = vld [vmem:[%s11047_s0 + $0x328] ss:$16 sps:$4 sm:$0xff]  }
  0xc4   :  { %2933 = vmatprep.mubr.bf16.mxu1 %v6177_v49 }
  0xca   :  { %2421 = vmatmul.mubr.bf16.gmra.mxu0 %v6179_v50  ;;  %v6247_v50 = vld [vmem:[%s11047_s0 + $0x344] ss:$16 sps:$4 sm:$0xff]  }
  0xcb   :  { %2934 = vmatmul.mubr.bf16.gmra.mxu1 %v6180_v51  ;;  %2430 = vmatprep.mubr.bf16.mxu0 %v6181_v52  ;;  %v6249_v51 = vld [vmem:[%s11047_s0 + $0x34c] ss:$16 sps:$4 sm:$0xff]  }
  0xcc   :  { %2943 = vmatprep.mubr.bf16.mxu1 %v6183_v53 }
  0xd2   :  { %2431 = vmatmul.mubr.bf16.gmra.mxu0 %v6185_v54 }
  0xd3   :  { %2944 = vmatmul.mubr.bf16.gmra.mxu1 %v6186_v55  ;;  %2440 = vmatprep.mubr.bf16.mxu0 %v6193_v56 }
  0xd4   :  { %2953 = vmatprep.mubr.bf16.mxu1 %v6195_v57 }
  0xda   :  { %2441 = vmatmul.mubr.bf16.gmra.mxu0 %v6197_v62 }
  0xdb   :  { %2954 = vmatmul.mubr.bf16.gmra.mxu1 %v6198_v63  ;;  %2450 = vmatprep.mubr.bf16.mxu0 %v6199_v0 }
  0xdc   :  { %2963 = vmatprep.mubr.bf16.mxu1 %v6201_v1 }
  0xe2   :  { %2451 = vmatmul.mubr.bf16.gmra.mxu0 %v6203_v2  ;;  %v6251_v2 = vld [vmem:[%s11047_s0 + $0x340] ss:$16 sps:$4 sm:$0xff]  }
  0xe3   :  { %2964 = vmatmul.mubr.bf16.gmra.mxu1 %v6204_v3  ;;  %2460 = vmatprep.mubr.bf16.mxu0 %v6205_v4  ;;  %v6252_v3 = vld [vmem:[%s11047_s0 + $0x348] ss:$16 sps:$4 sm:$0xff]  }
  0xe4   :  { %2973 = vmatprep.mubr.bf16.mxu1 %v6207_v5 }
  0xea   :  { %2461 = vmatmul.mubr.bf16.gmra.mxu0 %v6209_v6  ;;  %v6253_v6 = vld [vmem:[%s11047_s0 + $0x364] ss:$16 sps:$4 sm:$0xff]  }
  0xeb   :  { %2974 = vmatmul.mubr.bf16.gmra.mxu1 %v6210_v7  ;;  %2470 = vmatprep.mubr.bf16.mxu0 %v6217_v8  ;;  %v6255_v7 = vld [vmem:[%s11047_s0 + $0x36c] ss:$16 sps:$4 sm:$0xff]  }
  0xec   :  { %2983 = vmatprep.mubr.bf16.mxu1 %v6219_v9 }
  0xf2   :  { %2471 = vmatmul.mubr.bf16.gmra.mxu0 %v6221_v14 }
  0xf3   :  { %2984 = vmatmul.mubr.bf16.gmra.mxu1 %v6222_v15  ;;  %2480 = vmatprep.mubr.bf16.mxu0 %v6223_v16 }
  0xf4   :  { %2993 = vmatprep.mubr.bf16.mxu1 %v6225_v17 }
  0xfa   :  { %2481 = vmatmul.mubr.bf16.gmra.mxu0 %v6227_v19 }
  0xfb   :  { %2994 = vmatmul.mubr.bf16.gmra.mxu1 %v6228_v20  ;;  %2490 = vmatprep.mubr.bf16.mxu0 %v6229_v21 }
  0xfc   :  { %3003 = vmatprep.mubr.bf16.mxu1 %v6231_v22  ;;  %v6257_v22 = vld [vmem:[%s11047_s0 + $0x360] ss:$16 sps:$4 sm:$0xff]  }
 0x102   :  { %v2252_v37 = vpop.f32.mrf.mxu0  ;;  %2491 = vmatmul.mubr.bf16.gmra.mxu0 %v6233_v27  ;;  %v6267_v27 = vld [vmem:[%s11047_s0 + $0x384] ss:$16 sps:$4 sm:$0xff]  }
 0x103   :  { %v2765_v38 = vpop.f32.mrf.mxu1  ;;  %3004 = vmatmul.mubr.bf16.gmra.mxu1 %v6234_v28  ;;  %v2253_v39 = vadd.f32 %v2252_v37, %v7515_v29  ;;  %2500 = vmatprep.mubr.bf16.mxu0 %v6241_v30  ;;  %v6270_v28 = vld [vmem:[%s11047_s0 + $0x38c] ss:$16 sps:$4 sm:$0xff]   ;;  %v6381_v30 = vld [vmem:[%s11046_s1 + $0x174] ss:$20 sps:$4 sm:$0xff]   ;;  %v6382_v37 = vld [vmem:[%s11046_s1 + $0x3f0] ss:$20 sps:$4 sm:$0xff]  }
 0x104   :  { %3013 = vmatprep.mubr.bf16.mxu1 %v6243_v31  ;;  %v2254_v40 = vpop.f32.mrf.mxu0  ;;  %3272 = vmatprep.subr.bf16.mxu0 %v6381_v30 }
 0x105   :  { %v2767_v41 = vpop.f32.mrf.mxu1  ;;  %v2766_v42 = vadd.f32 %v2765_v38, %v2253_v39  ;;  %v2255_v43 = vadd.f32 %v2254_v40, %v7529_v34  ;;  %v6384_v38 = vld [vmem:[%s11046_s1 + $0x3f4] ss:$20 sps:$4 sm:$0xff]   ;;  %3273 = vmatpush2.bf16.msra.mxu0 %v6379_v33  ;;  %v6405_v33 = vld [vmem:[%s11046_s1 + $0x14c] ss:$20 sps:$4 sm:$0xff]  }
 0x106   :  { %v2256_v44 = vpop.f32.mrf.mxu0  ;;  %3785 = vmatprep.subr.bf16.mxu1 %v6384_v38  ;;  %3274 = vmatprep.subr.bf16.mxu0 %v6405_v33 }
 0x107   :  { %v2769_v45 = vpop.f32.mrf.mxu1  ;;  %5104 = vst [vmem:[%s11049_s3] sm:$0xff] %v2766_v42  ;;  %v2768_v48 = vadd.f32 %v2767_v41, %v2255_v43  ;;  %v2257_v49 = vadd.f32 %v2256_v44, %v7515_v29  ;;  %3786 = vmatpush2.bf16.msra.mxu1 %v6382_v37  ;;  %v6403_v37 = vld [vmem:[%s11046_s1 + $0x148] ss:$20 sps:$4 sm:$0xff]  }
 0x108   :  { %v2258_v52 = vpop.f32.mrf.mxu0 }
 0x109   :  { %v2771_v53 = vpop.f32.mrf.mxu1  ;;  %5105 = vst [vmem:[%s11049_s3 + $0x8] sm:$0xff] %v2768_v48  ;;  %v2770_v54 = vadd.f32 %v2769_v45, %v2257_v49  ;;  %v2259_v55 = vadd.f32 %v2258_v52, %v7529_v34  ;;  %v6265_v49 = vld [vmem:[%s11047_s0 + $0x380] ss:$16 sps:$4 sm:$0xff]   ;;  %3275 = vmatpush2.bf16.msra.mxu0 %v6403_v37 }
 0x10a   :  { %v2262_v56 = vpop.f32.mrf.mxu0  ;;  %2501 = vmatmul.mubr.bf16.gmra.mxu0 %v6245_v46 }
 0x10b   :  { %v2775_v57 = vpop.f32.mrf.mxu1  ;;  %3014 = vmatmul.mubr.bf16.gmra.mxu1 %v6246_v47  ;;  %5109 = vst [vmem:[%s11049_s3 + $0x28] sm:$0xff] %v2770_v54  ;;  %v2772_v58 = vadd.f32 %v2771_v53, %v2259_v55  ;;  %v2263_v59 = vadd.f32 %v2262_v56, %v7515_v29  ;;  %2510 = vmatprep.mubr.bf16.mxu0 %v6247_v50  ;;  %v6268_v50 = vld [vmem:[%s11047_s0 + $0x388] ss:$16 sps:$4 sm:$0xff]   ;;  %v6273_v53 = vld [vmem:[%s11047_s0 + $0x3a4] ss:$16 sps:$4 sm:$0xff]  }
 0x10c   :  { %3023 = vmatprep.mubr.bf16.mxu1 %v6249_v51  ;;  %v2264_v60 = vpop.f32.mrf.mxu0  ;;  %v6276_v54 = vld [vmem:[%s11047_s0 + $0x3ac] ss:$16 sps:$4 sm:$0xff]  }
 0x10d   :  { %v2777_v61 = vpop.f32.mrf.mxu1  ;;  %5110 = vst [vmem:[%s11049_s3 + $0x30] sm:$0xff] %v2772_v58  ;;  %v2776_v62 = vadd.f32 %v2775_v57, %v2263_v59  ;;  %v2265_v63 = vadd.f32 %v2264_v60, %v7529_v34 }
 0x10e   :  { %v2266_v0 = vpop.f32.mrf.mxu0 }
 0x10f   :  { %v2779_v1 = vpop.f32.mrf.mxu1  ;;  %5114 = vst [vmem:[%s11049_s3 + $0x50] sm:$0xff] %v2776_v62  ;;  %v2778_v4 = vadd.f32 %v2777_v61, %v2265_v63  ;;  %v2267_v5 = vadd.f32 %v2266_v0, %v7515_v29 }
 0x110   :  { %v2268_v8 = vpop.f32.mrf.mxu0 }
 0x111   :  { %v2781_v9 = vpop.f32.mrf.mxu1  ;;  %5115 = vst [vmem:[%s11049_s3 + $0x58] sm:$0xff] %v2778_v4  ;;  %v2780_v10 = vadd.f32 %v2779_v1, %v2267_v5  ;;  %v2269_v11 = vadd.f32 %v2268_v8, %v7529_v34  ;;  %v6271_v5 = vld [vmem:[%s11047_s0 + $0x3a0] ss:$16 sps:$4 sm:$0xff]  }
 0x112   :  { %v2272_v12 = vpop.f32.mrf.mxu0  ;;  %2511 = vmatmul.mubr.bf16.gmra.mxu0 %v6251_v2 }
 0x113   :  { %v2785_v13 = vpop.f32.mrf.mxu1  ;;  %3024 = vmatmul.mubr.bf16.gmra.mxu1 %v6252_v3  ;;  %5119 = vst [vmem:[%s11049_s3 + $0x78] sm:$0xff] %v2780_v10  ;;  %v2782_v14 = vadd.f32 %v2781_v9, %v2269_v11  ;;  %v2273_v15 = vadd.f32 %v2272_v12, %v7515_v29  ;;  %2520 = vmatprep.mubr.bf16.mxu0 %v6253_v6  ;;  %v6274_v6 = vld [vmem:[%s11047_s0 + $0x3a8] ss:$16 sps:$4 sm:$0xff]   ;;  %v6279_v9 = vld [vmem:[%s11047_s0 + $0x3c4] ss:$16 sps:$4 sm:$0xff]  }
 0x114   :  { %3033 = vmatprep.mubr.bf16.mxu1 %v6255_v7  ;;  %v2274_v16 = vpop.f32.mrf.mxu0  ;;  %v6282_v10 = vld [vmem:[%s11047_s0 + $0x3cc] ss:$16 sps:$4 sm:$0xff]  }
 0x115   :  { %v2787_v17 = vpop.f32.mrf.mxu1  ;;  %5120 = vst [vmem:[%s11049_s3 + $0x80] sm:$0xff] %v2782_v14  ;;  %v2786_v18 = vadd.f32 %v2785_v13, %v2273_v15  ;;  %v2275_v19 = vadd.f32 %v2274_v16, %v7529_v34 }
 0x116   :  { %v2276_v20 = vpop.f32.mrf.mxu0 }
 0x117   :  { %v2789_v21 = vpop.f32.mrf.mxu1  ;;  %5124 = vst [vmem:[%s11049_s3 + $0xa0] sm:$0xff] %v2786_v18  ;;  %v2788_v25 = vadd.f32 %v2787_v17, %v2275_v19  ;;  %v2277_v26 = vadd.f32 %v2276_v20, %v7515_v29 }
 0x118   :  { %v2278_v31 = vpop.f32.mrf.mxu0 }
 0x119   :  { %v2791_v32 = vpop.f32.mrf.mxu1  ;;  %5125 = vst [vmem:[%s11049_s3 + $0xa8] sm:$0xff] %v2788_v25  ;;  %v2790_v35 = vadd.f32 %v2789_v21, %v2277_v26  ;;  %v2279_v36 = vadd.f32 %v2278_v31, %v7529_v34  ;;  %v6277_v26 = vld [vmem:[%s11047_s0 + $0x3c0] ss:$16 sps:$4 sm:$0xff]   ;;  %v6291_v31 = vld [vmem:[%s11047_s0 + $0x3e4] ss:$16 sps:$4 sm:$0xff]  }
 0x11a   :  { %v2282_v39 = vpop.f32.mrf.mxu0  ;;  %2521 = vmatmul.mubr.bf16.gmra.mxu0 %v6257_v22 }
 0x11b   :  { %v2795_v40 = vpop.f32.mrf.mxu1  ;;  %3034 = vmatmul.mubr.bf16.gmra.mxu1 %v6258_v24  ;;  %5129 = vst [vmem:[%s11049_s3 + $0xc8] sm:$0xff] %v2790_v35  ;;  %v2792_v41 = vadd.f32 %v2791_v32, %v2279_v36  ;;  %v2283_v42 = vadd.f32 %v2282_v39, %v7515_v29  ;;  %2530 = vmatprep.mubr.bf16.mxu0 %v6267_v27  ;;  %v6280_v27 = vld [vmem:[%s11047_s0 + $0x3c8] ss:$16 sps:$4 sm:$0xff]   ;;  %v6294_v32 = vld [vmem:[%s11047_s0 + $0x3ec] ss:$16 sps:$4 sm:$0xff]  }
 0x11c   :  { %3043 = vmatprep.mubr.bf16.mxu1 %v6270_v28  ;;  %v2284_v43 = vpop.f32.mrf.mxu0 }
 0x11d   :  { %v2797_v44 = vpop.f32.mrf.mxu1  ;;  %5130 = vst [vmem:[%s11049_s3 + $0xd0] sm:$0xff] %v2792_v41  ;;  %v2796_v45 = vadd.f32 %v2795_v40, %v2283_v42  ;;  %v2285_v46 = vadd.f32 %v2284_v43, %v7529_v34  ;;  %v6406_v40 = vld [vmem:[%s11046_s1 + $0x3c8] ss:$20 sps:$4 sm:$0xff]   ;;  %v6408_v41 = vld [vmem:[%s11046_s1 + $0x3cc] ss:$20 sps:$4 sm:$0xff]  }
 0x11e   :  { %v2286_v47 = vpop.f32.mrf.mxu0  ;;  %3787 = vmatprep.subr.bf16.mxu1 %v6408_v41 }
 0x11f   :  { %v2799_v48 = vpop.f32.mrf.mxu1  ;;  %5134 = vst [vmem:[%s11049_s3 + $0xf0] sm:$0xff] %v2796_v45  ;;  %v2798_v51 = vadd.f32 %v2797_v44, %v2285_v46  ;;  %v2287_v52 = vadd.f32 %v2286_v47, %v7515_v29  ;;  %3788 = vmatpush2.bf16.msra.mxu1 %v6406_v40 }
 0x120   :  { %v2288_v55 = vpop.f32.mrf.mxu0 }
 0x121   :  { %v2801_v56 = vpop.f32.mrf.mxu1  ;;  %5135 = vst [vmem:[%s11049_s3 + $0xf8] sm:$0xff] %v2798_v51  ;;  %v2800_v57 = vadd.f32 %v2799_v48, %v2287_v52  ;;  %v2289_v58 = vadd.f32 %v2288_v55, %v7529_v34  ;;  %v6289_v52 = vld [vmem:[%s11047_s0 + $0x3e0] ss:$16 sps:$4 sm:$0xff]  }
 0x122   :  { %v2292_v59 = vpop.f32.mrf.mxu0  ;;  %2531 = vmatmul.mubr.bf16.gmra.mxu0 %v6265_v49 }
 0x123   :  { %v2805_v60 = vpop.f32.mrf.mxu1  ;;  %3044 = vmatmul.mubr.bf16.gmra.mxu1 %v6268_v50  ;;  %5139 = vst [vmem:[%s11049_s3 + $0x118] sm:$0xff] %v2800_v57  ;;  %v2802_v61 = vadd.f32 %v2801_v56, %v2289_v58  ;;  %v2293_v62 = vadd.f32 %v2292_v59, %v7515_v29  ;;  %2540 = vmatprep.mubr.bf16.mxu0 %v6273_v53  ;;  %v6292_v53 = vld [vmem:[%s11047_s0 + $0x3e8] ss:$16 sps:$4 sm:$0xff]   ;;  %v6297_v56 = vld [vmem:[%s11047_s0 + $0x404] ss:$16 sps:$4 sm:$0xff]  }
 0x124   :  { %3053 = vmatprep.mubr.bf16.mxu1 %v6276_v54  ;;  %v2294_v63 = vpop.f32.mrf.mxu0  ;;  %v6300_v57 = vld [vmem:[%s11047_s0 + $0x40c] ss:$16 sps:$4 sm:$0xff]  }
 0x125   :  { %v2807_v0 = vpop.f32.mrf.mxu1  ;;  %5140 = vst [vmem:[%s11049_s3 + $0x120] sm:$0xff] %v2802_v61  ;;  %v2806_v1 = vadd.f32 %v2805_v60, %v2293_v62  ;;  %v2295_v2 = vadd.f32 %v2294_v63, %v7529_v34 }
 0x126   :  { %v2296_v3 = vpop.f32.mrf.mxu0 }
 0x127   :  { %v2809_v4 = vpop.f32.mrf.mxu1  ;;  %5144 = vst [vmem:[%s11049_s3 + $0x140] sm:$0xff] %v2806_v1  ;;  %v2808_v7 = vadd.f32 %v2807_v0, %v2295_v2  ;;  %v2297_v8 = vadd.f32 %v2296_v3, %v7515_v29 }
 0x128   :  { %v2298_v11 = vpop.f32.mrf.mxu0 }
 0x129   :  { %v2811_v12 = vpop.f32.mrf.mxu1  ;;  %5145 = vst [vmem:[%s11049_s3 + $0x148] sm:$0xff] %v2808_v7  ;;  %v2810_v13 = vadd.f32 %v2809_v4, %v2297_v8  ;;  %v2299_v14 = vadd.f32 %v2298_v11, %v7529_v34  ;;  %v6295_v8 = vld [vmem:[%s11047_s0 + $0x400] ss:$16 sps:$4 sm:$0xff]  }
 0x12a   :  { %v2302_v15 = vpop.f32.mrf.mxu0  ;;  %2541 = vmatmul.mubr.bf16.gmra.mxu0 %v6271_v5 }
 0x12b   :  { %v2815_v16 = vpop.f32.mrf.mxu1  ;;  %3054 = vmatmul.mubr.bf16.gmra.mxu1 %v6274_v6  ;;  %5149 = vst [vmem:[%s11049_s3 + $0x168] sm:$0xff] %v2810_v13  ;;  %v2812_v17 = vadd.f32 %v2811_v12, %v2299_v14  ;;  %v2303_v18 = vadd.f32 %v2302_v15, %v7515_v29  ;;  %2550 = vmatprep.mubr.bf16.mxu0 %v6279_v9  ;;  %v6298_v9 = vld [vmem:[%s11047_s0 + $0x408] ss:$16 sps:$4 sm:$0xff]   ;;  %v6303_v12 = vld [vmem:[%s11047_s0 + $0x424] ss:$16 sps:$4 sm:$0xff]  }
 0x12c   :  { %3063 = vmatprep.mubr.bf16.mxu1 %v6282_v10  ;;  %v2304_v19 = vpop.f32.mrf.mxu0  ;;  %v6306_v13 = vld [vmem:[%s11047_s0 + $0x42c] ss:$16 sps:$4 sm:$0xff]  }
 0x12d   :  { %v2817_v20 = vpop.f32.mrf.mxu1  ;;  %5150 = vst [vmem:[%s11049_s3 + $0x170] sm:$0xff] %v2812_v17  ;;  %v2816_v21 = vadd.f32 %v2815_v16, %v2303_v18  ;;  %v2305_v22 = vadd.f32 %v2304_v19, %v7529_v34 }
 0x12e   :  { %v2306_v24 = vpop.f32.mrf.mxu0 }
 0x12f   :  { %v2819_v25 = vpop.f32.mrf.mxu1  ;;  %5154 = vst [vmem:[%s11049_s3 + $0x190] sm:$0xff] %v2816_v21  ;;  %v2818_v28 = vadd.f32 %v2817_v20, %v2305_v22  ;;  %v2307_v30 = vadd.f32 %v2306_v24, %v7515_v29 }
 0x130   :  { %v2308_v35 = vpop.f32.mrf.mxu0 }
 0x131   :  { %v2821_v36 = vpop.f32.mrf.mxu1  ;;  %5155 = vst [vmem:[%s11049_s3 + $0x198] sm:$0xff] %v2818_v28  ;;  %v2820_v38 = vadd.f32 %v2819_v25, %v2307_v30  ;;  %v2309_v39 = vadd.f32 %v2308_v35, %v7529_v34  ;;  %v6301_v30 = vld [vmem:[%s11047_s0 + $0x420] ss:$16 sps:$4 sm:$0xff]   ;;  %v6315_v35 = vld [vmem:[%s11047_s0 + $0x444] ss:$16 sps:$4 sm:$0xff]  }
 0x132   :  { %v2312_v42 = vpop.f32.mrf.mxu0  ;;  %2551 = vmatmul.mubr.bf16.gmra.mxu0 %v6277_v26 }
 0x133   :  { %v2825_v43 = vpop.f32.mrf.mxu1  ;;  %3064 = vmatmul.mubr.bf16.gmra.mxu1 %v6280_v27  ;;  %5159 = vst [vmem:[%s11049_s3 + $0x1b8] sm:$0xff] %v2820_v38  ;;  %v2822_v44 = vadd.f32 %v2821_v36, %v2309_v39  ;;  %v2313_v45 = vadd.f32 %v2312_v42, %v7515_v29  ;;  %2560 = vmatprep.mubr.bf16.mxu0 %v6291_v31  ;;  %v6304_v31 = vld [vmem:[%s11047_s0 + $0x428] ss:$16 sps:$4 sm:$0xff]   ;;  %v6318_v36 = vld [vmem:[%s11047_s0 + $0x44c] ss:$16 sps:$4 sm:$0xff]   ;;  %v6839_v39 = vmov 0  }
 0x134   :  { %3073 = vmatprep.mubr.bf16.mxu1 %v6294_v32  ;;  %v2314_v46 = vpop.f32.mrf.mxu0  ;;  %4270 = vmatprep.subr.bf16.mxu0 %v6839_v39 }
 0x135   :  { %v2827_v47 = vpop.f32.mrf.mxu1  ;;  %5160 = vst [vmem:[%s11049_s3 + $0x1c0] sm:$0xff] %v2822_v44  ;;  %v2826_v48 = vadd.f32 %v2825_v43, %v2313_v45  ;;  %v2315_v49 = vadd.f32 %v2314_v46, %v7529_v34  ;;  %4687 = vmatprep.subr.bf16.mxu1 %v6839_v39 }
 0x136   :  { %v2316_v50 = vpop.f32.mrf.mxu0 }
 0x137   :  { %v2829_v51 = vpop.f32.mrf.mxu1  ;;  %5164 = vst [vmem:[%s11049_s3 + $0x1e0] sm:$0xff] %v2826_v48  ;;  %v2828_v54 = vadd.f32 %v2827_v47, %v2315_v49  ;;  %v2317_v55 = vadd.f32 %v2316_v50, %v7515_v29 }
 0x138   :  { %v2318_v58 = vpop.f32.mrf.mxu0 }
 0x139   :  { %v2831_v59 = vpop.f32.mrf.mxu1  ;;  %5165 = vst [vmem:[%s11049_s3 + $0x1e8] sm:$0xff] %v2828_v54  ;;  %v2830_v60 = vadd.f32 %v2829_v51, %v2317_v55  ;;  %v2319_v61 = vadd.f32 %v2318_v58, %v7529_v34 }
 0x13a   :  { %v2322_v62 = vpop.f32.mrf.mxu0  ;;  %2561 = vmatmul.mubr.bf16.gmra.mxu0 %v6289_v52  ;;  %v6313_v52 = vld [vmem:[%s11047_s0 + $0x440] ss:$16 sps:$4 sm:$0xff]  }
 0x13b   :  { %v2835_v63 = vpop.f32.mrf.mxu1  ;;  %3074 = vmatmul.mubr.bf16.gmra.mxu1 %v6292_v53  ;;  %5169 = vst [vmem:[%s11049_s3 + $0x208] sm:$0xff] %v2830_v60  ;;  %v2832_v0 = vadd.f32 %v2831_v59, %v2319_v61  ;;  %v2323_v1 = vadd.f32 %v2322_v62, %v7515_v29  ;;  %2570 = vmatprep.mubr.bf16.mxu0 %v6297_v56  ;;  %v6316_v53 = vld [vmem:[%s11047_s0 + $0x448] ss:$16 sps:$4 sm:$0xff]   ;;  %v6321_v56 = vld [vmem:[%s11047_s0 + $0x464] ss:$16 sps:$4 sm:$0xff]  }
 0x13c   :  { %3083 = vmatprep.mubr.bf16.mxu1 %v6300_v57  ;;  %v2324_v2 = vpop.f32.mrf.mxu0  ;;  %v6324_v57 = vld [vmem:[%s11047_s0 + $0x46c] ss:$16 sps:$4 sm:$0xff]  }
 0x13d   :  { %v2837_v3 = vpop.f32.mrf.mxu1  ;;  %5170 = vst [vmem:[%s11049_s3 + $0x210] sm:$0xff] %v2832_v0  ;;  %v2836_v4 = vadd.f32 %v2835_v63, %v2323_v1  ;;  %v2325_v5 = vadd.f32 %v2324_v2, %v7529_v34 }
 0x13e   :  { %v2326_v6 = vpop.f32.mrf.mxu0 }
 0x13f   :  { %v2839_v7 = vpop.f32.mrf.mxu1  ;;  %5174 = vst [vmem:[%s11049_s3 + $0x230] sm:$0xff] %v2836_v4  ;;  %v2838_v10 = vadd.f32 %v2837_v3, %v2325_v5  ;;  %v2327_v11 = vadd.f32 %v2326_v6, %v7515_v29 }
 0x140   :  { %v2328_v14 = vpop.f32.mrf.mxu0 }
 0x141   :  { %v2841_v15 = vpop.f32.mrf.mxu1  ;;  %5175 = vst [vmem:[%s11049_s3 + $0x238] sm:$0xff] %v2838_v10  ;;  %v2840_v16 = vadd.f32 %v2839_v7, %v2327_v11  ;;  %v2329_v17 = vadd.f32 %v2328_v14, %v7529_v34 }
 0x142   :  { %v2332_v18 = vpop.f32.mrf.mxu0  ;;  %2571 = vmatmul.mubr.bf16.gmra.mxu0 %v6295_v8  ;;  %v6319_v8 = vld [vmem:[%s11047_s0 + $0x460] ss:$16 sps:$4 sm:$0xff]  }
 0x143   :  { %v2845_v19 = vpop.f32.mrf.mxu1  ;;  %3084 = vmatmul.mubr.bf16.gmra.mxu1 %v6298_v9  ;;  %5179 = vst [vmem:[%s11049_s3 + $0x258] sm:$0xff] %v2840_v16  ;;  %v2842_v20 = vadd.f32 %v2841_v15, %v2329_v17  ;;  %v2333_v21 = vadd.f32 %v2332_v18, %v7515_v29  ;;  %2580 = vmatprep.mubr.bf16.mxu0 %v6303_v12  ;;  %v6322_v9 = vld [vmem:[%s11047_s0 + $0x468] ss:$16 sps:$4 sm:$0xff]   ;;  %v6327_v12 = vld [vmem:[%s11047_s0 + $0x484] ss:$16 sps:$4 sm:$0xff]  }
 0x144   :  { %3093 = vmatprep.mubr.bf16.mxu1 %v6306_v13  ;;  %v2334_v22 = vpop.f32.mrf.mxu0  ;;  %v6330_v13 = vld [vmem:[%s11047_s0 + $0x48c] ss:$16 sps:$4 sm:$0xff]  }
 0x145   :  { %v2847_v24 = vpop.f32.mrf.mxu1  ;;  %5180 = vst [vmem:[%s11049_s3 + $0x260] sm:$0xff] %v2842_v20  ;;  %v2846_v25 = vadd.f32 %v2845_v19, %v2333_v21  ;;  %v2335_v26 = vadd.f32 %v2334_v22, %v7529_v34 }
 0x146   :  { %v2336_v27 = vpop.f32.mrf.mxu0 }
 0x147   :  { %v2849_v28 = vpop.f32.mrf.mxu1  ;;  %5184 = vst [vmem:[%s11049_s3 + $0x280] sm:$0xff] %v2846_v25  ;;  %v2848_v32 = vadd.f32 %v2847_v24, %v2335_v26  ;;  %v2337_v33 = vadd.f32 %v2336_v27, %v7515_v29 }
 0x148   :  { %v2338_v37 = vpop.f32.mrf.mxu0 }
 0x149   :  { %v2851_v38 = vpop.f32.mrf.mxu1  ;;  %5185 = vst [vmem:[%s11049_s3 + $0x288] sm:$0xff] %v2848_v32  ;;  %v2850_v40 = vadd.f32 %v2849_v28, %v2337_v33  ;;  %v2339_v41 = vadd.f32 %v2338_v37, %v7529_v34 }
 0x14a   :  { %v2342_v42 = vpop.f32.mrf.mxu0  ;;  %2581 = vmatmul.mubr.bf16.gmra.mxu0 %v6301_v30  ;;  %v6325_v30 = vld [vmem:[%s11047_s0 + $0x480] ss:$16 sps:$4 sm:$0xff]  }
 0x14b   :  { %v2855_v43 = vpop.f32.mrf.mxu1  ;;  %3094 = vmatmul.mubr.bf16.gmra.mxu1 %v6304_v31  ;;  %5189 = vst [vmem:[%s11049_s3 + $0x2a8] sm:$0xff] %v2850_v40  ;;  %v2852_v44 = vadd.f32 %v2851_v38, %v2339_v41  ;;  %v2343_v45 = vadd.f32 %v2342_v42, %v7515_v29  ;;  %2590 = vmatprep.mubr.bf16.mxu0 %v6315_v35  ;;  %v6328_v31 = vld [vmem:[%s11047_s0 + $0x488] ss:$16 sps:$4 sm:$0xff]   ;;  %v6339_v35 = vld [vmem:[%s11047_s0 + $0x4a4] ss:$16 sps:$4 sm:$0xff]  }
 0x14c   :  { %3103 = vmatprep.mubr.bf16.mxu1 %v6318_v36  ;;  %v2344_v46 = vpop.f32.mrf.mxu0  ;;  %v6342_v36 = vld [vmem:[%s11047_s0 + $0x4ac] ss:$16 sps:$4 sm:$0xff]  }
 0x14d   :  { %v2857_v47 = vpop.f32.mrf.mxu1  ;;  %5190 = vst [vmem:[%s11049_s3 + $0x2b0] sm:$0xff] %v2852_v44  ;;  %v2856_v48 = vadd.f32 %v2855_v43, %v2343_v45  ;;  %v2345_v49 = vadd.f32 %v2344_v46, %v7529_v34 }
 0x14e   :  { %v2346_v50 = vpop.f32.mrf.mxu0 }
 0x14f   :  { %v2859_v51 = vpop.f32.mrf.mxu1  ;;  %5194 = vst [vmem:[%s11049_s3 + $0x2d0] sm:$0xff] %v2856_v48  ;;  %v2858_v54 = vadd.f32 %v2857_v47, %v2345_v49  ;;  %v2347_v55 = vadd.f32 %v2346_v50, %v7515_v29 }
 0x150   :  { %v2348_v58 = vpop.f32.mrf.mxu0 }
 0x151   :  { %v2861_v59 = vpop.f32.mrf.mxu1  ;;  %5195 = vst [vmem:[%s11049_s3 + $0x2d8] sm:$0xff] %v2858_v54  ;;  %v2860_v60 = vadd.f32 %v2859_v51, %v2347_v55  ;;  %v2349_v61 = vadd.f32 %v2348_v58, %v7529_v34 }
 0x152   :  { %v2352_v62 = vpop.f32.mrf.mxu0  ;;  %2591 = vmatmul.mubr.bf16.gmra.mxu0 %v6313_v52  ;;  %v6337_v52 = vld [vmem:[%s11047_s0 + $0x4a0] ss:$16 sps:$4 sm:$0xff]  }
 0x153   :  { %v2865_v63 = vpop.f32.mrf.mxu1  ;;  %3104 = vmatmul.mubr.bf16.gmra.mxu1 %v6316_v53  ;;  %5199 = vst [vmem:[%s11049_s3 + $0x2f8] sm:$0xff] %v2860_v60  ;;  %v2862_v0 = vadd.f32 %v2861_v59, %v2349_v61  ;;  %v2353_v1 = vadd.f32 %v2352_v62, %v7515_v29  ;;  %2600 = vmatprep.mubr.bf16.mxu0 %v6321_v56  ;;  %v6340_v53 = vld [vmem:[%s11047_s0 + $0x4a8] ss:$16 sps:$4 sm:$0xff]   ;;  %v6345_v56 = vld [vmem:[%s11047_s0 + $0x4c4] ss:$16 sps:$4 sm:$0xff]  }
 0x154   :  { %3113 = vmatprep.mubr.bf16.mxu1 %v6324_v57  ;;  %v2354_v2 = vpop.f32.mrf.mxu0  ;;  %v6348_v57 = vld [vmem:[%s11047_s0 + $0x4cc] ss:$16 sps:$4 sm:$0xff]  }
 0x155   :  { %v2867_v3 = vpop.f32.mrf.mxu1  ;;  %5200 = vst [vmem:[%s11049_s3 + $0x300] sm:$0xff] %v2862_v0  ;;  %v2866_v4 = vadd.f32 %v2865_v63, %v2353_v1  ;;  %v2355_v5 = vadd.f32 %v2354_v2, %v7529_v34 }
 0x156   :  { %v2356_v6 = vpop.f32.mrf.mxu0 }
 0x157   :  { %v2869_v7 = vpop.f32.mrf.mxu1  ;;  %5204 = vst [vmem:[%s11049_s3 + $0x320] sm:$0xff] %v2866_v4  ;;  %v2868_v10 = vadd.f32 %v2867_v3, %v2355_v5  ;;  %v2357_v11 = vadd.f32 %v2356_v6, %v7515_v29 }
 0x158   :  { %v2358_v14 = vpop.f32.mrf.mxu0 }
 0x159   :  { %v2871_v15 = vpop.f32.mrf.mxu1  ;;  %5205 = vst [vmem:[%s11049_s3 + $0x328] sm:$0xff] %v2868_v10  ;;  %v2870_v16 = vadd.f32 %v2869_v7, %v2357_v11  ;;  %v2359_v17 = vadd.f32 %v2358_v14, %v7529_v34 }
 0x15a   :  { %v2362_v18 = vpop.f32.mrf.mxu0  ;;  %2601 = vmatmul.mubr.bf16.gmra.mxu0 %v6319_v8  ;;  %v6343_v8 = vld [vmem:[%s11047_s0 + $0x4c0] ss:$16 sps:$4 sm:$0xff]  }
 0x15b   :  { %v2875_v19 = vpop.f32.mrf.mxu1  ;;  %3114 = vmatmul.mubr.bf16.gmra.mxu1 %v6322_v9  ;;  %5209 = vst [vmem:[%s11049_s3 + $0x348] sm:$0xff] %v2870_v16  ;;  %v2872_v20 = vadd.f32 %v2871_v15, %v2359_v17  ;;  %v2363_v21 = vadd.f32 %v2362_v18, %v7515_v29  ;;  %2610 = vmatprep.mubr.bf16.mxu0 %v6327_v12  ;;  %v6346_v9 = vld [vmem:[%s11047_s0 + $0x4c8] ss:$16 sps:$4 sm:$0xff]   ;;  %v6351_v12 = vld [vmem:[%s11047_s0 + $0x4e4] ss:$16 sps:$4 sm:$0xff]  }
 0x15c   :  { %3123 = vmatprep.mubr.bf16.mxu1 %v6330_v13  ;;  %v2364_v22 = vpop.f32.mrf.mxu0  ;;  %v6354_v13 = vld [vmem:[%s11047_s0 + $0x4ec] ss:$16 sps:$4 sm:$0xff]  }
 0x15d   :  { %v2877_v24 = vpop.f32.mrf.mxu1  ;;  %5210 = vst [vmem:[%s11049_s3 + $0x350] sm:$0xff] %v2872_v20  ;;  %v2876_v25 = vadd.f32 %v2875_v19, %v2363_v21  ;;  %v2365_v26 = vadd.f32 %v2364_v22, %v7529_v34 }
 0x15e   :  { %v2366_v27 = vpop.f32.mrf.mxu0 }
 0x15f   :  { %v2879_v28 = vpop.f32.mrf.mxu1  ;;  %5214 = vst [vmem:[%s11049_s3 + $0x370] sm:$0xff] %v2876_v25  ;;  %v2878_v32 = vadd.f32 %v2877_v24, %v2365_v26  ;;  %v2367_v33 = vadd.f32 %v2366_v27, %v7515_v29 }
 0x160   :  { %v2368_v37 = vpop.f32.mrf.mxu0 }
 0x161   :  { %v2881_v38 = vpop.f32.mrf.mxu1  ;;  %5215 = vst [vmem:[%s11049_s3 + $0x378] sm:$0xff] %v2878_v32  ;;  %v2880_v40 = vadd.f32 %v2879_v28, %v2367_v33  ;;  %v2369_v41 = vadd.f32 %v2368_v37, %v7529_v34 }
 0x162   :  { %v2372_v42 = vpop.f32.mrf.mxu0  ;;  %2611 = vmatmul.mubr.bf16.gmra.mxu0 %v6325_v30  ;;  %v6349_v30 = vld [vmem:[%s11047_s0 + $0x4e0] ss:$16 sps:$4 sm:$0xff]  }
 0x163   :  { %v2885_v43 = vpop.f32.mrf.mxu1  ;;  %3124 = vmatmul.mubr.bf16.gmra.mxu1 %v6328_v31  ;;  %5219 = vst [vmem:[%s11049_s3 + $0x398] sm:$0xff] %v2880_v40  ;;  %v2882_v44 = vadd.f32 %v2881_v38, %v2369_v41  ;;  %v2373_v45 = vadd.f32 %v2372_v42, %v7515_v29  ;;  %2620 = vmatprep.mubr.bf16.mxu0 %v6339_v35  ;;  %v6352_v31 = vld [vmem:[%s11047_s0 + $0x4e8] ss:$16 sps:$4 sm:$0xff]   ;;  %v6363_v35 = vld [vmem:[%s11047_s0 + $0x504] ss:$16 sps:$4 sm:$0xff]  }
 0x164   :  { %3133 = vmatprep.mubr.bf16.mxu1 %v6342_v36  ;;  %v2374_v46 = vpop.f32.mrf.mxu0  ;;  %v6366_v36 = vld [vmem:[%s11047_s0 + $0x50c] ss:$16 sps:$4 sm:$0xff]  }
 0x165   :  { %v2887_v47 = vpop.f32.mrf.mxu1  ;;  %5220 = vst [vmem:[%s11049_s3 + $0x3a0] sm:$0xff] %v2882_v44  ;;  %v2886_v48 = vadd.f32 %v2885_v43, %v2373_v45  ;;  %v2375_v49 = vadd.f32 %v2374_v46, %v7529_v34 }
 0x166   :  { %v2376_v50 = vpop.f32.mrf.mxu0 }
 0x167   :  { %v2889_v51 = vpop.f32.mrf.mxu1  ;;  %5224 = vst [vmem:[%s11049_s3 + $0x3c0] sm:$0xff] %v2886_v48  ;;  %v2888_v54 = vadd.f32 %v2887_v47, %v2375_v49  ;;  %v2377_v55 = vadd.f32 %v2376_v50, %v7515_v29 }
 0x168   :  { %v2378_v58 = vpop.f32.mrf.mxu0 }
 0x169   :  { %v2891_v59 = vpop.f32.mrf.mxu1  ;;  %5225 = vst [vmem:[%s11049_s3 + $0x3c8] sm:$0xff] %v2888_v54  ;;  %v2890_v60 = vadd.f32 %v2889_v51, %v2377_v55  ;;  %v2379_v61 = vadd.f32 %v2378_v58, %v7529_v34 }
 0x16a   :  { %v2382_v62 = vpop.f32.mrf.mxu0  ;;  %2621 = vmatmul.mubr.bf16.gmra.mxu0 %v6337_v52  ;;  %v6361_v52 = vld [vmem:[%s11047_s0 + $0x500] ss:$16 sps:$4 sm:$0xff]  }
 0x16b   :  { %v2895_v63 = vpop.f32.mrf.mxu1  ;;  %3134 = vmatmul.mubr.bf16.gmra.mxu1 %v6340_v53  ;;  %5229 = vst [vmem:[%s11049_s3 + $0x3e8] sm:$0xff] %v2890_v60  ;;  %v2892_v0 = vadd.f32 %v2891_v59, %v2379_v61  ;;  %v2383_v1 = vadd.f32 %v2382_v62, %v7515_v29  ;;  %2630 = vmatprep.mubr.bf16.mxu0 %v6345_v56  ;;  %v6364_v53 = vld [vmem:[%s11047_s0 + $0x508] ss:$16 sps:$4 sm:$0xff]   ;;  %v6369_v56 = vld [vmem:[%s11047_s0 + $0x524] ss:$16 sps:$4 sm:$0xff]  }
 0x16c   :  { %3143 = vmatprep.mubr.bf16.mxu1 %v6348_v57  ;;  %v2384_v2 = vpop.f32.mrf.mxu0  ;;  %v6372_v57 = vld [vmem:[%s11047_s0 + $0x52c] ss:$16 sps:$4 sm:$0xff]  }
 0x16d   :  { %v2897_v3 = vpop.f32.mrf.mxu1  ;;  %5230 = vst [vmem:[%s11049_s3 + $0x3f0] sm:$0xff] %v2892_v0  ;;  %v2896_v4 = vadd.f32 %v2895_v63, %v2383_v1  ;;  %v2385_v5 = vadd.f32 %v2384_v2, %v7529_v34 }
 0x16e   :  { %v2386_v6 = vpop.f32.mrf.mxu0 }
 0x16f   :  { %v2899_v7 = vpop.f32.mrf.mxu1  ;;  %5234 = vst [vmem:[%s11049_s3 + $0x410] sm:$0xff] %v2896_v4  ;;  %v2898_v10 = vadd.f32 %v2897_v3, %v2385_v5  ;;  %v2387_v11 = vadd.f32 %v2386_v6, %v7515_v29 }
 0x170   :  { %v2388_v14 = vpop.f32.mrf.mxu0 }
 0x171   :  { %v2901_v15 = vpop.f32.mrf.mxu1  ;;  %5235 = vst [vmem:[%s11049_s3 + $0x418] sm:$0xff] %v2898_v10  ;;  %v2900_v16 = vadd.f32 %v2899_v7, %v2387_v11  ;;  %v2389_v17 = vadd.f32 %v2388_v14, %v7529_v34 }
 0x172   :  { %v2392_v18 = vpop.f32.mrf.mxu0  ;;  %2631 = vmatmul.mubr.bf16.gmra.mxu0 %v6343_v8  ;;  %v6367_v8 = vld [vmem:[%s11047_s0 + $0x520] ss:$16 sps:$4 sm:$0xff]  }
 0x173   :  { %v2905_v19 = vpop.f32.mrf.mxu1  ;;  %3144 = vmatmul.mubr.bf16.gmra.mxu1 %v6346_v9  ;;  %5239 = vst [vmem:[%s11049_s3 + $0x438] sm:$0xff] %v2900_v16  ;;  %v2902_v20 = vadd.f32 %v2901_v15, %v2389_v17  ;;  %v2393_v21 = vadd.f32 %v2392_v18, %v7515_v29  ;;  %2640 = vmatprep.mubr.bf16.mxu0 %v6351_v12  ;;  %v6370_v9 = vld [vmem:[%s11047_s0 + $0x528] ss:$16 sps:$4 sm:$0xff]   ;;  %v6375_v12 = vld [vmem:[%s11047_s0 + $0x544] ss:$16 sps:$4 sm:$0xff]  }
 0x174   :  { %3153 = vmatprep.mubr.bf16.mxu1 %v6354_v13  ;;  %v2394_v22 = vpop.f32.mrf.mxu0  ;;  %v6378_v13 = vld [vmem:[%s11047_s0 + $0x54c] ss:$16 sps:$4 sm:$0xff]  }
 0x175   :  { %v2907_v24 = vpop.f32.mrf.mxu1  ;;  %5240 = vst [vmem:[%s11049_s3 + $0x440] sm:$0xff] %v2902_v20  ;;  %v2906_v25 = vadd.f32 %v2905_v19, %v2393_v21  ;;  %v2395_v26 = vadd.f32 %v2394_v22, %v7529_v34 }
 0x176   :  { %v2396_v27 = vpop.f32.mrf.mxu0 }
 0x177   :  { %v2909_v28 = vpop.f32.mrf.mxu1  ;;  %5244 = vst [vmem:[%s11049_s3 + $0x460] sm:$0xff] %v2906_v25  ;;  %v2908_v32 = vadd.f32 %v2907_v24, %v2395_v26  ;;  %v2397_v33 = vadd.f32 %v2396_v27, %v7515_v29 }
 0x178   :  { %v2398_v37 = vpop.f32.mrf.mxu0 }
 0x179   :  { %v2911_v38 = vpop.f32.mrf.mxu1  ;;  %5245 = vst [vmem:[%s11049_s3 + $0x468] sm:$0xff] %v2908_v32  ;;  %v2910_v40 = vadd.f32 %v2909_v28, %v2397_v33  ;;  %v2399_v41 = vadd.f32 %v2398_v37, %v7529_v34 }
 0x17a   :  { %v2402_v42 = vpop.f32.mrf.mxu0  ;;  %2641 = vmatmul.mubr.bf16.gmra.mxu0 %v6349_v30  ;;  %v6373_v30 = vld [vmem:[%s11047_s0 + $0x540] ss:$16 sps:$4 sm:$0xff]  }
 0x17b   :  { %v2915_v43 = vpop.f32.mrf.mxu1  ;;  %3154 = vmatmul.mubr.bf16.gmra.mxu1 %v6352_v31  ;;  %5249 = vst [vmem:[%s11049_s3 + $0x488] sm:$0xff] %v2910_v40  ;;  %v2912_v44 = vadd.f32 %v2911_v38, %v2399_v41  ;;  %v2403_v45 = vadd.f32 %v2402_v42, %v7515_v29  ;;  %2650 = vmatprep.mubr.bf16.mxu0 %v6363_v35  ;;  %v6376_v31 = vld [vmem:[%s11047_s0 + $0x548] ss:$16 sps:$4 sm:$0xff]   ;;  %v6387_v35 = vld [vmem:[%s11047_s0 + $0x564] ss:$16 sps:$4 sm:$0xff]  }
 0x17c   :  { %3163 = vmatprep.mubr.bf16.mxu1 %v6366_v36  ;;  %v2404_v46 = vpop.f32.mrf.mxu0  ;;  %v6390_v36 = vld [vmem:[%s11047_s0 + $0x56c] ss:$16 sps:$4 sm:$0xff]  }
 0x17d   :  { %v2917_v47 = vpop.f32.mrf.mxu1  ;;  %5250 = vst [vmem:[%s11049_s3 + $0x490] sm:$0xff] %v2912_v44  ;;  %v2916_v48 = vadd.f32 %v2915_v43, %v2403_v45  ;;  %v2405_v49 = vadd.f32 %v2404_v46, %v7529_v34 }
 0x17e   :  { %v2406_v50 = vpop.f32.mrf.mxu0 }
 0x17f   :  { %v2919_v51 = vpop.f32.mrf.mxu1  ;;  %5254 = vst [vmem:[%s11049_s3 + $0x4b0] sm:$0xff] %v2916_v48  ;;  %v2918_v54 = vadd.f32 %v2917_v47, %v2405_v49  ;;  %v2407_v55 = vadd.f32 %v2406_v50, %v7515_v29 }
 0x180   :  { %v2408_v58 = vpop.f32.mrf.mxu0 }
 0x181   :  { %v2921_v59 = vpop.f32.mrf.mxu1  ;;  %5255 = vst [vmem:[%s11049_s3 + $0x4b8] sm:$0xff] %v2918_v54  ;;  %v2920_v60 = vadd.f32 %v2919_v51, %v2407_v55  ;;  %v2409_v61 = vadd.f32 %v2408_v58, %v7529_v34 }
 0x182   :  { %v2412_v62 = vpop.f32.mrf.mxu0  ;;  %2651 = vmatmul.mubr.bf16.gmra.mxu0 %v6361_v52  ;;  %v6385_v52 = vld [vmem:[%s11047_s0 + $0x560] ss:$16 sps:$4 sm:$0xff]  }
 0x183   :  { %v2925_v63 = vpop.f32.mrf.mxu1  ;;  %3164 = vmatmul.mubr.bf16.gmra.mxu1 %v6364_v53  ;;  %5259 = vst [vmem:[%s11049_s3 + $0x4d8] sm:$0xff] %v2920_v60  ;;  %v2922_v0 = vadd.f32 %v2921_v59, %v2409_v61  ;;  %v2413_v1 = vadd.f32 %v2412_v62, %v7515_v29  ;;  %2660 = vmatprep.mubr.bf16.mxu0 %v6369_v56  ;;  %v6388_v53 = vld [vmem:[%s11047_s0 + $0x568] ss:$16 sps:$4 sm:$0xff]   ;;  %v6393_v56 = vld [vmem:[%s11047_s0 + $0x584] ss:$16 sps:$4 sm:$0xff]  }
 0x184   :  { %3173 = vmatprep.mubr.bf16.mxu1 %v6372_v57  ;;  %v2414_v2 = vpop.f32.mrf.mxu0  ;;  %v6396_v57 = vld [vmem:[%s11047_s0 + $0x58c] ss:$16 sps:$4 sm:$0xff]  }
 0x185   :  { %v2927_v3 = vpop.f32.mrf.mxu1  ;;  %5260 = vst [vmem:[%s11049_s3 + $0x4e0] sm:$0xff] %v2922_v0  ;;  %v2926_v4 = vadd.f32 %v2925_v63, %v2413_v1  ;;  %v2415_v5 = vadd.f32 %v2414_v2, %v7529_v34 }
 0x186   :  { %v2416_v6 = vpop.f32.mrf.mxu0 }
 0x187   :  { %v2929_v7 = vpop.f32.mrf.mxu1  ;;  %5264 = vst [vmem:[%s11049_s3 + $0x500] sm:$0xff] %v2926_v4  ;;  %v2928_v10 = vadd.f32 %v2927_v3, %v2415_v5  ;;  %v2417_v11 = vadd.f32 %v2416_v6, %v7515_v29 }
 0x188   :  { %v2418_v14 = vpop.f32.mrf.mxu0 }
 0x189   :  { %v2931_v15 = vpop.f32.mrf.mxu1  ;;  %5265 = vst [vmem:[%s11049_s3 + $0x508] sm:$0xff] %v2928_v10  ;;  %v2930_v16 = vadd.f32 %v2929_v7, %v2417_v11  ;;  %v2419_v17 = vadd.f32 %v2418_v14, %v7529_v34 }
 0x18a   :  { %v2422_v18 = vpop.f32.mrf.mxu0  ;;  %2661 = vmatmul.mubr.bf16.gmra.mxu0 %v6367_v8  ;;  %v6391_v8 = vld [vmem:[%s11047_s0 + $0x580] ss:$16 sps:$4 sm:$0xff]  }
 0x18b   :  { %v2935_v19 = vpop.f32.mrf.mxu1  ;;  %3174 = vmatmul.mubr.bf16.gmra.mxu1 %v6370_v9  ;;  %5269 = vst [vmem:[%s11049_s3 + $0x528] sm:$0xff] %v2930_v16  ;;  %v2932_v20 = vadd.f32 %v2931_v15, %v2419_v17  ;;  %v2423_v21 = vadd.f32 %v2422_v18, %v7515_v29  ;;  %2670 = vmatprep.mubr.bf16.mxu0 %v6375_v12  ;;  %v6394_v9 = vld [vmem:[%s11047_s0 + $0x588] ss:$16 sps:$4 sm:$0xff]   ;;  %v6399_v12 = vld [vmem:[%s11047_s0 + $0x5a4] ss:$16 sps:$4 sm:$0xff]  }
 0x18c   :  { %3183 = vmatprep.mubr.bf16.mxu1 %v6378_v13  ;;  %v2424_v22 = vpop.f32.mrf.mxu0  ;;  %v6402_v13 = vld [vmem:[%s11047_s0 + $0x5ac] ss:$16 sps:$4 sm:$0xff]  }
 0x18d   :  { %v2937_v24 = vpop.f32.mrf.mxu1  ;;  %5270 = vst [vmem:[%s11049_s3 + $0x530] sm:$0xff] %v2932_v20  ;;  %v2936_v25 = vadd.f32 %v2935_v19, %v2423_v21  ;;  %v2425_v26 = vadd.f32 %v2424_v22, %v7529_v34 }
 0x18e   :  { %v2426_v27 = vpop.f32.mrf.mxu0 }
 0x18f   :  { %v2939_v28 = vpop.f32.mrf.mxu1  ;;  %5274 = vst [vmem:[%s11049_s3 + $0x550] sm:$0xff] %v2936_v25  ;;  %v2938_v32 = vadd.f32 %v2937_v24, %v2425_v26  ;;  %v2427_v33 = vadd.f32 %v2426_v27, %v7515_v29 }
 0x190   :  { %v2428_v37 = vpop.f32.mrf.mxu0 }
 0x191   :  { %v2941_v38 = vpop.f32.mrf.mxu1  ;;  %5275 = vst [vmem:[%s11049_s3 + $0x558] sm:$0xff] %v2938_v32  ;;  %v2940_v40 = vadd.f32 %v2939_v28, %v2427_v33  ;;  %v2429_v41 = vadd.f32 %v2428_v37, %v7529_v34 }
 0x192   :  { %v2432_v42 = vpop.f32.mrf.mxu0  ;;  %2671 = vmatmul.mubr.bf16.gmra.mxu0 %v6373_v30  ;;  %v6397_v30 = vld [vmem:[%s11047_s0 + $0x5a0] ss:$16 sps:$4 sm:$0xff]  }
 0x193   :  { %v2945_v43 = vpop.f32.mrf.mxu1  ;;  %3184 = vmatmul.mubr.bf16.gmra.mxu1 %v6376_v31  ;;  %5279 = vst [vmem:[%s11049_s3 + $0x578] sm:$0xff] %v2940_v40  ;;  %v2942_v44 = vadd.f32 %v2941_v38, %v2429_v41  ;;  %v2433_v45 = vadd.f32 %v2432_v42, %v7515_v29  ;;  %2680 = vmatprep.mubr.bf16.mxu0 %v6387_v35  ;;  %v6400_v31 = vld [vmem:[%s11047_s0 + $0x5a8] ss:$16 sps:$4 sm:$0xff]   ;;  %v6411_v35 = vld [vmem:[%s11047_s0 + $0x5c4] ss:$16 sps:$4 sm:$0xff]  }
 0x194   :  { %3193 = vmatprep.mubr.bf16.mxu1 %v6390_v36  ;;  %v2434_v46 = vpop.f32.mrf.mxu0  ;;  %v6414_v36 = vld [vmem:[%s11047_s0 + $0x5cc] ss:$16 sps:$4 sm:$0xff]  }
 0x195   :  { %v2947_v47 = vpop.f32.mrf.mxu1  ;;  %5280 = vst [vmem:[%s11049_s3 + $0x580] sm:$0xff] %v2942_v44  ;;  %v2946_v48 = vadd.f32 %v2945_v43, %v2433_v45  ;;  %v2435_v49 = vadd.f32 %v2434_v46, %v7529_v34 }
 0x196   :  { %v2436_v50 = vpop.f32.mrf.mxu0 }
 0x197   :  { %v2949_v51 = vpop.f32.mrf.mxu1  ;;  %5284 = vst [vmem:[%s11049_s3 + $0x5a0] sm:$0xff] %v2946_v48  ;;  %v2948_v54 = vadd.f32 %v2947_v47, %v2435_v49  ;;  %v2437_v55 = vadd.f32 %v2436_v50, %v7515_v29 }
 0x198   :  { %v2438_v58 = vpop.f32.mrf.mxu0 }
 0x199   :  { %v2951_v59 = vpop.f32.mrf.mxu1  ;;  %5285 = vst [vmem:[%s11049_s3 + $0x5a8] sm:$0xff] %v2948_v54  ;;  %v2950_v60 = vadd.f32 %v2949_v51, %v2437_v55  ;;  %v2439_v61 = vadd.f32 %v2438_v58, %v7529_v34 }
 0x19a   :  { %v2442_v62 = vpop.f32.mrf.mxu0  ;;  %2681 = vmatmul.mubr.bf16.gmra.mxu0 %v6385_v52  ;;  %v6409_v52 = vld [vmem:[%s11047_s0 + $0x5c0] ss:$16 sps:$4 sm:$0xff]  }
 0x19b   :  { %v2955_v63 = vpop.f32.mrf.mxu1  ;;  %3194 = vmatmul.mubr.bf16.gmra.mxu1 %v6388_v53  ;;  %5289 = vst [vmem:[%s11049_s3 + $0x5c8] sm:$0xff] %v2950_v60  ;;  %v2952_v0 = vadd.f32 %v2951_v59, %v2439_v61  ;;  %v2443_v1 = vadd.f32 %v2442_v62, %v7515_v29  ;;  %2690 = vmatprep.mubr.bf16.mxu0 %v6393_v56  ;;  %v6412_v53 = vld [vmem:[%s11047_s0 + $0x5c8] ss:$16 sps:$4 sm:$0xff]   ;;  %v6417_v56 = vld [vmem:[%s11047_s0 + $0x5e4] ss:$16 sps:$4 sm:$0xff]  }
 0x19c   :  { %3203 = vmatprep.mubr.bf16.mxu1 %v6396_v57  ;;  %v2444_v2 = vpop.f32.mrf.mxu0  ;;  %v6420_v57 = vld [vmem:[%s11047_s0 + $0x5ec] ss:$16 sps:$4 sm:$0xff]  }
 0x19d   :  { %v2957_v3 = vpop.f32.mrf.mxu1  ;;  %5290 = vst [vmem:[%s11049_s3 + $0x5d0] sm:$0xff] %v2952_v0  ;;  %v2956_v4 = vadd.f32 %v2955_v63, %v2443_v1  ;;  %v2445_v5 = vadd.f32 %v2444_v2, %v7529_v34 }
 0x19e   :  { %v2446_v6 = vpop.f32.mrf.mxu0 }
 0x19f   :  { %v2959_v7 = vpop.f32.mrf.mxu1  ;;  %5294 = vst [vmem:[%s11049_s3 + $0x5f0] sm:$0xff] %v2956_v4  ;;  %v2958_v10 = vadd.f32 %v2957_v3, %v2445_v5  ;;  %v2447_v11 = vadd.f32 %v2446_v6, %v7515_v29 }
 0x1a0   :  { %v2448_v14 = vpop.f32.mrf.mxu0 }
 0x1a1   :  { %v2961_v15 = vpop.f32.mrf.mxu1  ;;  %5295 = vst [vmem:[%s11049_s3 + $0x5f8] sm:$0xff] %v2958_v10  ;;  %v2960_v16 = vadd.f32 %v2959_v7, %v2447_v11  ;;  %v2449_v17 = vadd.f32 %v2448_v14, %v7529_v34 }
 0x1a2   :  { %v2452_v18 = vpop.f32.mrf.mxu0  ;;  %2691 = vmatmul.mubr.bf16.gmra.mxu0 %v6391_v8  ;;  %v6415_v8 = vld [vmem:[%s11047_s0 + $0x5e0] ss:$16 sps:$4 sm:$0xff]  }
 0x1a3   :  { %v2965_v19 = vpop.f32.mrf.mxu1  ;;  %3204 = vmatmul.mubr.bf16.gmra.mxu1 %v6394_v9  ;;  %5299 = vst [vmem:[%s11049_s3 + $0x618] sm:$0xff] %v2960_v16  ;;  %v2962_v20 = vadd.f32 %v2961_v15, %v2449_v17  ;;  %v2453_v21 = vadd.f32 %v2452_v18, %v7515_v29  ;;  %2700 = vmatprep.mubr.bf16.mxu0 %v6399_v12  ;;  %v6418_v9 = vld [vmem:[%s11047_s0 + $0x5e8] ss:$16 sps:$4 sm:$0xff]  }
 0x1a4   :  { %3213 = vmatprep.mubr.bf16.mxu1 %v6402_v13  ;;  %v2454_v22 = vpop.f32.mrf.mxu0 }
 0x1a5   :  { %v2967_v24 = vpop.f32.mrf.mxu1  ;;  %5300 = vst [vmem:[%s11049_s3 + $0x620] sm:$0xff] %v2962_v20  ;;  %v2966_v25 = vadd.f32 %v2965_v19, %v2453_v21  ;;  %v2455_v26 = vadd.f32 %v2454_v22, %v7529_v34  ;;  %v6453_v20 = vld [vmem:[%s11047_s0 + $0x4] ss:$16 sps:$4 sm:$0xff]   ;;  %v6454_v21 = vld [vmem:[%s11047_s0 + $0xc] ss:$16 sps:$4 sm:$0xff]  }
 0x1a6   :  { %v2456_v27 = vpop.f32.mrf.mxu0 }
 0x1a7   :  { %v2969_v28 = vpop.f32.mrf.mxu1  ;;  %5304 = vst [vmem:[%s11049_s3 + $0x640] sm:$0xff] %v2966_v25  ;;  %v2968_v32 = vadd.f32 %v2967_v24, %v2455_v26  ;;  %v2457_v33 = vadd.f32 %v2456_v27, %v7515_v29 }
 0x1a8   :  { %v2458_v37 = vpop.f32.mrf.mxu0 }
 0x1a9   :  { %v2971_v38 = vpop.f32.mrf.mxu1  ;;  %5305 = vst [vmem:[%s11049_s3 + $0x648] sm:$0xff] %v2968_v32  ;;  %v2970_v40 = vadd.f32 %v2969_v28, %v2457_v33  ;;  %v2459_v41 = vadd.f32 %v2458_v37, %v7529_v34  ;;  %v6421_v32 = vld [vmem:[%s11046_s1 + $0x128] ss:$20 sps:$4 sm:$0xff]  }
 0x1aa   :  { %v2462_v42 = vpop.f32.mrf.mxu0  ;;  %2701 = vmatmul.mubr.bf16.gmra.mxu0 %v6397_v30  ;;  %v6422_v33 = vld [vmem:[%s11046_s1 + $0x3a8] ss:$20 sps:$4 sm:$0xff]  }
 0x1ab   :  { %v2975_v43 = vpop.f32.mrf.mxu1  ;;  %3214 = vmatmul.mubr.bf16.gmra.mxu1 %v6400_v31  ;;  %5309 = vst [vmem:[%s11049_s3 + $0x668] sm:$0xff] %v2970_v40  ;;  %v2972_v44 = vadd.f32 %v2971_v38, %v2459_v41  ;;  %v2463_v45 = vadd.f32 %v2462_v42, %v7515_v29  ;;  %2710 = vmatprep.mubr.bf16.mxu0 %v6411_v35  ;;  %v6455_v42 = vld [vmem:[%s11047_s0] ss:$16 sps:$4 sm:$0xff]  }
 0x1ac   :  { %3223 = vmatprep.mubr.bf16.mxu1 %v6414_v36  ;;  %v2464_v46 = vpop.f32.mrf.mxu0 }
 0x1ad   :  { %v2977_v47 = vpop.f32.mrf.mxu1  ;;  %5310 = vst [vmem:[%s11049_s3 + $0x670] sm:$0xff] %v2972_v44  ;;  %v2976_v48 = vadd.f32 %v2975_v43, %v2463_v45  ;;  %v2465_v49 = vadd.f32 %v2464_v46, %v7529_v34  ;;  %v6456_v43 = vld [vmem:[%s11047_s0 + $0x8] ss:$16 sps:$4 sm:$0xff]   ;;  %v6423_v46 = vld [vmem:[%s11046_s1 + $0x100] ss:$20 sps:$4 sm:$0xff]  }
 0x1ae   :  { %v2466_v50 = vpop.f32.mrf.mxu0 }
 0x1af   :  { %v2979_v51 = vpop.f32.mrf.mxu1  ;;  %5314 = vst [vmem:[%s11049_s3 + $0x690] sm:$0xff] %v2976_v48  ;;  %v2978_v54 = vadd.f32 %v2977_v47, %v2465_v49  ;;  %v2467_v55 = vadd.f32 %v2466_v50, %v7515_v29  ;;  %v6424_v47 = vld [vmem:[%s11046_s1 + $0x380] ss:$20 sps:$4 sm:$0xff]  }
 0x1b0   :  { %v2468_v58 = vpop.f32.mrf.mxu0  ;;  %v6457_v50 = vld [vmem:[%s11047_s0 + $0x24] ss:$16 sps:$4 sm:$0xff]  }
 0x1b1   :  { %v2981_v59 = vpop.f32.mrf.mxu1  ;;  %5315 = vst [vmem:[%s11049_s3 + $0x698] sm:$0xff] %v2978_v54  ;;  %v2980_v60 = vadd.f32 %v2979_v51, %v2467_v55  ;;  %v2469_v61 = vadd.f32 %v2468_v58, %v7529_v34  ;;  %v6458_v51 = vld [vmem:[%s11047_s0 + $0x2c] ss:$16 sps:$4 sm:$0xff]  }
 0x1b2   :  { %v2472_v62 = vpop.f32.mrf.mxu0  ;;  %2711 = vmatmul.mubr.bf16.gmra.mxu0 %v6409_v52 }
 0x1b3   :  { %v2985_v63 = vpop.f32.mrf.mxu1  ;;  %3224 = vmatmul.mubr.bf16.gmra.mxu1 %v6412_v53  ;;  %5319 = vst [vmem:[%s11049_s3 + $0x6b8] sm:$0xff] %v2980_v60  ;;  %v2982_v0 = vadd.f32 %v2981_v59, %v2469_v61  ;;  %v2473_v1 = vadd.f32 %v2472_v62, %v7515_v29  ;;  %2720 = vmatprep.mubr.bf16.mxu0 %v6417_v56  ;;  %v6425_v60 = vld [vmem:[%s11046_s1 + $0xd8] ss:$20 sps:$4 sm:$0xff]  }
 0x1b4   :  { %3233 = vmatprep.mubr.bf16.mxu1 %v6420_v57  ;;  %v2474_v2 = vpop.f32.mrf.mxu0  ;;  %v6426_v61 = vld [vmem:[%s11046_s1 + $0x358] ss:$20 sps:$4 sm:$0xff]  }
 0x1b5   :  { %v2987_v3 = vpop.f32.mrf.mxu1  ;;  %5320 = vst [vmem:[%s11049_s3 + $0x6c0] sm:$0xff] %v2982_v0  ;;  %v2986_v4 = vadd.f32 %v2985_v63, %v2473_v1  ;;  %v2475_v5 = vadd.f32 %v2474_v2, %v7529_v34  ;;  %v6459_v2 = vld [vmem:[%s11047_s0 + $0x20] ss:$16 sps:$4 sm:$0xff]  }
 0x1b6   :  { %v2476_v6 = vpop.f32.mrf.mxu0 }
 0x1b7   :  { %v2989_v7 = vpop.f32.mrf.mxu1  ;;  %5324 = vst [vmem:[%s11049_s3 + $0x6e0] sm:$0xff] %v2986_v4  ;;  %v2988_v10 = vadd.f32 %v2987_v3, %v2475_v5  ;;  %v2477_v11 = vadd.f32 %v2476_v6, %v7515_v29  ;;  %v6460_v3 = vld [vmem:[%s11047_s0 + $0x28] ss:$16 sps:$4 sm:$0xff]   ;;  %v6461_v6 = vld [vmem:[%s11047_s0 + $0x44] ss:$16 sps:$4 sm:$0xff]  }
 0x1b8   :  { %v2478_v12 = vpop.f32.mrf.mxu0 }
 0x1b9   :  { %v2991_v13 = vpop.f32.mrf.mxu1  ;;  %5325 = vst [vmem:[%s11049_s3 + $0x6e8] sm:$0xff] %v2988_v10  ;;  %v2990_v14 = vadd.f32 %v2989_v7, %v2477_v11  ;;  %v2479_v15 = vadd.f32 %v2478_v12, %v7529_v34  ;;  %v6462_v7 = vld [vmem:[%s11047_s0 + $0x4c] ss:$16 sps:$4 sm:$0xff]   ;;  %v6427_v10 = vld [vmem:[%s11046_s1 + $0xb0] ss:$20 sps:$4 sm:$0xff]  }
 0x1ba   :  { %v2482_v16 = vpop.f32.mrf.mxu0  ;;  %2721 = vmatmul.mubr.bf16.gmra.mxu0 %v6415_v8  ;;  %v6428_v11 = vld [vmem:[%s11046_s1 + $0x330] ss:$20 sps:$4 sm:$0xff]  }
 0x1bb   :  { %v2995_v17 = vpop.f32.mrf.mxu1  ;;  %3234 = vmatmul.mubr.bf16.gmra.mxu1 %v6418_v9  ;;  %5329 = vst [vmem:[%s11049_s3 + $0x708] sm:$0xff] %v2990_v14  ;;  %v2992_v18 = vadd.f32 %v2991_v13, %v2479_v15  ;;  %v2483_v19 = vadd.f32 %v2482_v16, %v7515_v29  ;;  %3276 = vmatprep.mubr.bf16.mxu0 %v6453_v20  ;;  %v6429_v20 = vld [vmem:[%s11046_s1 + $0x88] ss:$20 sps:$4 sm:$0xff]  }
 0x1bc   :  { %3789 = vmatprep.mubr.bf16.mxu1 %v6454_v21  ;;  %v2484_v22 = vpop.f32.mrf.mxu0  ;;  %v6430_v21 = vld [vmem:[%s11046_s1 + $0x308] ss:$20 sps:$4 sm:$0xff]  }
 0x1bd   :  { %v2997_v24 = vpop.f32.mrf.mxu1  ;;  %5330 = vst [vmem:[%s11049_s3 + $0x710] sm:$0xff] %v2992_v18  ;;  %v2996_v25 = vadd.f32 %v2995_v17, %v2483_v19  ;;  %v2485_v26 = vadd.f32 %v2484_v22, %v7529_v34 }
 0x1be   :  { %v2486_v27 = vpop.f32.mrf.mxu0 }
 0x1bf   :  { %v2999_v28 = vpop.f32.mrf.mxu1  ;;  %5334 = vst [vmem:[%s11049_s3 + $0x730] sm:$0xff] %v2996_v25  ;;  %v2998_v30 = vadd.f32 %v2997_v24, %v2485_v26  ;;  %v2487_v31 = vadd.f32 %v2486_v27, %v7515_v29  ;;  %v6463_v27 = vld [vmem:[%s11047_s0 + $0x40] ss:$16 sps:$4 sm:$0xff]  }
 0x1c0   :  { %v2488_v35 = vpop.f32.mrf.mxu0 }
 0x1c1   :  { %v3001_v36 = vpop.f32.mrf.mxu1  ;;  %5335 = vst [vmem:[%s11049_s3 + $0x738] sm:$0xff] %v2998_v30  ;;  %v3000_v37 = vadd.f32 %v2999_v28, %v2487_v31  ;;  %v2489_v38 = vadd.f32 %v2488_v35, %v7529_v34  ;;  %v6464_v28 = vld [vmem:[%s11047_s0 + $0x48] ss:$16 sps:$4 sm:$0xff]  }
 0x1c2   :  { %v2492_v40 = vpop.f32.mrf.mxu0  ;;  %3277 = vmatmul.mubr.bf16.vlgmr.msra.gmra.mxu0 %v6455_v42 }
 0x1c3   :  { %v3005_v41 = vpop.f32.mrf.mxu1  ;;  %3790 = vmatmul.mubr.bf16.vlgmr.msra.gmra.mxu1 %v6456_v43  ;;  %5339 = vst [vmem:[%s11049_s3 + $0x758] sm:$0xff] %v3000_v37  ;;  %v3002_v44 = vadd.f32 %v3001_v36, %v2489_v38  ;;  %v2493_v45 = vadd.f32 %v2492_v40, %v7515_v29  ;;  %4271 = vmatpush1.bf16.msra.mxu0 %v6421_v32  ;;  %v6465_v32 = vld [vmem:[%s11047_s0 + $0x64] ss:$16 sps:$4 sm:$0xff]  }
 0x1c4   :  { %4688 = vmatpush1.bf16.msra.mxu1 %v6422_v33  ;;  %v2494_v48 = vpop.f32.mrf.mxu0  ;;  %3286 = vmatprep.mubr.bf16.mxu0 %v6457_v50  ;;  %v6466_v33 = vld [vmem:[%s11047_s0 + $0x6c] ss:$16 sps:$4 sm:$0xff]   ;;  %v6431_v37 = vld [vmem:[%s11046_s1 + $0x60] ss:$20 sps:$4 sm:$0xff]  }
 0x1c5   :  { %v3007_v49 = vpop.f32.mrf.mxu1  ;;  %3799 = vmatprep.mubr.bf16.mxu1 %v6458_v51  ;;  %5340 = vst [vmem:[%s11049_s3 + $0x760] sm:$0xff] %v3002_v44  ;;  %v3006_v52 = vadd.f32 %v3005_v41, %v2493_v45  ;;  %v2495_v53 = vadd.f32 %v2494_v48, %v7529_v34  ;;  %4272 = vmatprep.subr.bf16.mxu0 %v6839_v39  ;;  %v6432_v38 = vld [vmem:[%s11046_s1 + $0x2e0] ss:$20 sps:$4 sm:$0xff]   ;;  %v6433_v48 = vld [vmem:[%s11046_s1 + $0x38] ss:$20 sps:$4 sm:$0xff]  }
 0x1c6   :  { %4689 = vmatprep.subr.bf16.mxu1 %v6839_v39  ;;  %v2496_v54 = vpop.f32.mrf.mxu0  ;;  %v6434_v51 = vld [vmem:[%s11046_s1 + $0x2b8] ss:$20 sps:$4 sm:$0xff]  }
 0x1c7   :  { %v3009_v55 = vpop.f32.mrf.mxu1  ;;  %5344 = vst [vmem:[%s11049_s3 + $0x780] sm:$0xff] %v3006_v52  ;;  %v3008_v56 = vadd.f32 %v3007_v49, %v2495_v53  ;;  %v2497_v57 = vadd.f32 %v2496_v54, %v7515_v29  ;;  %4273 = vmatpush1.bf16.msra.mxu0 %v6423_v46  ;;  %v6467_v54 = vld [vmem:[%s11047_s0 + $0x60] ss:$16 sps:$4 sm:$0xff]  }
 0x1c8   :  { %4690 = vmatpush1.bf16.msra.mxu1 %v6424_v47  ;;  %v2498_v58 = vpop.f32.mrf.mxu0  ;;  %4274 = vmatprep.subr.bf16.mxu0 %v6839_v39 }
 0x1c9   :  { %v3011_v59 = vpop.f32.mrf.mxu1  ;;  %4691 = vmatprep.subr.bf16.mxu1 %v6839_v39  ;;  %5345 = vst [vmem:[%s11049_s3 + $0x788] sm:$0xff] %v3008_v56  ;;  %v3010_v62 = vadd.f32 %v3009_v55, %v2497_v57  ;;  %v2499_v63 = vadd.f32 %v2498_v58, %v7529_v34  ;;  %v6468_v55 = vld [vmem:[%s11047_s0 + $0x68] ss:$16 sps:$4 sm:$0xff]   ;;  %v6469_v58 = vld [vmem:[%s11047_s0 + $0x84] ss:$16 sps:$4 sm:$0xff]  }
 0x1ca   :  { %v2502_v0 = vpop.f32.mrf.mxu0  ;;  %3287 = vmatmul.mubr.bf16.gmra.mxu0 %v6459_v2 }
 0x1cb   :  { %v3015_v1 = vpop.f32.mrf.mxu1  ;;  %3800 = vmatmul.mubr.bf16.gmra.mxu1 %v6460_v3  ;;  %5349 = vst [vmem:[%s11049_s3 + $0x7a8] sm:$0xff] %v3010_v62  ;;  %v3012_v4 = vadd.f32 %v3011_v59, %v2499_v63  ;;  %v2503_v5 = vadd.f32 %v2502_v0, %v7515_v29  ;;  %3296 = vmatprep.mubr.bf16.mxu0 %v6461_v6  ;;  %v6470_v59 = vld [vmem:[%s11047_s0 + $0x8c] ss:$16 sps:$4 sm:$0xff]  }
 0x1cc   :  { %3809 = vmatprep.mubr.bf16.mxu1 %v6462_v7  ;;  %v2504_v8 = vpop.f32.mrf.mxu0  ;;  %4275 = vmatpush1.bf16.msra.mxu0 %v6425_v60 }
 0x1cd   :  { %v3017_v9 = vpop.f32.mrf.mxu1  ;;  %4692 = vmatpush1.bf16.msra.mxu1 %v6426_v61  ;;  %5350 = vst [vmem:[%s11049_s3 + $0x7b0] sm:$0xff] %v3012_v4  ;;  %v3016_v12 = vadd.f32 %v3015_v1, %v2503_v5  ;;  %v2505_v13 = vadd.f32 %v2504_v8, %v7529_v34  ;;  %4276 = vmatprep.subr.bf16.mxu0 %v6839_v39 }
 0x1ce   :  { %4693 = vmatprep.subr.bf16.mxu1 %v6839_v39  ;;  %v2506_v14 = vpop.f32.mrf.mxu0 }
 0x1cf   :  { %v3019_v15 = vpop.f32.mrf.mxu1  ;;  %5354 = vst [vmem:[%s11049_s3 + $0x7d0] sm:$0xff] %v3016_v12  ;;  %v3018_v16 = vadd.f32 %v3017_v9, %v2505_v13  ;;  %v2507_v17 = vadd.f32 %v2506_v14, %v7515_v29  ;;  %v6473_v14 = vld [vmem:[%s11047_s0 + $0xa4] ss:$16 sps:$4 sm:$0xff]  }
 0x1d0   :  { %v2508_v18 = vpop.f32.mrf.mxu0  ;;  %4277 = vmatpush1.bf16.msra.mxu0 %v6427_v10  ;;  %v6471_v10 = vld [vmem:[%s11047_s0 + $0x80] ss:$16 sps:$4 sm:$0xff]  }
 0x1d1   :  { %v3021_v19 = vpop.f32.mrf.mxu1  ;;  %4694 = vmatpush1.bf16.msra.mxu1 %v6428_v11  ;;  %5355 = vst [vmem:[%s11049_s3 + $0x7d8] sm:$0xff] %v3018_v16  ;;  %v3020_v22 = vadd.f32 %v3019_v15, %v2507_v17  ;;  %v2509_v24 = vadd.f32 %v2508_v18, %v7529_v34  ;;  %4278 = vmatprep.subr.bf16.mxu0 %v6839_v39  ;;  %v6472_v11 = vld [vmem:[%s11047_s0 + $0x88] ss:$16 sps:$4 sm:$0xff]   ;;  %v6474_v15 = vld [vmem:[%s11047_s0 + $0xac] ss:$16 sps:$4 sm:$0xff]  }
 0x1d2   :  { %4695 = vmatprep.subr.bf16.mxu1 %v6839_v39  ;;  %v2512_v25 = vpop.f32.mrf.mxu0  ;;  %3297 = vmatmul.mubr.bf16.gmra.mxu0 %v6463_v27 }
 0x1d3   :  { %v3025_v26 = vpop.f32.mrf.mxu1  ;;  %3810 = vmatmul.mubr.bf16.gmra.mxu1 %v6464_v28  ;;  %5359 = vst [vmem:[%s11049_s3 + $0x7f8] sm:$0xff] %v3020_v22  ;;  %v3022_v30 = vadd.f32 %v3021_v19, %v2509_v24  ;;  %v2513_v31 = vadd.f32 %v2512_v25, %v7515_v29  ;;  %3306 = vmatprep.mubr.bf16.mxu0 %v6465_v32  ;;  %v6475_v32 = vld [vmem:[%s11047_s0 + $0xa0] ss:$16 sps:$4 sm:$0xff]  }
 0x1d4   :  { %3819 = vmatprep.mubr.bf16.mxu1 %v6466_v33  ;;  %v2514_v35 = vpop.f32.mrf.mxu0  ;;  %4279 = vmatpush1.bf16.msra.mxu0 %v6429_v20  ;;  %v6476_v33 = vld [vmem:[%s11047_s0 + $0xa8] ss:$16 sps:$4 sm:$0xff]  }
 0x1d5   :  { %v3027_v36 = vpop.f32.mrf.mxu1  ;;  %4696 = vmatpush1.bf16.msra.mxu1 %v6430_v21  ;;  %5360 = vst [vmem:[%s11049_s3 + $0x800] sm:$0xff] %v3022_v30  ;;  %v3026_v40 = vadd.f32 %v3025_v26, %v2513_v31  ;;  %v2515_v41 = vadd.f32 %v2514_v35, %v7529_v34  ;;  %4280 = vmatprep.subr.bf16.mxu0 %v6839_v39 }
 0x1d6   :  { %4697 = vmatprep.subr.bf16.mxu1 %v6839_v39  ;;  %v2516_v42 = vpop.f32.mrf.mxu0 }
 0x1d7   :  { %v3029_v43 = vpop.f32.mrf.mxu1  ;;  %5364 = vst [vmem:[%s11049_s3 + $0x820] sm:$0xff] %v3026_v40  ;;  %v3028_v44 = vadd.f32 %v3027_v36, %v2515_v41  ;;  %v2517_v45 = vadd.f32 %v2516_v42, %v7515_v29 }
 0x1d8   :  { %v2518_v46 = vpop.f32.mrf.mxu0  ;;  %4281 = vmatpush1.bf16.msra.mxu0 %v6431_v37  ;;  %v6477_v37 = vld [vmem:[%s11047_s0 + $0xc4] ss:$16 sps:$4 sm:$0xff]  }
 0x1d9   :  { %v3031_v47 = vpop.f32.mrf.mxu1  ;;  %4698 = vmatpush1.bf16.msra.mxu1 %v6432_v38  ;;  %5365 = vst [vmem:[%s11049_s3 + $0x828] sm:$0xff] %v3028_v44  ;;  %v3030_v49 = vadd.f32 %v3029_v43, %v2517_v45  ;;  %v2519_v50 = vadd.f32 %v2518_v46, %v7529_v34  ;;  %4282 = vmatprep.subr.bf16.mxu0 %v6839_v39  ;;  %v6478_v38 = vld [vmem:[%s11047_s0 + $0xcc] ss:$16 sps:$4 sm:$0xff]  }
 0x1da   :  { %4699 = vmatprep.subr.bf16.mxu1 %v6839_v39  ;;  %v2522_v52 = vpop.f32.mrf.mxu0  ;;  %3307 = vmatmul.mubr.bf16.gmra.mxu0 %v6467_v54 }
 0x1db   :  { %v3035_v53 = vpop.f32.mrf.mxu1  ;;  %3820 = vmatmul.mubr.bf16.gmra.mxu1 %v6468_v55  ;;  %5369 = vst [vmem:[%s11049_s3 + $0x848] sm:$0xff] %v3030_v49  ;;  %v3032_v56 = vadd.f32 %v3031_v47, %v2519_v50  ;;  %v2523_v57 = vadd.f32 %v2522_v52, %v7515_v29  ;;  %3316 = vmatprep.mubr.bf16.mxu0 %v6469_v58 }
 0x1dc   :  { %3829 = vmatprep.mubr.bf16.mxu1 %v6470_v59  ;;  %v2524_v60 = vpop.f32.mrf.mxu0  ;;  %4283 = vmatpush1.bf16.msra.mxu0 %v6433_v48  ;;  %v6435_v48 = vld [vmem:[%s11046_s1 + $0x10] ss:$20 sps:$4 sm:$0xff]  }
 0x1dd   :  { %v3037_v61 = vpop.f32.mrf.mxu1  ;;  %4700 = vmatpush1.bf16.msra.mxu1 %v6434_v51  ;;  %5370 = vst [vmem:[%s11049_s3 + $0x850] sm:$0xff] %v3032_v56  ;;  %v3036_v62 = vadd.f32 %v3035_v53, %v2523_v57  ;;  %v2525_v63 = vadd.f32 %v2524_v60, %v7529_v34  ;;  %4284 = vmatprep.subr.bf16.mxu0 %v6839_v39  ;;  %v6436_v53 = vld [vmem:[%s11046_s1 + $0x290] ss:$20 sps:$4 sm:$0xff]   ;;  %v6480_v57 = vld [vmem:[%s11047_s0 + $0xc8] ss:$16 sps:$4 sm:$0xff]  }
 0x1de   :  { %4701 = vmatprep.subr.bf16.mxu1 %v6839_v39  ;;  %v2526_v0 = vpop.f32.mrf.mxu0  ;;  %v6479_v56 = vld [vmem:[%s11047_s0 + $0xc0] ss:$16 sps:$4 sm:$0xff]   ;;  %v6481_v60 = vld [vmem:[%s11047_s0 + $0xe4] ss:$16 sps:$4 sm:$0xff]  }
 0x1df   :  { %v3039_v1 = vpop.f32.mrf.mxu1  ;;  %5374 = vst [vmem:[%s11049_s3 + $0x870] sm:$0xff] %v3036_v62  ;;  %v3038_v2 = vadd.f32 %v3037_v61, %v2525_v63  ;;  %v2527_v3 = vadd.f32 %v2526_v0, %v7515_v29  ;;  %v6482_v61 = vld [vmem:[%s11047_s0 + $0xec] ss:$16 sps:$4 sm:$0xff]  }
 0x1e0   :  { %v2528_v4 = vpop.f32.mrf.mxu0  ;;  %4285 = vmatpush1.bf16.msra.mxu0 %v6435_v48 }
 0x1e1   :  { %v3041_v5 = vpop.f32.mrf.mxu1  ;;  %5375 = vst [vmem:[%s11049_s3 + $0x878] sm:$0xff] %v3038_v2  ;;  %v3040_v6 = vadd.f32 %v3039_v1, %v2527_v3  ;;  %v2529_v7 = vadd.f32 %v2528_v4, %v7529_v34  ;;  %4702 = vmatpush1.bf16.msra.mxu1 %v6436_v53  ;;  %4286 = vmatprep.subr.bf16.mxu0 %v6839_v39 }
 0x1e2   :  { %v2532_v8 = vpop.f32.mrf.mxu0  ;;  %3317 = vmatmul.mubr.bf16.gmra.mxu0 %v6471_v10  ;;  %4703 = vmatprep.subr.bf16.mxu1 %v6839_v39 }
 0x1e3   :  { %v3045_v9 = vpop.f32.mrf.mxu1  ;;  %3830 = vmatmul.mubr.bf16.gmra.mxu1 %v6472_v11  ;;  %5379 = vst [vmem:[%s11049_s3 + $0x898] sm:$0xff] %v3040_v6  ;;  %v3042_v12 = vadd.f32 %v3041_v5, %v2529_v7  ;;  %v2533_v13 = vadd.f32 %v2532_v8, %v7515_v29  ;;  %3326 = vmatprep.mubr.bf16.mxu0 %v6473_v14 }
 0x1e4   :  { %3839 = vmatprep.mubr.bf16.mxu1 %v6474_v15  ;;  %v2534_v16 = vpop.f32.mrf.mxu0 }
 0x1e5   :  { %v3047_v17 = vpop.f32.mrf.mxu1  ;;  %5380 = vst [vmem:[%s11049_s3 + $0x8a0] sm:$0xff] %v3042_v12  ;;  %v3046_v18 = vadd.f32 %v3045_v9, %v2533_v13  ;;  %v2535_v19 = vadd.f32 %v2534_v16, %v7529_v34  ;;  %v6483_v12 = vld [vmem:[%s11047_s0 + $0xe0] ss:$16 sps:$4 sm:$0xff]   ;;  %v6484_v13 = vld [vmem:[%s11047_s0 + $0xe8] ss:$16 sps:$4 sm:$0xff]  }
 0x1e6   :  { %v2536_v20 = vpop.f32.mrf.mxu0  ;;  %v6485_v16 = vld [vmem:[%s11047_s0 + $0x104] ss:$16 sps:$4 sm:$0xff]  }
 0x1e7   :  { %v3049_v21 = vpop.f32.mrf.mxu1  ;;  %5384 = vst [vmem:[%s11049_s3 + $0x8c0] sm:$0xff] %v3046_v18  ;;  %v3048_v22 = vadd.f32 %v3047_v17, %v2535_v19  ;;  %v2537_v24 = vadd.f32 %v2536_v20, %v7515_v29  ;;  %v6486_v17 = vld [vmem:[%s11047_s0 + $0x10c] ss:$16 sps:$4 sm:$0xff]  }
 0x1e8   :  { %v2538_v25 = vpop.f32.mrf.mxu0 }
 0x1e9   :  { %v3051_v26 = vpop.f32.mrf.mxu1  ;;  %5385 = vst [vmem:[%s11049_s3 + $0x8c8] sm:$0xff] %v3048_v22  ;;  %v3050_v27 = vadd.f32 %v3049_v21, %v2537_v24  ;;  %v2539_v28 = vadd.f32 %v2538_v25, %v7529_v34 }
 0x1ea   :  { %v2542_v30 = vpop.f32.mrf.mxu0  ;;  %3327 = vmatmul.mubr.bf16.gmra.mxu0 %v6475_v32 }
 0x1eb   :  { %v3055_v31 = vpop.f32.mrf.mxu1  ;;  %3840 = vmatmul.mubr.bf16.gmra.mxu1 %v6476_v33  ;;  %5389 = vst [vmem:[%s11049_s3 + $0x8e8] sm:$0xff] %v3050_v27  ;;  %v3052_v35 = vadd.f32 %v3051_v26, %v2539_v28  ;;  %v2543_v36 = vadd.f32 %v2542_v30, %v7515_v29  ;;  %3336 = vmatprep.mubr.bf16.mxu0 %v6477_v37 }
 0x1ec   :  { %3849 = vmatprep.mubr.bf16.mxu1 %v6478_v38  ;;  %v2544_v40 = vpop.f32.mrf.mxu0 }
 0x1ed   :  { %v3057_v41 = vpop.f32.mrf.mxu1  ;;  %5390 = vst [vmem:[%s11049_s3 + $0x8f0] sm:$0xff] %v3052_v35  ;;  %v3056_v42 = vadd.f32 %v3055_v31, %v2543_v36  ;;  %v2545_v43 = vadd.f32 %v2544_v40, %v7529_v34  ;;  %v6487_v35 = vld [vmem:[%s11047_s0 + $0x100] ss:$16 sps:$4 sm:$0xff]   ;;  %v6488_v36 = vld [vmem:[%s11047_s0 + $0x108] ss:$16 sps:$4 sm:$0xff]  }
 0x1ee   :  { %v2546_v44 = vpop.f32.mrf.mxu0  ;;  %v6489_v40 = vld [vmem:[%s11047_s0 + $0x124] ss:$16 sps:$4 sm:$0xff]  }
 0x1ef   :  { %v3059_v45 = vpop.f32.mrf.mxu1  ;;  %5394 = vst [vmem:[%s11049_s3 + $0x910] sm:$0xff] %v3056_v42  ;;  %v3058_v46 = vadd.f32 %v3057_v41, %v2545_v43  ;;  %v2547_v47 = vadd.f32 %v2546_v44, %v7515_v29  ;;  %v6490_v41 = vld [vmem:[%s11047_s0 + $0x12c] ss:$16 sps:$4 sm:$0xff]  }
 0x1f0   :  { %v2548_v49 = vpop.f32.mrf.mxu0 }
 0x1f1   :  { %v3061_v50 = vpop.f32.mrf.mxu1  ;;  %5395 = vst [vmem:[%s11049_s3 + $0x918] sm:$0xff] %v3058_v46  ;;  %v3060_v51 = vadd.f32 %v3059_v45, %v2547_v47  ;;  %v2549_v52 = vadd.f32 %v2548_v49, %v7529_v34 }
 0x1f2   :  { %v2552_v54 = vpop.f32.mrf.mxu0  ;;  %3337 = vmatmul.mubr.bf16.gmra.mxu0 %v6479_v56 }
 0x1f3   :  { %v3065_v55 = vpop.f32.mrf.mxu1  ;;  %3850 = vmatmul.mubr.bf16.gmra.mxu1 %v6480_v57  ;;  %5399 = vst [vmem:[%s11049_s3 + $0x938] sm:$0xff] %v3060_v51  ;;  %v3062_v58 = vadd.f32 %v3061_v50, %v2549_v52  ;;  %v2553_v59 = vadd.f32 %v2552_v54, %v7515_v29  ;;  %3346 = vmatprep.mubr.bf16.mxu0 %v6481_v60  ;;  %v6437_v50 = vld [vmem:[%s11046_s1 + $0x268] ss:$20 sps:$4 sm:$0xff]  }
 0x1f4   :  { %3859 = vmatprep.mubr.bf16.mxu1 %v6482_v61  ;;  %v2554_v62 = vpop.f32.mrf.mxu0  ;;  %4287 = vmatpush2.bf16.msra.mxu0 %v6437_v50 }
 0x1f5   :  { %v3067_v63 = vpop.f32.mrf.mxu1  ;;  %5400 = vst [vmem:[%s11049_s3 + $0x940] sm:$0xff] %v3062_v58  ;;  %v3066_v0 = vadd.f32 %v3065_v55, %v2553_v59  ;;  %v2555_v1 = vadd.f32 %v2554_v62, %v7529_v34  ;;  %v6438_v55 = vld [vmem:[%s11046_s1 + $0x4e8] ss:$20 sps:$4 sm:$0xff]   ;;  %v6491_v58 = vld [vmem:[%s11047_s0 + $0x120] ss:$16 sps:$4 sm:$0xff]   ;;  %4288 = vmatprep.subr.bf16.mxu0 %v6839_v39 }
 0x1f6   :  { %v2556_v2 = vpop.f32.mrf.mxu0  ;;  %v6492_v59 = vld [vmem:[%s11047_s0 + $0x128] ss:$16 sps:$4 sm:$0xff]   ;;  %v6493_v62 = vld [vmem:[%s11047_s0 + $0x144] ss:$16 sps:$4 sm:$0xff]   ;;  %4704 = vmatpush2.bf16.msra.mxu1 %v6438_v55 }
 0x1f7   :  { %v3069_v3 = vpop.f32.mrf.mxu1  ;;  %5404 = vst [vmem:[%s11049_s3 + $0x960] sm:$0xff] %v3066_v0  ;;  %v3068_v4 = vadd.f32 %v3067_v63, %v2555_v1  ;;  %v2557_v5 = vadd.f32 %v2556_v2, %v7515_v29  ;;  %v6494_v63 = vld [vmem:[%s11047_s0 + $0x14c] ss:$16 sps:$4 sm:$0xff]   ;;  %4705 = vmatprep.subr.bf16.mxu1 %v6839_v39 }
 0x1f8   :  { %v2558_v6 = vpop.f32.mrf.mxu0 }
 0x1f9   :  { %v3071_v7 = vpop.f32.mrf.mxu1  ;;  %5405 = vst [vmem:[%s11049_s3 + $0x968] sm:$0xff] %v3068_v4  ;;  %v3070_v8 = vadd.f32 %v3069_v3, %v2557_v5  ;;  %v2559_v9 = vadd.f32 %v2558_v6, %v7529_v34 }
 0x1fa   :  { %v2562_v10 = vpop.f32.mrf.mxu0  ;;  %3347 = vmatmul.mubr.bf16.gmra.mxu0 %v6483_v12 }
 0x1fb   :  { %v3075_v11 = vpop.f32.mrf.mxu1  ;;  %3860 = vmatmul.mubr.bf16.gmra.mxu1 %v6484_v13  ;;  %5409 = vst [vmem:[%s11049_s3 + $0x988] sm:$0xff] %v3070_v8  ;;  %v3072_v14 = vadd.f32 %v3071_v7, %v2559_v9  ;;  %v2563_v15 = vadd.f32 %v2562_v10, %v7515_v29  ;;  %3356 = vmatprep.mubr.bf16.mxu0 %v6485_v16 }
 0x1fc   :  { %3869 = vmatprep.mubr.bf16.mxu1 %v6486_v17  ;;  %v2564_v18 = vpop.f32.mrf.mxu0 }
 0x1fd   :  { %v3077_v19 = vpop.f32.mrf.mxu1  ;;  %5410 = vst [vmem:[%s11049_s3 + $0x990] sm:$0xff] %v3072_v14  ;;  %v3076_v20 = vadd.f32 %v3075_v11, %v2563_v15  ;;  %v2565_v21 = vadd.f32 %v2564_v18, %v7529_v34  ;;  %v6495_v14 = vld [vmem:[%s11047_s0 + $0x140] ss:$16 sps:$4 sm:$0xff]   ;;  %v6496_v15 = vld [vmem:[%s11047_s0 + $0x148] ss:$16 sps:$4 sm:$0xff]  }
 0x1fe   :  { %v2566_v22 = vpop.f32.mrf.mxu0  ;;  %v6497_v18 = vld [vmem:[%s11047_s0 + $0x164] ss:$16 sps:$4 sm:$0xff]  }
 0x1ff   :  { %v3079_v24 = vpop.f32.mrf.mxu1  ;;  %5414 = vst [vmem:[%s11049_s3 + $0x9b0] sm:$0xff] %v3076_v20  ;;  %v3078_v25 = vadd.f32 %v3077_v19, %v2565_v21  ;;  %v2567_v26 = vadd.f32 %v2566_v22, %v7515_v29  ;;  %v6498_v19 = vld [vmem:[%s11047_s0 + $0x16c] ss:$16 sps:$4 sm:$0xff]  }
 0x200   :  { %v2568_v27 = vpop.f32.mrf.mxu0 }
 0x201   :  { %v3081_v28 = vpop.f32.mrf.mxu1  ;;  %5415 = vst [vmem:[%s11049_s3 + $0x9b8] sm:$0xff] %v3078_v25  ;;  %v3080_v30 = vadd.f32 %v3079_v24, %v2567_v26  ;;  %v2569_v31 = vadd.f32 %v2568_v27, %v7529_v34 }
 0x202   :  { %v2572_v32 = vpop.f32.mrf.mxu0  ;;  %3357 = vmatmul.mubr.bf16.gmra.mxu0 %v6487_v35 }
 0x203   :  { %v3085_v33 = vpop.f32.mrf.mxu1  ;;  %3870 = vmatmul.mubr.bf16.gmra.mxu1 %v6488_v36  ;;  %5419 = vst [vmem:[%s11049_s3 + $0x9d8] sm:$0xff] %v3080_v30  ;;  %v3082_v37 = vadd.f32 %v3081_v28, %v2569_v31  ;;  %v2573_v38 = vadd.f32 %v2572_v32, %v7515_v29  ;;  %3366 = vmatprep.mubr.bf16.mxu0 %v6489_v40 }
 0x204   :  { %3879 = vmatprep.mubr.bf16.mxu1 %v6490_v41  ;;  %v2574_v42 = vpop.f32.mrf.mxu0 }
 0x205   :  { %v3087_v43 = vpop.f32.mrf.mxu1  ;;  %5420 = vst [vmem:[%s11049_s3 + $0x9e0] sm:$0xff] %v3082_v37  ;;  %v3086_v44 = vadd.f32 %v3085_v33, %v2573_v38  ;;  %v2575_v45 = vadd.f32 %v2574_v42, %v7529_v34  ;;  %v6499_v37 = vld [vmem:[%s11047_s0 + $0x160] ss:$16 sps:$4 sm:$0xff]   ;;  %v6500_v38 = vld [vmem:[%s11047_s0 + $0x168] ss:$16 sps:$4 sm:$0xff]  }
 0x206   :  { %v2576_v46 = vpop.f32.mrf.mxu0  ;;  %v6501_v42 = vld [vmem:[%s11047_s0 + $0x184] ss:$16 sps:$4 sm:$0xff]  }
 0x207   :  { %v3089_v47 = vpop.f32.mrf.mxu1  ;;  %5424 = vst [vmem:[%s11049_s3 + $0xa00] sm:$0xff] %v3086_v44  ;;  %v3088_v48 = vadd.f32 %v3087_v43, %v2575_v45  ;;  %v2577_v49 = vadd.f32 %v2576_v46, %v7515_v29  ;;  %v6502_v43 = vld [vmem:[%s11047_s0 + $0x18c] ss:$16 sps:$4 sm:$0xff]  }
 0x208   :  { %v2578_v51 = vpop.f32.mrf.mxu0 }
 0x209   :  { %v3091_v52 = vpop.f32.mrf.mxu1  ;;  %5425 = vst [vmem:[%s11049_s3 + $0xa08] sm:$0xff] %v3088_v48  ;;  %v3090_v53 = vadd.f32 %v3089_v47, %v2577_v49  ;;  %v2579_v54 = vadd.f32 %v2578_v51, %v7529_v34 }
 0x20a   :  { %v2582_v56 = vpop.f32.mrf.mxu0  ;;  %3367 = vmatmul.mubr.bf16.gmra.mxu0 %v6491_v58 }
 0x20b   :  { %v3095_v57 = vpop.f32.mrf.mxu1  ;;  %3880 = vmatmul.mubr.bf16.gmra.mxu1 %v6492_v59  ;;  %5429 = vst [vmem:[%s11049_s3 + $0xa28] sm:$0xff] %v3090_v53  ;;  %v3092_v60 = vadd.f32 %v3091_v52, %v2579_v54  ;;  %v2583_v61 = vadd.f32 %v2582_v56, %v7515_v29  ;;  %3376 = vmatprep.mubr.bf16.mxu0 %v6493_v62  ;;  %v6439_v52 = vld [vmem:[%s11046_s1 + $0x240] ss:$20 sps:$4 sm:$0xff]  }
 0x20c   :  { %3889 = vmatprep.mubr.bf16.mxu1 %v6494_v63  ;;  %v2584_v0 = vpop.f32.mrf.mxu0  ;;  %4289 = vmatpush2.bf16.msra.mxu0 %v6439_v52 }
 0x20d   :  { %v3097_v1 = vpop.f32.mrf.mxu1  ;;  %5430 = vst [vmem:[%s11049_s3 + $0xa30] sm:$0xff] %v3092_v60  ;;  %v3096_v2 = vadd.f32 %v3095_v57, %v2583_v61  ;;  %v2585_v3 = vadd.f32 %v2584_v0, %v7529_v34  ;;  %v6440_v57 = vld [vmem:[%s11046_s1 + $0x4c0] ss:$20 sps:$4 sm:$0xff]   ;;  %v6504_v61 = vld [vmem:[%s11047_s0 + $0x188] ss:$16 sps:$4 sm:$0xff]   ;;  %4290 = vmatprep.subr.bf16.mxu0 %v6839_v39 }
 0x20e   :  { %v2586_v4 = vpop.f32.mrf.mxu0  ;;  %v6503_v60 = vld [vmem:[%s11047_s0 + $0x180] ss:$16 sps:$4 sm:$0xff]   ;;  %v6505_v0 = vld [vmem:[%s11047_s0 + $0x1a4] ss:$16 sps:$4 sm:$0xff]   ;;  %4706 = vmatpush2.bf16.msra.mxu1 %v6440_v57 }
 0x20f   :  { %v3099_v5 = vpop.f32.mrf.mxu1  ;;  %5434 = vst [vmem:[%s11049_s3 + $0xa50] sm:$0xff] %v3096_v2  ;;  %v3098_v6 = vadd.f32 %v3097_v1, %v2585_v3  ;;  %v2587_v7 = vadd.f32 %v2586_v4, %v7515_v29  ;;  %v6506_v1 = vld [vmem:[%s11047_s0 + $0x1ac] ss:$16 sps:$4 sm:$0xff]   ;;  %4707 = vmatprep.subr.bf16.mxu1 %v6839_v39 }
 0x210   :  { %v2588_v8 = vpop.f32.mrf.mxu0 }
 0x211   :  { %v3101_v9 = vpop.f32.mrf.mxu1  ;;  %5435 = vst [vmem:[%s11049_s3 + $0xa58] sm:$0xff] %v3098_v6  ;;  %v3100_v10 = vadd.f32 %v3099_v5, %v2587_v7  ;;  %v2589_v11 = vadd.f32 %v2588_v8, %v7529_v34 }
 0x212   :  { %v2592_v12 = vpop.f32.mrf.mxu0  ;;  %3377 = vmatmul.mubr.bf16.gmra.mxu0 %v6495_v14 }
 0x213   :  { %v3105_v13 = vpop.f32.mrf.mxu1  ;;  %3890 = vmatmul.mubr.bf16.gmra.mxu1 %v6496_v15  ;;  %5439 = vst [vmem:[%s11049_s3 + $0xa78] sm:$0xff] %v3100_v10  ;;  %v3102_v16 = vadd.f32 %v3101_v9, %v2589_v11  ;;  %v2593_v17 = vadd.f32 %v2592_v12, %v7515_v29  ;;  %3386 = vmatprep.mubr.bf16.mxu0 %v6497_v18 }
 0x214   :  { %3899 = vmatprep.mubr.bf16.mxu1 %v6498_v19  ;;  %v2594_v20 = vpop.f32.mrf.mxu0 }
 0x215   :  { %v3107_v21 = vpop.f32.mrf.mxu1  ;;  %5440 = vst [vmem:[%s11049_s3 + $0xa80] sm:$0xff] %v3102_v16  ;;  %v3106_v22 = vadd.f32 %v3105_v13, %v2593_v17  ;;  %v2595_v24 = vadd.f32 %v2594_v20, %v7529_v34  ;;  %v6507_v16 = vld [vmem:[%s11047_s0 + $0x1a0] ss:$16 sps:$4 sm:$0xff]   ;;  %v6508_v17 = vld [vmem:[%s11047_s0 + $0x1a8] ss:$16 sps:$4 sm:$0xff]  }
 0x216   :  { %v2596_v25 = vpop.f32.mrf.mxu0  ;;  %v6509_v20 = vld [vmem:[%s11047_s0 + $0x1c4] ss:$16 sps:$4 sm:$0xff]  }
 0x217   :  { %v3109_v26 = vpop.f32.mrf.mxu1  ;;  %5444 = vst [vmem:[%s11049_s3 + $0xaa0] sm:$0xff] %v3106_v22  ;;  %v3108_v27 = vadd.f32 %v3107_v21, %v2595_v24  ;;  %v2597_v28 = vadd.f32 %v2596_v25, %v7515_v29  ;;  %v6510_v21 = vld [vmem:[%s11047_s0 + $0x1cc] ss:$16 sps:$4 sm:$0xff]  }
 0x218   :  { %v2598_v30 = vpop.f32.mrf.mxu0 }
 0x219   :  { %v3111_v31 = vpop.f32.mrf.mxu1  ;;  %5445 = vst [vmem:[%s11049_s3 + $0xaa8] sm:$0xff] %v3108_v27  ;;  %v3110_v32 = vadd.f32 %v3109_v26, %v2597_v28  ;;  %v2599_v33 = vadd.f32 %v2598_v30, %v7529_v34 }
 0x21a   :  { %v2602_v35 = vpop.f32.mrf.mxu0  ;;  %3387 = vmatmul.mubr.bf16.gmra.mxu0 %v6499_v37 }
 0x21b   :  { %v3115_v36 = vpop.f32.mrf.mxu1  ;;  %3900 = vmatmul.mubr.bf16.gmra.mxu1 %v6500_v38  ;;  %5449 = vst [vmem:[%s11049_s3 + $0xac8] sm:$0xff] %v3110_v32  ;;  %v3112_v40 = vadd.f32 %v3111_v31, %v2599_v33  ;;  %v2603_v41 = vadd.f32 %v2602_v35, %v7515_v29  ;;  %3396 = vmatprep.mubr.bf16.mxu0 %v6501_v42 }
 0x21c   :  { %3909 = vmatprep.mubr.bf16.mxu1 %v6502_v43  ;;  %v2604_v44 = vpop.f32.mrf.mxu0 }
 0x21d   :  { %v3117_v45 = vpop.f32.mrf.mxu1  ;;  %5450 = vst [vmem:[%s11049_s3 + $0xad0] sm:$0xff] %v3112_v40  ;;  %v3116_v46 = vadd.f32 %v3115_v36, %v2603_v41  ;;  %v2605_v47 = vadd.f32 %v2604_v44, %v7529_v34  ;;  %v6511_v40 = vld [vmem:[%s11047_s0 + $0x1c0] ss:$16 sps:$4 sm:$0xff]   ;;  %v6512_v41 = vld [vmem:[%s11047_s0 + $0x1c8] ss:$16 sps:$4 sm:$0xff]  }
 0x21e   :  { %v2606_v48 = vpop.f32.mrf.mxu0  ;;  %v6513_v44 = vld [vmem:[%s11047_s0 + $0x1e4] ss:$16 sps:$4 sm:$0xff]  }
 0x21f   :  { %v3119_v49 = vpop.f32.mrf.mxu1  ;;  %5454 = vst [vmem:[%s11049_s3 + $0xaf0] sm:$0xff] %v3116_v46  ;;  %v3118_v50 = vadd.f32 %v3117_v45, %v2605_v47  ;;  %v2607_v51 = vadd.f32 %v2606_v48, %v7515_v29  ;;  %v6514_v45 = vld [vmem:[%s11047_s0 + $0x1ec] ss:$16 sps:$4 sm:$0xff]  }
 0x220   :  { %v2608_v53 = vpop.f32.mrf.mxu0 }
 0x221   :  { %v3121_v54 = vpop.f32.mrf.mxu1  ;;  %5455 = vst [vmem:[%s11049_s3 + $0xaf8] sm:$0xff] %v3118_v50  ;;  %v3120_v55 = vadd.f32 %v3119_v49, %v2607_v51  ;;  %v2609_v56 = vadd.f32 %v2608_v53, %v7529_v34 }
 0x222   :  { %v2612_v58 = vpop.f32.mrf.mxu0  ;;  %3397 = vmatmul.mubr.bf16.gmra.mxu0 %v6503_v60 }
 0x223   :  { %v3125_v59 = vpop.f32.mrf.mxu1  ;;  %3910 = vmatmul.mubr.bf16.gmra.mxu1 %v6504_v61  ;;  %5459 = vst [vmem:[%s11049_s3 + $0xb18] sm:$0xff] %v3120_v55  ;;  %v3122_v62 = vadd.f32 %v3121_v54, %v2609_v56  ;;  %v2613_v63 = vadd.f32 %v2612_v58, %v7515_v29  ;;  %3406 = vmatprep.mubr.bf16.mxu0 %v6505_v0  ;;  %v6441_v54 = vld [vmem:[%s11046_s1 + $0x218] ss:$20 sps:$4 sm:$0xff]  }
 0x224   :  { %3919 = vmatprep.mubr.bf16.mxu1 %v6506_v1  ;;  %v2614_v2 = vpop.f32.mrf.mxu0  ;;  %4291 = vmatpush2.bf16.msra.mxu0 %v6441_v54 }
 0x225   :  { %v3127_v3 = vpop.f32.mrf.mxu1  ;;  %5460 = vst [vmem:[%s11049_s3 + $0xb20] sm:$0xff] %v3122_v62  ;;  %v3126_v4 = vadd.f32 %v3125_v59, %v2613_v63  ;;  %v2615_v5 = vadd.f32 %v2614_v2, %v7529_v34  ;;  %v6442_v59 = vld [vmem:[%s11046_s1 + $0x498] ss:$20 sps:$4 sm:$0xff]   ;;  %v6515_v62 = vld [vmem:[%s11047_s0 + $0x1e0] ss:$16 sps:$4 sm:$0xff]   ;;  %4292 = vmatprep.subr.bf16.mxu0 %v6839_v39 }
 0x226   :  { %v2616_v6 = vpop.f32.mrf.mxu0  ;;  %v6516_v63 = vld [vmem:[%s11047_s0 + $0x1e8] ss:$16 sps:$4 sm:$0xff]   ;;  %v6517_v2 = vld [vmem:[%s11047_s0 + $0x204] ss:$16 sps:$4 sm:$0xff]   ;;  %4708 = vmatpush2.bf16.msra.mxu1 %v6442_v59 }
 0x227   :  { %v3129_v7 = vpop.f32.mrf.mxu1  ;;  %5464 = vst [vmem:[%s11049_s3 + $0xb40] sm:$0xff] %v3126_v4  ;;  %v3128_v8 = vadd.f32 %v3127_v3, %v2615_v5  ;;  %v2617_v9 = vadd.f32 %v2616_v6, %v7515_v29  ;;  %v6518_v3 = vld [vmem:[%s11047_s0 + $0x20c] ss:$16 sps:$4 sm:$0xff]   ;;  %4709 = vmatprep.subr.bf16.mxu1 %v6839_v39 }
 0x228   :  { %v2618_v10 = vpop.f32.mrf.mxu0 }
 0x229   :  { %v3131_v11 = vpop.f32.mrf.mxu1  ;;  %5465 = vst [vmem:[%s11049_s3 + $0xb48] sm:$0xff] %v3128_v8  ;;  %v3130_v12 = vadd.f32 %v3129_v7, %v2617_v9  ;;  %v2619_v13 = vadd.f32 %v2618_v10, %v7529_v34 }
 0x22a   :  { %v2622_v14 = vpop.f32.mrf.mxu0  ;;  %3407 = vmatmul.mubr.bf16.gmra.mxu0 %v6507_v16 }
 0x22b   :  { %v3135_v15 = vpop.f32.mrf.mxu1  ;;  %3920 = vmatmul.mubr.bf16.gmra.mxu1 %v6508_v17  ;;  %5469 = vst [vmem:[%s11049_s3 + $0xb68] sm:$0xff] %v3130_v12  ;;  %v3132_v18 = vadd.f32 %v3131_v11, %v2619_v13  ;;  %v2623_v19 = vadd.f32 %v2622_v14, %v7515_v29  ;;  %3416 = vmatprep.mubr.bf16.mxu0 %v6509_v20 }
 0x22c   :  { %3929 = vmatprep.mubr.bf16.mxu1 %v6510_v21  ;;  %v2624_v22 = vpop.f32.mrf.mxu0 }
 0x22d   :  { %v3137_v24 = vpop.f32.mrf.mxu1  ;;  %5470 = vst [vmem:[%s11049_s3 + $0xb70] sm:$0xff] %v3132_v18  ;;  %v3136_v25 = vadd.f32 %v3135_v15, %v2623_v19  ;;  %v2625_v26 = vadd.f32 %v2624_v22, %v7529_v34  ;;  %v6519_v18 = vld [vmem:[%s11047_s0 + $0x200] ss:$16 sps:$4 sm:$0xff]   ;;  %v6520_v19 = vld [vmem:[%s11047_s0 + $0x208] ss:$16 sps:$4 sm:$0xff]  }
 0x22e   :  { %v2626_v27 = vpop.f32.mrf.mxu0  ;;  %v6521_v22 = vld [vmem:[%s11047_s0 + $0x224] ss:$16 sps:$4 sm:$0xff]  }
 0x22f   :  { %v3139_v28 = vpop.f32.mrf.mxu1  ;;  %5474 = vst [vmem:[%s11049_s3 + $0xb90] sm:$0xff] %v3136_v25  ;;  %v3138_v30 = vadd.f32 %v3137_v24, %v2625_v26  ;;  %v2627_v31 = vadd.f32 %v2626_v27, %v7515_v29  ;;  %v6522_v24 = vld [vmem:[%s11047_s0 + $0x22c] ss:$16 sps:$4 sm:$0xff]  }
 0x230   :  { %v2628_v32 = vpop.f32.mrf.mxu0 }
 0x231   :  { %v3141_v33 = vpop.f32.mrf.mxu1  ;;  %5475 = vst [vmem:[%s11049_s3 + $0xb98] sm:$0xff] %v3138_v30  ;;  %v3140_v35 = vadd.f32 %v3139_v28, %v2627_v31  ;;  %v2629_v36 = vadd.f32 %v2628_v32, %v7529_v34 }
 0x232   :  { %v2632_v37 = vpop.f32.mrf.mxu0  ;;  %3417 = vmatmul.mubr.bf16.gmra.mxu0 %v6511_v40 }
 0x233   :  { %v3145_v38 = vpop.f32.mrf.mxu1  ;;  %3930 = vmatmul.mubr.bf16.gmra.mxu1 %v6512_v41  ;;  %5479 = vst [vmem:[%s11049_s3 + $0xbb8] sm:$0xff] %v3140_v35  ;;  %v3142_v42 = vadd.f32 %v3141_v33, %v2629_v36  ;;  %v2633_v43 = vadd.f32 %v2632_v37, %v7515_v29  ;;  %3426 = vmatprep.mubr.bf16.mxu0 %v6513_v44 }
 0x234   :  { %3939 = vmatprep.mubr.bf16.mxu1 %v6514_v45  ;;  %v2634_v46 = vpop.f32.mrf.mxu0 }
 0x235   :  { %v3147_v47 = vpop.f32.mrf.mxu1  ;;  %5480 = vst [vmem:[%s11049_s3 + $0xbc0] sm:$0xff] %v3142_v42  ;;  %v3146_v48 = vadd.f32 %v3145_v38, %v2633_v43  ;;  %v2635_v49 = vadd.f32 %v2634_v46, %v7529_v34  ;;  %v6523_v42 = vld [vmem:[%s11047_s0 + $0x220] ss:$16 sps:$4 sm:$0xff]   ;;  %v6524_v43 = vld [vmem:[%s11047_s0 + $0x228] ss:$16 sps:$4 sm:$0xff]  }
 0x236   :  { %v2636_v50 = vpop.f32.mrf.mxu0  ;;  %v6525_v46 = vld [vmem:[%s11047_s0 + $0x244] ss:$16 sps:$4 sm:$0xff]  }
 0x237   :  { %v3149_v51 = vpop.f32.mrf.mxu1  ;;  %5484 = vst [vmem:[%s11049_s3 + $0xbe0] sm:$0xff] %v3146_v48  ;;  %v3148_v52 = vadd.f32 %v3147_v47, %v2635_v49  ;;  %v2637_v53 = vadd.f32 %v2636_v50, %v7515_v29  ;;  %v6526_v47 = vld [vmem:[%s11047_s0 + $0x24c] ss:$16 sps:$4 sm:$0xff]  }
 0x238   :  { %v2638_v55 = vpop.f32.mrf.mxu0 }
 0x239   :  { %v3151_v56 = vpop.f32.mrf.mxu1  ;;  %5485 = vst [vmem:[%s11049_s3 + $0xbe8] sm:$0xff] %v3148_v52  ;;  %v3150_v57 = vadd.f32 %v3149_v51, %v2637_v53  ;;  %v2639_v58 = vadd.f32 %v2638_v55, %v7529_v34 }
 0x23a   :  { %v2642_v60 = vpop.f32.mrf.mxu0  ;;  %3427 = vmatmul.mubr.bf16.gmra.mxu0 %v6515_v62 }
 0x23b   :  { %v3155_v61 = vpop.f32.mrf.mxu1  ;;  %3940 = vmatmul.mubr.bf16.gmra.mxu1 %v6516_v63  ;;  %5489 = vst [vmem:[%s11049_s3 + $0xc08] sm:$0xff] %v3150_v57  ;;  %v3152_v0 = vadd.f32 %v3151_v56, %v2639_v58  ;;  %v2643_v1 = vadd.f32 %v2642_v60, %v7515_v29  ;;  %3436 = vmatprep.mubr.bf16.mxu0 %v6517_v2  ;;  %v6443_v56 = vld [vmem:[%s11046_s1 + $0x1f0] ss:$20 sps:$4 sm:$0xff]  }
 0x23c   :  { %3949 = vmatprep.mubr.bf16.mxu1 %v6518_v3  ;;  %v2644_v4 = vpop.f32.mrf.mxu0  ;;  %4293 = vmatpush2.bf16.msra.mxu0 %v6443_v56 }
 0x23d   :  { %v3157_v5 = vpop.f32.mrf.mxu1  ;;  %5490 = vst [vmem:[%s11049_s3 + $0xc10] sm:$0xff] %v3152_v0  ;;  %v3156_v6 = vadd.f32 %v3155_v61, %v2643_v1  ;;  %v2645_v7 = vadd.f32 %v2644_v4, %v7529_v34  ;;  %v6444_v61 = vld [vmem:[%s11046_s1 + $0x470] ss:$20 sps:$4 sm:$0xff]   ;;  %v6528_v1 = vld [vmem:[%s11047_s0 + $0x248] ss:$16 sps:$4 sm:$0xff]   ;;  %4294 = vmatprep.subr.bf16.mxu0 %v6839_v39 }
 0x23e   :  { %v2646_v8 = vpop.f32.mrf.mxu0  ;;  %v6527_v0 = vld [vmem:[%s11047_s0 + $0x240] ss:$16 sps:$4 sm:$0xff]   ;;  %v6529_v4 = vld [vmem:[%s11047_s0 + $0x264] ss:$16 sps:$4 sm:$0xff]   ;;  %4710 = vmatpush2.bf16.msra.mxu1 %v6444_v61 }
 0x23f   :  { %v3159_v9 = vpop.f32.mrf.mxu1  ;;  %5494 = vst [vmem:[%s11049_s3 + $0xc30] sm:$0xff] %v3156_v6  ;;  %v3158_v10 = vadd.f32 %v3157_v5, %v2645_v7  ;;  %v2647_v11 = vadd.f32 %v2646_v8, %v7515_v29  ;;  %v6530_v5 = vld [vmem:[%s11047_s0 + $0x26c] ss:$16 sps:$4 sm:$0xff]   ;;  %4711 = vmatprep.subr.bf16.mxu1 %v6839_v39 }
 0x240   :  { %v2648_v12 = vpop.f32.mrf.mxu0 }
 0x241   :  { %v3161_v13 = vpop.f32.mrf.mxu1  ;;  %5495 = vst [vmem:[%s11049_s3 + $0xc38] sm:$0xff] %v3158_v10  ;;  %v3160_v14 = vadd.f32 %v3159_v9, %v2647_v11  ;;  %v2649_v15 = vadd.f32 %v2648_v12, %v7529_v34 }
 0x242   :  { %v2652_v16 = vpop.f32.mrf.mxu0  ;;  %3437 = vmatmul.mubr.bf16.gmra.mxu0 %v6519_v18 }
 0x243   :  { %v3165_v17 = vpop.f32.mrf.mxu1  ;;  %3950 = vmatmul.mubr.bf16.gmra.mxu1 %v6520_v19  ;;  %5499 = vst [vmem:[%s11049_s3 + $0xc58] sm:$0xff] %v3160_v14  ;;  %v3162_v20 = vadd.f32 %v3161_v13, %v2649_v15  ;;  %v2653_v21 = vadd.f32 %v2652_v16, %v7515_v29  ;;  %3446 = vmatprep.mubr.bf16.mxu0 %v6521_v22 }
 0x244   :  { %3959 = vmatprep.mubr.bf16.mxu1 %v6522_v24  ;;  %v2654_v25 = vpop.f32.mrf.mxu0 }
 0x245   :  { %v3167_v26 = vpop.f32.mrf.mxu1  ;;  %5500 = vst [vmem:[%s11049_s3 + $0xc60] sm:$0xff] %v3162_v20  ;;  %v3166_v27 = vadd.f32 %v3165_v17, %v2653_v21  ;;  %v2655_v28 = vadd.f32 %v2654_v25, %v7529_v34  ;;  %v6531_v20 = vld [vmem:[%s11047_s0 + $0x260] ss:$16 sps:$4 sm:$0xff]   ;;  %v6532_v21 = vld [vmem:[%s11047_s0 + $0x268] ss:$16 sps:$4 sm:$0xff]  }
 0x246   :  { %v2656_v30 = vpop.f32.mrf.mxu0  ;;  %v6533_v25 = vld [vmem:[%s11047_s0 + $0x284] ss:$16 sps:$4 sm:$0xff]  }
 0x247   :  { %v3169_v31 = vpop.f32.mrf.mxu1  ;;  %5504 = vst [vmem:[%s11049_s3 + $0xc80] sm:$0xff] %v3166_v27  ;;  %v3168_v32 = vadd.f32 %v3167_v26, %v2655_v28  ;;  %v2657_v33 = vadd.f32 %v2656_v30, %v7515_v29  ;;  %v6534_v26 = vld [vmem:[%s11047_s0 + $0x28c] ss:$16 sps:$4 sm:$0xff]  }
 0x248   :  { %v2658_v35 = vpop.f32.mrf.mxu0 }
 0x249   :  { %v3171_v36 = vpop.f32.mrf.mxu1  ;;  %5505 = vst [vmem:[%s11049_s3 + $0xc88] sm:$0xff] %v3168_v32  ;;  %v3170_v37 = vadd.f32 %v3169_v31, %v2657_v33  ;;  %v2659_v38 = vadd.f32 %v2658_v35, %v7529_v34 }
 0x24a   :  { %v2662_v40 = vpop.f32.mrf.mxu0  ;;  %3447 = vmatmul.mubr.bf16.gmra.mxu0 %v6523_v42 }
 0x24b   :  { %v3175_v41 = vpop.f32.mrf.mxu1  ;;  %3960 = vmatmul.mubr.bf16.gmra.mxu1 %v6524_v43  ;;  %5509 = vst [vmem:[%s11049_s3 + $0xca8] sm:$0xff] %v3170_v37  ;;  %v3172_v44 = vadd.f32 %v3171_v36, %v2659_v38  ;;  %v2663_v45 = vadd.f32 %v2662_v40, %v7515_v29  ;;  %3456 = vmatprep.mubr.bf16.mxu0 %v6525_v46 }
 0x24c   :  { %3969 = vmatprep.mubr.bf16.mxu1 %v6526_v47  ;;  %v2664_v48 = vpop.f32.mrf.mxu0 }
 0x24d   :  { %v3177_v49 = vpop.f32.mrf.mxu1  ;;  %5510 = vst [vmem:[%s11049_s3 + $0xcb0] sm:$0xff] %v3172_v44  ;;  %v3176_v50 = vadd.f32 %v3175_v41, %v2663_v45  ;;  %v2665_v51 = vadd.f32 %v2664_v48, %v7529_v34  ;;  %v6535_v44 = vld [vmem:[%s11047_s0 + $0x280] ss:$16 sps:$4 sm:$0xff]   ;;  %v6536_v45 = vld [vmem:[%s11047_s0 + $0x288] ss:$16 sps:$4 sm:$0xff]  }
 0x24e   :  { %v2666_v52 = vpop.f32.mrf.mxu0  ;;  %v6537_v48 = vld [vmem:[%s11047_s0 + $0x2a4] ss:$16 sps:$4 sm:$0xff]  }
 0x24f   :  { %v3179_v53 = vpop.f32.mrf.mxu1  ;;  %5514 = vst [vmem:[%s11049_s3 + $0xcd0] sm:$0xff] %v3176_v50  ;;  %v3178_v54 = vadd.f32 %v3177_v49, %v2665_v51  ;;  %v2667_v55 = vadd.f32 %v2666_v52, %v7515_v29  ;;  %v6538_v49 = vld [vmem:[%s11047_s0 + $0x2ac] ss:$16 sps:$4 sm:$0xff]  }
 0x250   :  { %v2668_v57 = vpop.f32.mrf.mxu0 }
 0x251   :  { %v3181_v58 = vpop.f32.mrf.mxu1  ;;  %5515 = vst [vmem:[%s11049_s3 + $0xcd8] sm:$0xff] %v3178_v54  ;;  %v3180_v59 = vadd.f32 %v3179_v53, %v2667_v55  ;;  %v2669_v60 = vadd.f32 %v2668_v57, %v7529_v34 }
 0x252   :  { %v2672_v62 = vpop.f32.mrf.mxu0  ;;  %3457 = vmatmul.mubr.bf16.gmra.mxu0 %v6527_v0 }
 0x253   :  { %v3185_v63 = vpop.f32.mrf.mxu1  ;;  %3970 = vmatmul.mubr.bf16.gmra.mxu1 %v6528_v1  ;;  %5519 = vst [vmem:[%s11049_s3 + $0xcf8] sm:$0xff] %v3180_v59  ;;  %v3182_v2 = vadd.f32 %v3181_v58, %v2669_v60  ;;  %v2673_v3 = vadd.f32 %v2672_v62, %v7515_v29  ;;  %3466 = vmatprep.mubr.bf16.mxu0 %v6529_v4  ;;  %v6445_v58 = vld [vmem:[%s11046_s1 + $0x1c8] ss:$20 sps:$4 sm:$0xff]  }
 0x254   :  { %3979 = vmatprep.mubr.bf16.mxu1 %v6530_v5  ;;  %v2674_v6 = vpop.f32.mrf.mxu0  ;;  %4295 = vmatpush2.bf16.msra.mxu0 %v6445_v58 }
 0x255   :  { %v3187_v7 = vpop.f32.mrf.mxu1  ;;  %5520 = vst [vmem:[%s11049_s3 + $0xd00] sm:$0xff] %v3182_v2  ;;  %v3186_v8 = vadd.f32 %v3185_v63, %v2673_v3  ;;  %v2675_v9 = vadd.f32 %v2674_v6, %v7529_v34  ;;  %v6446_v63 = vld [vmem:[%s11046_s1 + $0x448] ss:$20 sps:$4 sm:$0xff]   ;;  %v6539_v2 = vld [vmem:[%s11047_s0 + $0x2a0] ss:$16 sps:$4 sm:$0xff]   ;;  %4296 = vmatprep.subr.bf16.mxu0 %v6839_v39 }
 0x256   :  { %v2676_v10 = vpop.f32.mrf.mxu0  ;;  %v6540_v3 = vld [vmem:[%s11047_s0 + $0x2a8] ss:$16 sps:$4 sm:$0xff]   ;;  %v6541_v6 = vld [vmem:[%s11047_s0 + $0x2c4] ss:$16 sps:$4 sm:$0xff]   ;;  %4712 = vmatpush2.bf16.msra.mxu1 %v6446_v63 }
 0x257   :  { %v3189_v11 = vpop.f32.mrf.mxu1  ;;  %5524 = vst [vmem:[%s11049_s3 + $0xd20] sm:$0xff] %v3186_v8  ;;  %v3188_v12 = vadd.f32 %v3187_v7, %v2675_v9  ;;  %v2677_v13 = vadd.f32 %v2676_v10, %v7515_v29  ;;  %v6542_v7 = vld [vmem:[%s11047_s0 + $0x2cc] ss:$16 sps:$4 sm:$0xff]   ;;  %4713 = vmatprep.subr.bf16.mxu1 %v6839_v39 }
 0x258   :  { %v2678_v14 = vpop.f32.mrf.mxu0 }
 0x259   :  { %v3191_v15 = vpop.f32.mrf.mxu1  ;;  %5525 = vst [vmem:[%s11049_s3 + $0xd28] sm:$0xff] %v3188_v12  ;;  %v3190_v16 = vadd.f32 %v3189_v11, %v2677_v13  ;;  %v2679_v17 = vadd.f32 %v2678_v14, %v7529_v34 }
 0x25a   :  { %v2682_v18 = vpop.f32.mrf.mxu0  ;;  %3467 = vmatmul.mubr.bf16.gmra.mxu0 %v6531_v20 }
 0x25b   :  { %v3195_v19 = vpop.f32.mrf.mxu1  ;;  %3980 = vmatmul.mubr.bf16.gmra.mxu1 %v6532_v21  ;;  %5529 = vst [vmem:[%s11049_s3 + $0xd48] sm:$0xff] %v3190_v16  ;;  %v3192_v22 = vadd.f32 %v3191_v15, %v2679_v17  ;;  %v2683_v24 = vadd.f32 %v2682_v18, %v7515_v29  ;;  %3476 = vmatprep.mubr.bf16.mxu0 %v6533_v25 }
 0x25c   :  { %3989 = vmatprep.mubr.bf16.mxu1 %v6534_v26  ;;  %v2684_v27 = vpop.f32.mrf.mxu0 }
 0x25d   :  { %v3197_v28 = vpop.f32.mrf.mxu1  ;;  %5530 = vst [vmem:[%s11049_s3 + $0xd50] sm:$0xff] %v3192_v22  ;;  %v3196_v30 = vadd.f32 %v3195_v19, %v2683_v24  ;;  %v2685_v31 = vadd.f32 %v2684_v27, %v7529_v34  ;;  %v6543_v22 = vld [vmem:[%s11047_s0 + $0x2c0] ss:$16 sps:$4 sm:$0xff]   ;;  %v6544_v24 = vld [vmem:[%s11047_s0 + $0x2c8] ss:$16 sps:$4 sm:$0xff]  }
 0x25e   :  { %v2686_v32 = vpop.f32.mrf.mxu0  ;;  %v6545_v27 = vld [vmem:[%s11047_s0 + $0x2e4] ss:$16 sps:$4 sm:$0xff]  }
 0x25f   :  { %v3199_v33 = vpop.f32.mrf.mxu1  ;;  %5534 = vst [vmem:[%s11049_s3 + $0xd70] sm:$0xff] %v3196_v30  ;;  %v3198_v35 = vadd.f32 %v3197_v28, %v2685_v31  ;;  %v2687_v36 = vadd.f32 %v2686_v32, %v7515_v29  ;;  %v6546_v28 = vld [vmem:[%s11047_s0 + $0x2ec] ss:$16 sps:$4 sm:$0xff]  }
 0x260   :  { %v2688_v37 = vpop.f32.mrf.mxu0 }
 0x261   :  { %v3201_v38 = vpop.f32.mrf.mxu1  ;;  %5535 = vst [vmem:[%s11049_s3 + $0xd78] sm:$0xff] %v3198_v35  ;;  %v3200_v40 = vadd.f32 %v3199_v33, %v2687_v36  ;;  %v2689_v41 = vadd.f32 %v2688_v37, %v7529_v34 }
 0x262   :  { %v2692_v42 = vpop.f32.mrf.mxu0  ;;  %3477 = vmatmul.mubr.bf16.gmra.mxu0 %v6535_v44 }
 0x263   :  { %v3205_v43 = vpop.f32.mrf.mxu1  ;;  %3990 = vmatmul.mubr.bf16.gmra.mxu1 %v6536_v45  ;;  %5539 = vst [vmem:[%s11049_s3 + $0xd98] sm:$0xff] %v3200_v40  ;;  %v3202_v46 = vadd.f32 %v3201_v38, %v2689_v41  ;;  %v2693_v47 = vadd.f32 %v2692_v42, %v7515_v29  ;;  %3486 = vmatprep.mubr.bf16.mxu0 %v6537_v48 }
 0x264   :  { %3999 = vmatprep.mubr.bf16.mxu1 %v6538_v49  ;;  %v2694_v50 = vpop.f32.mrf.mxu0 }
 0x265   :  { %v3207_v51 = vpop.f32.mrf.mxu1  ;;  %5540 = vst [vmem:[%s11049_s3 + $0xda0] sm:$0xff] %v3202_v46  ;;  %v3206_v52 = vadd.f32 %v3205_v43, %v2693_v47  ;;  %v2695_v53 = vadd.f32 %v2694_v50, %v7529_v34  ;;  %v6547_v46 = vld [vmem:[%s11047_s0 + $0x2e0] ss:$16 sps:$4 sm:$0xff]   ;;  %v6548_v47 = vld [vmem:[%s11047_s0 + $0x2e8] ss:$16 sps:$4 sm:$0xff]  }
 0x266   :  { %v2696_v54 = vpop.f32.mrf.mxu0  ;;  %v6549_v50 = vld [vmem:[%s11047_s0 + $0x304] ss:$16 sps:$4 sm:$0xff]  }
 0x267   :  { %v3209_v55 = vpop.f32.mrf.mxu1  ;;  %5544 = vst [vmem:[%s11049_s3 + $0xdc0] sm:$0xff] %v3206_v52  ;;  %v3208_v56 = vadd.f32 %v3207_v51, %v2695_v53  ;;  %v2697_v57 = vadd.f32 %v2696_v54, %v7515_v29  ;;  %v6550_v51 = vld [vmem:[%s11047_s0 + $0x30c] ss:$16 sps:$4 sm:$0xff]   ;;  %v411_v52 = vsub.s32 2, %v7502_v23 }
 0x268   :  { %v2698_v59 = vpop.f32.mrf.mxu0 }
 0x269   :  { %v3211_v60 = vpop.f32.mrf.mxu1  ;;  %5545 = vst [vmem:[%s11049_s3 + $0xdc8] sm:$0xff] %v3208_v56  ;;  %v3210_v61 = vadd.f32 %v3209_v55, %v2697_v57  ;;  %v2699_v62 = vadd.f32 %v2698_v59, %v7529_v34  ;;  %v415_v57 = vsub.s32 3, %v7502_v23 }
 0x26a   :  { %v2702_v0 = vpop.f32.mrf.mxu0  ;;  %3487 = vmatmul.mubr.bf16.gmra.mxu0 %v6539_v2 }
 0x26b   :  { %v3215_v1 = vpop.f32.mrf.mxu1  ;;  %4000 = vmatmul.mubr.bf16.gmra.mxu1 %v6540_v3  ;;  %5549 = vst [vmem:[%s11049_s3 + $0xde8] sm:$0xff] %v3210_v61  ;;  %v3212_v4 = vadd.f32 %v3211_v60, %v2699_v62  ;;  %v2703_v5 = vadd.f32 %v2702_v0, %v7515_v29  ;;  %3496 = vmatprep.mubr.bf16.mxu0 %v6541_v6  ;;  %v6551_v62 = vld [vmem:[%s11048_s2] sm:$0x1f] }
 0x26c   :  { %4009 = vmatprep.mubr.bf16.mxu1 %v6542_v7  ;;  %v2704_v8 = vpop.f32.mrf.mxu0  ;;  %v8994_v63 = vrot.slane %v6551_v62, %v411_v52  ;;  %v6447_v0 = vld [vmem:[%s11046_s1 + $0x1a0] ss:$20 sps:$4 sm:$0xff]   ;;  %v6561_v52 = vld [vmem:[%s11047_s0 + $0x348] ss:$16 sps:$4 sm:$0xff]  }
 0x26d   :  { %v3217_v9 = vpop.f32.mrf.mxu1  ;;  %5550 = vst [vmem:[%s11049_s3 + $0xdf0] sm:$0xff] %v3212_v4  ;;  %v3216_v10 = vadd.f32 %v3215_v1, %v2703_v5  ;;  %v2705_v11 = vadd.f32 %v2704_v8, %v7529_v34  ;;  %4297 = vmatpush2.bf16.msra.mxu0 %v6447_v0  ;;  %v6448_v5 = vld [vmem:[%s11046_s1 + $0x420] ss:$20 sps:$4 sm:$0xff]  }
 0x26e   :  { %v2706_v12 = vpop.f32.mrf.mxu0  ;;  %v6552_v7 = vld [vmem:[%s11047_s0 + $0x300] ss:$16 sps:$4 sm:$0xff]   ;;  %4714 = vmatpush2.bf16.msra.mxu1 %v6448_v5  ;;  %4298 = vmatprep.subr.bf16.mxu0 %v6839_v39 }
 0x26f   :  { %v3219_v13 = vpop.f32.mrf.mxu1  ;;  %5554 = vst [vmem:[%s11049_s3 + $0xe10] sm:$0xff] %v3216_v10  ;;  %v3218_v14 = vadd.f32 %v3217_v9, %v2705_v11  ;;  %v2707_v15 = vadd.f32 %v2706_v12, %v7515_v29  ;;  %v6553_v9 = vld [vmem:[%s11047_s0 + $0x308] ss:$16 sps:$4 sm:$0xff]   ;;  %v6554_v11 = vld [vmem:[%s11047_s0 + $0x324] ss:$16 sps:$4 sm:$0xff]   ;;  %4715 = vmatprep.subr.bf16.mxu1 %v6839_v39 }
 0x270   :  { %v2708_v16 = vpop.f32.mrf.mxu0  ;;  %v6555_v12 = vld [vmem:[%s11047_s0 + $0x32c] ss:$16 sps:$4 sm:$0xff]  }
 0x271   :  { %v3221_v17 = vpop.f32.mrf.mxu1  ;;  %5555 = vst [vmem:[%s11049_s3 + $0xe18] sm:$0xff] %v3218_v14  ;;  %v3220_v18 = vadd.f32 %v3219_v13, %v2707_v15  ;;  %v2709_v19 = vadd.f32 %v2708_v16, %v7529_v34 }
 0x272   :  { %v2712_v20 = vpop.f32.mrf.mxu0  ;;  %3497 = vmatmul.mubr.bf16.gmra.mxu0 %v6543_v22 }
 0x273   :  { %v3225_v21 = vpop.f32.mrf.mxu1  ;;  %4010 = vmatmul.mubr.bf16.gmra.mxu1 %v6544_v24  ;;  %5559 = vst [vmem:[%s11049_s3 + $0xe38] sm:$0xff] %v3220_v18  ;;  %v3222_v25 = vadd.f32 %v3221_v17, %v2709_v19  ;;  %v2713_v26 = vadd.f32 %v2712_v20, %v7515_v29  ;;  %3506 = vmatprep.mubr.bf16.mxu0 %v6545_v27  ;;  %v6556_v27 = vld [vmem:[%s11047_s0 + $0x320] ss:$16 sps:$4 sm:$0xff]  }
 0x274   :  { %4019 = vmatprep.mubr.bf16.mxu1 %v6546_v28  ;;  %v2714_v30 = vpop.f32.mrf.mxu0 }
 0x275   :  { %v3227_v31 = vpop.f32.mrf.mxu1  ;;  %5560 = vst [vmem:[%s11049_s3 + $0xe40] sm:$0xff] %v3222_v25  ;;  %v3226_v32 = vadd.f32 %v3225_v21, %v2713_v26  ;;  %v2715_v33 = vadd.f32 %v2714_v30, %v7529_v34  ;;  %v6557_v30 = vld [vmem:[%s11047_s0 + $0x328] ss:$16 sps:$4 sm:$0xff]  }
 0x276   :  { %v2716_v35 = vpop.f32.mrf.mxu0 }
 0x277   :  { %v3229_v36 = vpop.f32.mrf.mxu1  ;;  %5564 = vst [vmem:[%s11049_s3 + $0xe60] sm:$0xff] %v3226_v32  ;;  %v3228_v37 = vadd.f32 %v3227_v31, %v2715_v33  ;;  %v2717_v38 = vadd.f32 %v2716_v35, %v7515_v29  ;;  %v6558_v33 = vld [vmem:[%s11047_s0 + $0x344] ss:$16 sps:$4 sm:$0xff]   ;;  %v6559_v35 = vld [vmem:[%s11047_s0 + $0x34c] ss:$16 sps:$4 sm:$0xff]  }
 0x278   :  { %v2718_v40 = vpop.f32.mrf.mxu0 }
 0x279   :  { %v3231_v41 = vpop.f32.mrf.mxu1  ;;  %5565 = vst [vmem:[%s11049_s3 + $0xe68] sm:$0xff] %v3228_v37  ;;  %v3230_v42 = vadd.f32 %v3229_v36, %v2717_v38  ;;  %v2719_v43 = vadd.f32 %v2718_v40, %v7529_v34 }
 0x27a   :  { %v2722_v44 = vpop.f32.mrf.mxu0  ;;  %3507 = vmatmul.mubr.bf16.gmra.mxu0 %v6547_v46 }
 0x27b   :  { %v3235_v45 = vpop.f32.mrf.mxu1  ;;  %4020 = vmatmul.mubr.bf16.gmra.mxu1 %v6548_v47  ;;  %5569 = vst [vmem:[%s11049_s3 + $0xe88] sm:$0xff] %v3230_v42  ;;  %v3232_v48 = vadd.f32 %v3231_v41, %v2719_v43  ;;  %v2723_v49 = vadd.f32 %v2722_v44, %v7515_v29  ;;  %3516 = vmatprep.mubr.bf16.mxu0 %v6549_v50  ;;  %v6560_v50 = vld [vmem:[%s11047_s0 + $0x340] ss:$16 sps:$4 sm:$0xff]  }
 0x27c   :  { %4029 = vmatprep.mubr.bf16.mxu1 %v6550_v51  ;;  %v2724_v53 = vpop.f32.mrf.mxu0 }
 0x27d   :  { %v3237_v54 = vpop.f32.mrf.mxu1  ;;  %5570 = vst [vmem:[%s11049_s3 + $0xe90] sm:$0xff] %v3232_v48  ;;  %v3236_v55 = vadd.f32 %v3235_v45, %v2723_v49  ;;  %v2725_v56 = vadd.f32 %v2724_v53, %v7529_v34 }
 0x27e   :  { %v2726_v58 = vpop.f32.mrf.mxu0 }
 0x27f   :  { %v3239_v59 = vpop.f32.mrf.mxu1  ;;  %5574 = vst [vmem:[%s11049_s3 + $0xeb0] sm:$0xff] %v3236_v55  ;;  %v3238_v60 = vadd.f32 %v3237_v54, %v2725_v56  ;;  %v2727_v61 = vadd.f32 %v2726_v58, %v7515_v29  ;;  %v9003_v29 = vrot.slane %v6551_v62, %v415_v57  ;;  %v6562_v55 = vld [vmem:[%s11047_s0 + $0x364] ss:$16 sps:$4 sm:$0xff]   ;;  %v6563_v56 = vld [vmem:[%s11047_s0 + $0x36c] ss:$16 sps:$4 sm:$0xff]  }
 0x280   :  { %v2728_v1 = vpop.f32.mrf.mxu0 }
 0x281   :  { %v3241_v2 = vpop.f32.mrf.mxu1  ;;  %5575 = vst [vmem:[%s11049_s3 + $0xeb8] sm:$0xff] %v3238_v60  ;;  %v3240_v3 = vadd.f32 %v3239_v59, %v2727_v61  ;;  %v2729_v4 = vadd.f32 %v2728_v1, %v7529_v34 }
 0x282   :  { %v3278_v6 = vpop.f32.mrf.mxu0  ;;  %3517 = vmatmul.mubr.bf16.gmra.mxu0 %v6552_v7  ;;  %v6450_v7 = vld [vmem:[%s11046_s1 + $0x3f8] ss:$20 sps:$4 sm:$0xff]  }
 0x283   :  { %v3791_v8 = vpop.f32.mrf.mxu1  ;;  %4030 = vmatmul.mubr.bf16.gmra.mxu1 %v6553_v9  ;;  %5579 = vst [vmem:[%s11049_s3 + $0xed8] sm:$0xff] %v3240_v3  ;;  %v3242_v34 = vadd.f32 %v3241_v2, %v2729_v4  ;;  %v3279_v10 = vadd.f32 %v3278_v6, %v8994_v63  ;;  %3526 = vmatprep.mubr.bf16.mxu0 %v6554_v11  ;;  %v6449_v2 = vld [vmem:[%s11046_s1 + $0x178] ss:$20 sps:$4 sm:$0xff]   ;;  %v6564_v9 = vld [vmem:[%s11047_s0 + $0x360] ss:$16 sps:$4 sm:$0xff]  }
 0x284   :  { %4039 = vmatprep.mubr.bf16.mxu1 %v6555_v12  ;;  %v3280_v13 = vpop.f32.mrf.mxu0  ;;  %4299 = vmatpush2.bf16.msra.mxu0 %v6449_v2 }
 0x285   :  { %v3793_v14 = vpop.f32.mrf.mxu1  ;;  %5580 = vst [vmem:[%s11049_s3 + $0xee0] sm:$0xff] %v3242_v34  ;;  %v3792_v15 = vadd.f32 %v3791_v8, %v3279_v10  ;;  %v3281_v16 = vadd.f32 %v3280_v13, %v9003_v29  ;;  %v6565_v10 = vld [vmem:[%s11047_s0 + $0x368] ss:$16 sps:$4 sm:$0xff]   ;;  %v6566_v13 = vld [vmem:[%s11047_s0 + $0x384] ss:$16 sps:$4 sm:$0xff]   ;;  %4716 = vmatpush2.bf16.msra.mxu1 %v6450_v7  ;;  %4300 = vmatprep.subr.bf16.mxu0 %v6839_v39 }
 0x286   :  { %v3282_v17 = vpop.f32.mrf.mxu0  ;;  %4717 = vmatprep.subr.bf16.mxu1 %v6839_v39  ;;  %v6568_v39 = vld [vmem:[%s11047_s0 + $0x380] ss:$16 sps:$4 sm:$0xff]  }
 0x287   :  { %v3795_v18 = vpop.f32.mrf.mxu1  ;;  %5106 = vst [vmem:[%s11049_s3 + $0x10] sm:$0xff] %v3792_v15  ;;  %v3794_v19 = vadd.f32 %v3793_v14, %v3281_v16  ;;  %v3283_v20 = vadd.f32 %v3282_v17, %v8994_v63  ;;  %v6567_v14 = vld [vmem:[%s11047_s0 + $0x38c] ss:$16 sps:$4 sm:$0xff]  }
 0x288   :  { %v3284_v21 = vpop.f32.mrf.mxu0 }
 0x289   :  { %v3797_v22 = vpop.f32.mrf.mxu1  ;;  %5107 = vst [vmem:[%s11049_s3 + $0x18] sm:$0xff] %v3794_v19  ;;  %v3796_v24 = vadd.f32 %v3795_v18, %v3283_v20  ;;  %v3285_v25 = vadd.f32 %v3284_v21, %v9003_v29 }
 0x28a   :  { %v3288_v26 = vpop.f32.mrf.mxu0  ;;  %3527 = vmatmul.mubr.bf16.gmra.mxu0 %v6556_v27 }
 0x28b   :  { %v3801_v28 = vpop.f32.mrf.mxu1  ;;  %4040 = vmatmul.mubr.bf16.gmra.mxu1 %v6557_v30  ;;  %5111 = vst [vmem:[%s11049_s3 + $0x38] sm:$0xff] %v3796_v24  ;;  %v3798_v31 = vadd.f32 %v3797_v22, %v3285_v25  ;;  %v3289_v32 = vadd.f32 %v3288_v26, %v8994_v63  ;;  %3536 = vmatprep.mubr.bf16.mxu0 %v6558_v33 }
 0x28c   :  { %4049 = vmatprep.mubr.bf16.mxu1 %v6559_v35  ;;  %v3290_v36 = vpop.f32.mrf.mxu0  ;;  %v6570_v35 = vld [vmem:[%s11047_s0 + $0x3a4] ss:$16 sps:$4 sm:$0xff]  }
 0x28d   :  { %v3803_v37 = vpop.f32.mrf.mxu1  ;;  %5112 = vst [vmem:[%s11049_s3 + $0x40] sm:$0xff] %v3798_v31  ;;  %v3802_v38 = vadd.f32 %v3801_v28, %v3289_v32  ;;  %v3291_v40 = vadd.f32 %v3290_v36, %v9003_v29  ;;  %v6569_v31 = vld [vmem:[%s11047_s0 + $0x388] ss:$16 sps:$4 sm:$0xff]   ;;  %v6571_v36 = vld [vmem:[%s11047_s0 + $0x3ac] ss:$16 sps:$4 sm:$0xff]  }
 0x28e   :  { %v3292_v41 = vpop.f32.mrf.mxu0 }
 0x28f   :  { %v3805_v42 = vpop.f32.mrf.mxu1  ;;  %5116 = vst [vmem:[%s11049_s3 + $0x60] sm:$0xff] %v3802_v38  ;;  %v3804_v43 = vadd.f32 %v3803_v37, %v3291_v40  ;;  %v3293_v44 = vadd.f32 %v3292_v41, %v8994_v63 }
 0x290   :  { %v3294_v45 = vpop.f32.mrf.mxu0 }
 0x291   :  { %v3807_v46 = vpop.f32.mrf.mxu1  ;;  %5117 = vst [vmem:[%s11049_s3 + $0x68] sm:$0xff] %v3804_v43  ;;  %v3806_v47 = vadd.f32 %v3805_v42, %v3293_v44  ;;  %v3295_v48 = vadd.f32 %v3294_v45, %v9003_v29 }
 0x292   :  { %v3298_v49 = vpop.f32.mrf.mxu0  ;;  %3537 = vmatmul.mubr.bf16.gmra.mxu0 %v6560_v50 }
 0x293   :  { %v3811_v51 = vpop.f32.mrf.mxu1  ;;  %4050 = vmatmul.mubr.bf16.gmra.mxu1 %v6561_v52  ;;  %5121 = vst [vmem:[%s11049_s3 + $0x88] sm:$0xff] %v3806_v47  ;;  %v3808_v53 = vadd.f32 %v3807_v46, %v3295_v48  ;;  %v3299_v54 = vadd.f32 %v3298_v49, %v8994_v63  ;;  %3546 = vmatprep.mubr.bf16.mxu0 %v6562_v55 }
 0x294   :  { %4059 = vmatprep.mubr.bf16.mxu1 %v6563_v56  ;;  %v3300_v57 = vpop.f32.mrf.mxu0  ;;  %v6574_v56 = vld [vmem:[%s11047_s0 + $0x3c4] ss:$16 sps:$4 sm:$0xff]  }
 0x295   :  { %v3813_v58 = vpop.f32.mrf.mxu1  ;;  %5122 = vst [vmem:[%s11049_s3 + $0x90] sm:$0xff] %v3808_v53  ;;  %v3812_v59 = vadd.f32 %v3811_v51, %v3299_v54  ;;  %v3301_v60 = vadd.f32 %v3300_v57, %v9003_v29  ;;  %v6572_v51 = vld [vmem:[%s11047_s0 + $0x3a0] ss:$16 sps:$4 sm:$0xff]   ;;  %v6573_v53 = vld [vmem:[%s11047_s0 + $0x3a8] ss:$16 sps:$4 sm:$0xff]  }
 0x296   :  { %v3302_v61 = vpop.f32.mrf.mxu0  ;;  %v6575_v57 = vld [vmem:[%s11047_s0 + $0x3cc] ss:$16 sps:$4 sm:$0xff]  }
 0x297   :  { %v3815_v62 = vpop.f32.mrf.mxu1  ;;  %5126 = vst [vmem:[%s11049_s3 + $0xb0] sm:$0xff] %v3812_v59  ;;  %v3814_v0 = vadd.f32 %v3813_v58, %v3301_v60  ;;  %v3303_v1 = vadd.f32 %v3302_v61, %v8994_v63 }
 0x298   :  { %v3304_v3 = vpop.f32.mrf.mxu0 }
 0x299   :  { %v3817_v4 = vpop.f32.mrf.mxu1  ;;  %5127 = vst [vmem:[%s11049_s3 + $0xb8] sm:$0xff] %v3814_v0  ;;  %v3816_v5 = vadd.f32 %v3815_v62, %v3303_v1  ;;  %v3305_v6 = vadd.f32 %v3304_v3, %v9003_v29  ;;  %v6451_v3 = vld [vmem:[%s11046_s1 + $0x150] ss:$20 sps:$4 sm:$0xff]  }
 0x29a   :  { %v3308_v8 = vpop.f32.mrf.mxu0  ;;  %3547 = vmatmul.mubr.bf16.gmra.mxu0 %v6564_v9 }
 0x29b   :  { %v3821_v34 = vpop.f32.mrf.mxu1  ;;  %4060 = vmatmul.mubr.bf16.gmra.mxu1 %v6565_v10  ;;  %5131 = vst [vmem:[%s11049_s3 + $0xd8] sm:$0xff] %v3816_v5  ;;  %v3818_v11 = vadd.f32 %v3817_v4, %v3305_v6  ;;  %v3309_v12 = vadd.f32 %v3308_v8, %v8994_v63  ;;  %3556 = vmatprep.mubr.bf16.mxu0 %v6566_v13  ;;  %v6452_v8 = vld [vmem:[%s11046_s1 + $0x3d0] ss:$20 sps:$4 sm:$0xff]  }
 0x29c   :  { %4069 = vmatprep.mubr.bf16.mxu1 %v6567_v14  ;;  %v3310_v15 = vpop.f32.mrf.mxu0  ;;  %4301 = vmatpush2.bf16.msra.mxu0 %v6451_v3  ;;  %v6578_v14 = vld [vmem:[%s11047_s0 + $0x3e4] ss:$16 sps:$4 sm:$0xff]  }
 0x29d   :  { %v3823_v16 = vpop.f32.mrf.mxu1  ;;  %5132 = vst [vmem:[%s11049_s3 + $0xe0] sm:$0xff] %v3818_v11  ;;  %v3822_v17 = vadd.f32 %v3821_v34, %v3309_v12  ;;  %v3311_v18 = vadd.f32 %v3310_v15, %v9003_v29  ;;  %v6576_v34 = vld [vmem:[%s11047_s0 + $0x3c0] ss:$16 sps:$4 sm:$0xff]   ;;  %v6577_v11 = vld [vmem:[%s11047_s0 + $0x3c8] ss:$16 sps:$4 sm:$0xff]   ;;  %4718 = vmatpush2.bf16.msra.mxu1 %v6452_v8 }
 0x29e   :  { %v3312_v19 = vpop.f32.mrf.mxu0  ;;  %v6579_v15 = vld [vmem:[%s11047_s0 + $0x3ec] ss:$16 sps:$4 sm:$0xff]  }
 0x29f   :  { %v3825_v20 = vpop.f32.mrf.mxu1  ;;  %5136 = vst [vmem:[%s11049_s3 + $0x100] sm:$0xff] %v3822_v17  ;;  %v3824_v21 = vadd.f32 %v3823_v16, %v3311_v18  ;;  %v3313_v22 = vadd.f32 %v3312_v19, %v8994_v63 }
 0x2a0   :  { %v3314_v24 = vpop.f32.mrf.mxu0 }
 0x2a1   :  { %v3827_v25 = vpop.f32.mrf.mxu1  ;;  %5137 = vst [vmem:[%s11049_s3 + $0x108] sm:$0xff] %v3824_v21  ;;  %v3826_v26 = vadd.f32 %v3825_v20, %v3313_v22  ;;  %v3315_v27 = vadd.f32 %v3314_v24, %v9003_v29 }
 0x2a2   :  { %v3318_v28 = vpop.f32.mrf.mxu0  ;;  %3557 = vmatmul.mubr.bf16.gmra.mxu0 %v6568_v39 }
 0x2a3   :  { %v3831_v30 = vpop.f32.mrf.mxu1  ;;  %4070 = vmatmul.mubr.bf16.gmra.mxu1 %v6569_v31  ;;  %5141 = vst [vmem:[%s11049_s3 + $0x128] sm:$0xff] %v3826_v26  ;;  %v3828_v32 = vadd.f32 %v3827_v25, %v3315_v27  ;;  %v3319_v33 = vadd.f32 %v3318_v28, %v8994_v63  ;;  %3566 = vmatprep.mubr.bf16.mxu0 %v6570_v35 }
 0x2a4   :  { %4079 = vmatprep.mubr.bf16.mxu1 %v6571_v36  ;;  %v3320_v37 = vpop.f32.mrf.mxu0  ;;  %v6582_v36 = vld [vmem:[%s11047_s0 + $0x404] ss:$16 sps:$4 sm:$0xff]  }
 0x2a5   :  { %v3833_v38 = vpop.f32.mrf.mxu1  ;;  %5142 = vst [vmem:[%s11049_s3 + $0x130] sm:$0xff] %v3828_v32  ;;  %v3832_v40 = vadd.f32 %v3831_v30, %v3319_v33  ;;  %v3321_v41 = vadd.f32 %v3320_v37, %v9003_v29  ;;  %v6580_v30 = vld [vmem:[%s11047_s0 + $0x3e0] ss:$16 sps:$4 sm:$0xff]   ;;  %v6581_v32 = vld [vmem:[%s11047_s0 + $0x3e8] ss:$16 sps:$4 sm:$0xff]  }
 0x2a6   :  { %v3322_v42 = vpop.f32.mrf.mxu0  ;;  %v6583_v37 = vld [vmem:[%s11047_s0 + $0x40c] ss:$16 sps:$4 sm:$0xff]  }
 0x2a7   :  { %v3835_v43 = vpop.f32.mrf.mxu1  ;;  %5146 = vst [vmem:[%s11049_s3 + $0x150] sm:$0xff] %v3832_v40  ;;  %v3834_v44 = vadd.f32 %v3833_v38, %v3321_v41  ;;  %v3323_v45 = vadd.f32 %v3322_v42, %v8994_v63 }
 0x2a8   :  { %v3324_v46 = vpop.f32.mrf.mxu0 }
 0x2a9   :  { %v3837_v47 = vpop.f32.mrf.mxu1  ;;  %5147 = vst [vmem:[%s11049_s3 + $0x158] sm:$0xff] %v3834_v44  ;;  %v3836_v48 = vadd.f32 %v3835_v43, %v3323_v45  ;;  %v3325_v49 = vadd.f32 %v3324_v46, %v9003_v29 }
 0x2aa   :  { %v3328_v50 = vpop.f32.mrf.mxu0  ;;  %3567 = vmatmul.mubr.bf16.gmra.mxu0 %v6572_v51 }
 0x2ab   :  { %v3841_v52 = vpop.f32.mrf.mxu1  ;;  %4080 = vmatmul.mubr.bf16.gmra.mxu1 %v6573_v53  ;;  %5151 = vst [vmem:[%s11049_s3 + $0x178] sm:$0xff] %v3836_v48  ;;  %v3838_v54 = vadd.f32 %v3837_v47, %v3325_v49  ;;  %v3329_v55 = vadd.f32 %v3328_v50, %v8994_v63  ;;  %3576 = vmatprep.mubr.bf16.mxu0 %v6574_v56 }
 0x2ac   :  { %4089 = vmatprep.mubr.bf16.mxu1 %v6575_v57  ;;  %v3330_v58 = vpop.f32.mrf.mxu0  ;;  %v6586_v57 = vld [vmem:[%s11047_s0 + $0x424] ss:$16 sps:$4 sm:$0xff]  }
 0x2ad   :  { %v3843_v59 = vpop.f32.mrf.mxu1  ;;  %5152 = vst [vmem:[%s11049_s3 + $0x180] sm:$0xff] %v3838_v54  ;;  %v3842_v60 = vadd.f32 %v3841_v52, %v3329_v55  ;;  %v3331_v61 = vadd.f32 %v3330_v58, %v9003_v29  ;;  %v6584_v52 = vld [vmem:[%s11047_s0 + $0x400] ss:$16 sps:$4 sm:$0xff]   ;;  %v6585_v54 = vld [vmem:[%s11047_s0 + $0x408] ss:$16 sps:$4 sm:$0xff]  }
 0x2ae   :  { %v3332_v62 = vpop.f32.mrf.mxu0  ;;  %v6587_v58 = vld [vmem:[%s11047_s0 + $0x42c] ss:$16 sps:$4 sm:$0xff]  }
 0x2af   :  { %v3845_v0 = vpop.f32.mrf.mxu1  ;;  %5156 = vst [vmem:[%s11049_s3 + $0x1a0] sm:$0xff] %v3842_v60  ;;  %v3844_v1 = vadd.f32 %v3843_v59, %v3331_v61  ;;  %v3333_v2 = vadd.f32 %v3332_v62, %v8994_v63 }
 0x2b0   :  { %v3334_v4 = vpop.f32.mrf.mxu0 }
 0x2b1   :  { %v3847_v5 = vpop.f32.mrf.mxu1  ;;  %5157 = vst [vmem:[%s11049_s3 + $0x1a8] sm:$0xff] %v3844_v1  ;;  %v3846_v6 = vadd.f32 %v3845_v0, %v3333_v2  ;;  %v3335_v7 = vadd.f32 %v3334_v4, %v9003_v29 }
 0x2b2   :  { %v3338_v9 = vpop.f32.mrf.mxu0  ;;  %3577 = vmatmul.mubr.bf16.gmra.mxu0 %v6576_v34 }
 0x2b3   :  { %v3851_v10 = vpop.f32.mrf.mxu1  ;;  %4090 = vmatmul.mubr.bf16.gmra.mxu1 %v6577_v11  ;;  %5161 = vst [vmem:[%s11049_s3 + $0x1c8] sm:$0xff] %v3846_v6  ;;  %v3848_v12 = vadd.f32 %v3847_v5, %v3335_v7  ;;  %v3339_v13 = vadd.f32 %v3338_v9, %v8994_v63  ;;  %3586 = vmatprep.mubr.bf16.mxu0 %v6578_v14  ;;  %v6588_v9 = vld [vmem:[%s11047_s0 + $0x420] ss:$16 sps:$4 sm:$0xff]   ;;  %v6591_v14 = vld [vmem:[%s11047_s0 + $0x44c] ss:$16 sps:$4 sm:$0xff]  }
 0x2b4   :  { %4099 = vmatprep.mubr.bf16.mxu1 %v6579_v15  ;;  %v3340_v16 = vpop.f32.mrf.mxu0 }
 0x2b5   :  { %v3853_v17 = vpop.f32.mrf.mxu1  ;;  %5162 = vst [vmem:[%s11049_s3 + $0x1d0] sm:$0xff] %v3848_v12  ;;  %v3852_v18 = vadd.f32 %v3851_v10, %v3339_v13  ;;  %v3341_v19 = vadd.f32 %v3340_v16, %v9003_v29  ;;  %v6589_v10 = vld [vmem:[%s11047_s0 + $0x428] ss:$16 sps:$4 sm:$0xff]   ;;  %v6590_v13 = vld [vmem:[%s11047_s0 + $0x444] ss:$16 sps:$4 sm:$0xff]  }
 0x2b6   :  { %v3342_v20 = vpop.f32.mrf.mxu0 }
 0x2b7   :  { %v3855_v21 = vpop.f32.mrf.mxu1  ;;  %5166 = vst [vmem:[%s11049_s3 + $0x1f0] sm:$0xff] %v3852_v18  ;;  %v3854_v22 = vadd.f32 %v3853_v17, %v3341_v19  ;;  %v3343_v24 = vadd.f32 %v3342_v20, %v8994_v63 }
 0x2b8   :  { %v3344_v25 = vpop.f32.mrf.mxu0 }
 0x2b9   :  { %v3857_v26 = vpop.f32.mrf.mxu1  ;;  %5167 = vst [vmem:[%s11049_s3 + $0x1f8] sm:$0xff] %v3854_v22  ;;  %v3856_v27 = vadd.f32 %v3855_v21, %v3343_v24  ;;  %v3345_v28 = vadd.f32 %v3344_v25, %v9003_v29 }
 0x2ba   :  { %v3348_v39 = vpop.f32.mrf.mxu0  ;;  %3587 = vmatmul.mubr.bf16.gmra.mxu0 %v6580_v30 }
 0x2bb   :  { %v3861_v31 = vpop.f32.mrf.mxu1  ;;  %4100 = vmatmul.mubr.bf16.gmra.mxu1 %v6581_v32  ;;  %5171 = vst [vmem:[%s11049_s3 + $0x218] sm:$0xff] %v3856_v27  ;;  %v3858_v33 = vadd.f32 %v3857_v26, %v3345_v28  ;;  %v3349_v35 = vadd.f32 %v3348_v39, %v8994_v63  ;;  %3596 = vmatprep.mubr.bf16.mxu0 %v6582_v36  ;;  %v6592_v39 = vld [vmem:[%s11047_s0 + $0x440] ss:$16 sps:$4 sm:$0xff]   ;;  %v6595_v36 = vld [vmem:[%s11047_s0 + $0x46c] ss:$16 sps:$4 sm:$0xff]  }
 0x2bc   :  { %4109 = vmatprep.mubr.bf16.mxu1 %v6583_v37  ;;  %v3350_v38 = vpop.f32.mrf.mxu0 }
 0x2bd   :  { %v3863_v40 = vpop.f32.mrf.mxu1  ;;  %5172 = vst [vmem:[%s11049_s3 + $0x220] sm:$0xff] %v3858_v33  ;;  %v3862_v41 = vadd.f32 %v3861_v31, %v3349_v35  ;;  %v3351_v42 = vadd.f32 %v3350_v38, %v9003_v29  ;;  %v6593_v31 = vld [vmem:[%s11047_s0 + $0x448] ss:$16 sps:$4 sm:$0xff]   ;;  %v6594_v35 = vld [vmem:[%s11047_s0 + $0x464] ss:$16 sps:$4 sm:$0xff]  }
 0x2be   :  { %v3352_v43 = vpop.f32.mrf.mxu0 }
 0x2bf   :  { %v3865_v44 = vpop.f32.mrf.mxu1  ;;  %5176 = vst [vmem:[%s11049_s3 + $0x240] sm:$0xff] %v3862_v41  ;;  %v3864_v45 = vadd.f32 %v3863_v40, %v3351_v42  ;;  %v3353_v46 = vadd.f32 %v3352_v43, %v8994_v63 }
 0x2c0   :  { %v3354_v47 = vpop.f32.mrf.mxu0 }
 0x2c1   :  { %v3867_v48 = vpop.f32.mrf.mxu1  ;;  %5177 = vst [vmem:[%s11049_s3 + $0x248] sm:$0xff] %v3864_v45  ;;  %v3866_v49 = vadd.f32 %v3865_v44, %v3353_v46  ;;  %v3355_v50 = vadd.f32 %v3354_v47, %v9003_v29 }
 0x2c2   :  { %v3358_v51 = vpop.f32.mrf.mxu0  ;;  %3597 = vmatmul.mubr.bf16.gmra.mxu0 %v6584_v52 }
 0x2c3   :  { %v3871_v53 = vpop.f32.mrf.mxu1  ;;  %4110 = vmatmul.mubr.bf16.gmra.mxu1 %v6585_v54  ;;  %5181 = vst [vmem:[%s11049_s3 + $0x268] sm:$0xff] %v3866_v49  ;;  %v3868_v55 = vadd.f32 %v3867_v48, %v3355_v50  ;;  %v3359_v56 = vadd.f32 %v3358_v51, %v8994_v63  ;;  %3606 = vmatprep.mubr.bf16.mxu0 %v6586_v57  ;;  %v6596_v51 = vld [vmem:[%s11047_s0 + $0x460] ss:$16 sps:$4 sm:$0xff]   ;;  %v6599_v57 = vld [vmem:[%s11047_s0 + $0x48c] ss:$16 sps:$4 sm:$0xff]  }
 0x2c4   :  { %4119 = vmatprep.mubr.bf16.mxu1 %v6587_v58  ;;  %v3360_v59 = vpop.f32.mrf.mxu0 }
 0x2c5   :  { %v3873_v60 = vpop.f32.mrf.mxu1  ;;  %5182 = vst [vmem:[%s11049_s3 + $0x270] sm:$0xff] %v3868_v55  ;;  %v3872_v61 = vadd.f32 %v3871_v53, %v3359_v56  ;;  %v3361_v62 = vadd.f32 %v3360_v59, %v9003_v29  ;;  %v6597_v53 = vld [vmem:[%s11047_s0 + $0x468] ss:$16 sps:$4 sm:$0xff]   ;;  %v6598_v56 = vld [vmem:[%s11047_s0 + $0x484] ss:$16 sps:$4 sm:$0xff]  }
 0x2c6   :  { %v3362_v0 = vpop.f32.mrf.mxu0 }
 0x2c7   :  { %v3875_v1 = vpop.f32.mrf.mxu1  ;;  %5186 = vst [vmem:[%s11049_s3 + $0x290] sm:$0xff] %v3872_v61  ;;  %v3874_v2 = vadd.f32 %v3873_v60, %v3361_v62  ;;  %v3363_v3 = vadd.f32 %v3362_v0, %v8994_v63 }
 0x2c8   :  { %v3364_v4 = vpop.f32.mrf.mxu0 }
 0x2c9   :  { %v3877_v5 = vpop.f32.mrf.mxu1  ;;  %5187 = vst [vmem:[%s11049_s3 + $0x298] sm:$0xff] %v3874_v2  ;;  %v3876_v6 = vadd.f32 %v3875_v1, %v3363_v3  ;;  %v3365_v7 = vadd.f32 %v3364_v4, %v9003_v29 }
 0x2ca   :  { %v3368_v8 = vpop.f32.mrf.mxu0  ;;  %3607 = vmatmul.mubr.bf16.gmra.mxu0 %v6588_v9 }
 0x2cb   :  { %v3881_v34 = vpop.f32.mrf.mxu1  ;;  %4120 = vmatmul.mubr.bf16.gmra.mxu1 %v6589_v10  ;;  %5191 = vst [vmem:[%s11049_s3 + $0x2b8] sm:$0xff] %v3876_v6  ;;  %v3878_v11 = vadd.f32 %v3877_v5, %v3365_v7  ;;  %v3369_v12 = vadd.f32 %v3368_v8, %v8994_v63  ;;  %3616 = vmatprep.mubr.bf16.mxu0 %v6590_v13  ;;  %v6600_v8 = vld [vmem:[%s11047_s0 + $0x480] ss:$16 sps:$4 sm:$0xff]   ;;  %v6603_v13 = vld [vmem:[%s11047_s0 + $0x4ac] ss:$16 sps:$4 sm:$0xff]  }
 0x2cc   :  { %4129 = vmatprep.mubr.bf16.mxu1 %v6591_v14  ;;  %v3370_v15 = vpop.f32.mrf.mxu0 }
 0x2cd   :  { %v3883_v16 = vpop.f32.mrf.mxu1  ;;  %5192 = vst [vmem:[%s11049_s3 + $0x2c0] sm:$0xff] %v3878_v11  ;;  %v3882_v17 = vadd.f32 %v3881_v34, %v3369_v12  ;;  %v3371_v18 = vadd.f32 %v3370_v15, %v9003_v29  ;;  %v6601_v34 = vld [vmem:[%s11047_s0 + $0x488] ss:$16 sps:$4 sm:$0xff]   ;;  %v6602_v12 = vld [vmem:[%s11047_s0 + $0x4a4] ss:$16 sps:$4 sm:$0xff]  }
 0x2ce   :  { %v3372_v19 = vpop.f32.mrf.mxu0 }
 0x2cf   :  { %v3885_v20 = vpop.f32.mrf.mxu1  ;;  %5196 = vst [vmem:[%s11049_s3 + $0x2e0] sm:$0xff] %v3882_v17  ;;  %v3884_v21 = vadd.f32 %v3883_v16, %v3371_v18  ;;  %v3373_v22 = vadd.f32 %v3372_v19, %v8994_v63 }
 0x2d0   :  { %v3374_v24 = vpop.f32.mrf.mxu0 }
 0x2d1   :  { %v3887_v25 = vpop.f32.mrf.mxu1  ;;  %5197 = vst [vmem:[%s11049_s3 + $0x2e8] sm:$0xff] %v3884_v21  ;;  %v3886_v26 = vadd.f32 %v3885_v20, %v3373_v22  ;;  %v3375_v27 = vadd.f32 %v3374_v24, %v9003_v29 }
 0x2d2   :  { %v3378_v28 = vpop.f32.mrf.mxu0  ;;  %3617 = vmatmul.mubr.bf16.gmra.mxu0 %v6592_v39 }
 0x2d3   :  { %v3891_v30 = vpop.f32.mrf.mxu1  ;;  %4130 = vmatmul.mubr.bf16.gmra.mxu1 %v6593_v31  ;;  %5201 = vst [vmem:[%s11049_s3 + $0x308] sm:$0xff] %v3886_v26  ;;  %v3888_v32 = vadd.f32 %v3887_v25, %v3375_v27  ;;  %v3379_v33 = vadd.f32 %v3378_v28, %v8994_v63  ;;  %3626 = vmatprep.mubr.bf16.mxu0 %v6594_v35  ;;  %v6604_v28 = vld [vmem:[%s11047_s0 + $0x4a0] ss:$16 sps:$4 sm:$0xff]   ;;  %v6607_v35 = vld [vmem:[%s11047_s0 + $0x4cc] ss:$16 sps:$4 sm:$0xff]  }
 0x2d4   :  { %4139 = vmatprep.mubr.bf16.mxu1 %v6595_v36  ;;  %v3380_v37 = vpop.f32.mrf.mxu0 }
 0x2d5   :  { %v3893_v38 = vpop.f32.mrf.mxu1  ;;  %5202 = vst [vmem:[%s11049_s3 + $0x310] sm:$0xff] %v3888_v32  ;;  %v3892_v40 = vadd.f32 %v3891_v30, %v3379_v33  ;;  %v3381_v41 = vadd.f32 %v3380_v37, %v9003_v29  ;;  %v6605_v30 = vld [vmem:[%s11047_s0 + $0x4a8] ss:$16 sps:$4 sm:$0xff]   ;;  %v6606_v33 = vld [vmem:[%s11047_s0 + $0x4c4] ss:$16 sps:$4 sm:$0xff]  }
 0x2d6   :  { %v3382_v42 = vpop.f32.mrf.mxu0 }
 0x2d7   :  { %v3895_v43 = vpop.f32.mrf.mxu1  ;;  %5206 = vst [vmem:[%s11049_s3 + $0x330] sm:$0xff] %v3892_v40  ;;  %v3894_v44 = vadd.f32 %v3893_v38, %v3381_v41  ;;  %v3383_v45 = vadd.f32 %v3382_v42, %v8994_v63 }
 0x2d8   :  { %v3384_v46 = vpop.f32.mrf.mxu0 }
 0x2d9   :  { %v3897_v47 = vpop.f32.mrf.mxu1  ;;  %5207 = vst [vmem:[%s11049_s3 + $0x338] sm:$0xff] %v3894_v44  ;;  %v3896_v48 = vadd.f32 %v3895_v43, %v3383_v45  ;;  %v3385_v49 = vadd.f32 %v3384_v46, %v9003_v29 }
 0x2da   :  { %v3388_v50 = vpop.f32.mrf.mxu0  ;;  %3627 = vmatmul.mubr.bf16.gmra.mxu0 %v6596_v51 }
 0x2db   :  { %v3901_v52 = vpop.f32.mrf.mxu1  ;;  %4140 = vmatmul.mubr.bf16.gmra.mxu1 %v6597_v53  ;;  %5211 = vst [vmem:[%s11049_s3 + $0x358] sm:$0xff] %v3896_v48  ;;  %v3898_v54 = vadd.f32 %v3897_v47, %v3385_v49  ;;  %v3389_v55 = vadd.f32 %v3388_v50, %v8994_v63  ;;  %3636 = vmatprep.mubr.bf16.mxu0 %v6598_v56  ;;  %v6608_v50 = vld [vmem:[%s11047_s0 + $0x4c0] ss:$16 sps:$4 sm:$0xff]   ;;  %v6611_v56 = vld [vmem:[%s11047_s0 + $0x4ec] ss:$16 sps:$4 sm:$0xff]  }
 0x2dc   :  { %4149 = vmatprep.mubr.bf16.mxu1 %v6599_v57  ;;  %v3390_v58 = vpop.f32.mrf.mxu0 }
 0x2dd   :  { %v3903_v59 = vpop.f32.mrf.mxu1  ;;  %5212 = vst [vmem:[%s11049_s3 + $0x360] sm:$0xff] %v3898_v54  ;;  %v3902_v60 = vadd.f32 %v3901_v52, %v3389_v55  ;;  %v3391_v61 = vadd.f32 %v3390_v58, %v9003_v29  ;;  %v6609_v52 = vld [vmem:[%s11047_s0 + $0x4c8] ss:$16 sps:$4 sm:$0xff]   ;;  %v6610_v55 = vld [vmem:[%s11047_s0 + $0x4e4] ss:$16 sps:$4 sm:$0xff]  }
 0x2de   :  { %v3392_v62 = vpop.f32.mrf.mxu0 }
 0x2df   :  { %v3905_v0 = vpop.f32.mrf.mxu1  ;;  %5216 = vst [vmem:[%s11049_s3 + $0x380] sm:$0xff] %v3902_v60  ;;  %v3904_v1 = vadd.f32 %v3903_v59, %v3391_v61  ;;  %v3393_v2 = vadd.f32 %v3392_v62, %v8994_v63 }
 0x2e0   :  { %v3394_v3 = vpop.f32.mrf.mxu0 }
 0x2e1   :  { %v3907_v4 = vpop.f32.mrf.mxu1  ;;  %5217 = vst [vmem:[%s11049_s3 + $0x388] sm:$0xff] %v3904_v1  ;;  %v3906_v5 = vadd.f32 %v3905_v0, %v3393_v2  ;;  %v3395_v6 = vadd.f32 %v3394_v3, %v9003_v29 }
 0x2e2   :  { %v3398_v7 = vpop.f32.mrf.mxu0  ;;  %3637 = vmatmul.mubr.bf16.gmra.mxu0 %v6600_v8 }
 0x2e3   :  { %v3911_v9 = vpop.f32.mrf.mxu1  ;;  %4150 = vmatmul.mubr.bf16.gmra.mxu1 %v6601_v34  ;;  %5221 = vst [vmem:[%s11049_s3 + $0x3a8] sm:$0xff] %v3906_v5  ;;  %v3908_v10 = vadd.f32 %v3907_v4, %v3395_v6  ;;  %v3399_v11 = vadd.f32 %v3398_v7, %v8994_v63  ;;  %3646 = vmatprep.mubr.bf16.mxu0 %v6602_v12  ;;  %v6612_v7 = vld [vmem:[%s11047_s0 + $0x4e0] ss:$16 sps:$4 sm:$0xff]   ;;  %v6615_v12 = vld [vmem:[%s11047_s0 + $0x50c] ss:$16 sps:$4 sm:$0xff]  }
 0x2e4   :  { %4159 = vmatprep.mubr.bf16.mxu1 %v6603_v13  ;;  %v3400_v14 = vpop.f32.mrf.mxu0 }
 0x2e5   :  { %v3913_v15 = vpop.f32.mrf.mxu1  ;;  %5222 = vst [vmem:[%s11049_s3 + $0x3b0] sm:$0xff] %v3908_v10  ;;  %v3912_v16 = vadd.f32 %v3911_v9, %v3399_v11  ;;  %v3401_v17 = vadd.f32 %v3400_v14, %v9003_v29  ;;  %v6613_v9 = vld [vmem:[%s11047_s0 + $0x4e8] ss:$16 sps:$4 sm:$0xff]   ;;  %v6614_v11 = vld [vmem:[%s11047_s0 + $0x504] ss:$16 sps:$4 sm:$0xff]  }
 0x2e6   :  { %v3402_v18 = vpop.f32.mrf.mxu0 }
 0x2e7   :  { %v3915_v19 = vpop.f32.mrf.mxu1  ;;  %5226 = vst [vmem:[%s11049_s3 + $0x3d0] sm:$0xff] %v3912_v16  ;;  %v3914_v20 = vadd.f32 %v3913_v15, %v3401_v17  ;;  %v3403_v21 = vadd.f32 %v3402_v18, %v8994_v63 }
 0x2e8   :  { %v3404_v22 = vpop.f32.mrf.mxu0 }
 0x2e9   :  { %v3917_v24 = vpop.f32.mrf.mxu1  ;;  %5227 = vst [vmem:[%s11049_s3 + $0x3d8] sm:$0xff] %v3914_v20  ;;  %v3916_v25 = vadd.f32 %v3915_v19, %v3403_v21  ;;  %v3405_v26 = vadd.f32 %v3404_v22, %v9003_v29 }
 0x2ea   :  { %v3408_v27 = vpop.f32.mrf.mxu0  ;;  %3647 = vmatmul.mubr.bf16.gmra.mxu0 %v6604_v28 }
 0x2eb   :  { %v3921_v39 = vpop.f32.mrf.mxu1  ;;  %4160 = vmatmul.mubr.bf16.gmra.mxu1 %v6605_v30  ;;  %5231 = vst [vmem:[%s11049_s3 + $0x3f8] sm:$0xff] %v3916_v25  ;;  %v3918_v31 = vadd.f32 %v3917_v24, %v3405_v26  ;;  %v3409_v32 = vadd.f32 %v3408_v27, %v8994_v63  ;;  %3656 = vmatprep.mubr.bf16.mxu0 %v6606_v33  ;;  %v6616_v27 = vld [vmem:[%s11047_s0 + $0x500] ss:$16 sps:$4 sm:$0xff]   ;;  %v6619_v33 = vld [vmem:[%s11047_s0 + $0x52c] ss:$16 sps:$4 sm:$0xff]  }
 0x2ec   :  { %4169 = vmatprep.mubr.bf16.mxu1 %v6607_v35  ;;  %v3410_v36 = vpop.f32.mrf.mxu0 }
 0x2ed   :  { %v3923_v37 = vpop.f32.mrf.mxu1  ;;  %5232 = vst [vmem:[%s11049_s3 + $0x400] sm:$0xff] %v3918_v31  ;;  %v3922_v38 = vadd.f32 %v3921_v39, %v3409_v32  ;;  %v3411_v40 = vadd.f32 %v3410_v36, %v9003_v29  ;;  %v6617_v39 = vld [vmem:[%s11047_s0 + $0x508] ss:$16 sps:$4 sm:$0xff]   ;;  %v6618_v32 = vld [vmem:[%s11047_s0 + $0x524] ss:$16 sps:$4 sm:$0xff]  }
 0x2ee   :  { %v3412_v41 = vpop.f32.mrf.mxu0 }
 0x2ef   :  { %v3925_v42 = vpop.f32.mrf.mxu1  ;;  %5236 = vst [vmem:[%s11049_s3 + $0x420] sm:$0xff] %v3922_v38  ;;  %v3924_v43 = vadd.f32 %v3923_v37, %v3411_v40  ;;  %v3413_v44 = vadd.f32 %v3412_v41, %v8994_v63 }
 0x2f0   :  { %v3414_v45 = vpop.f32.mrf.mxu0 }
 0x2f1   :  { %v3927_v46 = vpop.f32.mrf.mxu1  ;;  %5237 = vst [vmem:[%s11049_s3 + $0x428] sm:$0xff] %v3924_v43  ;;  %v3926_v47 = vadd.f32 %v3925_v42, %v3413_v44  ;;  %v3415_v48 = vadd.f32 %v3414_v45, %v9003_v29 }
 0x2f2   :  { %v3418_v49 = vpop.f32.mrf.mxu0  ;;  %3657 = vmatmul.mubr.bf16.gmra.mxu0 %v6608_v50 }
 0x2f3   :  { %v3931_v51 = vpop.f32.mrf.mxu1  ;;  %4170 = vmatmul.mubr.bf16.gmra.mxu1 %v6609_v52  ;;  %5241 = vst [vmem:[%s11049_s3 + $0x448] sm:$0xff] %v3926_v47  ;;  %v3928_v53 = vadd.f32 %v3927_v46, %v3415_v48  ;;  %v3419_v54 = vadd.f32 %v3418_v49, %v8994_v63  ;;  %3666 = vmatprep.mubr.bf16.mxu0 %v6610_v55  ;;  %v6620_v49 = vld [vmem:[%s11047_s0 + $0x520] ss:$16 sps:$4 sm:$0xff]   ;;  %v6623_v55 = vld [vmem:[%s11047_s0 + $0x54c] ss:$16 sps:$4 sm:$0xff]  }
 0x2f4   :  { %4179 = vmatprep.mubr.bf16.mxu1 %v6611_v56  ;;  %v3420_v57 = vpop.f32.mrf.mxu0 }
 0x2f5   :  { %v3933_v58 = vpop.f32.mrf.mxu1  ;;  %5242 = vst [vmem:[%s11049_s3 + $0x450] sm:$0xff] %v3928_v53  ;;  %v3932_v59 = vadd.f32 %v3931_v51, %v3419_v54  ;;  %v3421_v60 = vadd.f32 %v3420_v57, %v9003_v29  ;;  %v6621_v51 = vld [vmem:[%s11047_s0 + $0x528] ss:$16 sps:$4 sm:$0xff]   ;;  %v6622_v54 = vld [vmem:[%s11047_s0 + $0x544] ss:$16 sps:$4 sm:$0xff]  }
 0x2f6   :  { %v3422_v61 = vpop.f32.mrf.mxu0 }
 0x2f7   :  { %v3935_v62 = vpop.f32.mrf.mxu1  ;;  %5246 = vst [vmem:[%s11049_s3 + $0x470] sm:$0xff] %v3932_v59  ;;  %v3934_v0 = vadd.f32 %v3933_v58, %v3421_v60  ;;  %v3423_v1 = vadd.f32 %v3422_v61, %v8994_v63 }
 0x2f8   :  { %v3424_v2 = vpop.f32.mrf.mxu0 }
 0x2f9   :  { %v3937_v3 = vpop.f32.mrf.mxu1  ;;  %5247 = vst [vmem:[%s11049_s3 + $0x478] sm:$0xff] %v3934_v0  ;;  %v3936_v4 = vadd.f32 %v3935_v62, %v3423_v1  ;;  %v3425_v5 = vadd.f32 %v3424_v2, %v9003_v29 }
 0x2fa   :  { %v3428_v6 = vpop.f32.mrf.mxu0  ;;  %3667 = vmatmul.mubr.bf16.gmra.mxu0 %v6612_v7 }
 0x2fb   :  { %v3941_v8 = vpop.f32.mrf.mxu1  ;;  %4180 = vmatmul.mubr.bf16.gmra.mxu1 %v6613_v9  ;;  %5251 = vst [vmem:[%s11049_s3 + $0x498] sm:$0xff] %v3936_v4  ;;  %v3938_v34 = vadd.f32 %v3937_v3, %v3425_v5  ;;  %v3429_v10 = vadd.f32 %v3428_v6, %v8994_v63  ;;  %3676 = vmatprep.mubr.bf16.mxu0 %v6614_v11  ;;  %v6624_v6 = vld [vmem:[%s11047_s0 + $0x540] ss:$16 sps:$4 sm:$0xff]   ;;  %v6627_v11 = vld [vmem:[%s11047_s0 + $0x56c] ss:$16 sps:$4 sm:$0xff]  }
 0x2fc   :  { %4189 = vmatprep.mubr.bf16.mxu1 %v6615_v12  ;;  %v3430_v13 = vpop.f32.mrf.mxu0 }
 0x2fd   :  { %v3943_v14 = vpop.f32.mrf.mxu1  ;;  %5252 = vst [vmem:[%s11049_s3 + $0x4a0] sm:$0xff] %v3938_v34  ;;  %v3942_v15 = vadd.f32 %v3941_v8, %v3429_v10  ;;  %v3431_v16 = vadd.f32 %v3430_v13, %v9003_v29  ;;  %v6625_v8 = vld [vmem:[%s11047_s0 + $0x548] ss:$16 sps:$4 sm:$0xff]   ;;  %v6626_v10 = vld [vmem:[%s11047_s0 + $0x564] ss:$16 sps:$4 sm:$0xff]  }
 0x2fe   :  { %v3432_v17 = vpop.f32.mrf.mxu0 }
 0x2ff   :  { %v3945_v18 = vpop.f32.mrf.mxu1  ;;  %5256 = vst [vmem:[%s11049_s3 + $0x4c0] sm:$0xff] %v3942_v15  ;;  %v3944_v19 = vadd.f32 %v3943_v14, %v3431_v16  ;;  %v3433_v20 = vadd.f32 %v3432_v17, %v8994_v63 }
 0x300   :  { %v3434_v21 = vpop.f32.mrf.mxu0 }
 0x301   :  { %v3947_v22 = vpop.f32.mrf.mxu1  ;;  %5257 = vst [vmem:[%s11049_s3 + $0x4c8] sm:$0xff] %v3944_v19  ;;  %v3946_v24 = vadd.f32 %v3945_v18, %v3433_v20  ;;  %v3435_v25 = vadd.f32 %v3434_v21, %v9003_v29 }
 0x302   :  { %v3438_v26 = vpop.f32.mrf.mxu0  ;;  %3677 = vmatmul.mubr.bf16.gmra.mxu0 %v6616_v27 }
 0x303   :  { %v3951_v28 = vpop.f32.mrf.mxu1  ;;  %4190 = vmatmul.mubr.bf16.gmra.mxu1 %v6617_v39  ;;  %5261 = vst [vmem:[%s11049_s3 + $0x4e8] sm:$0xff] %v3946_v24  ;;  %v3948_v30 = vadd.f32 %v3947_v22, %v3435_v25  ;;  %v3439_v31 = vadd.f32 %v3438_v26, %v8994_v63  ;;  %3686 = vmatprep.mubr.bf16.mxu0 %v6618_v32  ;;  %v6628_v26 = vld [vmem:[%s11047_s0 + $0x560] ss:$16 sps:$4 sm:$0xff]   ;;  %v6631_v32 = vld [vmem:[%s11047_s0 + $0x58c] ss:$16 sps:$4 sm:$0xff]  }
 0x304   :  { %4199 = vmatprep.mubr.bf16.mxu1 %v6619_v33  ;;  %v3440_v35 = vpop.f32.mrf.mxu0 }
 0x305   :  { %v3953_v36 = vpop.f32.mrf.mxu1  ;;  %5262 = vst [vmem:[%s11049_s3 + $0x4f0] sm:$0xff] %v3948_v30  ;;  %v3952_v37 = vadd.f32 %v3951_v28, %v3439_v31  ;;  %v3441_v38 = vadd.f32 %v3440_v35, %v9003_v29  ;;  %v6629_v28 = vld [vmem:[%s11047_s0 + $0x568] ss:$16 sps:$4 sm:$0xff]   ;;  %v6630_v31 = vld [vmem:[%s11047_s0 + $0x584] ss:$16 sps:$4 sm:$0xff]  }
 0x306   :  { %v3442_v40 = vpop.f32.mrf.mxu0 }
 0x307   :  { %v3955_v41 = vpop.f32.mrf.mxu1  ;;  %5266 = vst [vmem:[%s11049_s3 + $0x510] sm:$0xff] %v3952_v37  ;;  %v3954_v42 = vadd.f32 %v3953_v36, %v3441_v38  ;;  %v3443_v43 = vadd.f32 %v3442_v40, %v8994_v63 }
 0x308   :  { %v3444_v44 = vpop.f32.mrf.mxu0 }
 0x309   :  { %v3957_v45 = vpop.f32.mrf.mxu1  ;;  %5267 = vst [vmem:[%s11049_s3 + $0x518] sm:$0xff] %v3954_v42  ;;  %v3956_v46 = vadd.f32 %v3955_v41, %v3443_v43  ;;  %v3445_v47 = vadd.f32 %v3444_v44, %v9003_v29 }
 0x30a   :  { %v3448_v48 = vpop.f32.mrf.mxu0  ;;  %3687 = vmatmul.mubr.bf16.gmra.mxu0 %v6620_v49 }
 0x30b   :  { %v3961_v50 = vpop.f32.mrf.mxu1  ;;  %4200 = vmatmul.mubr.bf16.gmra.mxu1 %v6621_v51  ;;  %5271 = vst [vmem:[%s11049_s3 + $0x538] sm:$0xff] %v3956_v46  ;;  %v3958_v52 = vadd.f32 %v3957_v45, %v3445_v47  ;;  %v3449_v53 = vadd.f32 %v3448_v48, %v8994_v63  ;;  %3696 = vmatprep.mubr.bf16.mxu0 %v6622_v54  ;;  %v6632_v48 = vld [vmem:[%s11047_s0 + $0x580] ss:$16 sps:$4 sm:$0xff]   ;;  %v6635_v54 = vld [vmem:[%s11047_s0 + $0x5ac] ss:$16 sps:$4 sm:$0xff]  }
 0x30c   :  { %4209 = vmatprep.mubr.bf16.mxu1 %v6623_v55  ;;  %v3450_v56 = vpop.f32.mrf.mxu0 }
 0x30d   :  { %v3963_v57 = vpop.f32.mrf.mxu1  ;;  %5272 = vst [vmem:[%s11049_s3 + $0x540] sm:$0xff] %v3958_v52  ;;  %v3962_v58 = vadd.f32 %v3961_v50, %v3449_v53  ;;  %v3451_v59 = vadd.f32 %v3450_v56, %v9003_v29  ;;  %v6633_v50 = vld [vmem:[%s11047_s0 + $0x588] ss:$16 sps:$4 sm:$0xff]   ;;  %v6634_v53 = vld [vmem:[%s11047_s0 + $0x5a4] ss:$16 sps:$4 sm:$0xff]  }
 0x30e   :  { %v3452_v60 = vpop.f32.mrf.mxu0 }
 0x30f   :  { %v3965_v61 = vpop.f32.mrf.mxu1  ;;  %5276 = vst [vmem:[%s11049_s3 + $0x560] sm:$0xff] %v3962_v58  ;;  %v3964_v62 = vadd.f32 %v3963_v57, %v3451_v59  ;;  %v3453_v0 = vadd.f32 %v3452_v60, %v8994_v63 }
 0x310   :  { %v3454_v1 = vpop.f32.mrf.mxu0 }
 0x311   :  { %v3967_v2 = vpop.f32.mrf.mxu1  ;;  %5277 = vst [vmem:[%s11049_s3 + $0x568] sm:$0xff] %v3964_v62  ;;  %v3966_v3 = vadd.f32 %v3965_v61, %v3453_v0  ;;  %v3455_v4 = vadd.f32 %v3454_v1, %v9003_v29 }
 0x312   :  { %v3458_v5 = vpop.f32.mrf.mxu0  ;;  %3697 = vmatmul.mubr.bf16.gmra.mxu0 %v6624_v6 }
 0x313   :  { %v3971_v7 = vpop.f32.mrf.mxu1  ;;  %4210 = vmatmul.mubr.bf16.gmra.mxu1 %v6625_v8  ;;  %5281 = vst [vmem:[%s11049_s3 + $0x588] sm:$0xff] %v3966_v3  ;;  %v3968_v9 = vadd.f32 %v3967_v2, %v3455_v4  ;;  %v3459_v34 = vadd.f32 %v3458_v5, %v8994_v63  ;;  %3706 = vmatprep.mubr.bf16.mxu0 %v6626_v10  ;;  %v6636_v5 = vld [vmem:[%s11047_s0 + $0x5a0] ss:$16 sps:$4 sm:$0xff]   ;;  %v6639_v10 = vld [vmem:[%s11047_s0 + $0x5cc] ss:$16 sps:$4 sm:$0xff]  }
 0x314   :  { %4219 = vmatprep.mubr.bf16.mxu1 %v6627_v11  ;;  %v3460_v12 = vpop.f32.mrf.mxu0 }
 0x315   :  { %v3973_v13 = vpop.f32.mrf.mxu1  ;;  %5282 = vst [vmem:[%s11049_s3 + $0x590] sm:$0xff] %v3968_v9  ;;  %v3972_v14 = vadd.f32 %v3971_v7, %v3459_v34  ;;  %v3461_v15 = vadd.f32 %v3460_v12, %v9003_v29  ;;  %v6637_v7 = vld [vmem:[%s11047_s0 + $0x5a8] ss:$16 sps:$4 sm:$0xff]   ;;  %v6638_v34 = vld [vmem:[%s11047_s0 + $0x5c4] ss:$16 sps:$4 sm:$0xff]  }
 0x316   :  { %v3462_v16 = vpop.f32.mrf.mxu0 }
 0x317   :  { %v3975_v17 = vpop.f32.mrf.mxu1  ;;  %5286 = vst [vmem:[%s11049_s3 + $0x5b0] sm:$0xff] %v3972_v14  ;;  %v3974_v18 = vadd.f32 %v3973_v13, %v3461_v15  ;;  %v3463_v19 = vadd.f32 %v3462_v16, %v8994_v63 }
 0x318   :  { %v3464_v20 = vpop.f32.mrf.mxu0 }
 0x319   :  { %v3977_v21 = vpop.f32.mrf.mxu1  ;;  %5287 = vst [vmem:[%s11049_s3 + $0x5b8] sm:$0xff] %v3974_v18  ;;  %v3976_v22 = vadd.f32 %v3975_v17, %v3463_v19  ;;  %v3465_v24 = vadd.f32 %v3464_v20, %v9003_v29 }
 0x31a   :  { %v3468_v25 = vpop.f32.mrf.mxu0  ;;  %3707 = vmatmul.mubr.bf16.gmra.mxu0 %v6628_v26 }
 0x31b   :  { %v3981_v27 = vpop.f32.mrf.mxu1  ;;  %4220 = vmatmul.mubr.bf16.gmra.mxu1 %v6629_v28  ;;  %5291 = vst [vmem:[%s11049_s3 + $0x5d8] sm:$0xff] %v3976_v22  ;;  %v3978_v39 = vadd.f32 %v3977_v21, %v3465_v24  ;;  %v3469_v30 = vadd.f32 %v3468_v25, %v8994_v63  ;;  %3716 = vmatprep.mubr.bf16.mxu0 %v6630_v31  ;;  %v6640_v25 = vld [vmem:[%s11047_s0 + $0x5c0] ss:$16 sps:$4 sm:$0xff]   ;;  %v6643_v31 = vld [vmem:[%s11047_s0 + $0x5ec] ss:$16 sps:$4 sm:$0xff]  }
 0x31c   :  { %4229 = vmatprep.mubr.bf16.mxu1 %v6631_v32  ;;  %v3470_v33 = vpop.f32.mrf.mxu0 }
 0x31d   :  { %v3983_v35 = vpop.f32.mrf.mxu1  ;;  %5292 = vst [vmem:[%s11049_s3 + $0x5e0] sm:$0xff] %v3978_v39  ;;  %v3982_v36 = vadd.f32 %v3981_v27, %v3469_v30  ;;  %v3471_v37 = vadd.f32 %v3470_v33, %v9003_v29  ;;  %v6641_v27 = vld [vmem:[%s11047_s0 + $0x5c8] ss:$16 sps:$4 sm:$0xff]   ;;  %v6642_v30 = vld [vmem:[%s11047_s0 + $0x5e4] ss:$16 sps:$4 sm:$0xff]  }
 0x31e   :  { %v3472_v38 = vpop.f32.mrf.mxu0 }
 0x31f   :  { %v3985_v40 = vpop.f32.mrf.mxu1  ;;  %5296 = vst [vmem:[%s11049_s3 + $0x600] sm:$0xff] %v3982_v36  ;;  %v3984_v41 = vadd.f32 %v3983_v35, %v3471_v37  ;;  %v3473_v42 = vadd.f32 %v3472_v38, %v8994_v63 }
 0x320   :  { %v3474_v43 = vpop.f32.mrf.mxu0 }
 0x321   :  { %v3987_v44 = vpop.f32.mrf.mxu1  ;;  %5297 = vst [vmem:[%s11049_s3 + $0x608] sm:$0xff] %v3984_v41  ;;  %v3986_v45 = vadd.f32 %v3985_v40, %v3473_v42  ;;  %v3475_v46 = vadd.f32 %v3474_v43, %v9003_v29 }
 0x322   :  { %v3478_v47 = vpop.f32.mrf.mxu0  ;;  %3717 = vmatmul.mubr.bf16.gmra.mxu0 %v6632_v48 }
 0x323   :  { %v3991_v49 = vpop.f32.mrf.mxu1  ;;  %4230 = vmatmul.mubr.bf16.gmra.mxu1 %v6633_v50  ;;  %5301 = vst [vmem:[%s11049_s3 + $0x628] sm:$0xff] %v3986_v45  ;;  %v3988_v51 = vadd.f32 %v3987_v44, %v3475_v46  ;;  %v3479_v52 = vadd.f32 %v3478_v47, %v8994_v63  ;;  %3726 = vmatprep.mubr.bf16.mxu0 %v6634_v53  ;;  %v6644_v47 = vld [vmem:[%s11047_s0 + $0x5e0] ss:$16 sps:$4 sm:$0xff]   ;;  %v6647_v53 = vld [vmem:[%s11047_s0 + $0xc] ss:$16 sps:$4 sm:$0xff]  }
 0x324   :  { %4239 = vmatprep.mubr.bf16.mxu1 %v6635_v54  ;;  %v3480_v55 = vpop.f32.mrf.mxu0 }
 0x325   :  { %v3993_v56 = vpop.f32.mrf.mxu1  ;;  %5302 = vst [vmem:[%s11049_s3 + $0x630] sm:$0xff] %v3988_v51  ;;  %v3992_v57 = vadd.f32 %v3991_v49, %v3479_v52  ;;  %v3481_v58 = vadd.f32 %v3480_v55, %v9003_v29  ;;  %v6645_v49 = vld [vmem:[%s11047_s0 + $0x5e8] ss:$16 sps:$4 sm:$0xff]   ;;  %v6646_v52 = vld [vmem:[%s11047_s0 + $0x4] ss:$16 sps:$4 sm:$0xff]  }
 0x326   :  { %v3482_v59 = vpop.f32.mrf.mxu0 }
 0x327   :  { %v3995_v60 = vpop.f32.mrf.mxu1  ;;  %5306 = vst [vmem:[%s11049_s3 + $0x650] sm:$0xff] %v3992_v57  ;;  %v3994_v61 = vadd.f32 %v3993_v56, %v3481_v58  ;;  %v3483_v62 = vadd.f32 %v3482_v59, %v8994_v63 }
 0x328   :  { %v3484_v0 = vpop.f32.mrf.mxu0 }
 0x329   :  { %v3997_v1 = vpop.f32.mrf.mxu1  ;;  %5307 = vst [vmem:[%s11049_s3 + $0x658] sm:$0xff] %v3994_v61  ;;  %v3996_v2 = vadd.f32 %v3995_v60, %v3483_v62  ;;  %v3485_v3 = vadd.f32 %v3484_v0, %v9003_v29 }
 0x32a   :  { %v3488_v4 = vpop.f32.mrf.mxu0  ;;  %3727 = vmatmul.mubr.bf16.gmra.mxu0 %v6636_v5  ;;  %v6648_v5 = vld [vmem:[%s11047_s0] ss:$16 sps:$4 sm:$0xff]  }
 0x32b   :  { %v4001_v6 = vpop.f32.mrf.mxu1  ;;  %4240 = vmatmul.mubr.bf16.gmra.mxu1 %v6637_v7  ;;  %5311 = vst [vmem:[%s11049_s3 + $0x678] sm:$0xff] %v3996_v2  ;;  %v3998_v8 = vadd.f32 %v3997_v1, %v3485_v3  ;;  %v3489_v9 = vadd.f32 %v3488_v4, %v8994_v63  ;;  %3736 = vmatprep.mubr.bf16.mxu0 %v6638_v34  ;;  %v6651_v34 = vld [vmem:[%s11047_s0 + $0x2c] ss:$16 sps:$4 sm:$0xff]  }
 0x32c   :  { %4249 = vmatprep.mubr.bf16.mxu1 %v6639_v10  ;;  %v3490_v11 = vpop.f32.mrf.mxu0 }
 0x32d   :  { %v4003_v12 = vpop.f32.mrf.mxu1  ;;  %5312 = vst [vmem:[%s11049_s3 + $0x680] sm:$0xff] %v3998_v8  ;;  %v4002_v13 = vadd.f32 %v4001_v6, %v3489_v9  ;;  %v3491_v14 = vadd.f32 %v3490_v11, %v9003_v29  ;;  %v6649_v6 = vld [vmem:[%s11047_s0 + $0x8] ss:$16 sps:$4 sm:$0xff]   ;;  %v6650_v9 = vld [vmem:[%s11047_s0 + $0x24] ss:$16 sps:$4 sm:$0xff]  }
 0x32e   :  { %v3492_v15 = vpop.f32.mrf.mxu0 }
 0x32f   :  { %v4005_v16 = vpop.f32.mrf.mxu1  ;;  %5316 = vst [vmem:[%s11049_s3 + $0x6a0] sm:$0xff] %v4002_v13  ;;  %v4004_v17 = vadd.f32 %v4003_v12, %v3491_v14  ;;  %v3493_v18 = vadd.f32 %v3492_v15, %v8994_v63 }
 0x330   :  { %v3494_v19 = vpop.f32.mrf.mxu0 }
 0x331   :  { %v4007_v20 = vpop.f32.mrf.mxu1  ;;  %5317 = vst [vmem:[%s11049_s3 + $0x6a8] sm:$0xff] %v4004_v17  ;;  %v4006_v21 = vadd.f32 %v4005_v16, %v3493_v18  ;;  %v3495_v22 = vadd.f32 %v3494_v19, %v9003_v29 }
 0x332   :  { %v3498_v24 = vpop.f32.mrf.mxu0  ;;  %3737 = vmatmul.mubr.bf16.gmra.mxu0 %v6640_v25  ;;  %v6652_v25 = vld [vmem:[%s11047_s0 + $0x20] ss:$16 sps:$4 sm:$0xff]  }
 0x333   :  { %v4011_v26 = vpop.f32.mrf.mxu1  ;;  %4250 = vmatmul.mubr.bf16.gmra.mxu1 %v6641_v27  ;;  %5321 = vst [vmem:[%s11049_s3 + $0x6c8] sm:$0xff] %v4006_v21  ;;  %v4008_v28 = vadd.f32 %v4007_v20, %v3495_v22  ;;  %v3499_v39 = vadd.f32 %v3498_v24, %v8994_v63  ;;  %3746 = vmatprep.mubr.bf16.mxu0 %v6642_v30  ;;  %v6655_v30 = vld [vmem:[%s11047_s0 + $0x4c] ss:$16 sps:$4 sm:$0xff]  }
 0x334   :  { %4259 = vmatprep.mubr.bf16.mxu1 %v6643_v31  ;;  %v3500_v32 = vpop.f32.mrf.mxu0 }
 0x335   :  { %v4013_v33 = vpop.f32.mrf.mxu1  ;;  %5322 = vst [vmem:[%s11049_s3 + $0x6d0] sm:$0xff] %v4008_v28  ;;  %v4012_v35 = vadd.f32 %v4011_v26, %v3499_v39  ;;  %v3501_v36 = vadd.f32 %v3500_v32, %v9003_v29  ;;  %v6653_v26 = vld [vmem:[%s11047_s0 + $0x28] ss:$16 sps:$4 sm:$0xff]   ;;  %v6654_v39 = vld [vmem:[%s11047_s0 + $0x44] ss:$16 sps:$4 sm:$0xff]  }
 0x336   :  { %v3502_v37 = vpop.f32.mrf.mxu0 }
 0x337   :  { %v4015_v38 = vpop.f32.mrf.mxu1  ;;  %5326 = vst [vmem:[%s11049_s3 + $0x6f0] sm:$0xff] %v4012_v35  ;;  %v4014_v40 = vadd.f32 %v4013_v33, %v3501_v36  ;;  %v3503_v41 = vadd.f32 %v3502_v37, %v8994_v63 }
 0x338   :  { %v3504_v42 = vpop.f32.mrf.mxu0 }
 0x339   :  { %v4017_v43 = vpop.f32.mrf.mxu1  ;;  %5327 = vst [vmem:[%s11049_s3 + $0x6f8] sm:$0xff] %v4014_v40  ;;  %v4016_v44 = vadd.f32 %v4015_v38, %v3503_v41  ;;  %v3505_v45 = vadd.f32 %v3504_v42, %v9003_v29 }
 0x33a   :  { %v3508_v46 = vpop.f32.mrf.mxu0  ;;  %3747 = vmatmul.mubr.bf16.gmra.mxu0 %v6644_v47  ;;  %v6656_v47 = vld [vmem:[%s11047_s0 + $0x40] ss:$16 sps:$4 sm:$0xff]  }
 0x33b   :  { %v4021_v48 = vpop.f32.mrf.mxu1  ;;  %4260 = vmatmul.mubr.bf16.gmra.mxu1 %v6645_v49  ;;  %5331 = vst [vmem:[%s11049_s3 + $0x718] sm:$0xff] %v4016_v44  ;;  %v4018_v50 = vadd.f32 %v4017_v43, %v3505_v45  ;;  %v3509_v51 = vadd.f32 %v3508_v46, %v8994_v63  ;;  %4302 = vmatprep.mubr.bf16.mxu0 %v6646_v52  ;;  %v6659_v52 = vld [vmem:[%s11047_s0 + $0x6c] ss:$16 sps:$4 sm:$0xff]  }
 0x33c   :  { %4719 = vmatprep.mubr.bf16.mxu1 %v6647_v53  ;;  %v3510_v54 = vpop.f32.mrf.mxu0 }
 0x33d   :  { %v4023_v55 = vpop.f32.mrf.mxu1  ;;  %5332 = vst [vmem:[%s11049_s3 + $0x720] sm:$0xff] %v4018_v50  ;;  %v4022_v56 = vadd.f32 %v4021_v48, %v3509_v51  ;;  %v3511_v57 = vadd.f32 %v3510_v54, %v9003_v29  ;;  %v6657_v48 = vld [vmem:[%s11047_s0 + $0x48] ss:$16 sps:$4 sm:$0xff]   ;;  %v6658_v51 = vld [vmem:[%s11047_s0 + $0x64] ss:$16 sps:$4 sm:$0xff]  }
 0x33e   :  { %v3512_v58 = vpop.f32.mrf.mxu0 }
 0x33f   :  { %v4025_v59 = vpop.f32.mrf.mxu1  ;;  %5336 = vst [vmem:[%s11049_s3 + $0x740] sm:$0xff] %v4022_v56  ;;  %v4024_v60 = vadd.f32 %v4023_v55, %v3511_v57  ;;  %v3513_v61 = vadd.f32 %v3512_v58, %v8994_v63 }
 0x340   :  { %v3514_v62 = vpop.f32.mrf.mxu0 }
 0x341   :  { %v4027_v0 = vpop.f32.mrf.mxu1  ;;  %5337 = vst [vmem:[%s11049_s3 + $0x748] sm:$0xff] %v4024_v60  ;;  %v4026_v1 = vadd.f32 %v4025_v59, %v3513_v61  ;;  %v3515_v2 = vadd.f32 %v3514_v62, %v9003_v29 }
 0x342   :  { %v3518_v3 = vpop.f32.mrf.mxu0  ;;  %4303 = vmatmul.mubr.bf16.vlgmr.msra.gmra.mxu0 %v6648_v5  ;;  %v6661_v5 = vld [vmem:[%s11047_s0 + $0x68] ss:$16 sps:$4 sm:$0xff]  }
 0x343   :  { %v4031_v4 = vpop.f32.mrf.mxu1  ;;  %4720 = vmatmul.mubr.bf16.vlgmr.msra.gmra.mxu1 %v6649_v6  ;;  %5341 = vst [vmem:[%s11049_s3 + $0x768] sm:$0xff] %v4026_v1  ;;  %v4028_v7 = vadd.f32 %v4027_v0, %v3515_v2  ;;  %v3519_v8 = vadd.f32 %v3518_v3, %v8994_v63  ;;  %4310 = vmatprep.mubr.bf16.mxu0 %v6650_v9  ;;  %v6663_v9 = vld [vmem:[%s11047_s0 + $0x8c] ss:$16 sps:$4 sm:$0xff]  }
 0x344   :  { %4727 = vmatprep.mubr.bf16.mxu1 %v6651_v34  ;;  %v3520_v10 = vpop.f32.mrf.mxu0 }
 0x345   :  { %v4033_v11 = vpop.f32.mrf.mxu1  ;;  %5342 = vst [vmem:[%s11049_s3 + $0x770] sm:$0xff] %v4028_v7  ;;  %v4032_v12 = vadd.f32 %v4031_v4, %v3519_v8  ;;  %v3521_v13 = vadd.f32 %v3520_v10, %v9003_v29  ;;  %v6660_v4 = vld [vmem:[%s11047_s0 + $0x60] ss:$16 sps:$4 sm:$0xff]   ;;  %v6662_v8 = vld [vmem:[%s11047_s0 + $0x84] ss:$16 sps:$4 sm:$0xff]  }
 0x346   :  { %v3522_v14 = vpop.f32.mrf.mxu0 }
 0x347   :  { %v4035_v15 = vpop.f32.mrf.mxu1  ;;  %5346 = vst [vmem:[%s11049_s3 + $0x790] sm:$0xff] %v4032_v12  ;;  %v4034_v16 = vadd.f32 %v4033_v11, %v3521_v13  ;;  %v3523_v17 = vadd.f32 %v3522_v14, %v8994_v63 }
 0x348   :  { %v3524_v18 = vpop.f32.mrf.mxu0 }
 0x349   :  { %v4037_v19 = vpop.f32.mrf.mxu1  ;;  %5347 = vst [vmem:[%s11049_s3 + $0x798] sm:$0xff] %v4034_v16  ;;  %v4036_v20 = vadd.f32 %v4035_v15, %v3523_v17  ;;  %v3525_v21 = vadd.f32 %v3524_v18, %v9003_v29 }
 0x34a   :  { %v3528_v22 = vpop.f32.mrf.mxu0  ;;  %4311 = vmatmul.mubr.bf16.gmra.mxu0 %v6652_v25  ;;  %v6665_v25 = vld [vmem:[%s11047_s0 + $0x88] ss:$16 sps:$4 sm:$0xff]  }
 0x34b   :  { %v4041_v24 = vpop.f32.mrf.mxu1  ;;  %4728 = vmatmul.mubr.bf16.gmra.mxu1 %v6653_v26  ;;  %5351 = vst [vmem:[%s11049_s3 + $0x7b8] sm:$0xff] %v4036_v20  ;;  %v4038_v27 = vadd.f32 %v4037_v19, %v3525_v21  ;;  %v3529_v28 = vadd.f32 %v3528_v22, %v8994_v63  ;;  %4318 = vmatprep.mubr.bf16.mxu0 %v6654_v39  ;;  %v6667_v39 = vld [vmem:[%s11047_s0 + $0xac] ss:$16 sps:$4 sm:$0xff]  }
 0x34c   :  { %4735 = vmatprep.mubr.bf16.mxu1 %v6655_v30  ;;  %v3530_v31 = vpop.f32.mrf.mxu0 }
 0x34d   :  { %v4043_v32 = vpop.f32.mrf.mxu1  ;;  %5352 = vst [vmem:[%s11049_s3 + $0x7c0] sm:$0xff] %v4038_v27  ;;  %v4042_v33 = vadd.f32 %v4041_v24, %v3529_v28  ;;  %v3531_v35 = vadd.f32 %v3530_v31, %v9003_v29  ;;  %v6664_v24 = vld [vmem:[%s11047_s0 + $0x80] ss:$16 sps:$4 sm:$0xff]   ;;  %v6666_v28 = vld [vmem:[%s11047_s0 + $0xa4] ss:$16 sps:$4 sm:$0xff]  }
 0x34e   :  { %v3532_v36 = vpop.f32.mrf.mxu0 }
 0x34f   :  { %v4045_v37 = vpop.f32.mrf.mxu1  ;;  %5356 = vst [vmem:[%s11049_s3 + $0x7e0] sm:$0xff] %v4042_v33  ;;  %v4044_v38 = vadd.f32 %v4043_v32, %v3531_v35  ;;  %v3533_v40 = vadd.f32 %v3532_v36, %v8994_v63 }
 0x350   :  { %v3534_v41 = vpop.f32.mrf.mxu0 }
 0x351   :  { %v4047_v42 = vpop.f32.mrf.mxu1  ;;  %5357 = vst [vmem:[%s11049_s3 + $0x7e8] sm:$0xff] %v4044_v38  ;;  %v4046_v43 = vadd.f32 %v4045_v37, %v3533_v40  ;;  %v3535_v44 = vadd.f32 %v3534_v41, %v9003_v29 }
 0x352   :  { %v3538_v45 = vpop.f32.mrf.mxu0  ;;  %4319 = vmatmul.mubr.bf16.gmra.mxu0 %v6656_v47  ;;  %v6669_v47 = vld [vmem:[%s11047_s0 + $0xa8] ss:$16 sps:$4 sm:$0xff]  }
 0x353   :  { %v4051_v46 = vpop.f32.mrf.mxu1  ;;  %4736 = vmatmul.mubr.bf16.gmra.mxu1 %v6657_v48  ;;  %5361 = vst [vmem:[%s11049_s3 + $0x808] sm:$0xff] %v4046_v43  ;;  %v4048_v49 = vadd.f32 %v4047_v42, %v3535_v44  ;;  %v3539_v50 = vadd.f32 %v3538_v45, %v8994_v63  ;;  %4326 = vmatprep.mubr.bf16.mxu0 %v6658_v51  ;;  %v6671_v51 = vld [vmem:[%s11047_s0 + $0xcc] ss:$16 sps:$4 sm:$0xff]  }
 0x354   :  { %4743 = vmatprep.mubr.bf16.mxu1 %v6659_v52  ;;  %v3540_v53 = vpop.f32.mrf.mxu0 }
 0x355   :  { %v4053_v54 = vpop.f32.mrf.mxu1  ;;  %5362 = vst [vmem:[%s11049_s3 + $0x810] sm:$0xff] %v4048_v49  ;;  %v4052_v55 = vadd.f32 %v4051_v46, %v3539_v50  ;;  %v3541_v56 = vadd.f32 %v3540_v53, %v9003_v29  ;;  %v6668_v46 = vld [vmem:[%s11047_s0 + $0xa0] ss:$16 sps:$4 sm:$0xff]   ;;  %v6670_v50 = vld [vmem:[%s11047_s0 + $0xc4] ss:$16 sps:$4 sm:$0xff]  }
 0x356   :  { %v3542_v57 = vpop.f32.mrf.mxu0 }
 0x357   :  { %v4055_v58 = vpop.f32.mrf.mxu1  ;;  %5366 = vst [vmem:[%s11049_s3 + $0x830] sm:$0xff] %v4052_v55  ;;  %v4054_v59 = vadd.f32 %v4053_v54, %v3541_v56  ;;  %v3543_v60 = vadd.f32 %v3542_v57, %v8994_v63 }
 0x358   :  { %v3544_v61 = vpop.f32.mrf.mxu0 }
 0x359   :  { %v4057_v62 = vpop.f32.mrf.mxu1  ;;  %5367 = vst [vmem:[%s11049_s3 + $0x838] sm:$0xff] %v4054_v59  ;;  %v4056_v0 = vadd.f32 %v4055_v58, %v3543_v60  ;;  %v3545_v1 = vadd.f32 %v3544_v61, %v9003_v29 }
 0x35a   :  { %v3548_v2 = vpop.f32.mrf.mxu0  ;;  %4327 = vmatmul.mubr.bf16.gmra.mxu0 %v6660_v4  ;;  %v6673_v4 = vld [vmem:[%s11047_s0 + $0xc8] ss:$16 sps:$4 sm:$0xff]  }
 0x35b   :  { %v4061_v3 = vpop.f32.mrf.mxu1  ;;  %4744 = vmatmul.mubr.bf16.gmra.mxu1 %v6661_v5  ;;  %5371 = vst [vmem:[%s11049_s3 + $0x858] sm:$0xff] %v4056_v0  ;;  %v4058_v6 = vadd.f32 %v4057_v62, %v3545_v1  ;;  %v3549_v7 = vadd.f32 %v3548_v2, %v8994_v63  ;;  %4334 = vmatprep.mubr.bf16.mxu0 %v6662_v8  ;;  %v6675_v8 = vld [vmem:[%s11047_s0 + $0xec] ss:$16 sps:$4 sm:$0xff]  }
 0x35c   :  { %4751 = vmatprep.mubr.bf16.mxu1 %v6663_v9  ;;  %v3550_v34 = vpop.f32.mrf.mxu0 }
 0x35d   :  { %v4063_v10 = vpop.f32.mrf.mxu1  ;;  %5372 = vst [vmem:[%s11049_s3 + $0x860] sm:$0xff] %v4058_v6  ;;  %v4062_v11 = vadd.f32 %v4061_v3, %v3549_v7  ;;  %v3551_v12 = vadd.f32 %v3550_v34, %v9003_v29  ;;  %v6672_v3 = vld [vmem:[%s11047_s0 + $0xc0] ss:$16 sps:$4 sm:$0xff]   ;;  %v6674_v7 = vld [vmem:[%s11047_s0 + $0xe4] ss:$16 sps:$4 sm:$0xff]  }
 0x35e   :  { %v3552_v13 = vpop.f32.mrf.mxu0 }
 0x35f   :  { %v4065_v14 = vpop.f32.mrf.mxu1  ;;  %5376 = vst [vmem:[%s11049_s3 + $0x880] sm:$0xff] %v4062_v11  ;;  %v4064_v15 = vadd.f32 %v4063_v10, %v3551_v12  ;;  %v3553_v16 = vadd.f32 %v3552_v13, %v8994_v63 }
 0x360   :  { %v3554_v17 = vpop.f32.mrf.mxu0 }
 0x361   :  { %v4067_v18 = vpop.f32.mrf.mxu1  ;;  %5377 = vst [vmem:[%s11049_s3 + $0x888] sm:$0xff] %v4064_v15  ;;  %v4066_v19 = vadd.f32 %v4065_v14, %v3553_v16  ;;  %v3555_v20 = vadd.f32 %v3554_v17, %v9003_v29 }
 0x362   :  { %v3558_v21 = vpop.f32.mrf.mxu0  ;;  %4335 = vmatmul.mubr.bf16.gmra.mxu0 %v6664_v24  ;;  %v6677_v24 = vld [vmem:[%s11047_s0 + $0xe8] ss:$16 sps:$4 sm:$0xff]  }
 0x363   :  { %v4071_v22 = vpop.f32.mrf.mxu1  ;;  %4752 = vmatmul.mubr.bf16.gmra.mxu1 %v6665_v25  ;;  %5381 = vst [vmem:[%s11049_s3 + $0x8a8] sm:$0xff] %v4066_v19  ;;  %v4068_v26 = vadd.f32 %v4067_v18, %v3555_v20  ;;  %v3559_v27 = vadd.f32 %v3558_v21, %v8994_v63  ;;  %4342 = vmatprep.mubr.bf16.mxu0 %v6666_v28  ;;  %v6679_v28 = vld [vmem:[%s11047_s0 + $0x10c] ss:$16 sps:$4 sm:$0xff]  }
 0x364   :  { %4759 = vmatprep.mubr.bf16.mxu1 %v6667_v39  ;;  %v3560_v30 = vpop.f32.mrf.mxu0 }
 0x365   :  { %v4073_v31 = vpop.f32.mrf.mxu1  ;;  %5382 = vst [vmem:[%s11049_s3 + $0x8b0] sm:$0xff] %v4068_v26  ;;  %v4072_v32 = vadd.f32 %v4071_v22, %v3559_v27  ;;  %v3561_v33 = vadd.f32 %v3560_v30, %v9003_v29  ;;  %v6676_v22 = vld [vmem:[%s11047_s0 + $0xe0] ss:$16 sps:$4 sm:$0xff]   ;;  %v6678_v27 = vld [vmem:[%s11047_s0 + $0x104] ss:$16 sps:$4 sm:$0xff]  }
 0x366   :  { %v3562_v35 = vpop.f32.mrf.mxu0 }
 0x367   :  { %v4075_v36 = vpop.f32.mrf.mxu1  ;;  %5386 = vst [vmem:[%s11049_s3 + $0x8d0] sm:$0xff] %v4072_v32  ;;  %v4074_v37 = vadd.f32 %v4073_v31, %v3561_v33  ;;  %v3563_v38 = vadd.f32 %v3562_v35, %v8994_v63 }
 0x368   :  { %v3564_v40 = vpop.f32.mrf.mxu0 }
 0x369   :  { %v4077_v41 = vpop.f32.mrf.mxu1  ;;  %5387 = vst [vmem:[%s11049_s3 + $0x8d8] sm:$0xff] %v4074_v37  ;;  %v4076_v42 = vadd.f32 %v4075_v36, %v3563_v38  ;;  %v3565_v43 = vadd.f32 %v3564_v40, %v9003_v29 }
 0x36a   :  { %v3568_v44 = vpop.f32.mrf.mxu0  ;;  %4343 = vmatmul.mubr.bf16.gmra.mxu0 %v6668_v46  ;;  %v6681_v46 = vld [vmem:[%s11047_s0 + $0x108] ss:$16 sps:$4 sm:$0xff]  }
 0x36b   :  { %v4081_v45 = vpop.f32.mrf.mxu1  ;;  %4760 = vmatmul.mubr.bf16.gmra.mxu1 %v6669_v47  ;;  %5391 = vst [vmem:[%s11049_s3 + $0x8f8] sm:$0xff] %v4076_v42  ;;  %v4078_v48 = vadd.f32 %v4077_v41, %v3565_v43  ;;  %v3569_v49 = vadd.f32 %v3568_v44, %v8994_v63  ;;  %4350 = vmatprep.mubr.bf16.mxu0 %v6670_v50  ;;  %v6683_v50 = vld [vmem:[%s11047_s0 + $0x12c] ss:$16 sps:$4 sm:$0xff]  }
 0x36c   :  { %4767 = vmatprep.mubr.bf16.mxu1 %v6671_v51  ;;  %v3570_v52 = vpop.f32.mrf.mxu0 }
 0x36d   :  { %v4083_v53 = vpop.f32.mrf.mxu1  ;;  %5392 = vst [vmem:[%s11049_s3 + $0x900] sm:$0xff] %v4078_v48  ;;  %v4082_v54 = vadd.f32 %v4081_v45, %v3569_v49  ;;  %v3571_v55 = vadd.f32 %v3570_v52, %v9003_v29  ;;  %v6680_v45 = vld [vmem:[%s11047_s0 + $0x100] ss:$16 sps:$4 sm:$0xff]   ;;  %v6682_v49 = vld [vmem:[%s11047_s0 + $0x124] ss:$16 sps:$4 sm:$0xff]  }
 0x36e   :  { %v3572_v56 = vpop.f32.mrf.mxu0 }
 0x36f   :  { %v4085_v57 = vpop.f32.mrf.mxu1  ;;  %5396 = vst [vmem:[%s11049_s3 + $0x920] sm:$0xff] %v4082_v54  ;;  %v4084_v58 = vadd.f32 %v4083_v53, %v3571_v55  ;;  %v3573_v59 = vadd.f32 %v3572_v56, %v8994_v63 }
 0x370   :  { %v3574_v60 = vpop.f32.mrf.mxu0 }
 0x371   :  { %v4087_v61 = vpop.f32.mrf.mxu1  ;;  %5397 = vst [vmem:[%s11049_s3 + $0x928] sm:$0xff] %v4084_v58  ;;  %v4086_v62 = vadd.f32 %v4085_v57, %v3573_v59  ;;  %v3575_v0 = vadd.f32 %v3574_v60, %v9003_v29 }
 0x372   :  { %v3578_v1 = vpop.f32.mrf.mxu0  ;;  %4351 = vmatmul.mubr.bf16.gmra.mxu0 %v6672_v3  ;;  %v6685_v3 = vld [vmem:[%s11047_s0 + $0x128] ss:$16 sps:$4 sm:$0xff]  }
 0x373   :  { %v4091_v2 = vpop.f32.mrf.mxu1  ;;  %4768 = vmatmul.mubr.bf16.gmra.mxu1 %v6673_v4  ;;  %5401 = vst [vmem:[%s11049_s3 + $0x948] sm:$0xff] %v4086_v62  ;;  %v4088_v5 = vadd.f32 %v4087_v61, %v3575_v0  ;;  %v3579_v6 = vadd.f32 %v3578_v1, %v8994_v63  ;;  %4358 = vmatprep.mubr.bf16.mxu0 %v6674_v7  ;;  %v6687_v7 = vld [vmem:[%s11047_s0 + $0x14c] ss:$16 sps:$4 sm:$0xff]  }
 0x374   :  { %4775 = vmatprep.mubr.bf16.mxu1 %v6675_v8  ;;  %v3580_v9 = vpop.f32.mrf.mxu0 }
 0x375   :  { %v4093_v34 = vpop.f32.mrf.mxu1  ;;  %5402 = vst [vmem:[%s11049_s3 + $0x950] sm:$0xff] %v4088_v5  ;;  %v4092_v10 = vadd.f32 %v4091_v2, %v3579_v6  ;;  %v3581_v11 = vadd.f32 %v3580_v9, %v9003_v29  ;;  %v6684_v2 = vld [vmem:[%s11047_s0 + $0x120] ss:$16 sps:$4 sm:$0xff]   ;;  %v6686_v6 = vld [vmem:[%s11047_s0 + $0x144] ss:$16 sps:$4 sm:$0xff]  }
 0x376   :  { %v3582_v12 = vpop.f32.mrf.mxu0 }
 0x377   :  { %v4095_v13 = vpop.f32.mrf.mxu1  ;;  %5406 = vst [vmem:[%s11049_s3 + $0x970] sm:$0xff] %v4092_v10  ;;  %v4094_v14 = vadd.f32 %v4093_v34, %v3581_v11  ;;  %v3583_v15 = vadd.f32 %v3582_v12, %v8994_v63 }
 0x378   :  { %v3584_v16 = vpop.f32.mrf.mxu0 }
 0x379   :  { %v4097_v17 = vpop.f32.mrf.mxu1  ;;  %5407 = vst [vmem:[%s11049_s3 + $0x978] sm:$0xff] %v4094_v14  ;;  %v4096_v18 = vadd.f32 %v4095_v13, %v3583_v15  ;;  %v3585_v19 = vadd.f32 %v3584_v16, %v9003_v29 }
 0x37a   :  { %v3588_v20 = vpop.f32.mrf.mxu0  ;;  %4359 = vmatmul.mubr.bf16.gmra.mxu0 %v6676_v22  ;;  %v6689_v22 = vld [vmem:[%s11047_s0 + $0x148] ss:$16 sps:$4 sm:$0xff]  }
 0x37b   :  { %v4101_v21 = vpop.f32.mrf.mxu1  ;;  %4776 = vmatmul.mubr.bf16.gmra.mxu1 %v6677_v24  ;;  %5411 = vst [vmem:[%s11049_s3 + $0x998] sm:$0xff] %v4096_v18  ;;  %v4098_v25 = vadd.f32 %v4097_v17, %v3585_v19  ;;  %v3589_v26 = vadd.f32 %v3588_v20, %v8994_v63  ;;  %4366 = vmatprep.mubr.bf16.mxu0 %v6678_v27  ;;  %v6691_v27 = vld [vmem:[%s11047_s0 + $0x16c] ss:$16 sps:$4 sm:$0xff]  }
 0x37c   :  { %4783 = vmatprep.mubr.bf16.mxu1 %v6679_v28  ;;  %v3590_v39 = vpop.f32.mrf.mxu0 }
 0x37d   :  { %v4103_v30 = vpop.f32.mrf.mxu1  ;;  %5412 = vst [vmem:[%s11049_s3 + $0x9a0] sm:$0xff] %v4098_v25  ;;  %v4102_v31 = vadd.f32 %v4101_v21, %v3589_v26  ;;  %v3591_v32 = vadd.f32 %v3590_v39, %v9003_v29  ;;  %v6688_v21 = vld [vmem:[%s11047_s0 + $0x140] ss:$16 sps:$4 sm:$0xff]   ;;  %v6690_v26 = vld [vmem:[%s11047_s0 + $0x164] ss:$16 sps:$4 sm:$0xff]  }
 0x37e   :  { %v3592_v33 = vpop.f32.mrf.mxu0 }
 0x37f   :  { %v4105_v35 = vpop.f32.mrf.mxu1  ;;  %5416 = vst [vmem:[%s11049_s3 + $0x9c0] sm:$0xff] %v4102_v31  ;;  %v4104_v36 = vadd.f32 %v4103_v30, %v3591_v32  ;;  %v3593_v37 = vadd.f32 %v3592_v33, %v8994_v63 }
 0x380   :  { %v3594_v38 = vpop.f32.mrf.mxu0 }
 0x381   :  { %v4107_v40 = vpop.f32.mrf.mxu1  ;;  %5417 = vst [vmem:[%s11049_s3 + $0x9c8] sm:$0xff] %v4104_v36  ;;  %v4106_v41 = vadd.f32 %v4105_v35, %v3593_v37  ;;  %v3595_v42 = vadd.f32 %v3594_v38, %v9003_v29 }
 0x382   :  { %v3598_v43 = vpop.f32.mrf.mxu0  ;;  %4367 = vmatmul.mubr.bf16.gmra.mxu0 %v6680_v45  ;;  %v6693_v45 = vld [vmem:[%s11047_s0 + $0x168] ss:$16 sps:$4 sm:$0xff]  }
 0x383   :  { %v4111_v44 = vpop.f32.mrf.mxu1  ;;  %4784 = vmatmul.mubr.bf16.gmra.mxu1 %v6681_v46  ;;  %5421 = vst [vmem:[%s11049_s3 + $0x9e8] sm:$0xff] %v4106_v41  ;;  %v4108_v47 = vadd.f32 %v4107_v40, %v3595_v42  ;;  %v3599_v48 = vadd.f32 %v3598_v43, %v8994_v63  ;;  %4374 = vmatprep.mubr.bf16.mxu0 %v6682_v49  ;;  %v6695_v49 = vld [vmem:[%s11047_s0 + $0x18c] ss:$16 sps:$4 sm:$0xff]  }
 0x384   :  { %4791 = vmatprep.mubr.bf16.mxu1 %v6683_v50  ;;  %v3600_v51 = vpop.f32.mrf.mxu0 }
 0x385   :  { %v4113_v52 = vpop.f32.mrf.mxu1  ;;  %5422 = vst [vmem:[%s11049_s3 + $0x9f0] sm:$0xff] %v4108_v47  ;;  %v4112_v53 = vadd.f32 %v4111_v44, %v3599_v48  ;;  %v3601_v54 = vadd.f32 %v3600_v51, %v9003_v29  ;;  %v6692_v44 = vld [vmem:[%s11047_s0 + $0x160] ss:$16 sps:$4 sm:$0xff]   ;;  %v6694_v48 = vld [vmem:[%s11047_s0 + $0x184] ss:$16 sps:$4 sm:$0xff]  }
 0x386   :  { %v3602_v55 = vpop.f32.mrf.mxu0 }
 0x387   :  { %v4115_v56 = vpop.f32.mrf.mxu1  ;;  %5426 = vst [vmem:[%s11049_s3 + $0xa10] sm:$0xff] %v4112_v53  ;;  %v4114_v57 = vadd.f32 %v4113_v52, %v3601_v54  ;;  %v3603_v58 = vadd.f32 %v3602_v55, %v8994_v63 }
 0x388   :  { %v3604_v59 = vpop.f32.mrf.mxu0 }
 0x389   :  { %v4117_v60 = vpop.f32.mrf.mxu1  ;;  %5427 = vst [vmem:[%s11049_s3 + $0xa18] sm:$0xff] %v4114_v57  ;;  %v4116_v61 = vadd.f32 %v4115_v56, %v3603_v58  ;;  %v3605_v62 = vadd.f32 %v3604_v59, %v9003_v29 }
 0x38a   :  { %v3608_v0 = vpop.f32.mrf.mxu0  ;;  %4375 = vmatmul.mubr.bf16.gmra.mxu0 %v6684_v2  ;;  %v6697_v2 = vld [vmem:[%s11047_s0 + $0x188] ss:$16 sps:$4 sm:$0xff]  }
 0x38b   :  { %v4121_v1 = vpop.f32.mrf.mxu1  ;;  %4792 = vmatmul.mubr.bf16.gmra.mxu1 %v6685_v3  ;;  %5431 = vst [vmem:[%s11049_s3 + $0xa38] sm:$0xff] %v4116_v61  ;;  %v4118_v4 = vadd.f32 %v4117_v60, %v3605_v62  ;;  %v3609_v5 = vadd.f32 %v3608_v0, %v8994_v63  ;;  %4382 = vmatprep.mubr.bf16.mxu0 %v6686_v6  ;;  %v6699_v6 = vld [vmem:[%s11047_s0 + $0x1ac] ss:$16 sps:$4 sm:$0xff]  }
 0x38c   :  { %4799 = vmatprep.mubr.bf16.mxu1 %v6687_v7  ;;  %v3610_v8 = vpop.f32.mrf.mxu0 }
 0x38d   :  { %v4123_v9 = vpop.f32.mrf.mxu1  ;;  %5432 = vst [vmem:[%s11049_s3 + $0xa40] sm:$0xff] %v4118_v4  ;;  %v4122_v34 = vadd.f32 %v4121_v1, %v3609_v5  ;;  %v3611_v10 = vadd.f32 %v3610_v8, %v9003_v29  ;;  %v6696_v1 = vld [vmem:[%s11047_s0 + $0x180] ss:$16 sps:$4 sm:$0xff]   ;;  %v6698_v5 = vld [vmem:[%s11047_s0 + $0x1a4] ss:$16 sps:$4 sm:$0xff]  }
 0x38e   :  { %v3612_v11 = vpop.f32.mrf.mxu0 }
 0x38f   :  { %v4125_v12 = vpop.f32.mrf.mxu1  ;;  %5436 = vst [vmem:[%s11049_s3 + $0xa60] sm:$0xff] %v4122_v34  ;;  %v4124_v13 = vadd.f32 %v4123_v9, %v3611_v10  ;;  %v3613_v14 = vadd.f32 %v3612_v11, %v8994_v63 }
 0x390   :  { %v3614_v15 = vpop.f32.mrf.mxu0 }
 0x391   :  { %v4127_v16 = vpop.f32.mrf.mxu1  ;;  %5437 = vst [vmem:[%s11049_s3 + $0xa68] sm:$0xff] %v4124_v13  ;;  %v4126_v17 = vadd.f32 %v4125_v12, %v3613_v14  ;;  %v3615_v18 = vadd.f32 %v3614_v15, %v9003_v29 }
 0x392   :  { %v3618_v19 = vpop.f32.mrf.mxu0  ;;  %4383 = vmatmul.mubr.bf16.gmra.mxu0 %v6688_v21  ;;  %v6701_v21 = vld [vmem:[%s11047_s0 + $0x1a8] ss:$16 sps:$4 sm:$0xff]  }
 0x393   :  { %v4131_v20 = vpop.f32.mrf.mxu1  ;;  %4800 = vmatmul.mubr.bf16.gmra.mxu1 %v6689_v22  ;;  %5441 = vst [vmem:[%s11049_s3 + $0xa88] sm:$0xff] %v4126_v17  ;;  %v4128_v24 = vadd.f32 %v4127_v16, %v3615_v18  ;;  %v3619_v25 = vadd.f32 %v3618_v19, %v8994_v63  ;;  %4390 = vmatprep.mubr.bf16.mxu0 %v6690_v26  ;;  %v6703_v26 = vld [vmem:[%s11047_s0 + $0x1cc] ss:$16 sps:$4 sm:$0xff]  }
 0x394   :  { %4807 = vmatprep.mubr.bf16.mxu1 %v6691_v27  ;;  %v3620_v28 = vpop.f32.mrf.mxu0 }
 0x395   :  { %v4133_v39 = vpop.f32.mrf.mxu1  ;;  %5442 = vst [vmem:[%s11049_s3 + $0xa90] sm:$0xff] %v4128_v24  ;;  %v4132_v30 = vadd.f32 %v4131_v20, %v3619_v25  ;;  %v3621_v31 = vadd.f32 %v3620_v28, %v9003_v29  ;;  %v6700_v20 = vld [vmem:[%s11047_s0 + $0x1a0] ss:$16 sps:$4 sm:$0xff]   ;;  %v6702_v25 = vld [vmem:[%s11047_s0 + $0x1c4] ss:$16 sps:$4 sm:$0xff]  }
 0x396   :  { %v3622_v32 = vpop.f32.mrf.mxu0 }
 0x397   :  { %v4135_v33 = vpop.f32.mrf.mxu1  ;;  %5446 = vst [vmem:[%s11049_s3 + $0xab0] sm:$0xff] %v4132_v30  ;;  %v4134_v35 = vadd.f32 %v4133_v39, %v3621_v31  ;;  %v3623_v36 = vadd.f32 %v3622_v32, %v8994_v63 }
 0x398   :  { %v3624_v37 = vpop.f32.mrf.mxu0 }
 0x399   :  { %v4137_v38 = vpop.f32.mrf.mxu1  ;;  %5447 = vst [vmem:[%s11049_s3 + $0xab8] sm:$0xff] %v4134_v35  ;;  %v4136_v40 = vadd.f32 %v4135_v33, %v3623_v36  ;;  %v3625_v41 = vadd.f32 %v3624_v37, %v9003_v29 }
 0x39a   :  { %v3628_v42 = vpop.f32.mrf.mxu0  ;;  %4391 = vmatmul.mubr.bf16.gmra.mxu0 %v6692_v44  ;;  %v6705_v44 = vld [vmem:[%s11047_s0 + $0x1c8] ss:$16 sps:$4 sm:$0xff]  }
 0x39b   :  { %v4141_v43 = vpop.f32.mrf.mxu1  ;;  %4808 = vmatmul.mubr.bf16.gmra.mxu1 %v6693_v45  ;;  %5451 = vst [vmem:[%s11049_s3 + $0xad8] sm:$0xff] %v4136_v40  ;;  %v4138_v46 = vadd.f32 %v4137_v38, %v3625_v41  ;;  %v3629_v47 = vadd.f32 %v3628_v42, %v8994_v63  ;;  %4398 = vmatprep.mubr.bf16.mxu0 %v6694_v48  ;;  %v6707_v48 = vld [vmem:[%s11047_s0 + $0x1ec] ss:$16 sps:$4 sm:$0xff]  }
 0x39c   :  { %4815 = vmatprep.mubr.bf16.mxu1 %v6695_v49  ;;  %v3630_v50 = vpop.f32.mrf.mxu0 }
 0x39d   :  { %v4143_v51 = vpop.f32.mrf.mxu1  ;;  %5452 = vst [vmem:[%s11049_s3 + $0xae0] sm:$0xff] %v4138_v46  ;;  %v4142_v52 = vadd.f32 %v4141_v43, %v3629_v47  ;;  %v3631_v53 = vadd.f32 %v3630_v50, %v9003_v29  ;;  %v6704_v43 = vld [vmem:[%s11047_s0 + $0x1c0] ss:$16 sps:$4 sm:$0xff]   ;;  %v6706_v47 = vld [vmem:[%s11047_s0 + $0x1e4] ss:$16 sps:$4 sm:$0xff]  }
 0x39e   :  { %v3632_v54 = vpop.f32.mrf.mxu0 }
 0x39f   :  { %v4145_v55 = vpop.f32.mrf.mxu1  ;;  %5456 = vst [vmem:[%s11049_s3 + $0xb00] sm:$0xff] %v4142_v52  ;;  %v4144_v56 = vadd.f32 %v4143_v51, %v3631_v53  ;;  %v3633_v57 = vadd.f32 %v3632_v54, %v8994_v63 }
 0x3a0   :  { %v3634_v58 = vpop.f32.mrf.mxu0 }
 0x3a1   :  { %v4147_v59 = vpop.f32.mrf.mxu1  ;;  %5457 = vst [vmem:[%s11049_s3 + $0xb08] sm:$0xff] %v4144_v56  ;;  %v4146_v60 = vadd.f32 %v4145_v55, %v3633_v57  ;;  %v3635_v61 = vadd.f32 %v3634_v58, %v9003_v29 }
 0x3a2   :  { %v3638_v62 = vpop.f32.mrf.mxu0  ;;  %4399 = vmatmul.mubr.bf16.gmra.mxu0 %v6696_v1  ;;  %v6709_v1 = vld [vmem:[%s11047_s0 + $0x1e8] ss:$16 sps:$4 sm:$0xff]  }
 0x3a3   :  { %v4151_v0 = vpop.f32.mrf.mxu1  ;;  %4816 = vmatmul.mubr.bf16.gmra.mxu1 %v6697_v2  ;;  %5461 = vst [vmem:[%s11049_s3 + $0xb28] sm:$0xff] %v4146_v60  ;;  %v4148_v3 = vadd.f32 %v4147_v59, %v3635_v61  ;;  %v3639_v4 = vadd.f32 %v3638_v62, %v8994_v63  ;;  %4406 = vmatprep.mubr.bf16.mxu0 %v6698_v5  ;;  %v6711_v5 = vld [vmem:[%s11047_s0 + $0x20c] ss:$16 sps:$4 sm:$0xff]  }
 0x3a4   :  { %4823 = vmatprep.mubr.bf16.mxu1 %v6699_v6  ;;  %v3640_v7 = vpop.f32.mrf.mxu0 }
 0x3a5   :  { %v4153_v8 = vpop.f32.mrf.mxu1  ;;  %5462 = vst [vmem:[%s11049_s3 + $0xb30] sm:$0xff] %v4148_v3  ;;  %v4152_v9 = vadd.f32 %v4151_v0, %v3639_v4  ;;  %v3641_v34 = vadd.f32 %v3640_v7, %v9003_v29  ;;  %v6708_v0 = vld [vmem:[%s11047_s0 + $0x1e0] ss:$16 sps:$4 sm:$0xff]   ;;  %v6710_v4 = vld [vmem:[%s11047_s0 + $0x204] ss:$16 sps:$4 sm:$0xff]  }
 0x3a6   :  { %v3642_v10 = vpop.f32.mrf.mxu0 }
 0x3a7   :  { %v4155_v11 = vpop.f32.mrf.mxu1  ;;  %5466 = vst [vmem:[%s11049_s3 + $0xb50] sm:$0xff] %v4152_v9  ;;  %v4154_v12 = vadd.f32 %v4153_v8, %v3641_v34  ;;  %v3643_v13 = vadd.f32 %v3642_v10, %v8994_v63 }
 0x3a8   :  { %v3644_v14 = vpop.f32.mrf.mxu0 }
 0x3a9   :  { %v4157_v15 = vpop.f32.mrf.mxu1  ;;  %5467 = vst [vmem:[%s11049_s3 + $0xb58] sm:$0xff] %v4154_v12  ;;  %v4156_v16 = vadd.f32 %v4155_v11, %v3643_v13  ;;  %v3645_v17 = vadd.f32 %v3644_v14, %v9003_v29 }
 0x3aa   :  { %v3648_v18 = vpop.f32.mrf.mxu0  ;;  %4407 = vmatmul.mubr.bf16.gmra.mxu0 %v6700_v20  ;;  %v6713_v20 = vld [vmem:[%s11047_s0 + $0x208] ss:$16 sps:$4 sm:$0xff]  }
 0x3ab   :  { %v4161_v19 = vpop.f32.mrf.mxu1  ;;  %4824 = vmatmul.mubr.bf16.gmra.mxu1 %v6701_v21  ;;  %5471 = vst [vmem:[%s11049_s3 + $0xb78] sm:$0xff] %v4156_v16  ;;  %v4158_v22 = vadd.f32 %v4157_v15, %v3645_v17  ;;  %v3649_v24 = vadd.f32 %v3648_v18, %v8994_v63  ;;  %4414 = vmatprep.mubr.bf16.mxu0 %v6702_v25  ;;  %v6715_v25 = vld [vmem:[%s11047_s0 + $0x22c] ss:$16 sps:$4 sm:$0xff]  }
 0x3ac   :  { %4831 = vmatprep.mubr.bf16.mxu1 %v6703_v26  ;;  %v3650_v27 = vpop.f32.mrf.mxu0 }
 0x3ad   :  { %v4163_v28 = vpop.f32.mrf.mxu1  ;;  %5472 = vst [vmem:[%s11049_s3 + $0xb80] sm:$0xff] %v4158_v22  ;;  %v4162_v39 = vadd.f32 %v4161_v19, %v3649_v24  ;;  %v3651_v30 = vadd.f32 %v3650_v27, %v9003_v29  ;;  %v6712_v19 = vld [vmem:[%s11047_s0 + $0x200] ss:$16 sps:$4 sm:$0xff]   ;;  %v6714_v24 = vld [vmem:[%s11047_s0 + $0x224] ss:$16 sps:$4 sm:$0xff]  }
 0x3ae   :  { %v3652_v31 = vpop.f32.mrf.mxu0 }
 0x3af   :  { %v4165_v32 = vpop.f32.mrf.mxu1  ;;  %5476 = vst [vmem:[%s11049_s3 + $0xba0] sm:$0xff] %v4162_v39  ;;  %v4164_v33 = vadd.f32 %v4163_v28, %v3651_v30  ;;  %v3653_v35 = vadd.f32 %v3652_v31, %v8994_v63 }
 0x3b0   :  { %v3654_v36 = vpop.f32.mrf.mxu0 }
 0x3b1   :  { %v4167_v37 = vpop.f32.mrf.mxu1  ;;  %5477 = vst [vmem:[%s11049_s3 + $0xba8] sm:$0xff] %v4164_v33  ;;  %v4166_v38 = vadd.f32 %v4165_v32, %v3653_v35  ;;  %v3655_v40 = vadd.f32 %v3654_v36, %v9003_v29 }
 0x3b2   :  { %v3658_v41 = vpop.f32.mrf.mxu0  ;;  %4415 = vmatmul.mubr.bf16.gmra.mxu0 %v6704_v43  ;;  %v6717_v43 = vld [vmem:[%s11047_s0 + $0x228] ss:$16 sps:$4 sm:$0xff]  }
 0x3b3   :  { %v4171_v42 = vpop.f32.mrf.mxu1  ;;  %4832 = vmatmul.mubr.bf16.gmra.mxu1 %v6705_v44  ;;  %5481 = vst [vmem:[%s11049_s3 + $0xbc8] sm:$0xff] %v4166_v38  ;;  %v4168_v45 = vadd.f32 %v4167_v37, %v3655_v40  ;;  %v3659_v46 = vadd.f32 %v3658_v41, %v8994_v63  ;;  %4422 = vmatprep.mubr.bf16.mxu0 %v6706_v47  ;;  %v6719_v47 = vld [vmem:[%s11047_s0 + $0x24c] ss:$16 sps:$4 sm:$0xff]  }
 0x3b4   :  { %4839 = vmatprep.mubr.bf16.mxu1 %v6707_v48  ;;  %v3660_v49 = vpop.f32.mrf.mxu0 }
 0x3b5   :  { %v4173_v50 = vpop.f32.mrf.mxu1  ;;  %5482 = vst [vmem:[%s11049_s3 + $0xbd0] sm:$0xff] %v4168_v45  ;;  %v4172_v51 = vadd.f32 %v4171_v42, %v3659_v46  ;;  %v3661_v52 = vadd.f32 %v3660_v49, %v9003_v29  ;;  %v6716_v42 = vld [vmem:[%s11047_s0 + $0x220] ss:$16 sps:$4 sm:$0xff]   ;;  %v6718_v46 = vld [vmem:[%s11047_s0 + $0x244] ss:$16 sps:$4 sm:$0xff]  }
 0x3b6   :  { %v3662_v53 = vpop.f32.mrf.mxu0 }
 0x3b7   :  { %v4175_v54 = vpop.f32.mrf.mxu1  ;;  %5486 = vst [vmem:[%s11049_s3 + $0xbf0] sm:$0xff] %v4172_v51  ;;  %v4174_v55 = vadd.f32 %v4173_v50, %v3661_v52  ;;  %v3663_v56 = vadd.f32 %v3662_v53, %v8994_v63 }
 0x3b8   :  { %v3664_v57 = vpop.f32.mrf.mxu0 }
 0x3b9   :  { %v4177_v58 = vpop.f32.mrf.mxu1  ;;  %5487 = vst [vmem:[%s11049_s3 + $0xbf8] sm:$0xff] %v4174_v55  ;;  %v4176_v59 = vadd.f32 %v4175_v54, %v3663_v56  ;;  %v3665_v60 = vadd.f32 %v3664_v57, %v9003_v29 }
 0x3ba   :  { %v3668_v61 = vpop.f32.mrf.mxu0  ;;  %4423 = vmatmul.mubr.bf16.gmra.mxu0 %v6708_v0  ;;  %v6721_v0 = vld [vmem:[%s11047_s0 + $0x248] ss:$16 sps:$4 sm:$0xff]  }
 0x3bb   :  { %v4181_v62 = vpop.f32.mrf.mxu1  ;;  %4840 = vmatmul.mubr.bf16.gmra.mxu1 %v6709_v1  ;;  %5491 = vst [vmem:[%s11049_s3 + $0xc18] sm:$0xff] %v4176_v59  ;;  %v4178_v2 = vadd.f32 %v4177_v58, %v3665_v60  ;;  %v3669_v3 = vadd.f32 %v3668_v61, %v8994_v63  ;;  %4430 = vmatprep.mubr.bf16.mxu0 %v6710_v4  ;;  %v6723_v4 = vld [vmem:[%s11047_s0 + $0x26c] ss:$16 sps:$4 sm:$0xff]  }
 0x3bc   :  { %4847 = vmatprep.mubr.bf16.mxu1 %v6711_v5  ;;  %v3670_v6 = vpop.f32.mrf.mxu0 }
 0x3bd   :  { %v4183_v7 = vpop.f32.mrf.mxu1  ;;  %5492 = vst [vmem:[%s11049_s3 + $0xc20] sm:$0xff] %v4178_v2  ;;  %v4182_v8 = vadd.f32 %v4181_v62, %v3669_v3  ;;  %v3671_v9 = vadd.f32 %v3670_v6, %v9003_v29  ;;  %v6720_v62 = vld [vmem:[%s11047_s0 + $0x240] ss:$16 sps:$4 sm:$0xff]   ;;  %v6722_v3 = vld [vmem:[%s11047_s0 + $0x264] ss:$16 sps:$4 sm:$0xff]  }
 0x3be   :  { %v3672_v34 = vpop.f32.mrf.mxu0 }
 0x3bf   :  { %v4185_v10 = vpop.f32.mrf.mxu1  ;;  %5496 = vst [vmem:[%s11049_s3 + $0xc40] sm:$0xff] %v4182_v8  ;;  %v4184_v11 = vadd.f32 %v4183_v7, %v3671_v9  ;;  %v3673_v12 = vadd.f32 %v3672_v34, %v8994_v63 }
 0x3c0   :  { %v3674_v13 = vpop.f32.mrf.mxu0 }
 0x3c1   :  { %v4187_v14 = vpop.f32.mrf.mxu1  ;;  %5497 = vst [vmem:[%s11049_s3 + $0xc48] sm:$0xff] %v4184_v11  ;;  %v4186_v15 = vadd.f32 %v4185_v10, %v3673_v12  ;;  %v3675_v16 = vadd.f32 %v3674_v13, %v9003_v29 }
 0x3c2   :  { %v3678_v17 = vpop.f32.mrf.mxu0  ;;  %4431 = vmatmul.mubr.bf16.gmra.mxu0 %v6712_v19  ;;  %v6725_v19 = vld [vmem:[%s11047_s0 + $0x268] ss:$16 sps:$4 sm:$0xff]  }
 0x3c3   :  { %v4191_v18 = vpop.f32.mrf.mxu1  ;;  %4848 = vmatmul.mubr.bf16.gmra.mxu1 %v6713_v20  ;;  %5501 = vst [vmem:[%s11049_s3 + $0xc68] sm:$0xff] %v4186_v15  ;;  %v4188_v21 = vadd.f32 %v4187_v14, %v3675_v16  ;;  %v3679_v22 = vadd.f32 %v3678_v17, %v8994_v63  ;;  %4438 = vmatprep.mubr.bf16.mxu0 %v6714_v24  ;;  %v6727_v24 = vld [vmem:[%s11047_s0 + $0x28c] ss:$16 sps:$4 sm:$0xff]  }
 0x3c4   :  { %4855 = vmatprep.mubr.bf16.mxu1 %v6715_v25  ;;  %v3680_v26 = vpop.f32.mrf.mxu0 }
 0x3c5   :  { %v4193_v27 = vpop.f32.mrf.mxu1  ;;  %5502 = vst [vmem:[%s11049_s3 + $0xc70] sm:$0xff] %v4188_v21  ;;  %v4192_v28 = vadd.f32 %v4191_v18, %v3679_v22  ;;  %v3681_v39 = vadd.f32 %v3680_v26, %v9003_v29  ;;  %v6724_v18 = vld [vmem:[%s11047_s0 + $0x260] ss:$16 sps:$4 sm:$0xff]   ;;  %v6726_v22 = vld [vmem:[%s11047_s0 + $0x284] ss:$16 sps:$4 sm:$0xff]  }
 0x3c6   :  { %v3682_v30 = vpop.f32.mrf.mxu0 }
 0x3c7   :  { %v4195_v31 = vpop.f32.mrf.mxu1  ;;  %5506 = vst [vmem:[%s11049_s3 + $0xc90] sm:$0xff] %v4192_v28  ;;  %v4194_v32 = vadd.f32 %v4193_v27, %v3681_v39  ;;  %v3683_v33 = vadd.f32 %v3682_v30, %v8994_v63 }
 0x3c8   :  { %v3684_v35 = vpop.f32.mrf.mxu0 }
 0x3c9   :  { %v4197_v36 = vpop.f32.mrf.mxu1  ;;  %5507 = vst [vmem:[%s11049_s3 + $0xc98] sm:$0xff] %v4194_v32  ;;  %v4196_v37 = vadd.f32 %v4195_v31, %v3683_v33  ;;  %v3685_v38 = vadd.f32 %v3684_v35, %v9003_v29 }
 0x3ca   :  { %v3688_v40 = vpop.f32.mrf.mxu0  ;;  %4439 = vmatmul.mubr.bf16.gmra.mxu0 %v6716_v42  ;;  %v6729_v42 = vld [vmem:[%s11047_s0 + $0x288] ss:$16 sps:$4 sm:$0xff]  }
 0x3cb   :  { %v4201_v41 = vpop.f32.mrf.mxu1  ;;  %4856 = vmatmul.mubr.bf16.gmra.mxu1 %v6717_v43  ;;  %5511 = vst [vmem:[%s11049_s3 + $0xcb8] sm:$0xff] %v4196_v37  ;;  %v4198_v44 = vadd.f32 %v4197_v36, %v3685_v38  ;;  %v3689_v45 = vadd.f32 %v3688_v40, %v8994_v63  ;;  %4446 = vmatprep.mubr.bf16.mxu0 %v6718_v46  ;;  %v6731_v46 = vld [vmem:[%s11047_s0 + $0x2ac] ss:$16 sps:$4 sm:$0xff]  }
 0x3cc   :  { %4863 = vmatprep.mubr.bf16.mxu1 %v6719_v47  ;;  %v3690_v48 = vpop.f32.mrf.mxu0 }
 0x3cd   :  { %v4203_v49 = vpop.f32.mrf.mxu1  ;;  %5512 = vst [vmem:[%s11049_s3 + $0xcc0] sm:$0xff] %v4198_v44  ;;  %v4202_v50 = vadd.f32 %v4201_v41, %v3689_v45  ;;  %v3691_v51 = vadd.f32 %v3690_v48, %v9003_v29  ;;  %v6728_v41 = vld [vmem:[%s11047_s0 + $0x280] ss:$16 sps:$4 sm:$0xff]   ;;  %v6730_v45 = vld [vmem:[%s11047_s0 + $0x2a4] ss:$16 sps:$4 sm:$0xff]  }
 0x3ce   :  { %v3692_v52 = vpop.f32.mrf.mxu0 }
 0x3cf   :  { %v4205_v53 = vpop.f32.mrf.mxu1  ;;  %5516 = vst [vmem:[%s11049_s3 + $0xce0] sm:$0xff] %v4202_v50  ;;  %v4204_v54 = vadd.f32 %v4203_v49, %v3691_v51  ;;  %v3693_v55 = vadd.f32 %v3692_v52, %v8994_v63 }
 0x3d0   :  { %v3694_v56 = vpop.f32.mrf.mxu0 }
 0x3d1   :  { %v4207_v57 = vpop.f32.mrf.mxu1  ;;  %5517 = vst [vmem:[%s11049_s3 + $0xce8] sm:$0xff] %v4204_v54  ;;  %v4206_v58 = vadd.f32 %v4205_v53, %v3693_v55  ;;  %v3695_v59 = vadd.f32 %v3694_v56, %v9003_v29 }
 0x3d2   :  { %v3698_v60 = vpop.f32.mrf.mxu0  ;;  %4447 = vmatmul.mubr.bf16.gmra.mxu0 %v6720_v62  ;;  %v6733_v62 = vld [vmem:[%s11047_s0 + $0x2a8] ss:$16 sps:$4 sm:$0xff]  }
 0x3d3   :  { %v4211_v61 = vpop.f32.mrf.mxu1  ;;  %4864 = vmatmul.mubr.bf16.gmra.mxu1 %v6721_v0  ;;  %5521 = vst [vmem:[%s11049_s3 + $0xd08] sm:$0xff] %v4206_v58  ;;  %v4208_v1 = vadd.f32 %v4207_v57, %v3695_v59  ;;  %v3699_v2 = vadd.f32 %v3698_v60, %v8994_v63  ;;  %4454 = vmatprep.mubr.bf16.mxu0 %v6722_v3  ;;  %v6735_v3 = vld [vmem:[%s11047_s0 + $0x2cc] ss:$16 sps:$4 sm:$0xff]  }
 0x3d4   :  { %4871 = vmatprep.mubr.bf16.mxu1 %v6723_v4  ;;  %v3700_v5 = vpop.f32.mrf.mxu0 }
 0x3d5   :  { %v4213_v6 = vpop.f32.mrf.mxu1  ;;  %5522 = vst [vmem:[%s11049_s3 + $0xd10] sm:$0xff] %v4208_v1  ;;  %v4212_v7 = vadd.f32 %v4211_v61, %v3699_v2  ;;  %v3701_v8 = vadd.f32 %v3700_v5, %v9003_v29  ;;  %v6732_v61 = vld [vmem:[%s11047_s0 + $0x2a0] ss:$16 sps:$4 sm:$0xff]   ;;  %v6734_v2 = vld [vmem:[%s11047_s0 + $0x2c4] ss:$16 sps:$4 sm:$0xff]  }
 0x3d6   :  { %v3702_v9 = vpop.f32.mrf.mxu0 }
 0x3d7   :  { %v4215_v34 = vpop.f32.mrf.mxu1  ;;  %5526 = vst [vmem:[%s11049_s3 + $0xd30] sm:$0xff] %v4212_v7  ;;  %v4214_v10 = vadd.f32 %v4213_v6, %v3701_v8  ;;  %v3703_v11 = vadd.f32 %v3702_v9, %v8994_v63 }
 0x3d8   :  { %v3704_v12 = vpop.f32.mrf.mxu0 }
 0x3d9   :  { %v4217_v13 = vpop.f32.mrf.mxu1  ;;  %5527 = vst [vmem:[%s11049_s3 + $0xd38] sm:$0xff] %v4214_v10  ;;  %v4216_v14 = vadd.f32 %v4215_v34, %v3703_v11  ;;  %v3705_v15 = vadd.f32 %v3704_v12, %v9003_v29 }
 0x3da   :  { %v3708_v16 = vpop.f32.mrf.mxu0  ;;  %4455 = vmatmul.mubr.bf16.gmra.mxu0 %v6724_v18  ;;  %v6737_v18 = vld [vmem:[%s11047_s0 + $0x2c8] ss:$16 sps:$4 sm:$0xff]  }
 0x3db   :  { %v4221_v17 = vpop.f32.mrf.mxu1  ;;  %4872 = vmatmul.mubr.bf16.gmra.mxu1 %v6725_v19  ;;  %5531 = vst [vmem:[%s11049_s3 + $0xd58] sm:$0xff] %v4216_v14  ;;  %v4218_v20 = vadd.f32 %v4217_v13, %v3705_v15  ;;  %v3709_v21 = vadd.f32 %v3708_v16, %v8994_v63  ;;  %4462 = vmatprep.mubr.bf16.mxu0 %v6726_v22  ;;  %v6739_v22 = vld [vmem:[%s11047_s0 + $0x2ec] ss:$16 sps:$4 sm:$0xff]  }
 0x3dc   :  { %4879 = vmatprep.mubr.bf16.mxu1 %v6727_v24  ;;  %v3710_v25 = vpop.f32.mrf.mxu0 }
 0x3dd   :  { %v4223_v26 = vpop.f32.mrf.mxu1  ;;  %5532 = vst [vmem:[%s11049_s3 + $0xd60] sm:$0xff] %v4218_v20  ;;  %v4222_v27 = vadd.f32 %v4221_v17, %v3709_v21  ;;  %v3711_v28 = vadd.f32 %v3710_v25, %v9003_v29  ;;  %v6736_v17 = vld [vmem:[%s11047_s0 + $0x2c0] ss:$16 sps:$4 sm:$0xff]   ;;  %v6738_v21 = vld [vmem:[%s11047_s0 + $0x2e4] ss:$16 sps:$4 sm:$0xff]  }
 0x3de   :  { %v3712_v39 = vpop.f32.mrf.mxu0 }
 0x3df   :  { %v4225_v30 = vpop.f32.mrf.mxu1  ;;  %5536 = vst [vmem:[%s11049_s3 + $0xd80] sm:$0xff] %v4222_v27  ;;  %v4224_v31 = vadd.f32 %v4223_v26, %v3711_v28  ;;  %v3713_v32 = vadd.f32 %v3712_v39, %v8994_v63 }
 0x3e0   :  { %v3714_v33 = vpop.f32.mrf.mxu0 }
 0x3e1   :  { %v4227_v35 = vpop.f32.mrf.mxu1  ;;  %5537 = vst [vmem:[%s11049_s3 + $0xd88] sm:$0xff] %v4224_v31  ;;  %v4226_v36 = vadd.f32 %v4225_v30, %v3713_v32  ;;  %v3715_v37 = vadd.f32 %v3714_v33, %v9003_v29 }
 0x3e2   :  { %v3718_v38 = vpop.f32.mrf.mxu0  ;;  %4463 = vmatmul.mubr.bf16.gmra.mxu0 %v6728_v41  ;;  %v6741_v41 = vld [vmem:[%s11047_s0 + $0x2e8] ss:$16 sps:$4 sm:$0xff]  }
 0x3e3   :  { %v4231_v40 = vpop.f32.mrf.mxu1  ;;  %4880 = vmatmul.mubr.bf16.gmra.mxu1 %v6729_v42  ;;  %5541 = vst [vmem:[%s11049_s3 + $0xda8] sm:$0xff] %v4226_v36  ;;  %v4228_v43 = vadd.f32 %v4227_v35, %v3715_v37  ;;  %v3719_v44 = vadd.f32 %v3718_v38, %v8994_v63  ;;  %4470 = vmatprep.mubr.bf16.mxu0 %v6730_v45  ;;  %v6743_v45 = vld [vmem:[%s11047_s0 + $0x30c] ss:$16 sps:$4 sm:$0xff]  }
 0x3e4   :  { %4887 = vmatprep.mubr.bf16.mxu1 %v6731_v46  ;;  %v3720_v47 = vpop.f32.mrf.mxu0  ;;  %v419_v46 = vsub.s32 4, %v7502_v23  ;;  %v6744_v23 = vld [vmem:[%s11048_s2] sm:$0x1f] }
 0x3e5   :  { %v4233_v48 = vpop.f32.mrf.mxu1  ;;  %5542 = vst [vmem:[%s11049_s3 + $0xdb0] sm:$0xff] %v4228_v43  ;;  %v4232_v49 = vadd.f32 %v4231_v40, %v3719_v44  ;;  %v3721_v50 = vadd.f32 %v3720_v47, %v9003_v29  ;;  %v6740_v40 = vld [vmem:[%s11047_s0 + $0x2e0] ss:$16 sps:$4 sm:$0xff]   ;;  %v6742_v44 = vld [vmem:[%s11047_s0 + $0x304] ss:$16 sps:$4 sm:$0xff]  }
 0x3e6   :  { %v3722_v51 = vpop.f32.mrf.mxu0 }
 0x3e7   :  { %v4235_v52 = vpop.f32.mrf.mxu1  ;;  %5546 = vst [vmem:[%s11049_s3 + $0xdd0] sm:$0xff] %v4232_v49  ;;  %v4234_v53 = vadd.f32 %v4233_v48, %v3721_v50  ;;  %v3723_v54 = vadd.f32 %v3722_v51, %v8994_v63 }
 0x3e8   :  { %v3724_v55 = vpop.f32.mrf.mxu0 }
 0x3e9   :  { %v4237_v56 = vpop.f32.mrf.mxu1  ;;  %5547 = vst [vmem:[%s11049_s3 + $0xdd8] sm:$0xff] %v4234_v53  ;;  %v4236_v57 = vadd.f32 %v4235_v52, %v3723_v54  ;;  %v3725_v58 = vadd.f32 %v3724_v55, %v9003_v29  ;;  %v10368_v55 = vrot.slane %v6744_v23, %v419_v46 }
 0x3ea   :  { %v3728_v59 = vpop.f32.mrf.mxu0  ;;  %4471 = vmatmul.mubr.bf16.gmra.mxu0 %v6732_v61 }
 0x3eb   :  { %v4241_v60 = vpop.f32.mrf.mxu1  ;;  %4888 = vmatmul.mubr.bf16.gmra.mxu1 %v6733_v62  ;;  %5551 = vst [vmem:[%s11049_s3 + $0xdf8] sm:$0xff] %v4236_v57  ;;  %v4238_v0 = vadd.f32 %v4237_v56, %v3725_v58  ;;  %v3729_v1 = vadd.f32 %v3728_v59, %v8994_v63  ;;  %4478 = vmatprep.mubr.bf16.mxu0 %v6734_v2  ;;  %v6746_v62 = vld [vmem:[%s11047_s0 + $0x308] ss:$16 sps:$4 sm:$0xff]   ;;  %v6748_v2 = vld [vmem:[%s11047_s0 + $0x32c] ss:$16 sps:$4 sm:$0xff]  }
 0x3ec   :  { %4895 = vmatprep.mubr.bf16.mxu1 %v6735_v3  ;;  %v3730_v4 = vpop.f32.mrf.mxu0 }
 0x3ed   :  { %v4243_v5 = vpop.f32.mrf.mxu1  ;;  %5552 = vst [vmem:[%s11049_s3 + $0xe00] sm:$0xff] %v4238_v0  ;;  %v4242_v6 = vadd.f32 %v4241_v60, %v3729_v1  ;;  %v3731_v7 = vadd.f32 %v3730_v4, %v9003_v29 }
 0x3ee   :  { %v3732_v8 = vpop.f32.mrf.mxu0 }
 0x3ef   :  { %v4245_v9 = vpop.f32.mrf.mxu1  ;;  %5556 = vst [vmem:[%s11049_s3 + $0xe20] sm:$0xff] %v4242_v6  ;;  %v4244_v34 = vadd.f32 %v4243_v5, %v3731_v7  ;;  %v3733_v10 = vadd.f32 %v3732_v8, %v8994_v63 }
 0x3f0   :  { %v3734_v11 = vpop.f32.mrf.mxu0 }
 0x3f1   :  { %v4247_v12 = vpop.f32.mrf.mxu1  ;;  %5557 = vst [vmem:[%s11049_s3 + $0xe28] sm:$0xff] %v4244_v34  ;;  %v4246_v13 = vadd.f32 %v4245_v9, %v3733_v10  ;;  %v3735_v14 = vadd.f32 %v3734_v11, %v9003_v29 }
 0x3f2   :  { %v3738_v15 = vpop.f32.mrf.mxu0  ;;  %4479 = vmatmul.mubr.bf16.gmra.mxu0 %v6736_v17  ;;  %v6752_v17 = vld [vmem:[%s11047_s0 + $0x34c] ss:$16 sps:$4 sm:$0xff]  }
 0x3f3   :  { %v4251_v16 = vpop.f32.mrf.mxu1  ;;  %4896 = vmatmul.mubr.bf16.gmra.mxu1 %v6737_v18  ;;  %5561 = vst [vmem:[%s11049_s3 + $0xe48] sm:$0xff] %v4246_v13  ;;  %v4248_v19 = vadd.f32 %v4247_v12, %v3735_v14  ;;  %v3739_v20 = vadd.f32 %v3738_v15, %v8994_v63  ;;  %4486 = vmatprep.mubr.bf16.mxu0 %v6738_v21  ;;  %v6749_v12 = vld [vmem:[%s11047_s0 + $0x320] ss:$16 sps:$4 sm:$0xff]   ;;  %v6750_v14 = vld [vmem:[%s11047_s0 + $0x328] ss:$16 sps:$4 sm:$0xff]  }
 0x3f4   :  { %4903 = vmatprep.mubr.bf16.mxu1 %v6739_v22  ;;  %v3740_v24 = vpop.f32.mrf.mxu0 }
 0x3f5   :  { %v4253_v25 = vpop.f32.mrf.mxu1  ;;  %5562 = vst [vmem:[%s11049_s3 + $0xe50] sm:$0xff] %v4248_v19  ;;  %v4252_v26 = vadd.f32 %v4251_v16, %v3739_v20  ;;  %v3741_v27 = vadd.f32 %v3740_v24, %v9003_v29  ;;  %v6751_v16 = vld [vmem:[%s11047_s0 + $0x344] ss:$16 sps:$4 sm:$0xff]  }
 0x3f6   :  { %v3742_v28 = vpop.f32.mrf.mxu0 }
 0x3f7   :  { %v4255_v39 = vpop.f32.mrf.mxu1  ;;  %5566 = vst [vmem:[%s11049_s3 + $0xe70] sm:$0xff] %v4252_v26  ;;  %v4254_v30 = vadd.f32 %v4253_v25, %v3741_v27  ;;  %v3743_v31 = vadd.f32 %v3742_v28, %v8994_v63 }
 0x3f8   :  { %v3744_v32 = vpop.f32.mrf.mxu0 }
 0x3f9   :  { %v4257_v33 = vpop.f32.mrf.mxu1  ;;  %5567 = vst [vmem:[%s11049_s3 + $0xe78] sm:$0xff] %v4254_v30  ;;  %v4256_v35 = vadd.f32 %v4255_v39, %v3743_v31  ;;  %v3745_v36 = vadd.f32 %v3744_v32, %v9003_v29  ;;  %v6753_v39 = vld [vmem:[%s11047_s0 + $0x340] ss:$16 sps:$4 sm:$0xff]   ;;  %v6754_v31 = vld [vmem:[%s11047_s0 + $0x348] ss:$16 sps:$4 sm:$0xff]  }
 0x3fa   :  { %v3748_v37 = vpop.f32.mrf.mxu0  ;;  %4487 = vmatmul.mubr.bf16.gmra.mxu0 %v6740_v40 }
 0x3fb   :  { %v4261_v38 = vpop.f32.mrf.mxu1  ;;  %4904 = vmatmul.mubr.bf16.gmra.mxu1 %v6741_v41  ;;  %5571 = vst [vmem:[%s11049_s3 + $0xe98] sm:$0xff] %v4256_v35  ;;  %v4258_v42 = vadd.f32 %v4257_v33, %v3745_v36  ;;  %v3749_v43 = vadd.f32 %v3748_v37, %v8994_v63  ;;  %4494 = vmatprep.mubr.bf16.mxu0 %v6742_v44  ;;  %v6755_v33 = vld [vmem:[%s11047_s0 + $0x364] ss:$16 sps:$4 sm:$0xff]   ;;  %v6756_v35 = vld [vmem:[%s11047_s0 + $0x36c] ss:$16 sps:$4 sm:$0xff]  }
 0x3fc   :  { %4911 = vmatprep.mubr.bf16.mxu1 %v6743_v45  ;;  %v3750_v47 = vpop.f32.mrf.mxu0 }
 0x3fd   :  { %v4263_v48 = vpop.f32.mrf.mxu1  ;;  %5572 = vst [vmem:[%s11049_s3 + $0xea0] sm:$0xff] %v4258_v42  ;;  %v4262_v49 = vadd.f32 %v4261_v38, %v3749_v43  ;;  %v3751_v50 = vadd.f32 %v3750_v47, %v9003_v29  ;;  %v6757_v47 = vld [vmem:[%s11047_s0 + $0x360] ss:$16 sps:$4 sm:$0xff]  }
 0x3fe   :  { %v3752_v51 = vpop.f32.mrf.mxu0 }
 0x3ff   :  { %v4265_v52 = vpop.f32.mrf.mxu1  ;;  %5576 = vst [vmem:[%s11049_s3 + $0xec0] sm:$0xff] %v4262_v49  ;;  %v4264_v53 = vadd.f32 %v4263_v48, %v3751_v50  ;;  %v3753_v54 = vadd.f32 %v3752_v51, %v8994_v63  ;;  %v6745_v63 = vld [vmem:[%s11047_s0 + $0x300] ss:$16 sps:$4 sm:$0xff]   ;;  %v6758_v49 = vld [vmem:[%s11047_s0 + $0x368] ss:$16 sps:$4 sm:$0xff]  }
 0x400   :  { %v3754_v56 = vpop.f32.mrf.mxu0  ;;  %v6759_v51 = vld [vmem:[%s11047_s0 + $0x384] ss:$16 sps:$4 sm:$0xff]  }
 0x401   :  { %v4267_v57 = vpop.f32.mrf.mxu1  ;;  %5577 = vst [vmem:[%s11049_s3 + $0xec8] sm:$0xff] %v4264_v53  ;;  %v4266_v58 = vadd.f32 %v4265_v52, %v3753_v54  ;;  %v3755_v59 = vadd.f32 %v3754_v56, %v9003_v29  ;;  %v6747_v29 = vld [vmem:[%s11047_s0 + $0x324] ss:$16 sps:$4 sm:$0xff]   ;;  %v6760_v52 = vld [vmem:[%s11047_s0 + $0x38c] ss:$16 sps:$4 sm:$0xff]  }
 0x402   :  { %v4304_v60 = vpop.f32.mrf.mxu0  ;;  %4495 = vmatmul.mubr.bf16.gmra.mxu0 %v6745_v63 }
 0x403   :  { %v4721_v61 = vpop.f32.mrf.mxu1  ;;  %4912 = vmatmul.mubr.bf16.gmra.mxu1 %v6746_v62  ;;  %5581 = vst [vmem:[%s11049_s3 + $0xee8] sm:$0xff] %v4266_v58  ;;  %v4268_v0 = vadd.f32 %v4267_v57, %v3755_v59  ;;  %v4305_v1 = vadd.f32 %v4304_v60, %v10368_v55  ;;  %4502 = vmatprep.mubr.bf16.mxu0 %v6747_v29  ;;  %v6761_v62 = vld [vmem:[%s11047_s0 + $0x380] ss:$16 sps:$4 sm:$0xff]  }
 0x404   :  { %4919 = vmatprep.mubr.bf16.mxu1 %v6748_v2  ;;  %v4306_v3 = vpop.f32.mrf.mxu0  ;;  %v6763_v2 = vld [vmem:[%s11047_s0 + $0x3a4] ss:$16 sps:$4 sm:$0xff]  }
 0x405   :  { %v4723_v4 = vpop.f32.mrf.mxu1  ;;  %5582 = vst [vmem:[%s11049_s3 + $0xef0] sm:$0xff] %v4268_v0  ;;  %v4722_v5 = vadd.f32 %v4721_v61, %v4305_v1  ;;  %v6762_v1 = vld [vmem:[%s11047_s0 + $0x388] ss:$16 sps:$4 sm:$0xff]   ;;  %v6764_v3 = vld [vmem:[%s11047_s0 + $0x3ac] ss:$16 sps:$4 sm:$0xff]  }
 0x406   :  { %v4307_v6 = vpop.f32.mrf.mxu0 }
 0x407   :  { %v4724_v7 = vpop.f32.mrf.mxu1  ;;  %5108 = vst [vmem:[%s11049_s3 + $0x20] sm:$0xff] %v4722_v5  ;;  %v4308_v8 = vadd.f32 %v4307_v6, %v10368_v55 }
 0x408   :  { %v4309_v9 = vpop.f32.mrf.mxu0 }
 0x409   :  { %v4726_v34 = vpop.f32.mrf.mxu1  ;;  %v4725_v10 = vadd.f32 %v4724_v7, %v4308_v8 }
 0x40a   :  { %v4312_v11 = vpop.f32.mrf.mxu0  ;;  %4503 = vmatmul.mubr.bf16.gmra.mxu0 %v6749_v12 }
 0x40b   :  { %v4729_v13 = vpop.f32.mrf.mxu1  ;;  %4920 = vmatmul.mubr.bf16.gmra.mxu1 %v6750_v14  ;;  %5113 = vst [vmem:[%s11049_s3 + $0x48] sm:$0xff] %v4725_v10  ;;  %v4313_v15 = vadd.f32 %v4312_v11, %v10368_v55  ;;  %4510 = vmatprep.mubr.bf16.mxu0 %v6751_v16 }
 0x40c   :  { %4927 = vmatprep.mubr.bf16.mxu1 %v6752_v17  ;;  %v4314_v18 = vpop.f32.mrf.mxu0  ;;  %v6767_v17 = vld [vmem:[%s11047_s0 + $0x3c4] ss:$16 sps:$4 sm:$0xff]  }
 0x40d   :  { %v4731_v19 = vpop.f32.mrf.mxu1  ;;  %v4730_v20 = vadd.f32 %v4729_v13, %v4313_v15  ;;  %v6765_v13 = vld [vmem:[%s11047_s0 + $0x3a0] ss:$16 sps:$4 sm:$0xff]   ;;  %v6766_v15 = vld [vmem:[%s11047_s0 + $0x3a8] ss:$16 sps:$4 sm:$0xff]   ;;  %v6768_v18 = vld [vmem:[%s11047_s0 + $0x3cc] ss:$16 sps:$4 sm:$0xff]  }
 0x40e   :  { %v4315_v21 = vpop.f32.mrf.mxu0 }
 0x40f   :  { %v4732_v22 = vpop.f32.mrf.mxu1  ;;  %5118 = vst [vmem:[%s11049_s3 + $0x70] sm:$0xff] %v4730_v20  ;;  %v4316_v24 = vadd.f32 %v4315_v21, %v10368_v55 }
 0x410   :  { %v4317_v25 = vpop.f32.mrf.mxu0 }
 0x411   :  { %v4734_v26 = vpop.f32.mrf.mxu1  ;;  %v4733_v27 = vadd.f32 %v4732_v22, %v4316_v24 }
 0x412   :  { %v4320_v28 = vpop.f32.mrf.mxu0  ;;  %4511 = vmatmul.mubr.bf16.gmra.mxu0 %v6753_v39 }
 0x413   :  { %v4737_v30 = vpop.f32.mrf.mxu1  ;;  %4928 = vmatmul.mubr.bf16.gmra.mxu1 %v6754_v31  ;;  %5123 = vst [vmem:[%s11049_s3 + $0x98] sm:$0xff] %v4733_v27  ;;  %v4321_v32 = vadd.f32 %v4320_v28, %v10368_v55  ;;  %4518 = vmatprep.mubr.bf16.mxu0 %v6755_v33 }
 0x414   :  { %4935 = vmatprep.mubr.bf16.mxu1 %v6756_v35  ;;  %v4322_v36 = vpop.f32.mrf.mxu0  ;;  %v6771_v35 = vld [vmem:[%s11047_s0 + $0x3e4] ss:$16 sps:$4 sm:$0xff]  }
 0x415   :  { %v4739_v37 = vpop.f32.mrf.mxu1  ;;  %v4738_v38 = vadd.f32 %v4737_v30, %v4321_v32  ;;  %v6769_v30 = vld [vmem:[%s11047_s0 + $0x3c0] ss:$16 sps:$4 sm:$0xff]   ;;  %v6770_v32 = vld [vmem:[%s11047_s0 + $0x3c8] ss:$16 sps:$4 sm:$0xff]   ;;  %v6772_v36 = vld [vmem:[%s11047_s0 + $0x3ec] ss:$16 sps:$4 sm:$0xff]  }
 0x416   :  { %v4323_v40 = vpop.f32.mrf.mxu0 }
 0x417   :  { %v4740_v41 = vpop.f32.mrf.mxu1  ;;  %5128 = vst [vmem:[%s11049_s3 + $0xc0] sm:$0xff] %v4738_v38  ;;  %v4324_v42 = vadd.f32 %v4323_v40, %v10368_v55 }
 0x418   :  { %v4325_v43 = vpop.f32.mrf.mxu0 }
 0x419   :  { %v4742_v44 = vpop.f32.mrf.mxu1  ;;  %v4741_v45 = vadd.f32 %v4740_v41, %v4324_v42 }
 0x41a   :  { %v4328_v46 = vpop.f32.mrf.mxu0  ;;  %4519 = vmatmul.mubr.bf16.gmra.mxu0 %v6757_v47 }
 0x41b   :  { %v4745_v48 = vpop.f32.mrf.mxu1  ;;  %4936 = vmatmul.mubr.bf16.gmra.mxu1 %v6758_v49  ;;  %5133 = vst [vmem:[%s11049_s3 + $0xe8] sm:$0xff] %v4741_v45  ;;  %v4329_v50 = vadd.f32 %v4328_v46, %v10368_v55  ;;  %4526 = vmatprep.mubr.bf16.mxu0 %v6759_v51 }
 0x41c   :  { %4943 = vmatprep.mubr.bf16.mxu1 %v6760_v52  ;;  %v4330_v53 = vpop.f32.mrf.mxu0  ;;  %v6775_v52 = vld [vmem:[%s11047_s0 + $0x404] ss:$16 sps:$4 sm:$0xff]  }
 0x41d   :  { %v4747_v54 = vpop.f32.mrf.mxu1  ;;  %v4746_v23 = vadd.f32 %v4745_v48, %v4329_v50  ;;  %v6773_v48 = vld [vmem:[%s11047_s0 + $0x3e0] ss:$16 sps:$4 sm:$0xff]   ;;  %v6774_v50 = vld [vmem:[%s11047_s0 + $0x3e8] ss:$16 sps:$4 sm:$0xff]   ;;  %v6776_v53 = vld [vmem:[%s11047_s0 + $0x40c] ss:$16 sps:$4 sm:$0xff]  }
 0x41e   :  { %v4331_v56 = vpop.f32.mrf.mxu0 }
 0x41f   :  { %v4748_v57 = vpop.f32.mrf.mxu1  ;;  %5138 = vst [vmem:[%s11049_s3 + $0x110] sm:$0xff] %v4746_v23  ;;  %v4332_v58 = vadd.f32 %v4331_v56, %v10368_v55 }
 0x420   :  { %v4333_v59 = vpop.f32.mrf.mxu0 }
 0x421   :  { %v4750_v60 = vpop.f32.mrf.mxu1  ;;  %v4749_v63 = vadd.f32 %v4748_v57, %v4332_v58 }
 0x422   :  { %v4336_v61 = vpop.f32.mrf.mxu0  ;;  %4527 = vmatmul.mubr.bf16.gmra.mxu0 %v6761_v62 }
 0x423   :  { %v4753_v0 = vpop.f32.mrf.mxu1  ;;  %4944 = vmatmul.mubr.bf16.gmra.mxu1 %v6762_v1  ;;  %5143 = vst [vmem:[%s11049_s3 + $0x138] sm:$0xff] %v4749_v63  ;;  %v4337_v29 = vadd.f32 %v4336_v61, %v10368_v55  ;;  %4534 = vmatprep.mubr.bf16.mxu0 %v6763_v2 }
 0x424   :  { %4951 = vmatprep.mubr.bf16.mxu1 %v6764_v3  ;;  %v4338_v4 = vpop.f32.mrf.mxu0  ;;  %v6779_v3 = vld [vmem:[%s11047_s0 + $0x424] ss:$16 sps:$4 sm:$0xff]  }
 0x425   :  { %v4755_v5 = vpop.f32.mrf.mxu1  ;;  %v4754_v6 = vadd.f32 %v4753_v0, %v4337_v29  ;;  %v6777_v0 = vld [vmem:[%s11047_s0 + $0x400] ss:$16 sps:$4 sm:$0xff]   ;;  %v6778_v29 = vld [vmem:[%s11047_s0 + $0x408] ss:$16 sps:$4 sm:$0xff]   ;;  %v6780_v4 = vld [vmem:[%s11047_s0 + $0x42c] ss:$16 sps:$4 sm:$0xff]  }
 0x426   :  { %v4339_v7 = vpop.f32.mrf.mxu0 }
 0x427   :  { %v4756_v8 = vpop.f32.mrf.mxu1  ;;  %5148 = vst [vmem:[%s11049_s3 + $0x160] sm:$0xff] %v4754_v6  ;;  %v4340_v9 = vadd.f32 %v4339_v7, %v10368_v55 }
 0x428   :  { %v4341_v34 = vpop.f32.mrf.mxu0 }
 0x429   :  { %v4758_v10 = vpop.f32.mrf.mxu1  ;;  %v4757_v11 = vadd.f32 %v4756_v8, %v4340_v9 }
 0x42a   :  { %v4344_v12 = vpop.f32.mrf.mxu0  ;;  %4535 = vmatmul.mubr.bf16.gmra.mxu0 %v6765_v13 }
 0x42b   :  { %v4761_v14 = vpop.f32.mrf.mxu1  ;;  %4952 = vmatmul.mubr.bf16.gmra.mxu1 %v6766_v15  ;;  %5153 = vst [vmem:[%s11049_s3 + $0x188] sm:$0xff] %v4757_v11  ;;  %v4345_v16 = vadd.f32 %v4344_v12, %v10368_v55  ;;  %4542 = vmatprep.mubr.bf16.mxu0 %v6767_v17 }
 0x42c   :  { %4959 = vmatprep.mubr.bf16.mxu1 %v6768_v18  ;;  %v4346_v19 = vpop.f32.mrf.mxu0  ;;  %v6783_v18 = vld [vmem:[%s11047_s0 + $0x444] ss:$16 sps:$4 sm:$0xff]  }
 0x42d   :  { %v4763_v20 = vpop.f32.mrf.mxu1  ;;  %v4762_v21 = vadd.f32 %v4761_v14, %v4345_v16  ;;  %v6781_v14 = vld [vmem:[%s11047_s0 + $0x420] ss:$16 sps:$4 sm:$0xff]   ;;  %v6782_v16 = vld [vmem:[%s11047_s0 + $0x428] ss:$16 sps:$4 sm:$0xff]   ;;  %v6784_v19 = vld [vmem:[%s11047_s0 + $0x44c] ss:$16 sps:$4 sm:$0xff]  }
 0x42e   :  { %v4347_v22 = vpop.f32.mrf.mxu0 }
 0x42f   :  { %v4764_v24 = vpop.f32.mrf.mxu1  ;;  %5158 = vst [vmem:[%s11049_s3 + $0x1b0] sm:$0xff] %v4762_v21  ;;  %v4348_v25 = vadd.f32 %v4347_v22, %v10368_v55 }
 0x430   :  { %v4349_v26 = vpop.f32.mrf.mxu0 }
 0x431   :  { %v4766_v27 = vpop.f32.mrf.mxu1  ;;  %v4765_v28 = vadd.f32 %v4764_v24, %v4348_v25 }
 0x432   :  { %v4352_v39 = vpop.f32.mrf.mxu0  ;;  %4543 = vmatmul.mubr.bf16.gmra.mxu0 %v6769_v30 }
 0x433   :  { %v4769_v31 = vpop.f32.mrf.mxu1  ;;  %4960 = vmatmul.mubr.bf16.gmra.mxu1 %v6770_v32  ;;  %5163 = vst [vmem:[%s11049_s3 + $0x1d8] sm:$0xff] %v4765_v28  ;;  %v4353_v33 = vadd.f32 %v4352_v39, %v10368_v55  ;;  %4550 = vmatprep.mubr.bf16.mxu0 %v6771_v35 }
 0x434   :  { %4967 = vmatprep.mubr.bf16.mxu1 %v6772_v36  ;;  %v4354_v37 = vpop.f32.mrf.mxu0  ;;  %v6787_v36 = vld [vmem:[%s11047_s0 + $0x464] ss:$16 sps:$4 sm:$0xff]  }
 0x435   :  { %v4771_v38 = vpop.f32.mrf.mxu1  ;;  %v4770_v40 = vadd.f32 %v4769_v31, %v4353_v33  ;;  %v6785_v31 = vld [vmem:[%s11047_s0 + $0x440] ss:$16 sps:$4 sm:$0xff]   ;;  %v6786_v33 = vld [vmem:[%s11047_s0 + $0x448] ss:$16 sps:$4 sm:$0xff]   ;;  %v6788_v37 = vld [vmem:[%s11047_s0 + $0x46c] ss:$16 sps:$4 sm:$0xff]  }
 0x436   :  { %v4355_v41 = vpop.f32.mrf.mxu0 }
 0x437   :  { %v4772_v42 = vpop.f32.mrf.mxu1  ;;  %5168 = vst [vmem:[%s11049_s3 + $0x200] sm:$0xff] %v4770_v40  ;;  %v4356_v43 = vadd.f32 %v4355_v41, %v10368_v55 }
 0x438   :  { %v4357_v44 = vpop.f32.mrf.mxu0 }
 0x439   :  { %v4774_v45 = vpop.f32.mrf.mxu1  ;;  %v4773_v46 = vadd.f32 %v4772_v42, %v4356_v43 }
 0x43a   :  { %v4360_v47 = vpop.f32.mrf.mxu0  ;;  %4551 = vmatmul.mubr.bf16.gmra.mxu0 %v6773_v48 }
 0x43b   :  { %v4777_v49 = vpop.f32.mrf.mxu1  ;;  %4968 = vmatmul.mubr.bf16.gmra.mxu1 %v6774_v50  ;;  %5173 = vst [vmem:[%s11049_s3 + $0x228] sm:$0xff] %v4773_v46  ;;  %v4361_v51 = vadd.f32 %v4360_v47, %v10368_v55  ;;  %4558 = vmatprep.mubr.bf16.mxu0 %v6775_v52 }
 0x43c   :  { %4975 = vmatprep.mubr.bf16.mxu1 %v6776_v53  ;;  %v4362_v54 = vpop.f32.mrf.mxu0  ;;  %v6791_v53 = vld [vmem:[%s11047_s0 + $0x484] ss:$16 sps:$4 sm:$0xff]  }
 0x43d   :  { %v4779_v23 = vpop.f32.mrf.mxu1  ;;  %v4778_v56 = vadd.f32 %v4777_v49, %v4361_v51  ;;  %v6789_v49 = vld [vmem:[%s11047_s0 + $0x460] ss:$16 sps:$4 sm:$0xff]   ;;  %v6790_v51 = vld [vmem:[%s11047_s0 + $0x468] ss:$16 sps:$4 sm:$0xff]   ;;  %v6792_v54 = vld [vmem:[%s11047_s0 + $0x48c] ss:$16 sps:$4 sm:$0xff]  }
 0x43e   :  { %v4363_v57 = vpop.f32.mrf.mxu0 }
 0x43f   :  { %v4780_v58 = vpop.f32.mrf.mxu1  ;;  %5178 = vst [vmem:[%s11049_s3 + $0x250] sm:$0xff] %v4778_v56  ;;  %v4364_v59 = vadd.f32 %v4363_v57, %v10368_v55 }
 0x440   :  { %v4365_v60 = vpop.f32.mrf.mxu0 }
 0x441   :  { %v4782_v63 = vpop.f32.mrf.mxu1  ;;  %v4781_v61 = vadd.f32 %v4780_v58, %v4364_v59 }
 0x442   :  { %v4368_v62 = vpop.f32.mrf.mxu0  ;;  %4559 = vmatmul.mubr.bf16.gmra.mxu0 %v6777_v0 }
 0x443   :  { %v4785_v1 = vpop.f32.mrf.mxu1  ;;  %4976 = vmatmul.mubr.bf16.gmra.mxu1 %v6778_v29  ;;  %5183 = vst [vmem:[%s11049_s3 + $0x278] sm:$0xff] %v4781_v61  ;;  %v4369_v2 = vadd.f32 %v4368_v62, %v10368_v55  ;;  %4566 = vmatprep.mubr.bf16.mxu0 %v6779_v3 }
 0x444   :  { %4983 = vmatprep.mubr.bf16.mxu1 %v6780_v4  ;;  %v4370_v5 = vpop.f32.mrf.mxu0  ;;  %v6795_v4 = vld [vmem:[%s11047_s0 + $0x4a4] ss:$16 sps:$4 sm:$0xff]  }
 0x445   :  { %v4787_v6 = vpop.f32.mrf.mxu1  ;;  %v4786_v7 = vadd.f32 %v4785_v1, %v4369_v2  ;;  %v6793_v1 = vld [vmem:[%s11047_s0 + $0x480] ss:$16 sps:$4 sm:$0xff]   ;;  %v6794_v2 = vld [vmem:[%s11047_s0 + $0x488] ss:$16 sps:$4 sm:$0xff]   ;;  %v6796_v5 = vld [vmem:[%s11047_s0 + $0x4ac] ss:$16 sps:$4 sm:$0xff]  }
 0x446   :  { %v4371_v8 = vpop.f32.mrf.mxu0 }
 0x447   :  { %v4788_v9 = vpop.f32.mrf.mxu1  ;;  %5188 = vst [vmem:[%s11049_s3 + $0x2a0] sm:$0xff] %v4786_v7  ;;  %v4372_v34 = vadd.f32 %v4371_v8, %v10368_v55 }
 0x448   :  { %v4373_v10 = vpop.f32.mrf.mxu0 }
 0x449   :  { %v4790_v11 = vpop.f32.mrf.mxu1  ;;  %v4789_v12 = vadd.f32 %v4788_v9, %v4372_v34 }
 0x44a   :  { %v4376_v13 = vpop.f32.mrf.mxu0  ;;  %4567 = vmatmul.mubr.bf16.gmra.mxu0 %v6781_v14 }
 0x44b   :  { %v4793_v15 = vpop.f32.mrf.mxu1  ;;  %4984 = vmatmul.mubr.bf16.gmra.mxu1 %v6782_v16  ;;  %5193 = vst [vmem:[%s11049_s3 + $0x2c8] sm:$0xff] %v4789_v12  ;;  %v4377_v17 = vadd.f32 %v4376_v13, %v10368_v55  ;;  %4574 = vmatprep.mubr.bf16.mxu0 %v6783_v18 }
 0x44c   :  { %4991 = vmatprep.mubr.bf16.mxu1 %v6784_v19  ;;  %v4378_v20 = vpop.f32.mrf.mxu0  ;;  %v6799_v19 = vld [vmem:[%s11047_s0 + $0x4c4] ss:$16 sps:$4 sm:$0xff]  }
 0x44d   :  { %v4795_v21 = vpop.f32.mrf.mxu1  ;;  %v4794_v22 = vadd.f32 %v4793_v15, %v4377_v17  ;;  %v6797_v15 = vld [vmem:[%s11047_s0 + $0x4a0] ss:$16 sps:$4 sm:$0xff]   ;;  %v6798_v17 = vld [vmem:[%s11047_s0 + $0x4a8] ss:$16 sps:$4 sm:$0xff]   ;;  %v6800_v20 = vld [vmem:[%s11047_s0 + $0x4cc] ss:$16 sps:$4 sm:$0xff]  }
 0x44e   :  { %v4379_v24 = vpop.f32.mrf.mxu0 }
 0x44f   :  { %v4796_v25 = vpop.f32.mrf.mxu1  ;;  %5198 = vst [vmem:[%s11049_s3 + $0x2f0] sm:$0xff] %v4794_v22  ;;  %v4380_v26 = vadd.f32 %v4379_v24, %v10368_v55 }
 0x450   :  { %v4381_v27 = vpop.f32.mrf.mxu0 }
 0x451   :  { %v4798_v28 = vpop.f32.mrf.mxu1  ;;  %v4797_v39 = vadd.f32 %v4796_v25, %v4380_v26 }
 0x452   :  { %v4384_v30 = vpop.f32.mrf.mxu0  ;;  %4575 = vmatmul.mubr.bf16.gmra.mxu0 %v6785_v31 }
 0x453   :  { %v4801_v32 = vpop.f32.mrf.mxu1  ;;  %4992 = vmatmul.mubr.bf16.gmra.mxu1 %v6786_v33  ;;  %5203 = vst [vmem:[%s11049_s3 + $0x318] sm:$0xff] %v4797_v39  ;;  %v4385_v35 = vadd.f32 %v4384_v30, %v10368_v55  ;;  %4582 = vmatprep.mubr.bf16.mxu0 %v6787_v36 }
 0x454   :  { %4999 = vmatprep.mubr.bf16.mxu1 %v6788_v37  ;;  %v4386_v38 = vpop.f32.mrf.mxu0  ;;  %v6803_v37 = vld [vmem:[%s11047_s0 + $0x4e4] ss:$16 sps:$4 sm:$0xff]  }
 0x455   :  { %v4803_v40 = vpop.f32.mrf.mxu1  ;;  %v4802_v41 = vadd.f32 %v4801_v32, %v4385_v35  ;;  %v6801_v32 = vld [vmem:[%s11047_s0 + $0x4c0] ss:$16 sps:$4 sm:$0xff]   ;;  %v6802_v35 = vld [vmem:[%s11047_s0 + $0x4c8] ss:$16 sps:$4 sm:$0xff]   ;;  %v6804_v38 = vld [vmem:[%s11047_s0 + $0x4ec] ss:$16 sps:$4 sm:$0xff]  }
 0x456   :  { %v4387_v42 = vpop.f32.mrf.mxu0 }
 0x457   :  { %v4804_v43 = vpop.f32.mrf.mxu1  ;;  %5208 = vst [vmem:[%s11049_s3 + $0x340] sm:$0xff] %v4802_v41  ;;  %v4388_v44 = vadd.f32 %v4387_v42, %v10368_v55 }
 0x458   :  { %v4389_v45 = vpop.f32.mrf.mxu0 }
 0x459   :  { %v4806_v46 = vpop.f32.mrf.mxu1  ;;  %v4805_v47 = vadd.f32 %v4804_v43, %v4388_v44 }
 0x45a   :  { %v4392_v48 = vpop.f32.mrf.mxu0  ;;  %4583 = vmatmul.mubr.bf16.gmra.mxu0 %v6789_v49 }
 0x45b   :  { %v4809_v50 = vpop.f32.mrf.mxu1  ;;  %5000 = vmatmul.mubr.bf16.gmra.mxu1 %v6790_v51  ;;  %5213 = vst [vmem:[%s11049_s3 + $0x368] sm:$0xff] %v4805_v47  ;;  %v4393_v52 = vadd.f32 %v4392_v48, %v10368_v55  ;;  %4590 = vmatprep.mubr.bf16.mxu0 %v6791_v53 }
 0x45c   :  { %5007 = vmatprep.mubr.bf16.mxu1 %v6792_v54  ;;  %v4394_v23 = vpop.f32.mrf.mxu0  ;;  %v6807_v54 = vld [vmem:[%s11047_s0 + $0x504] ss:$16 sps:$4 sm:$0xff]  }
 0x45d   :  { %v4811_v56 = vpop.f32.mrf.mxu1  ;;  %v4810_v57 = vadd.f32 %v4809_v50, %v4393_v52  ;;  %v6805_v50 = vld [vmem:[%s11047_s0 + $0x4e0] ss:$16 sps:$4 sm:$0xff]   ;;  %v6806_v52 = vld [vmem:[%s11047_s0 + $0x4e8] ss:$16 sps:$4 sm:$0xff]   ;;  %v6808_v23 = vld [vmem:[%s11047_s0 + $0x50c] ss:$16 sps:$4 sm:$0xff]  }
 0x45e   :  { %v4395_v58 = vpop.f32.mrf.mxu0 }
 0x45f   :  { %v4812_v59 = vpop.f32.mrf.mxu1  ;;  %5218 = vst [vmem:[%s11049_s3 + $0x390] sm:$0xff] %v4810_v57  ;;  %v4396_v60 = vadd.f32 %v4395_v58, %v10368_v55 }
 0x460   :  { %v4397_v63 = vpop.f32.mrf.mxu0 }
 0x461   :  { %v4814_v61 = vpop.f32.mrf.mxu1  ;;  %v4813_v62 = vadd.f32 %v4812_v59, %v4396_v60 }
 0x462   :  { %v4400_v0 = vpop.f32.mrf.mxu0  ;;  %4591 = vmatmul.mubr.bf16.gmra.mxu0 %v6793_v1 }
 0x463   :  { %v4817_v29 = vpop.f32.mrf.mxu1  ;;  %5008 = vmatmul.mubr.bf16.gmra.mxu1 %v6794_v2  ;;  %5223 = vst [vmem:[%s11049_s3 + $0x3b8] sm:$0xff] %v4813_v62  ;;  %v4401_v3 = vadd.f32 %v4400_v0, %v10368_v55  ;;  %4598 = vmatprep.mubr.bf16.mxu0 %v6795_v4 }
 0x464   :  { %5015 = vmatprep.mubr.bf16.mxu1 %v6796_v5  ;;  %v4402_v6 = vpop.f32.mrf.mxu0  ;;  %v6811_v5 = vld [vmem:[%s11047_s0 + $0x524] ss:$16 sps:$4 sm:$0xff]  }
 0x465   :  { %v4819_v7 = vpop.f32.mrf.mxu1  ;;  %v4818_v8 = vadd.f32 %v4817_v29, %v4401_v3  ;;  %v6809_v29 = vld [vmem:[%s11047_s0 + $0x500] ss:$16 sps:$4 sm:$0xff]   ;;  %v6810_v3 = vld [vmem:[%s11047_s0 + $0x508] ss:$16 sps:$4 sm:$0xff]   ;;  %v6812_v6 = vld [vmem:[%s11047_s0 + $0x52c] ss:$16 sps:$4 sm:$0xff]  }
 0x466   :  { %v4403_v9 = vpop.f32.mrf.mxu0 }
 0x467   :  { %v4820_v34 = vpop.f32.mrf.mxu1  ;;  %5228 = vst [vmem:[%s11049_s3 + $0x3e0] sm:$0xff] %v4818_v8  ;;  %v4404_v10 = vadd.f32 %v4403_v9, %v10368_v55 }
 0x468   :  { %v4405_v11 = vpop.f32.mrf.mxu0 }
 0x469   :  { %v4822_v12 = vpop.f32.mrf.mxu1  ;;  %v4821_v13 = vadd.f32 %v4820_v34, %v4404_v10 }
 0x46a   :  { %v4408_v14 = vpop.f32.mrf.mxu0  ;;  %4599 = vmatmul.mubr.bf16.gmra.mxu0 %v6797_v15 }
 0x46b   :  { %v4825_v16 = vpop.f32.mrf.mxu1  ;;  %5016 = vmatmul.mubr.bf16.gmra.mxu1 %v6798_v17  ;;  %5233 = vst [vmem:[%s11049_s3 + $0x408] sm:$0xff] %v4821_v13  ;;  %v4409_v18 = vadd.f32 %v4408_v14, %v10368_v55  ;;  %4606 = vmatprep.mubr.bf16.mxu0 %v6799_v19 }
 0x46c   :  { %5023 = vmatprep.mubr.bf16.mxu1 %v6800_v20  ;;  %v4410_v21 = vpop.f32.mrf.mxu0  ;;  %v6815_v20 = vld [vmem:[%s11047_s0 + $0x544] ss:$16 sps:$4 sm:$0xff]  }
 0x46d   :  { %v4827_v22 = vpop.f32.mrf.mxu1  ;;  %v4826_v24 = vadd.f32 %v4825_v16, %v4409_v18  ;;  %v6813_v16 = vld [vmem:[%s11047_s0 + $0x520] ss:$16 sps:$4 sm:$0xff]   ;;  %v6814_v18 = vld [vmem:[%s11047_s0 + $0x528] ss:$16 sps:$4 sm:$0xff]   ;;  %v6816_v21 = vld [vmem:[%s11047_s0 + $0x54c] ss:$16 sps:$4 sm:$0xff]  }
 0x46e   :  { %v4411_v25 = vpop.f32.mrf.mxu0 }
 0x46f   :  { %v4828_v26 = vpop.f32.mrf.mxu1  ;;  %5238 = vst [vmem:[%s11049_s3 + $0x430] sm:$0xff] %v4826_v24  ;;  %v4412_v27 = vadd.f32 %v4411_v25, %v10368_v55 }
 0x470   :  { %v4413_v28 = vpop.f32.mrf.mxu0 }
 0x471   :  { %v4830_v39 = vpop.f32.mrf.mxu1  ;;  %v4829_v30 = vadd.f32 %v4828_v26, %v4412_v27 }
 0x472   :  { %v4416_v31 = vpop.f32.mrf.mxu0  ;;  %4607 = vmatmul.mubr.bf16.gmra.mxu0 %v6801_v32 }
 0x473   :  { %v4833_v33 = vpop.f32.mrf.mxu1  ;;  %5024 = vmatmul.mubr.bf16.gmra.mxu1 %v6802_v35  ;;  %5243 = vst [vmem:[%s11049_s3 + $0x458] sm:$0xff] %v4829_v30  ;;  %v4417_v36 = vadd.f32 %v4416_v31, %v10368_v55  ;;  %4614 = vmatprep.mubr.bf16.mxu0 %v6803_v37 }
 0x474   :  { %5031 = vmatprep.mubr.bf16.mxu1 %v6804_v38  ;;  %v4418_v40 = vpop.f32.mrf.mxu0  ;;  %v6819_v38 = vld [vmem:[%s11047_s0 + $0x564] ss:$16 sps:$4 sm:$0xff]  }
 0x475   :  { %v4835_v41 = vpop.f32.mrf.mxu1  ;;  %v4834_v42 = vadd.f32 %v4833_v33, %v4417_v36  ;;  %v6817_v33 = vld [vmem:[%s11047_s0 + $0x540] ss:$16 sps:$4 sm:$0xff]   ;;  %v6818_v36 = vld [vmem:[%s11047_s0 + $0x548] ss:$16 sps:$4 sm:$0xff]   ;;  %v6820_v40 = vld [vmem:[%s11047_s0 + $0x56c] ss:$16 sps:$4 sm:$0xff]  }
 0x476   :  { %v4419_v43 = vpop.f32.mrf.mxu0 }
 0x477   :  { %v4836_v44 = vpop.f32.mrf.mxu1  ;;  %5248 = vst [vmem:[%s11049_s3 + $0x480] sm:$0xff] %v4834_v42  ;;  %v4420_v45 = vadd.f32 %v4419_v43, %v10368_v55 }
 0x478   :  { %v4421_v46 = vpop.f32.mrf.mxu0 }
 0x479   :  { %v4838_v47 = vpop.f32.mrf.mxu1  ;;  %v4837_v48 = vadd.f32 %v4836_v44, %v4420_v45 }
 0x47a   :  { %v4424_v49 = vpop.f32.mrf.mxu0  ;;  %4615 = vmatmul.mubr.bf16.gmra.mxu0 %v6805_v50 }
 0x47b   :  { %v4841_v51 = vpop.f32.mrf.mxu1  ;;  %5032 = vmatmul.mubr.bf16.gmra.mxu1 %v6806_v52  ;;  %5253 = vst [vmem:[%s11049_s3 + $0x4a8] sm:$0xff] %v4837_v48  ;;  %v4425_v53 = vadd.f32 %v4424_v49, %v10368_v55  ;;  %4622 = vmatprep.mubr.bf16.mxu0 %v6807_v54 }
 0x47c   :  { %5039 = vmatprep.mubr.bf16.mxu1 %v6808_v23  ;;  %v4426_v56 = vpop.f32.mrf.mxu0  ;;  %v6823_v23 = vld [vmem:[%s11047_s0 + $0x584] ss:$16 sps:$4 sm:$0xff]  }
 0x47d   :  { %v4843_v57 = vpop.f32.mrf.mxu1  ;;  %v4842_v58 = vadd.f32 %v4841_v51, %v4425_v53  ;;  %v6821_v51 = vld [vmem:[%s11047_s0 + $0x560] ss:$16 sps:$4 sm:$0xff]   ;;  %v6822_v53 = vld [vmem:[%s11047_s0 + $0x568] ss:$16 sps:$4 sm:$0xff]   ;;  %v6824_v56 = vld [vmem:[%s11047_s0 + $0x58c] ss:$16 sps:$4 sm:$0xff]  }
 0x47e   :  { %v4427_v59 = vpop.f32.mrf.mxu0 }
 0x47f   :  { %v4844_v60 = vpop.f32.mrf.mxu1  ;;  %5258 = vst [vmem:[%s11049_s3 + $0x4d0] sm:$0xff] %v4842_v58  ;;  %v4428_v63 = vadd.f32 %v4427_v59, %v10368_v55 }
 0x480   :  { %v4429_v61 = vpop.f32.mrf.mxu0 }
 0x481   :  { %v4846_v62 = vpop.f32.mrf.mxu1  ;;  %v4845_v0 = vadd.f32 %v4844_v60, %v4428_v63 }
 0x482   :  { %v4432_v1 = vpop.f32.mrf.mxu0  ;;  %4623 = vmatmul.mubr.bf16.gmra.mxu0 %v6809_v29 }
 0x483   :  { %v4849_v2 = vpop.f32.mrf.mxu1  ;;  %5040 = vmatmul.mubr.bf16.gmra.mxu1 %v6810_v3  ;;  %5263 = vst [vmem:[%s11049_s3 + $0x4f8] sm:$0xff] %v4845_v0  ;;  %v4433_v4 = vadd.f32 %v4432_v1, %v10368_v55  ;;  %4630 = vmatprep.mubr.bf16.mxu0 %v6811_v5 }
 0x484   :  { %5047 = vmatprep.mubr.bf16.mxu1 %v6812_v6  ;;  %v4434_v7 = vpop.f32.mrf.mxu0  ;;  %v6827_v6 = vld [vmem:[%s11047_s0 + $0x5a4] ss:$16 sps:$4 sm:$0xff]  }
 0x485   :  { %v4851_v8 = vpop.f32.mrf.mxu1  ;;  %v4850_v9 = vadd.f32 %v4849_v2, %v4433_v4  ;;  %v6825_v2 = vld [vmem:[%s11047_s0 + $0x580] ss:$16 sps:$4 sm:$0xff]   ;;  %v6826_v4 = vld [vmem:[%s11047_s0 + $0x588] ss:$16 sps:$4 sm:$0xff]   ;;  %v6828_v7 = vld [vmem:[%s11047_s0 + $0x5ac] ss:$16 sps:$4 sm:$0xff]  }
 0x486   :  { %v4435_v34 = vpop.f32.mrf.mxu0 }
 0x487   :  { %v4852_v10 = vpop.f32.mrf.mxu1  ;;  %5268 = vst [vmem:[%s11049_s3 + $0x520] sm:$0xff] %v4850_v9  ;;  %v4436_v11 = vadd.f32 %v4435_v34, %v10368_v55 }
 0x488   :  { %v4437_v12 = vpop.f32.mrf.mxu0 }
 0x489   :  { %v4854_v13 = vpop.f32.mrf.mxu1  ;;  %v4853_v14 = vadd.f32 %v4852_v10, %v4436_v11 }
 0x48a   :  { %v4440_v15 = vpop.f32.mrf.mxu0  ;;  %4631 = vmatmul.mubr.bf16.gmra.mxu0 %v6813_v16 }
 0x48b   :  { %v4857_v17 = vpop.f32.mrf.mxu1  ;;  %5048 = vmatmul.mubr.bf16.gmra.mxu1 %v6814_v18  ;;  %5273 = vst [vmem:[%s11049_s3 + $0x548] sm:$0xff] %v4853_v14  ;;  %v4441_v19 = vadd.f32 %v4440_v15, %v10368_v55  ;;  %4638 = vmatprep.mubr.bf16.mxu0 %v6815_v20 }
 0x48c   :  { %5055 = vmatprep.mubr.bf16.mxu1 %v6816_v21  ;;  %v4442_v22 = vpop.f32.mrf.mxu0  ;;  %v6831_v21 = vld [vmem:[%s11047_s0 + $0x5c4] ss:$16 sps:$4 sm:$0xff]  }
 0x48d   :  { %v4859_v24 = vpop.f32.mrf.mxu1  ;;  %v4858_v25 = vadd.f32 %v4857_v17, %v4441_v19  ;;  %v6829_v17 = vld [vmem:[%s11047_s0 + $0x5a0] ss:$16 sps:$4 sm:$0xff]   ;;  %v6830_v19 = vld [vmem:[%s11047_s0 + $0x5a8] ss:$16 sps:$4 sm:$0xff]   ;;  %v6832_v22 = vld [vmem:[%s11047_s0 + $0x5cc] ss:$16 sps:$4 sm:$0xff]  }
 0x48e   :  { %v4443_v26 = vpop.f32.mrf.mxu0 }
 0x48f   :  { %v4860_v27 = vpop.f32.mrf.mxu1  ;;  %5278 = vst [vmem:[%s11049_s3 + $0x570] sm:$0xff] %v4858_v25  ;;  %v4444_v28 = vadd.f32 %v4443_v26, %v10368_v55 }
 0x490   :  { %v4445_v39 = vpop.f32.mrf.mxu0 }
 0x491   :  { %v4862_v30 = vpop.f32.mrf.mxu1  ;;  %v4861_v31 = vadd.f32 %v4860_v27, %v4444_v28 }
 0x492   :  { %v4448_v32 = vpop.f32.mrf.mxu0  ;;  %4639 = vmatmul.mubr.bf16.gmra.mxu0 %v6817_v33 }
 0x493   :  { %v4865_v35 = vpop.f32.mrf.mxu1  ;;  %5056 = vmatmul.mubr.bf16.gmra.mxu1 %v6818_v36  ;;  %5283 = vst [vmem:[%s11049_s3 + $0x598] sm:$0xff] %v4861_v31  ;;  %v4449_v37 = vadd.f32 %v4448_v32, %v10368_v55  ;;  %4646 = vmatprep.mubr.bf16.mxu0 %v6819_v38 }
 0x494   :  { %5063 = vmatprep.mubr.bf16.mxu1 %v6820_v40  ;;  %v4450_v41 = vpop.f32.mrf.mxu0  ;;  %v6835_v40 = vld [vmem:[%s11047_s0 + $0x5e4] ss:$16 sps:$4 sm:$0xff]  }
 0x495   :  { %v4867_v42 = vpop.f32.mrf.mxu1  ;;  %v4866_v43 = vadd.f32 %v4865_v35, %v4449_v37  ;;  %v6833_v35 = vld [vmem:[%s11047_s0 + $0x5c0] ss:$16 sps:$4 sm:$0xff]   ;;  %v6834_v37 = vld [vmem:[%s11047_s0 + $0x5c8] ss:$16 sps:$4 sm:$0xff]   ;;  %v6836_v41 = vld [vmem:[%s11047_s0 + $0x5ec] ss:$16 sps:$4 sm:$0xff]  }
 0x496   :  { %v4451_v44 = vpop.f32.mrf.mxu0 }
 0x497   :  { %v4868_v45 = vpop.f32.mrf.mxu1  ;;  %5288 = vst [vmem:[%s11049_s3 + $0x5c0] sm:$0xff] %v4866_v43  ;;  %v4452_v46 = vadd.f32 %v4451_v44, %v10368_v55 }
 0x498   :  { %v4453_v47 = vpop.f32.mrf.mxu0 }
 0x499   :  { %v4870_v48 = vpop.f32.mrf.mxu1  ;;  %v4869_v49 = vadd.f32 %v4868_v45, %v4452_v46 }
 0x49a   :  { %v4456_v50 = vpop.f32.mrf.mxu0  ;;  %4647 = vmatmul.mubr.bf16.gmra.mxu0 %v6821_v51 }
 0x49b   :  { %v4873_v52 = vpop.f32.mrf.mxu1  ;;  %5064 = vmatmul.mubr.bf16.gmra.mxu1 %v6822_v53  ;;  %5293 = vst [vmem:[%s11049_s3 + $0x5e8] sm:$0xff] %v4869_v49  ;;  %v4457_v54 = vadd.f32 %v4456_v50, %v10368_v55  ;;  %4654 = vmatprep.mubr.bf16.mxu0 %v6823_v23 }
 0x49c   :  { %5071 = vmatprep.mubr.bf16.mxu1 %v6824_v56  ;;  %v4458_v57 = vpop.f32.mrf.mxu0 }
 0x49d   :  { %v4875_v58 = vpop.f32.mrf.mxu1  ;;  %v4874_v59 = vadd.f32 %v4873_v52, %v4457_v54  ;;  %v6837_v52 = vld [vmem:[%s11047_s0 + $0x5e0] ss:$16 sps:$4 sm:$0xff]   ;;  %v6838_v54 = vld [vmem:[%s11047_s0 + $0x5e8] ss:$16 sps:$4 sm:$0xff]  }
 0x49e   :  { %v4459_v60 = vpop.f32.mrf.mxu0 }
 0x49f   :  { %v4876_v63 = vpop.f32.mrf.mxu1  ;;  %5298 = vst [vmem:[%s11049_s3 + $0x610] sm:$0xff] %v4874_v59  ;;  %v4460_v61 = vadd.f32 %v4459_v60, %v10368_v55 }
 0x4a0   :  { %v4461_v62 = vpop.f32.mrf.mxu0 }
 0x4a1   :  { %v4878_v0 = vpop.f32.mrf.mxu1  ;;  %v4877_v1 = vadd.f32 %v4876_v63, %v4460_v61 }
 0x4a2   :  { %v4464_v29 = vpop.f32.mrf.mxu0  ;;  %4655 = vmatmul.mubr.bf16.gmra.mxu0 %v6825_v2 }
 0x4a3   :  { %v4881_v3 = vpop.f32.mrf.mxu1  ;;  %5072 = vmatmul.mubr.bf16.gmra.mxu1 %v6826_v4  ;;  %5303 = vst [vmem:[%s11049_s3 + $0x638] sm:$0xff] %v4877_v1  ;;  %v4465_v5 = vadd.f32 %v4464_v29, %v10368_v55  ;;  %4662 = vmatprep.mubr.bf16.mxu0 %v6827_v6 }
 0x4a4   :  { %5079 = vmatprep.mubr.bf16.mxu1 %v6828_v7  ;;  %v4466_v8 = vpop.f32.mrf.mxu0 }
 0x4a5   :  { %v4883_v9 = vpop.f32.mrf.mxu1  ;;  %v4882_v34 = vadd.f32 %v4881_v3, %v4465_v5 }
 0x4a6   :  { %v4467_v10 = vpop.f32.mrf.mxu0 }
 0x4a7   :  { %v4884_v11 = vpop.f32.mrf.mxu1  ;;  %5308 = vst [vmem:[%s11049_s3 + $0x660] sm:$0xff] %v4882_v34  ;;  %v4468_v12 = vadd.f32 %v4467_v10, %v10368_v55 }
 0x4a8   :  { %v4469_v13 = vpop.f32.mrf.mxu0 }
 0x4a9   :  { %v4886_v14 = vpop.f32.mrf.mxu1  ;;  %v4885_v15 = vadd.f32 %v4884_v11, %v4468_v12 }
 0x4aa   :  { %v4472_v16 = vpop.f32.mrf.mxu0  ;;  %4663 = vmatmul.mubr.bf16.gmra.mxu0 %v6829_v17 }
 0x4ab   :  { %v4889_v18 = vpop.f32.mrf.mxu1  ;;  %5080 = vmatmul.mubr.bf16.gmra.mxu1 %v6830_v19  ;;  %5313 = vst [vmem:[%s11049_s3 + $0x688] sm:$0xff] %v4885_v15  ;;  %v4473_v20 = vadd.f32 %v4472_v16, %v10368_v55  ;;  %4670 = vmatprep.mubr.bf16.mxu0 %v6831_v21 }
 0x4ac   :  { %5087 = vmatprep.mubr.bf16.mxu1 %v6832_v22  ;;  %v4474_v24 = vpop.f32.mrf.mxu0 }
 0x4ad   :  { %v4891_v25 = vpop.f32.mrf.mxu1  ;;  %v4890_v26 = vadd.f32 %v4889_v18, %v4473_v20 }
 0x4ae   :  { %v4475_v27 = vpop.f32.mrf.mxu0 }
 0x4af   :  { %v4892_v28 = vpop.f32.mrf.mxu1  ;;  %5318 = vst [vmem:[%s11049_s3 + $0x6b0] sm:$0xff] %v4890_v26  ;;  %v4476_v39 = vadd.f32 %v4475_v27, %v10368_v55 }
 0x4b0   :  { %v4477_v30 = vpop.f32.mrf.mxu0 }
 0x4b1   :  { %v4894_v31 = vpop.f32.mrf.mxu1  ;;  %v4893_v32 = vadd.f32 %v4892_v28, %v4476_v39 }
 0x4b2   :  { %v4480_v33 = vpop.f32.mrf.mxu0  ;;  %4671 = vmatmul.mubr.bf16.gmra.mxu0 %v6833_v35 }
 0x4b3   :  { %v4897_v36 = vpop.f32.mrf.mxu1  ;;  %5088 = vmatmul.mubr.bf16.gmra.mxu1 %v6834_v37  ;;  %5323 = vst [vmem:[%s11049_s3 + $0x6d8] sm:$0xff] %v4893_v32  ;;  %v4481_v38 = vadd.f32 %v4480_v33, %v10368_v55  ;;  %4678 = vmatprep.mubr.bf16.mxu0 %v6835_v40 }
 0x4b4   :  { %5095 = vmatprep.mubr.bf16.mxu1 %v6836_v41  ;;  %v4482_v42 = vpop.f32.mrf.mxu0 }
 0x4b5   :  { %v4899_v43 = vpop.f32.mrf.mxu1  ;;  %v4898_v44 = vadd.f32 %v4897_v36, %v4481_v38 }
 0x4b6   :  { %v4483_v45 = vpop.f32.mrf.mxu0 }
 0x4b7   :  { %v4900_v46 = vpop.f32.mrf.mxu1  ;;  %5328 = vst [vmem:[%s11049_s3 + $0x700] sm:$0xff] %v4898_v44  ;;  %v4484_v47 = vadd.f32 %v4483_v45, %v10368_v55 }
 0x4b8   :  { %v4485_v48 = vpop.f32.mrf.mxu0 }
 0x4b9   :  { %v4902_v49 = vpop.f32.mrf.mxu1  ;;  %v4901_v50 = vadd.f32 %v4900_v46, %v4484_v47 }
 0x4ba   :  { %v4488_v51 = vpop.f32.mrf.mxu0  ;;  %4679 = vmatmul.mubr.bf16.gmra.mxu0 %v6837_v52 }
 0x4bb   :  { %v4905_v53 = vpop.f32.mrf.mxu1  ;;  %5096 = vmatmul.mubr.bf16.gmra.mxu1 %v6838_v54  ;;  %5333 = vst [vmem:[%s11049_s3 + $0x728] sm:$0xff] %v4901_v50  ;;  %v4489_v23 = vadd.f32 %v4488_v51, %v10368_v55 }
 0x4bc   :  { %v4490_v56 = vpop.f32.mrf.mxu0 }
 0x4bd   :  { %v4907_v57 = vpop.f32.mrf.mxu1  ;;  %v4906_v58 = vadd.f32 %v4905_v53, %v4489_v23 }
 0x4be   :  { %v4491_v59 = vpop.f32.mrf.mxu0 }
 0x4bf   :  { %v4908_v60 = vpop.f32.mrf.mxu1  ;;  %5338 = vst [vmem:[%s11049_s3 + $0x750] sm:$0xff] %v4906_v58  ;;  %v4492_v63 = vadd.f32 %v4491_v59, %v10368_v55 }
 0x4c0   :  { %v4493_v61 = vpop.f32.mrf.mxu0 }
 0x4c1   :  { %v4910_v62 = vpop.f32.mrf.mxu1  ;;  %v4909_v0 = vadd.f32 %v4908_v60, %v4492_v63 }
 0x4c2   :  { %v4496_v1 = vpop.f32.mrf.mxu0 }
 0x4c3   :  { %v4913_v29 = vpop.f32.mrf.mxu1  ;;  %5343 = vst [vmem:[%s11049_s3 + $0x778] sm:$0xff] %v4909_v0  ;;  %v4497_v2 = vadd.f32 %v4496_v1, %v10368_v55 }
 0x4c4   :  { %v4498_v3 = vpop.f32.mrf.mxu0 }
 0x4c5   :  { %v4915_v4 = vpop.f32.mrf.mxu1  ;;  %v4914_v5 = vadd.f32 %v4913_v29, %v4497_v2 }
 0x4c6   :  { %v4499_v6 = vpop.f32.mrf.mxu0 }
 0x4c7   :  { %v4916_v7 = vpop.f32.mrf.mxu1  ;;  %5348 = vst [vmem:[%s11049_s3 + $0x7a0] sm:$0xff] %v4914_v5  ;;  %v4500_v8 = vadd.f32 %v4499_v6, %v10368_v55 }
 0x4c8   :  { %v4501_v9 = vpop.f32.mrf.mxu0 }
 0x4c9   :  { %v4918_v34 = vpop.f32.mrf.mxu1  ;;  %v4917_v10 = vadd.f32 %v4916_v7, %v4500_v8 }
 0x4ca   :  { %v4504_v11 = vpop.f32.mrf.mxu0 }
 0x4cb   :  { %v4921_v12 = vpop.f32.mrf.mxu1  ;;  %5353 = vst [vmem:[%s11049_s3 + $0x7c8] sm:$0xff] %v4917_v10  ;;  %v4505_v13 = vadd.f32 %v4504_v11, %v10368_v55 }
 0x4cc   :  { %v4506_v14 = vpop.f32.mrf.mxu0 }
 0x4cd   :  { %v4923_v15 = vpop.f32.mrf.mxu1  ;;  %v4922_v16 = vadd.f32 %v4921_v12, %v4505_v13 }
 0x4ce   :  { %v4507_v17 = vpop.f32.mrf.mxu0 }
 0x4cf   :  { %v4924_v18 = vpop.f32.mrf.mxu1  ;;  %5358 = vst [vmem:[%s11049_s3 + $0x7f0] sm:$0xff] %v4922_v16  ;;  %v4508_v19 = vadd.f32 %v4507_v17, %v10368_v55 }
 0x4d0   :  { %v4509_v20 = vpop.f32.mrf.mxu0 }
 0x4d1   :  { %v4926_v21 = vpop.f32.mrf.mxu1  ;;  %v4925_v22 = vadd.f32 %v4924_v18, %v4508_v19 }
 0x4d2   :  { %v4512_v24 = vpop.f32.mrf.mxu0 }
 0x4d3   :  { %v4929_v25 = vpop.f32.mrf.mxu1  ;;  %5363 = vst [vmem:[%s11049_s3 + $0x818] sm:$0xff] %v4925_v22  ;;  %v4513_v26 = vadd.f32 %v4512_v24, %v10368_v55 }
 0x4d4   :  { %v4514_v27 = vpop.f32.mrf.mxu0 }
 0x4d5   :  { %v4931_v28 = vpop.f32.mrf.mxu1  ;;  %v4930_v39 = vadd.f32 %v4929_v25, %v4513_v26 }
 0x4d6   :  { %v4515_v30 = vpop.f32.mrf.mxu0 }
 0x4d7   :  { %v4932_v31 = vpop.f32.mrf.mxu1  ;;  %5368 = vst [vmem:[%s11049_s3 + $0x840] sm:$0xff] %v4930_v39  ;;  %v4516_v32 = vadd.f32 %v4515_v30, %v10368_v55 }
 0x4d8   :  { %v4517_v33 = vpop.f32.mrf.mxu0 }
 0x4d9   :  { %v4934_v35 = vpop.f32.mrf.mxu1  ;;  %v4933_v36 = vadd.f32 %v4932_v31, %v4516_v32 }
 0x4da   :  { %v4520_v37 = vpop.f32.mrf.mxu0 }
 0x4db   :  { %v4937_v38 = vpop.f32.mrf.mxu1  ;;  %5373 = vst [vmem:[%s11049_s3 + $0x868] sm:$0xff] %v4933_v36  ;;  %v4521_v40 = vadd.f32 %v4520_v37, %v10368_v55 }
 0x4dc   :  { %v4522_v41 = vpop.f32.mrf.mxu0 }
 0x4dd   :  { %v4939_v42 = vpop.f32.mrf.mxu1  ;;  %v4938_v43 = vadd.f32 %v4937_v38, %v4521_v40 }
 0x4de   :  { %v4523_v44 = vpop.f32.mrf.mxu0 }
 0x4df   :  { %v4940_v45 = vpop.f32.mrf.mxu1  ;;  %5378 = vst [vmem:[%s11049_s3 + $0x890] sm:$0xff] %v4938_v43  ;;  %v4524_v46 = vadd.f32 %v4523_v44, %v10368_v55 }
 0x4e0   :  { %v4525_v47 = vpop.f32.mrf.mxu0 }
 0x4e1   :  { %v4942_v48 = vpop.f32.mrf.mxu1  ;;  %v4941_v49 = vadd.f32 %v4940_v45, %v4524_v46 }
 0x4e2   :  { %v4528_v50 = vpop.f32.mrf.mxu0 }
 0x4e3   :  { %v4945_v51 = vpop.f32.mrf.mxu1  ;;  %5383 = vst [vmem:[%s11049_s3 + $0x8b8] sm:$0xff] %v4941_v49  ;;  %v4529_v52 = vadd.f32 %v4528_v50, %v10368_v55 }
 0x4e4   :  { %v4530_v53 = vpop.f32.mrf.mxu0 }
 0x4e5   :  { %v4947_v54 = vpop.f32.mrf.mxu1  ;;  %v4946_v23 = vadd.f32 %v4945_v51, %v4529_v52 }
 0x4e6   :  { %v4531_v56 = vpop.f32.mrf.mxu0 }
 0x4e7   :  { %v4948_v57 = vpop.f32.mrf.mxu1  ;;  %5388 = vst [vmem:[%s11049_s3 + $0x8e0] sm:$0xff] %v4946_v23  ;;  %v4532_v58 = vadd.f32 %v4531_v56, %v10368_v55 }
 0x4e8   :  { %v4533_v59 = vpop.f32.mrf.mxu0 }
 0x4e9   :  { %v4950_v60 = vpop.f32.mrf.mxu1  ;;  %v4949_v63 = vadd.f32 %v4948_v57, %v4532_v58 }
 0x4ea   :  { %v4536_v61 = vpop.f32.mrf.mxu0 }
 0x4eb   :  { %v4953_v62 = vpop.f32.mrf.mxu1  ;;  %5393 = vst [vmem:[%s11049_s3 + $0x908] sm:$0xff] %v4949_v63  ;;  %v4537_v0 = vadd.f32 %v4536_v61, %v10368_v55 }
 0x4ec   :  { %v4538_v1 = vpop.f32.mrf.mxu0 }
 0x4ed   :  { %v4955_v29 = vpop.f32.mrf.mxu1  ;;  %v4954_v2 = vadd.f32 %v4953_v62, %v4537_v0 }
 0x4ee   :  { %v4539_v3 = vpop.f32.mrf.mxu0 }
 0x4ef   :  { %v4956_v4 = vpop.f32.mrf.mxu1  ;;  %5398 = vst [vmem:[%s11049_s3 + $0x930] sm:$0xff] %v4954_v2  ;;  %v4540_v5 = vadd.f32 %v4539_v3, %v10368_v55 }
 0x4f0   :  { %v4541_v6 = vpop.f32.mrf.mxu0 }
 0x4f1   :  { %v4958_v7 = vpop.f32.mrf.mxu1  ;;  %v4957_v8 = vadd.f32 %v4956_v4, %v4540_v5 }
 0x4f2   :  { %v4544_v9 = vpop.f32.mrf.mxu0 }
 0x4f3   :  { %v4961_v34 = vpop.f32.mrf.mxu1  ;;  %5403 = vst [vmem:[%s11049_s3 + $0x958] sm:$0xff] %v4957_v8  ;;  %v4545_v10 = vadd.f32 %v4544_v9, %v10368_v55 }
 0x4f4   :  { %v4546_v11 = vpop.f32.mrf.mxu0 }
 0x4f5   :  { %v4963_v12 = vpop.f32.mrf.mxu1  ;;  %v4962_v13 = vadd.f32 %v4961_v34, %v4545_v10 }
 0x4f6   :  { %v4547_v14 = vpop.f32.mrf.mxu0 }
 0x4f7   :  { %v4964_v15 = vpop.f32.mrf.mxu1  ;;  %5408 = vst [vmem:[%s11049_s3 + $0x980] sm:$0xff] %v4962_v13  ;;  %v4548_v16 = vadd.f32 %v4547_v14, %v10368_v55 }
 0x4f8   :  { %v4549_v17 = vpop.f32.mrf.mxu0 }
 0x4f9   :  { %v4966_v18 = vpop.f32.mrf.mxu1  ;;  %v4965_v19 = vadd.f32 %v4964_v15, %v4548_v16 }
 0x4fa   :  { %v4552_v20 = vpop.f32.mrf.mxu0 }
 0x4fb   :  { %v4969_v21 = vpop.f32.mrf.mxu1  ;;  %5413 = vst [vmem:[%s11049_s3 + $0x9a8] sm:$0xff] %v4965_v19  ;;  %v4553_v22 = vadd.f32 %v4552_v20, %v10368_v55 }
 0x4fc   :  { %v4554_v24 = vpop.f32.mrf.mxu0 }
 0x4fd   :  { %v4971_v25 = vpop.f32.mrf.mxu1  ;;  %v4970_v26 = vadd.f32 %v4969_v21, %v4553_v22 }
 0x4fe   :  { %v4555_v27 = vpop.f32.mrf.mxu0 }
 0x4ff   :  { %v4972_v28 = vpop.f32.mrf.mxu1  ;;  %5418 = vst [vmem:[%s11049_s3 + $0x9d0] sm:$0xff] %v4970_v26  ;;  %v4556_v39 = vadd.f32 %v4555_v27, %v10368_v55 }
 0x500   :  { %v4557_v30 = vpop.f32.mrf.mxu0 }
 0x501   :  { %v4974_v31 = vpop.f32.mrf.mxu1  ;;  %v4973_v32 = vadd.f32 %v4972_v28, %v4556_v39 }
 0x502   :  { %v4560_v33 = vpop.f32.mrf.mxu0 }
 0x503   :  { %v4977_v35 = vpop.f32.mrf.mxu1  ;;  %5423 = vst [vmem:[%s11049_s3 + $0x9f8] sm:$0xff] %v4973_v32  ;;  %v4561_v36 = vadd.f32 %v4560_v33, %v10368_v55 }
 0x504   :  { %v4562_v37 = vpop.f32.mrf.mxu0 }
 0x505   :  { %v4979_v38 = vpop.f32.mrf.mxu1  ;;  %v4978_v40 = vadd.f32 %v4977_v35, %v4561_v36 }
 0x506   :  { %v4563_v41 = vpop.f32.mrf.mxu0 }
 0x507   :  { %v4980_v42 = vpop.f32.mrf.mxu1  ;;  %5428 = vst [vmem:[%s11049_s3 + $0xa20] sm:$0xff] %v4978_v40  ;;  %v4564_v43 = vadd.f32 %v4563_v41, %v10368_v55 }
 0x508   :  { %v4565_v44 = vpop.f32.mrf.mxu0 }
 0x509   :  { %v4982_v45 = vpop.f32.mrf.mxu1  ;;  %v4981_v46 = vadd.f32 %v4980_v42, %v4564_v43 }
 0x50a   :  { %v4568_v47 = vpop.f32.mrf.mxu0 }
 0x50b   :  { %v4985_v48 = vpop.f32.mrf.mxu1  ;;  %5433 = vst [vmem:[%s11049_s3 + $0xa48] sm:$0xff] %v4981_v46  ;;  %v4569_v49 = vadd.f32 %v4568_v47, %v10368_v55 }
 0x50c   :  { %v4570_v50 = vpop.f32.mrf.mxu0 }
 0x50d   :  { %v4987_v51 = vpop.f32.mrf.mxu1  ;;  %v4986_v52 = vadd.f32 %v4985_v48, %v4569_v49 }
 0x50e   :  { %v4571_v53 = vpop.f32.mrf.mxu0 }
 0x50f   :  { %v4988_v54 = vpop.f32.mrf.mxu1  ;;  %5438 = vst [vmem:[%s11049_s3 + $0xa70] sm:$0xff] %v4986_v52  ;;  %v4572_v23 = vadd.f32 %v4571_v53, %v10368_v55 }
 0x510   :  { %v4573_v56 = vpop.f32.mrf.mxu0 }
 0x511   :  { %v4990_v57 = vpop.f32.mrf.mxu1  ;;  %v4989_v58 = vadd.f32 %v4988_v54, %v4572_v23 }
 0x512   :  { %v4576_v59 = vpop.f32.mrf.mxu0 }
 0x513   :  { %v4993_v60 = vpop.f32.mrf.mxu1  ;;  %5443 = vst [vmem:[%s11049_s3 + $0xa98] sm:$0xff] %v4989_v58  ;;  %v4577_v63 = vadd.f32 %v4576_v59, %v10368_v55 }
 0x514   :  { %v4578_v61 = vpop.f32.mrf.mxu0 }
 0x515   :  { %v4995_v62 = vpop.f32.mrf.mxu1  ;;  %v4994_v0 = vadd.f32 %v4993_v60, %v4577_v63 }
 0x516   :  { %v4579_v1 = vpop.f32.mrf.mxu0 }
 0x517   :  { %v4996_v29 = vpop.f32.mrf.mxu1  ;;  %5448 = vst [vmem:[%s11049_s3 + $0xac0] sm:$0xff] %v4994_v0  ;;  %v4580_v2 = vadd.f32 %v4579_v1, %v10368_v55 }
 0x518   :  { %v4581_v3 = vpop.f32.mrf.mxu0 }
 0x519   :  { %v4998_v4 = vpop.f32.mrf.mxu1  ;;  %v4997_v5 = vadd.f32 %v4996_v29, %v4580_v2 }
 0x51a   :  { %v4584_v6 = vpop.f32.mrf.mxu0 }
 0x51b   :  { %v5001_v7 = vpop.f32.mrf.mxu1  ;;  %5453 = vst [vmem:[%s11049_s3 + $0xae8] sm:$0xff] %v4997_v5  ;;  %v4585_v8 = vadd.f32 %v4584_v6, %v10368_v55 }
 0x51c   :  { %v4586_v9 = vpop.f32.mrf.mxu0 }
 0x51d   :  { %v5003_v34 = vpop.f32.mrf.mxu1  ;;  %v5002_v10 = vadd.f32 %v5001_v7, %v4585_v8 }
 0x51e   :  { %v4587_v11 = vpop.f32.mrf.mxu0 }
 0x51f   :  { %v5004_v12 = vpop.f32.mrf.mxu1  ;;  %5458 = vst [vmem:[%s11049_s3 + $0xb10] sm:$0xff] %v5002_v10  ;;  %v4588_v13 = vadd.f32 %v4587_v11, %v10368_v55 }
 0x520   :  { %v4589_v14 = vpop.f32.mrf.mxu0 }
 0x521   :  { %v5006_v15 = vpop.f32.mrf.mxu1  ;;  %v5005_v16 = vadd.f32 %v5004_v12, %v4588_v13 }
 0x522   :  { %v4592_v17 = vpop.f32.mrf.mxu0 }
 0x523   :  { %v5009_v18 = vpop.f32.mrf.mxu1  ;;  %5463 = vst [vmem:[%s11049_s3 + $0xb38] sm:$0xff] %v5005_v16  ;;  %v4593_v19 = vadd.f32 %v4592_v17, %v10368_v55 }
 0x524   :  { %v4594_v20 = vpop.f32.mrf.mxu0 }
 0x525   :  { %v5011_v21 = vpop.f32.mrf.mxu1  ;;  %v5010_v22 = vadd.f32 %v5009_v18, %v4593_v19 }
 0x526   :  { %v4595_v24 = vpop.f32.mrf.mxu0 }
 0x527   :  { %v5012_v25 = vpop.f32.mrf.mxu1  ;;  %5468 = vst [vmem:[%s11049_s3 + $0xb60] sm:$0xff] %v5010_v22  ;;  %v4596_v26 = vadd.f32 %v4595_v24, %v10368_v55 }
 0x528   :  { %v4597_v27 = vpop.f32.mrf.mxu0 }
 0x529   :  { %v5014_v28 = vpop.f32.mrf.mxu1  ;;  %v5013_v39 = vadd.f32 %v5012_v25, %v4596_v26 }
 0x52a   :  { %v4600_v30 = vpop.f32.mrf.mxu0 }
 0x52b   :  { %v5017_v31 = vpop.f32.mrf.mxu1  ;;  %5473 = vst [vmem:[%s11049_s3 + $0xb88] sm:$0xff] %v5013_v39  ;;  %v4601_v32 = vadd.f32 %v4600_v30, %v10368_v55 }
 0x52c   :  { %v4602_v33 = vpop.f32.mrf.mxu0 }
 0x52d   :  { %v5019_v35 = vpop.f32.mrf.mxu1  ;;  %v5018_v36 = vadd.f32 %v5017_v31, %v4601_v32 }
 0x52e   :  { %v4603_v37 = vpop.f32.mrf.mxu0 }
 0x52f   :  { %v5020_v38 = vpop.f32.mrf.mxu1  ;;  %5478 = vst [vmem:[%s11049_s3 + $0xbb0] sm:$0xff] %v5018_v36  ;;  %v4604_v40 = vadd.f32 %v4603_v37, %v10368_v55 }
 0x530   :  { %v4605_v41 = vpop.f32.mrf.mxu0 }
 0x531   :  { %v5022_v42 = vpop.f32.mrf.mxu1  ;;  %v5021_v43 = vadd.f32 %v5020_v38, %v4604_v40 }
 0x532   :  { %v4608_v44 = vpop.f32.mrf.mxu0 }
 0x533   :  { %v5025_v45 = vpop.f32.mrf.mxu1  ;;  %5483 = vst [vmem:[%s11049_s3 + $0xbd8] sm:$0xff] %v5021_v43  ;;  %v4609_v46 = vadd.f32 %v4608_v44, %v10368_v55 }
 0x534   :  { %v4610_v47 = vpop.f32.mrf.mxu0 }
 0x535   :  { %v5027_v48 = vpop.f32.mrf.mxu1  ;;  %v5026_v49 = vadd.f32 %v5025_v45, %v4609_v46 }
 0x536   :  { %v4611_v50 = vpop.f32.mrf.mxu0 }
 0x537   :  { %v5028_v51 = vpop.f32.mrf.mxu1  ;;  %5488 = vst [vmem:[%s11049_s3 + $0xc00] sm:$0xff] %v5026_v49  ;;  %v4612_v52 = vadd.f32 %v4611_v50, %v10368_v55 }
 0x538   :  { %v4613_v53 = vpop.f32.mrf.mxu0 }
 0x539   :  { %v5030_v54 = vpop.f32.mrf.mxu1  ;;  %v5029_v23 = vadd.f32 %v5028_v51, %v4612_v52 }
 0x53a   :  { %v4616_v56 = vpop.f32.mrf.mxu0 }
 0x53b   :  { %v5033_v57 = vpop.f32.mrf.mxu1  ;;  %5493 = vst [vmem:[%s11049_s3 + $0xc28] sm:$0xff] %v5029_v23  ;;  %v4617_v58 = vadd.f32 %v4616_v56, %v10368_v55 }
 0x53c   :  { %v4618_v59 = vpop.f32.mrf.mxu0 }
 0x53d   :  { %v5035_v60 = vpop.f32.mrf.mxu1  ;;  %v5034_v63 = vadd.f32 %v5033_v57, %v4617_v58 }
 0x53e   :  { %v4619_v61 = vpop.f32.mrf.mxu0 }
 0x53f   :  { %v5036_v62 = vpop.f32.mrf.mxu1  ;;  %5498 = vst [vmem:[%s11049_s3 + $0xc50] sm:$0xff] %v5034_v63  ;;  %v4620_v0 = vadd.f32 %v4619_v61, %v10368_v55 }
 0x540   :  { %v4621_v1 = vpop.f32.mrf.mxu0 }
 0x541   :  { %v5038_v29 = vpop.f32.mrf.mxu1  ;;  %v5037_v2 = vadd.f32 %v5036_v62, %v4620_v0 }
 0x542   :  { %v4624_v3 = vpop.f32.mrf.mxu0 }
 0x543   :  { %v5041_v4 = vpop.f32.mrf.mxu1  ;;  %5503 = vst [vmem:[%s11049_s3 + $0xc78] sm:$0xff] %v5037_v2  ;;  %v4625_v5 = vadd.f32 %v4624_v3, %v10368_v55 }
 0x544   :  { %v4626_v6 = vpop.f32.mrf.mxu0 }
 0x545   :  { %v5043_v7 = vpop.f32.mrf.mxu1  ;;  %v5042_v8 = vadd.f32 %v5041_v4, %v4625_v5 }
 0x546   :  { %v4627_v9 = vpop.f32.mrf.mxu0 }
 0x547   :  { %v5044_v34 = vpop.f32.mrf.mxu1  ;;  %5508 = vst [vmem:[%s11049_s3 + $0xca0] sm:$0xff] %v5042_v8  ;;  %v4628_v10 = vadd.f32 %v4627_v9, %v10368_v55 }
 0x548   :  { %v4629_v11 = vpop.f32.mrf.mxu0 }
 0x549   :  { %v5046_v12 = vpop.f32.mrf.mxu1  ;;  %v5045_v13 = vadd.f32 %v5044_v34, %v4628_v10 }
 0x54a   :  { %v4632_v14 = vpop.f32.mrf.mxu0 }
 0x54b   :  { %v5049_v15 = vpop.f32.mrf.mxu1  ;;  %5513 = vst [vmem:[%s11049_s3 + $0xcc8] sm:$0xff] %v5045_v13  ;;  %v4633_v16 = vadd.f32 %v4632_v14, %v10368_v55 }
 0x54c   :  { %v4634_v17 = vpop.f32.mrf.mxu0 }
 0x54d   :  { %v5051_v18 = vpop.f32.mrf.mxu1  ;;  %v5050_v19 = vadd.f32 %v5049_v15, %v4633_v16 }
 0x54e   :  { %v4635_v20 = vpop.f32.mrf.mxu0 }
 0x54f   :  { %v5052_v21 = vpop.f32.mrf.mxu1  ;;  %5518 = vst [vmem:[%s11049_s3 + $0xcf0] sm:$0xff] %v5050_v19  ;;  %v4636_v22 = vadd.f32 %v4635_v20, %v10368_v55 }
 0x550   :  { %v4637_v24 = vpop.f32.mrf.mxu0 }
 0x551   :  { %v5054_v25 = vpop.f32.mrf.mxu1  ;;  %v5053_v26 = vadd.f32 %v5052_v21, %v4636_v22 }
 0x552   :  { %v4640_v27 = vpop.f32.mrf.mxu0 }
 0x553   :  { %v5057_v28 = vpop.f32.mrf.mxu1  ;;  %5523 = vst [vmem:[%s11049_s3 + $0xd18] sm:$0xff] %v5053_v26  ;;  %v4641_v39 = vadd.f32 %v4640_v27, %v10368_v55 }
 0x554   :  { %v4642_v30 = vpop.f32.mrf.mxu0 }
 0x555   :  { %v5059_v31 = vpop.f32.mrf.mxu1  ;;  %v5058_v32 = vadd.f32 %v5057_v28, %v4641_v39 }
 0x556   :  { %v4643_v33 = vpop.f32.mrf.mxu0 }
 0x557   :  { %v5060_v35 = vpop.f32.mrf.mxu1  ;;  %5528 = vst [vmem:[%s11049_s3 + $0xd40] sm:$0xff] %v5058_v32  ;;  %v4644_v36 = vadd.f32 %v4643_v33, %v10368_v55 }
 0x558   :  { %v4645_v37 = vpop.f32.mrf.mxu0 }
 0x559   :  { %v5062_v38 = vpop.f32.mrf.mxu1  ;;  %v5061_v40 = vadd.f32 %v5060_v35, %v4644_v36 }
 0x55a   :  { %v4648_v41 = vpop.f32.mrf.mxu0 }
 0x55b   :  { %v5065_v42 = vpop.f32.mrf.mxu1  ;;  %5533 = vst [vmem:[%s11049_s3 + $0xd68] sm:$0xff] %v5061_v40  ;;  %v4649_v43 = vadd.f32 %v4648_v41, %v10368_v55 }
 0x55c   :  { %v4650_v44 = vpop.f32.mrf.mxu0 }
 0x55d   :  { %v5067_v45 = vpop.f32.mrf.mxu1  ;;  %v5066_v46 = vadd.f32 %v5065_v42, %v4649_v43 }
 0x55e   :  { %v4651_v47 = vpop.f32.mrf.mxu0 }
 0x55f   :  { %v5068_v48 = vpop.f32.mrf.mxu1  ;;  %5538 = vst [vmem:[%s11049_s3 + $0xd90] sm:$0xff] %v5066_v46  ;;  %v4652_v49 = vadd.f32 %v4651_v47, %v10368_v55 }
 0x560   :  { %v4653_v50 = vpop.f32.mrf.mxu0 }
 0x561   :  { %v5070_v51 = vpop.f32.mrf.mxu1  ;;  %v5069_v52 = vadd.f32 %v5068_v48, %v4652_v49 }
 0x562   :  { %v4656_v53 = vpop.f32.mrf.mxu0 }
 0x563   :  { %v5073_v54 = vpop.f32.mrf.mxu1  ;;  %5543 = vst [vmem:[%s11049_s3 + $0xdb8] sm:$0xff] %v5069_v52  ;;  %v4657_v23 = vadd.f32 %v4656_v53, %v10368_v55 }
 0x564   :  { %v4658_v56 = vpop.f32.mrf.mxu0 }
 0x565   :  { %v5075_v57 = vpop.f32.mrf.mxu1  ;;  %v5074_v58 = vadd.f32 %v5073_v54, %v4657_v23 }
 0x566   :  { %v4659_v59 = vpop.f32.mrf.mxu0 }
 0x567   :  { %v5076_v60 = vpop.f32.mrf.mxu1  ;;  %5548 = vst [vmem:[%s11049_s3 + $0xde0] sm:$0xff] %v5074_v58  ;;  %v4660_v63 = vadd.f32 %v4659_v59, %v10368_v55 }
 0x568   :  { %v4661_v61 = vpop.f32.mrf.mxu0 }
 0x569   :  { %v5078_v62 = vpop.f32.mrf.mxu1  ;;  %v5077_v0 = vadd.f32 %v5076_v60, %v4660_v63 }
 0x56a   :  { %v4664_v1 = vpop.f32.mrf.mxu0 }
 0x56b   :  { %v5081_v29 = vpop.f32.mrf.mxu1  ;;  %5553 = vst [vmem:[%s11049_s3 + $0xe08] sm:$0xff] %v5077_v0  ;;  %v4665_v2 = vadd.f32 %v4664_v1, %v10368_v55 }
 0x56c   :  { %v4666_v3 = vpop.f32.mrf.mxu0 }
 0x56d   :  { %v5083_v4 = vpop.f32.mrf.mxu1  ;;  %v5082_v5 = vadd.f32 %v5081_v29, %v4665_v2 }
 0x56e   :  { %v4667_v6 = vpop.f32.mrf.mxu0 }
 0x56f   :  { %v5084_v7 = vpop.f32.mrf.mxu1  ;;  %5558 = vst [vmem:[%s11049_s3 + $0xe30] sm:$0xff] %v5082_v5  ;;  %v4668_v8 = vadd.f32 %v4667_v6, %v10368_v55 }
 0x570   :  { %v4669_v9 = vpop.f32.mrf.mxu0 }
 0x571   :  { %v5086_v34 = vpop.f32.mrf.mxu1  ;;  %v5085_v10 = vadd.f32 %v5084_v7, %v4668_v8 }
 0x572   :  { %v4672_v11 = vpop.f32.mrf.mxu0 }
 0x573   :  { %v5089_v12 = vpop.f32.mrf.mxu1  ;;  %5563 = vst [vmem:[%s11049_s3 + $0xe58] sm:$0xff] %v5085_v10  ;;  %v4673_v13 = vadd.f32 %v4672_v11, %v10368_v55 }
 0x574   :  { %v4674_v14 = vpop.f32.mrf.mxu0 }
 0x575   :  { %v5091_v15 = vpop.f32.mrf.mxu1  ;;  %v5090_v16 = vadd.f32 %v5089_v12, %v4673_v13 }
 0x576   :  { %v4675_v17 = vpop.f32.mrf.mxu0 }
 0x577   :  { %v5092_v18 = vpop.f32.mrf.mxu1  ;;  %5568 = vst [vmem:[%s11049_s3 + $0xe80] sm:$0xff] %v5090_v16  ;;  %v4676_v19 = vadd.f32 %v4675_v17, %v10368_v55 }
 0x578   :  { %v4677_v20 = vpop.f32.mrf.mxu0 }
 0x579   :  { %v5094_v21 = vpop.f32.mrf.mxu1  ;;  %v5093_v22 = vadd.f32 %v5092_v18, %v4676_v19 }
 0x57a   :  { %v4680_v24 = vpop.f32.mrf.mxu0 }
 0x57b   :  { %v5097_v25 = vpop.f32.mrf.mxu1  ;;  %5573 = vst [vmem:[%s11049_s3 + $0xea8] sm:$0xff] %v5093_v22  ;;  %v4681_v26 = vadd.f32 %v4680_v24, %v10368_v55 }
 0x57c   :  { %v4682_v27 = vpop.f32.mrf.mxu0 }
 0x57d   :  { %v5099_v28 = vpop.f32.mrf.mxu1  ;;  %v5098_v39 = vadd.f32 %v5097_v25, %v4681_v26 }
 0x57e   :  { %v4683_v30 = vpop.f32.mrf.mxu0 }
 0x57f   :  { %v5100_v31 = vpop.f32.mrf.mxu1  ;;  %5578 = vst [vmem:[%s11049_s3 + $0xed0] sm:$0xff] %v5098_v39  ;;  %v4684_v32 = vadd.f32 %v4683_v30, %v10368_v55 }
 0x580   :  { %v4685_v33 = vpop.f32.mrf.mxu0 }
 0x581   :  { %v5102_v35 = vpop.f32.mrf.mxu1  ;;  %v5101_v36 = vadd.f32 %v5100_v31, %v4684_v32 }
 0x583   :  { %5583 = vst [vmem:[%s11049_s3 + $0xef8] sm:$0xff] %v5101_v36 }

</bundles_post_ra>
